<compile_context>
chip_gen: v7x
topology: tpu7x:2x2x1
jax: 0.10.0
libtpu: 0.0.40
codegen_flags: <defaults>
</compile_context>

<pallas_src>
import functools

import jax
import jax.numpy as jnp
from jax.experimental import pallas as pl
from jax.experimental.pallas import tpu as pltpu


# ----------------------------- Pallas kernel --------------------------------

def _transformer_block_kernel(
    x_ref,                       # (1, C1, S) f32  input, torch flatten(2) layout
    cw_ref, cb_ref,              # (C2, C1) f32 BN-folded conv weight, (C2, 1) f32 bias
    lw_ref, lb_ref,              # (C2, C2) bf16 positional linear, (C2, 1) f32 bias
    wq_ref, wk_ref, wv_ref,      # (L, C2, C2) bf16  q/k/v Linear folded with MHA in_proj
    biq_ref, bik_ref, biv_ref,   # (L, C2, 1) f32    MHA in_proj bias
    wo_ref, bo_ref,              # (L, C2, C2) bf16, (L, C2, 1) f32  MHA out_proj
    w1_ref, w2_ref,              # (L, C2, C2) bf16  fc1 / fc2 (bias=False)
    o_ref,                       # (1, C2, S) f32
    attn_ref,                    # (C2, S) f32 VMEM scratch (head outputs, sublane-stacked)
    *, num_heads, num_layers, has_conv):

  f32, bf16 = jnp.float32, jnp.bfloat16

  def silu(y):
    # y * sigmoid(y).  Clamp the exponent so exp() never overflows to inf;
    # the reciprocal goes to the EUP slot.
    z = jnp.exp(jnp.minimum(-y, 80.0))
    return y * pl.reciprocal(1.0 + z, approx=True)

  x = x_ref[0]                                          # (C1, S) f32

  if has_conv:
    c1 = x.shape[0]
    cw = cw_ref[...]                                    # (C2, C1), BN folded
    if c1 <= 8:
      # K = C1 is tiny: 1x1 conv as C1 broadcast FMAs on the VPU.
      acc = cw[:, 0:1] * x[0:1, :]
      for i in range(1, c1):
        acc = acc + cw[:, i:i + 1] * x[i:i + 1, :]
    else:
      acc = jnp.dot(cw, x, preferred_element_type=f32)
    y = silu(acc + cb_ref[...])                         # (C2, S) f32
  else:
    y = x

  # Learned positional encoding: p = y + Linear(y)   (Linear has bias)
  e = jnp.dot(lw_ref[...], y.astype(bf16),
              preferred_element_type=f32) + lb_ref[...]
  p = y + e                                             # (C2, S) f32

  c2 = p.shape[0]
  hd = c2 // num_heads
  scale = 1.0 / float(hd) ** 0.5

  for l in range(num_layers):                           # static unroll
    pb = p.astype(bf16)
    # q/k/v: per-layer Linear (bias=False) folded offline with MHA in_proj;
    # only the in_proj bias remains.
    q = jnp.dot(wq_ref[l], pb, preferred_element_type=f32) + biq_ref[l]
    k = jnp.dot(wk_ref[l], pb, preferred_element_type=f32) + bik_ref[l]
    v = jnp.dot(wv_ref[l], pb, preferred_element_type=f32) + biv_ref[l]

    # Per-head scaled dot-product attention, fully feature-major.
    # hd == 8 -> each head slice is exactly one f32 sublane tile.
    for h in range(num_heads):
      sl = slice(h * hd, (h + 1) * hd)
      qh = (q[sl, :] * scale).astype(bf16)              # (hd, S)
      kh = k[sl, :].astype(bf16)
      vh = v[sl, :].astype(bf16)
      # st[j, i] = <k_j, q_i>: keys on sublanes, queries on lanes.
      st = jax.lax.dot_general(kh, qh, (((0,), (0,)), ((), ())),
                               preferred_element_type=f32)        # (S, S)
      st = st - jnp.max(st, axis=0, keepdims=True)
      et = jnp.exp(st)
      at = et * pl.reciprocal(jnp.sum(et, axis=0, keepdims=True), approx=True)
      # out[d, i] = sum_j vh[d, j] * at[j, i]  -> (hd, S); K = S dense matmul.
      attn_ref[sl, :] = jnp.dot(vh, at.astype(bf16),
                                preferred_element_type=f32)

    # MHA out_proj (with bias) + residual
    mha = jnp.dot(wo_ref[l], attn_ref[...].astype(bf16),
                  preferred_element_type=f32) + bo_ref[l]
    xr = mha + p
    # fc2(fc1(x)) + x   (both bias=False)
    h1 = jnp.dot(w1_ref[l], xr.astype(bf16), preferred_element_type=f32)
    h2 = jnp.dot(w2_ref[l], h1.astype(bf16), preferred_element_type=f32)
    p = h2 + xr

  o_ref[0] = p.astype(o_ref.dtype)


# ------------------------------ wrapper --------------------------------------

def transformer_block_pallas(x_bcs, params, *, num_heads, num_layers, has_conv):
  """x_bcs: (B, C1, S) feature-major input.  Returns (B, C2, S) f32."""
  B, C1, S = x_bcs.shape
  C2 = params["lin_w"].shape[-1]

  kernel = functools.partial(
      _transformer_block_kernel,
      num_heads=num_heads, num_layers=num_layers, has_conv=has_conv)

  weights = [
      params["conv_w"], params["conv_b"],
      params["lin_w"], params["lin_b"],
      params["wq"], params["wk"], params["wv"],
      params["biq"], params["bik"], params["biv"],
      params["wo"], params["bo"],
      params["w1"], params["w2"],
  ]

  def rep_spec(a):  # weight replicated across the batch grid
    nd = a.ndim
    return pl.BlockSpec(a.shape, lambda b, _nd=nd: (0,) * _nd)

  return pl.pallas_call(
      kernel,
      out_shape=jax.ShapeDtypeStruct((B, C2, S), jnp.float32),
      grid=(B,),
      in_specs=[pl.BlockSpec((1, C1, S), lambda b: (b, 0, 0))]
               + [rep_spec(w) for w in weights],
      out_specs=pl.BlockSpec((1, C2, S), lambda b: (b, 0, 0)),
      scratch_shapes=[pltpu.VMEM((C2, S), jnp.float32)],
      compiler_params=pltpu.CompilerParams(
          dimension_semantics=("parallel",)),
  )(x_bcs, *weights)


def transformer_block_forward(x_nchw, params, *, num_heads, num_layers, c2):
  B, C1, H, W = x_nchw.shape
  S = H * W
  has_conv = (C1 != c2)
  # torch's x.flatten(2): (B, C1, H*W) -- already feature-major, no transpose.
  x_bcs = x_nchw.reshape(B, C1, S)
  out_bcs = transformer_block_pallas(
      x_bcs, params, num_heads=num_heads, num_layers=num_layers,
      has_conv=has_conv)
  # (B, C2, S) -> (B, C2, H, W)   (matches the reference reshape back)
  return out_bcs.reshape(B, c2, H, W)


# ------------------------------ init ------------------------------------------

def init_transformer_block_params(key, c1, c2, num_heads, num_layers):
  """Random weights in PyTorch (out, in) convention; BN + q/k/v folds offline."""
  assert c2 % num_heads == 0
  keys = iter(jax.random.split(key, 7 + 13 * num_layers))

  def mat(k, cout, cin):
    return jax.random.normal(k, (cout, cin), jnp.float32) / jnp.sqrt(cin)

  def vec(k):
    return 0.1 * jax.random.normal(k, (c2, 1), jnp.float32)

  params = {}
  # Conv(c1, c2, k=1, bias=False) + BatchNorm2d(c2); BN folded (inference).
  w = mat(next(keys), c2, c1)
  gamma = 1.0 + 0.1 * jax.random.normal(next(keys), (c2,), jnp.float32)
  beta = 0.1 * jax.random.normal(next(keys), (c2,), jnp.float32)
  r_mean = 0.1 * jax.random.normal(next(keys), (c2,), jnp.float32)
  r_var = jnp.abs(jax.random.normal(next(keys), (c2,), jnp.float32)) + 0.5
  scale = gamma / jnp.sqrt(r_var + 1e-5)
  params["conv_w"] = (w * scale[:, None]).astype(jnp.float32)        # (c2, c1)
  params["conv_b"] = (beta - r_mean * scale).reshape(c2, 1)

  # Positional Linear(c2, c2) (bias=True)
  params["lin_w"] = mat(next(keys), c2, c2).astype(jnp.bfloat16)
  params["lin_b"] = vec(next(keys))

  acc = {n: [] for n in
         ["wq", "wk", "wv", "biq", "bik", "biv", "wo", "bo", "w1", "w2"]}
  for _ in range(num_layers):
    Wq = mat(next(keys), c2, c2)
    Wk = mat(next(keys), c2, c2)
    Wv = mat(next(keys), c2, c2)
    Wiq = mat(next(keys), c2, c2)
    Wik = mat(next(keys), c2, c2)
    Wiv = mat(next(keys), c2, c2)
    # Offline fold of Linear(q/k/v, bias=False) followed by MHA in_proj:
    #   x @ Wq^T @ Wiq^T + biq  ==  (Wiq @ Wq) @ x_fm + biq   (fold in f32).
    acc["wq"].append((Wiq @ Wq).astype(jnp.bfloat16))
    acc["wk"].append((Wik @ Wk).astype(jnp.bfloat16))
    acc["wv"].append((Wiv @ Wv).astype(jnp.bfloat16))
    acc["biq"].append(vec(next(keys)))
    acc["bik"].append(vec(next(keys)))
    acc["biv"].append(vec(next(keys)))
    acc["wo"].append(mat(next(keys), c2, c2).astype(jnp.bfloat16))
    acc["bo"].append(vec(next(keys)))
    acc["w1"].append(mat(next(keys), c2, c2).astype(jnp.bfloat16))
    acc["w2"].append(mat(next(keys), c2, c2).astype(jnp.bfloat16))
  for n, v in acc.items():
    params[n] = jnp.stack(v)         # (L, c2, c2) or (L, c2, 1)
  return params


# ------------------------------- main ----------------------------------------

if __name__ == "__main__":
  # TransformerBlock(c1=4, c2=32, num_heads=4, num_layers=2) on a
  # (2, 4, 16, 16) NCHW input  ->  S = 256 tokens, 32 channels, head_dim = 8.
  c1, c2, num_heads, num_layers = 4, 32, 4, 2
  B, H, W = 2, 16, 16

  key = jax.random.PRNGKey(0)
  kx, kp = jax.random.split(key)
  x = jax.random.normal(kx, (B, c1, H, W), jnp.float32)

  params = init_transformer_block_params(kp, c1, c2, num_heads, num_layers)

  fwd = jax.jit(functools.partial(
      transformer_block_forward,
      num_heads=num_heads, num_layers=num_layers, c2=c2))
  out = jax.block_until_ready(fwd(x, params))

  assert out.shape == (B, c2, H, W), out.shape
  assert bool(jnp.all(jnp.isfinite(out)))
  print("KERNEL_OK")
</pallas_src>

<mosaic_0001>
module attributes {stable_mosaic.version = 11 : i64} {
  func.func @_transformer_block_kernel(%arg0: i32, %arg1: memref<1x4x256xf32, #tpu.memory_space<vmem>>, %arg2: memref<32x4xf32, #tpu.memory_space<vmem>>, %arg3: memref<32x1xf32, #tpu.memory_space<vmem>>, %arg4: memref<32x32xbf16, #tpu.memory_space<vmem>>, %arg5: memref<32x1xf32, #tpu.memory_space<vmem>>, %arg6: memref<2x32x32xbf16, #tpu.memory_space<vmem>>, %arg7: memref<2x32x32xbf16, #tpu.memory_space<vmem>>, %arg8: memref<2x32x32xbf16, #tpu.memory_space<vmem>>, %arg9: memref<2x32x1xf32, #tpu.memory_space<vmem>>, %arg10: memref<2x32x1xf32, #tpu.memory_space<vmem>>, %arg11: memref<2x32x1xf32, #tpu.memory_space<vmem>>, %arg12: memref<2x32x32xbf16, #tpu.memory_space<vmem>>, %arg13: memref<2x32x1xf32, #tpu.memory_space<vmem>>, %arg14: memref<2x32x32xbf16, #tpu.memory_space<vmem>>, %arg15: memref<2x32x32xbf16, #tpu.memory_space<vmem>>, %arg16: memref<1x32x256xf32, #tpu.memory_space<vmem>>, %arg17: memref<32x256xf32, #tpu.memory_space<vmem>>) attributes {dimension_semantics = [#tpu.dimension_semantics<parallel>], iteration_bounds = array<i64: 2>, scalar_prefetch = 0 : i64, scratch_operands = 1 : i64, tpu.core_type = #tpu.core_type<tc>, window_params = [{transform_indices = @transform_0, window_bounds = array<i64: 1, 4, 256>}, {pipeline_mode = #tpu.pipeline_mode<synchronous>, transform_indices = @transform_1, window_bounds = array<i64: 32, 4>}, {pipeline_mode = #tpu.pipeline_mode<synchronous>, transform_indices = @transform_2, window_bounds = array<i64: 32, 1>}, {pipeline_mode = #tpu.pipeline_mode<synchronous>, transform_indices = @transform_3, window_bounds = array<i64: 32, 32>}, {pipeline_mode = #tpu.pipeline_mode<synchronous>, transform_indices = @transform_4, window_bounds = array<i64: 32, 1>}, {pipeline_mode = #tpu.pipeline_mode<synchronous>, transform_indices = @transform_5, window_bounds = array<i64: 2, 32, 32>}, {pipeline_mode = #tpu.pipeline_mode<synchronous>, transform_indices = @transform_6, window_bounds = array<i64: 2, 32, 32>}, {pipeline_mode = #tpu.pipeline_mode<synchronous>, transform_indices = @transform_7, window_bounds = array<i64: 2, 32, 32>}, {pipeline_mode = #tpu.pipeline_mode<synchronous>, transform_indices = @transform_8, window_bounds = array<i64: 2, 32, 1>}, {pipeline_mode = #tpu.pipeline_mode<synchronous>, transform_indices = @transform_9, window_bounds = array<i64: 2, 32, 1>}, {pipeline_mode = #tpu.pipeline_mode<synchronous>, transform_indices = @transform_10, window_bounds = array<i64: 2, 32, 1>}, {pipeline_mode = #tpu.pipeline_mode<synchronous>, transform_indices = @transform_11, window_bounds = array<i64: 2, 32, 32>}, {pipeline_mode = #tpu.pipeline_mode<synchronous>, transform_indices = @transform_12, window_bounds = array<i64: 2, 32, 1>}, {pipeline_mode = #tpu.pipeline_mode<synchronous>, transform_indices = @transform_13, window_bounds = array<i64: 2, 32, 32>}, {pipeline_mode = #tpu.pipeline_mode<synchronous>, transform_indices = @transform_14, window_bounds = array<i64: 2, 32, 32>}, {transform_indices = @transform_15, window_bounds = array<i64: 1, 32, 256>}]} {
    %c0 = arith.constant 0 : index
    %c0_0 = arith.constant 0 : index
    %c0_1 = arith.constant 0 : index
    %0 = vector.load %arg1[%c0, %c0_0, %c0_1] : memref<1x4x256xf32, #tpu.memory_space<vmem>>, vector<1x4x256xf32>
    %1 = vector.shape_cast %0 : vector<1x4x256xf32> to vector<4x256xf32>
    %c0_2 = arith.constant 0 : index
    %c0_3 = arith.constant 0 : index
    %2 = vector.load %arg2[%c0_2, %c0_3] : memref<32x4xf32, #tpu.memory_space<vmem>>, vector<32x4xf32>
    %3 = vector.extract_strided_slice %2 {offsets = [0, 0], sizes = [32, 1], strides = [1, 1]} : vector<32x4xf32> to vector<32x1xf32>
    %4 = vector.extract_strided_slice %1 {offsets = [0, 0], sizes = [1, 256], strides = [1, 1]} : vector<4x256xf32> to vector<1x256xf32>
    %5 = vector.broadcast %3 : vector<32x1xf32> to vector<32x256xf32>
    %6 = vector.broadcast %4 : vector<1x256xf32> to vector<32x256xf32>
    %7 = arith.mulf %5, %6 : vector<32x256xf32>
    %8 = vector.extract_strided_slice %2 {offsets = [0, 1], sizes = [32, 1], strides = [1, 1]} : vector<32x4xf32> to vector<32x1xf32>
    %9 = vector.extract_strided_slice %1 {offsets = [1, 0], sizes = [1, 256], strides = [1, 1]} : vector<4x256xf32> to vector<1x256xf32>
    %10 = vector.broadcast %8 : vector<32x1xf32> to vector<32x256xf32>
    %11 = vector.broadcast %9 : vector<1x256xf32> to vector<32x256xf32>
    %12 = arith.mulf %10, %11 : vector<32x256xf32>
    %13 = arith.addf %7, %12 : vector<32x256xf32>
    %14 = vector.extract_strided_slice %2 {offsets = [0, 2], sizes = [32, 1], strides = [1, 1]} : vector<32x4xf32> to vector<32x1xf32>
    %15 = vector.extract_strided_slice %1 {offsets = [2, 0], sizes = [1, 256], strides = [1, 1]} : vector<4x256xf32> to vector<1x256xf32>
    %16 = vector.broadcast %14 : vector<32x1xf32> to vector<32x256xf32>
    %17 = vector.broadcast %15 : vector<1x256xf32> to vector<32x256xf32>
    %18 = arith.mulf %16, %17 : vector<32x256xf32>
    %19 = arith.addf %13, %18 : vector<32x256xf32>
    %20 = vector.extract_strided_slice %2 {offsets = [0, 3], sizes = [32, 1], strides = [1, 1]} : vector<32x4xf32> to vector<32x1xf32>
    %21 = vector.extract_strided_slice %1 {offsets = [3, 0], sizes = [1, 256], strides = [1, 1]} : vector<4x256xf32> to vector<1x256xf32>
    %22 = vector.broadcast %20 : vector<32x1xf32> to vector<32x256xf32>
    %23 = vector.broadcast %21 : vector<1x256xf32> to vector<32x256xf32>
    %24 = arith.mulf %22, %23 : vector<32x256xf32>
    %25 = arith.addf %19, %24 : vector<32x256xf32>
    %c0_4 = arith.constant 0 : index
    %c0_5 = arith.constant 0 : index
    %26 = vector.load %arg3[%c0_4, %c0_5] : memref<32x1xf32, #tpu.memory_space<vmem>>, vector<32x1xf32>
    %27 = vector.broadcast %26 : vector<32x1xf32> to vector<32x256xf32>
    %28 = arith.addf %25, %27 : vector<32x256xf32>
    %cst = arith.constant 0.000000e+00 : f32
    %29 = vector.broadcast %cst : f32 to vector<32x256xf32>
    %30 = arith.subf %29, %28 : vector<32x256xf32>
    %cst_6 = arith.constant 8.000000e+01 : f32
    %31 = vector.broadcast %cst_6 : f32 to vector<32x256xf32>
    %32 = arith.minimumf %30, %31 : vector<32x256xf32>
    %33 = math.exp %32 : vector<32x256xf32>
    %cst_7 = arith.constant 1.000000e+00 : f32
    %34 = vector.broadcast %cst_7 : f32 to vector<32x256xf32>
    %35 = arith.addf %34, %33 : vector<32x256xf32>
    %36 = tpu.reciprocal %35 {approx = true} : vector<32x256xf32> -> vector<32x256xf32>
    %37 = arith.mulf %28, %36 : vector<32x256xf32>
    %c0_8 = arith.constant 0 : index
    %c0_9 = arith.constant 0 : index
    %38 = vector.load %arg4[%c0_8, %c0_9] : memref<32x32xbf16, #tpu.memory_space<vmem>>, vector<32x32xbf16>
    %39 = arith.truncf %37 : vector<32x256xf32> to vector<32x256xbf16>
    %cst_10 = arith.constant dense<0.000000e+00> : vector<32x256xf32>
    %40 = tpu.matmul %38, %39, %cst_10 {dimension_numbers = #tpu.dot_dimension_numbers<[1], [0], [0], [1], [0, 0, 1, 1], [], []>} : vector<32x32xbf16>, vector<32x256xbf16>, vector<32x256xf32> -> vector<32x256xf32>
    %c0_11 = arith.constant 0 : index
    %c0_12 = arith.constant 0 : index
    %41 = vector.load %arg5[%c0_11, %c0_12] : memref<32x1xf32, #tpu.memory_space<vmem>>, vector<32x1xf32>
    %42 = vector.broadcast %41 : vector<32x1xf32> to vector<32x256xf32>
    %43 = arith.addf %40, %42 : vector<32x256xf32>
    %44 = arith.addf %37, %43 : vector<32x256xf32>
    %45 = arith.truncf %44 : vector<32x256xf32> to vector<32x256xbf16>
    %c0_13 = arith.constant 0 : index
    %c0_14 = arith.constant 0 : index
    %c0_15 = arith.constant 0 : index
    %46 = vector.load %arg6[%c0_13, %c0_14, %c0_15] : memref<2x32x32xbf16, #tpu.memory_space<vmem>>, vector<1x32x32xbf16>
    %47 = vector.shape_cast %46 : vector<1x32x32xbf16> to vector<32x32xbf16>
    %cst_16 = arith.constant dense<0.000000e+00> : vector<32x256xf32>
    %48 = tpu.matmul %47, %45, %cst_16 {dimension_numbers = #tpu.dot_dimension_numbers<[1], [0], [0], [1], [0, 0, 1, 1], [], []>} : vector<32x32xbf16>, vector<32x256xbf16>, vector<32x256xf32> -> vector<32x256xf32>
    %c0_17 = arith.constant 0 : index
    %c0_18 = arith.constant 0 : index
    %c0_19 = arith.constant 0 : index
    %49 = vector.load %arg9[%c0_17, %c0_18, %c0_19] : memref<2x32x1xf32, #tpu.memory_space<vmem>>, vector<1x32x1xf32>
    %50 = vector.shape_cast %49 : vector<1x32x1xf32> to vector<32x1xf32>
    %51 = vector.broadcast %50 : vector<32x1xf32> to vector<32x256xf32>
    %52 = arith.addf %48, %51 : vector<32x256xf32>
    %c0_20 = arith.constant 0 : index
    %c0_21 = arith.constant 0 : index
    %c0_22 = arith.constant 0 : index
    %53 = vector.load %arg7[%c0_20, %c0_21, %c0_22] : memref<2x32x32xbf16, #tpu.memory_space<vmem>>, vector<1x32x32xbf16>
    %54 = vector.shape_cast %53 : vector<1x32x32xbf16> to vector<32x32xbf16>
    %cst_23 = arith.constant dense<0.000000e+00> : vector<32x256xf32>
    %55 = tpu.matmul %54, %45, %cst_23 {dimension_numbers = #tpu.dot_dimension_numbers<[1], [0], [0], [1], [0, 0, 1, 1], [], []>} : vector<32x32xbf16>, vector<32x256xbf16>, vector<32x256xf32> -> vector<32x256xf32>
    %c0_24 = arith.constant 0 : index
    %c0_25 = arith.constant 0 : index
    %c0_26 = arith.constant 0 : index
    %56 = vector.load %arg10[%c0_24, %c0_25, %c0_26] : memref<2x32x1xf32, #tpu.memory_space<vmem>>, vector<1x32x1xf32>
    %57 = vector.shape_cast %56 : vector<1x32x1xf32> to vector<32x1xf32>
    %58 = vector.broadcast %57 : vector<32x1xf32> to vector<32x256xf32>
    %59 = arith.addf %55, %58 : vector<32x256xf32>
    %c0_27 = arith.constant 0 : index
    %c0_28 = arith.constant 0 : index
    %c0_29 = arith.constant 0 : index
    %60 = vector.load %arg8[%c0_27, %c0_28, %c0_29] : memref<2x32x32xbf16, #tpu.memory_space<vmem>>, vector<1x32x32xbf16>
    %61 = vector.shape_cast %60 : vector<1x32x32xbf16> to vector<32x32xbf16>
    %cst_30 = arith.constant dense<0.000000e+00> : vector<32x256xf32>
    %62 = tpu.matmul %61, %45, %cst_30 {dimension_numbers = #tpu.dot_dimension_numbers<[1], [0], [0], [1], [0, 0, 1, 1], [], []>} : vector<32x32xbf16>, vector<32x256xbf16>, vector<32x256xf32> -> vector<32x256xf32>
    %c0_31 = arith.constant 0 : index
    %c0_32 = arith.constant 0 : index
    %c0_33 = arith.constant 0 : index
    %63 = vector.load %arg11[%c0_31, %c0_32, %c0_33] : memref<2x32x1xf32, #tpu.memory_space<vmem>>, vector<1x32x1xf32>
    %64 = vector.shape_cast %63 : vector<1x32x1xf32> to vector<32x1xf32>
    %65 = vector.broadcast %64 : vector<32x1xf32> to vector<32x256xf32>
    %66 = arith.addf %62, %65 : vector<32x256xf32>
    %67 = vector.extract_strided_slice %52 {offsets = [0, 0], sizes = [8, 256], strides = [1, 1]} : vector<32x256xf32> to vector<8x256xf32>
    %cst_34 = arith.constant 0.353553385 : f32
    %68 = vector.broadcast %cst_34 : f32 to vector<8x256xf32>
    %69 = arith.mulf %67, %68 : vector<8x256xf32>
    %70 = arith.truncf %69 : vector<8x256xf32> to vector<8x256xbf16>
    %71 = vector.extract_strided_slice %59 {offsets = [0, 0], sizes = [8, 256], strides = [1, 1]} : vector<32x256xf32> to vector<8x256xf32>
    %72 = arith.truncf %71 : vector<8x256xf32> to vector<8x256xbf16>
    %73 = vector.extract_strided_slice %66 {offsets = [0, 0], sizes = [8, 256], strides = [1, 1]} : vector<32x256xf32> to vector<8x256xf32>
    %74 = arith.truncf %73 : vector<8x256xf32> to vector<8x256xbf16>
    %cst_35 = arith.constant dense<0.000000e+00> : vector<256x256xf32>
    %75 = tpu.matmul %72, %70, %cst_35 {dimension_numbers = #tpu.dot_dimension_numbers<[0], [0], [1], [1], [0, 1, 1, 1], [], []>} : vector<8x256xbf16>, vector<8x256xbf16>, vector<256x256xf32> -> vector<256x256xf32>
    %cst_36 = arith.constant dense<0xFF800000> : vector<256xf32>
    %76 = vector.multi_reduction <maximumf>, %75, %cst_36 [0] : vector<256x256xf32> to vector<256xf32>
    %77 = vector.shape_cast %76 : vector<256xf32> to vector<1x256xf32>
    %78 = vector.broadcast %77 : vector<1x256xf32> to vector<256x256xf32>
    %79 = arith.subf %75, %78 : vector<256x256xf32>
    %80 = math.exp %79 : vector<256x256xf32>
    %cst_37 = arith.constant dense<0.000000e+00> : vector<256xf32>
    %81 = vector.multi_reduction <add>, %80, %cst_37 [0] : vector<256x256xf32> to vector<256xf32>
    %82 = vector.shape_cast %81 : vector<256xf32> to vector<1x256xf32>
    %83 = tpu.reciprocal %82 {approx = true} : vector<1x256xf32> -> vector<1x256xf32>
    %84 = vector.broadcast %83 : vector<1x256xf32> to vector<256x256xf32>
    %85 = arith.mulf %80, %84 : vector<256x256xf32>
    %86 = arith.truncf %85 : vector<256x256xf32> to vector<256x256xbf16>
    %cst_38 = arith.constant dense<0.000000e+00> : vector<8x256xf32>
    %87 = tpu.matmul %74, %86, %cst_38 {dimension_numbers = #tpu.dot_dimension_numbers<[1], [0], [0], [1], [0, 0, 1, 1], [], []>} : vector<8x256xbf16>, vector<256x256xbf16>, vector<8x256xf32> -> vector<8x256xf32>
    %c0_39 = arith.constant 0 : index
    %c0_40 = arith.constant 0 : index
    %88 = vector.load %arg17[%c0_39, %c0_40] : memref<32x256xf32, #tpu.memory_space<vmem>>, vector<8x256xf32>
    tpu.vector_store %arg17[%c0_39, %c0_40], %87 {strides = array<i32>} : memref<32x256xf32, #tpu.memory_space<vmem>>, vector<8x256xf32>,
    %89 = vector.extract_strided_slice %52 {offsets = [8, 0], sizes = [8, 256], strides = [1, 1]} : vector<32x256xf32> to vector<8x256xf32>
    %cst_41 = arith.constant 0.353553385 : f32
    %90 = vector.broadcast %cst_41 : f32 to vector<8x256xf32>
    %91 = arith.mulf %89, %90 : vector<8x256xf32>
    %92 = arith.truncf %91 : vector<8x256xf32> to vector<8x256xbf16>
    %93 = vector.extract_strided_slice %59 {offsets = [8, 0], sizes = [8, 256], strides = [1, 1]} : vector<32x256xf32> to vector<8x256xf32>
    %94 = arith.truncf %93 : vector<8x256xf32> to vector<8x256xbf16>
    %95 = vector.extract_strided_slice %66 {offsets = [8, 0], sizes = [8, 256], strides = [1, 1]} : vector<32x256xf32> to vector<8x256xf32>
    %96 = arith.truncf %95 : vector<8x256xf32> to vector<8x256xbf16>
    %cst_42 = arith.constant dense<0.000000e+00> : vector<256x256xf32>
    %97 = tpu.matmul %94, %92, %cst_42 {dimension_numbers = #tpu.dot_dimension_numbers<[0], [0], [1], [1], [0, 1, 1, 1], [], []>} : vector<8x256xbf16>, vector<8x256xbf16>, vector<256x256xf32> -> vector<256x256xf32>
    %cst_43 = arith.constant dense<0xFF800000> : vector<256xf32>
    %98 = vector.multi_reduction <maximumf>, %97, %cst_43 [0] : vector<256x256xf32> to vector<256xf32>
    %99 = vector.shape_cast %98 : vector<256xf32> to vector<1x256xf32>
    %100 = vector.broadcast %99 : vector<1x256xf32> to vector<256x256xf32>
    %101 = arith.subf %97, %100 : vector<256x256xf32>
    %102 = math.exp %101 : vector<256x256xf32>
    %cst_44 = arith.constant dense<0.000000e+00> : vector<256xf32>
    %103 = vector.multi_reduction <add>, %102, %cst_44 [0] : vector<256x256xf32> to vector<256xf32>
    %104 = vector.shape_cast %103 : vector<256xf32> to vector<1x256xf32>
    %105 = tpu.reciprocal %104 {approx = true} : vector<1x256xf32> -> vector<1x256xf32>
    %106 = vector.broadcast %105 : vector<1x256xf32> to vector<256x256xf32>
    %107 = arith.mulf %102, %106 : vector<256x256xf32>
    %108 = arith.truncf %107 : vector<256x256xf32> to vector<256x256xbf16>
    %cst_45 = arith.constant dense<0.000000e+00> : vector<8x256xf32>
    %109 = tpu.matmul %96, %108, %cst_45 {dimension_numbers = #tpu.dot_dimension_numbers<[1], [0], [0], [1], [0, 0, 1, 1], [], []>} : vector<8x256xbf16>, vector<256x256xbf16>, vector<8x256xf32> -> vector<8x256xf32>
    %c8 = arith.constant 8 : index
    %c0_46 = arith.constant 0 : index
    %110 = vector.load %arg17[%c8, %c0_46] : memref<32x256xf32, #tpu.memory_space<vmem>>, vector<8x256xf32>
    tpu.vector_store %arg17[%c8, %c0_46], %109 {strides = array<i32>} : memref<32x256xf32, #tpu.memory_space<vmem>>, vector<8x256xf32>,
    %111 = vector.extract_strided_slice %52 {offsets = [16, 0], sizes = [8, 256], strides = [1, 1]} : vector<32x256xf32> to vector<8x256xf32>
    %cst_47 = arith.constant 0.353553385 : f32
    %112 = vector.broadcast %cst_47 : f32 to vector<8x256xf32>
    %113 = arith.mulf %111, %112 : vector<8x256xf32>
    %114 = arith.truncf %113 : vector<8x256xf32> to vector<8x256xbf16>
    %115 = vector.extract_strided_slice %59 {offsets = [16, 0], sizes = [8, 256], strides = [1, 1]} : vector<32x256xf32> to vector<8x256xf32>
    %116 = arith.truncf %115 : vector<8x256xf32> to vector<8x256xbf16>
    %117 = vector.extract_strided_slice %66 {offsets = [16, 0], sizes = [8, 256], strides = [1, 1]} : vector<32x256xf32> to vector<8x256xf32>
    %118 = arith.truncf %117 : vector<8x256xf32> to vector<8x256xbf16>
    %cst_48 = arith.constant dense<0.000000e+00> : vector<256x256xf32>
    %119 = tpu.matmul %116, %114, %cst_48 {dimension_numbers = #tpu.dot_dimension_numbers<[0], [0], [1], [1], [0, 1, 1, 1], [], []>} : vector<8x256xbf16>, vector<8x256xbf16>, vector<256x256xf32> -> vector<256x256xf32>
    %cst_49 = arith.constant dense<0xFF800000> : vector<256xf32>
    %120 = vector.multi_reduction <maximumf>, %119, %cst_49 [0] : vector<256x256xf32> to vector<256xf32>
    %121 = vector.shape_cast %120 : vector<256xf32> to vector<1x256xf32>
    %122 = vector.broadcast %121 : vector<1x256xf32> to vector<256x256xf32>
    %123 = arith.subf %119, %122 : vector<256x256xf32>
    %124 = math.exp %123 : vector<256x256xf32>
    %cst_50 = arith.constant dense<0.000000e+00> : vector<256xf32>
    %125 = vector.multi_reduction <add>, %124, %cst_50 [0] : vector<256x256xf32> to vector<256xf32>
    %126 = vector.shape_cast %125 : vector<256xf32> to vector<1x256xf32>
    %127 = tpu.reciprocal %126 {approx = true} : vector<1x256xf32> -> vector<1x256xf32>
    %128 = vector.broadcast %127 : vector<1x256xf32> to vector<256x256xf32>
    %129 = arith.mulf %124, %128 : vector<256x256xf32>
    %130 = arith.truncf %129 : vector<256x256xf32> to vector<256x256xbf16>
    %cst_51 = arith.constant dense<0.000000e+00> : vector<8x256xf32>
    %131 = tpu.matmul %118, %130, %cst_51 {dimension_numbers = #tpu.dot_dimension_numbers<[1], [0], [0], [1], [0, 0, 1, 1], [], []>} : vector<8x256xbf16>, vector<256x256xbf16>, vector<8x256xf32> -> vector<8x256xf32>
    %c16 = arith.constant 16 : index
    %c0_52 = arith.constant 0 : index
    %132 = vector.load %arg17[%c16, %c0_52] : memref<32x256xf32, #tpu.memory_space<vmem>>, vector<8x256xf32>
    tpu.vector_store %arg17[%c16, %c0_52], %131 {strides = array<i32>} : memref<32x256xf32, #tpu.memory_space<vmem>>, vector<8x256xf32>,
    %133 = vector.extract_strided_slice %52 {offsets = [24, 0], sizes = [8, 256], strides = [1, 1]} : vector<32x256xf32> to vector<8x256xf32>
    %cst_53 = arith.constant 0.353553385 : f32
    %134 = vector.broadcast %cst_53 : f32 to vector<8x256xf32>
    %135 = arith.mulf %133, %134 : vector<8x256xf32>
    %136 = arith.truncf %135 : vector<8x256xf32> to vector<8x256xbf16>
    %137 = vector.extract_strided_slice %59 {offsets = [24, 0], sizes = [8, 256], strides = [1, 1]} : vector<32x256xf32> to vector<8x256xf32>
    %138 = arith.truncf %137 : vector<8x256xf32> to vector<8x256xbf16>
    %139 = vector.extract_strided_slice %66 {offsets = [24, 0], sizes = [8, 256], strides = [1, 1]} : vector<32x256xf32> to vector<8x256xf32>
    %140 = arith.truncf %139 : vector<8x256xf32> to vector<8x256xbf16>
    %cst_54 = arith.constant dense<0.000000e+00> : vector<256x256xf32>
    %141 = tpu.matmul %138, %136, %cst_54 {dimension_numbers = #tpu.dot_dimension_numbers<[0], [0], [1], [1], [0, 1, 1, 1], [], []>} : vector<8x256xbf16>, vector<8x256xbf16>, vector<256x256xf32> -> vector<256x256xf32>
    %cst_55 = arith.constant dense<0xFF800000> : vector<256xf32>
    %142 = vector.multi_reduction <maximumf>, %141, %cst_55 [0] : vector<256x256xf32> to vector<256xf32>
    %143 = vector.shape_cast %142 : vector<256xf32> to vector<1x256xf32>
    %144 = vector.broadcast %143 : vector<1x256xf32> to vector<256x256xf32>
    %145 = arith.subf %141, %144 : vector<256x256xf32>
    %146 = math.exp %145 : vector<256x256xf32>
    %cst_56 = arith.constant dense<0.000000e+00> : vector<256xf32>
    %147 = vector.multi_reduction <add>, %146, %cst_56 [0] : vector<256x256xf32> to vector<256xf32>
    %148 = vector.shape_cast %147 : vector<256xf32> to vector<1x256xf32>
    %149 = tpu.reciprocal %148 {approx = true} : vector<1x256xf32> -> vector<1x256xf32>
    %150 = vector.broadcast %149 : vector<1x256xf32> to vector<256x256xf32>
    %151 = arith.mulf %146, %150 : vector<256x256xf32>
    %152 = arith.truncf %151 : vector<256x256xf32> to vector<256x256xbf16>
    %cst_57 = arith.constant dense<0.000000e+00> : vector<8x256xf32>
    %153 = tpu.matmul %140, %152, %cst_57 {dimension_numbers = #tpu.dot_dimension_numbers<[1], [0], [0], [1], [0, 0, 1, 1], [], []>} : vector<8x256xbf16>, vector<256x256xbf16>, vector<8x256xf32> -> vector<8x256xf32>
    %c24 = arith.constant 24 : index
    %c0_58 = arith.constant 0 : index
    %154 = vector.load %arg17[%c24, %c0_58] : memref<32x256xf32, #tpu.memory_space<vmem>>, vector<8x256xf32>
    tpu.vector_store %arg17[%c24, %c0_58], %153 {strides = array<i32>} : memref<32x256xf32, #tpu.memory_space<vmem>>, vector<8x256xf32>,
    %c0_59 = arith.constant 0 : index
    %c0_60 = arith.constant 0 : index
    %c0_61 = arith.constant 0 : index
    %155 = vector.load %arg12[%c0_59, %c0_60, %c0_61] : memref<2x32x32xbf16, #tpu.memory_space<vmem>>, vector<1x32x32xbf16>
    %156 = vector.shape_cast %155 : vector<1x32x32xbf16> to vector<32x32xbf16>
    %c0_62 = arith.constant 0 : index
    %c0_63 = arith.constant 0 : index
    %157 = vector.load %arg17[%c0_62, %c0_63] : memref<32x256xf32, #tpu.memory_space<vmem>>, vector<32x256xf32>
    %158 = arith.truncf %157 : vector<32x256xf32> to vector<32x256xbf16>
    %cst_64 = arith.constant dense<0.000000e+00> : vector<32x256xf32>
    %159 = tpu.matmul %156, %158, %cst_64 {dimension_numbers = #tpu.dot_dimension_numbers<[1], [0], [0], [1], [0, 0, 1, 1], [], []>} : vector<32x32xbf16>, vector<32x256xbf16>, vector<32x256xf32> -> vector<32x256xf32>
    %c0_65 = arith.constant 0 : index
    %c0_66 = arith.constant 0 : index
    %c0_67 = arith.constant 0 : index
    %160 = vector.load %arg13[%c0_65, %c0_66, %c0_67] : memref<2x32x1xf32, #tpu.memory_space<vmem>>, vector<1x32x1xf32>
    %161 = vector.shape_cast %160 : vector<1x32x1xf32> to vector<32x1xf32>
    %162 = vector.broadcast %161 : vector<32x1xf32> to vector<32x256xf32>
    %163 = arith.addf %159, %162 : vector<32x256xf32>
    %164 = arith.addf %163, %44 : vector<32x256xf32>
    %c0_68 = arith.constant 0 : index
    %c0_69 = arith.constant 0 : index
    %c0_70 = arith.constant 0 : index
    %165 = vector.load %arg14[%c0_68, %c0_69, %c0_70] : memref<2x32x32xbf16, #tpu.memory_space<vmem>>, vector<1x32x32xbf16>
    %166 = vector.shape_cast %165 : vector<1x32x32xbf16> to vector<32x32xbf16>
    %167 = arith.truncf %164 : vector<32x256xf32> to vector<32x256xbf16>
    %cst_71 = arith.constant dense<0.000000e+00> : vector<32x256xf32>
    %168 = tpu.matmul %166, %167, %cst_71 {dimension_numbers = #tpu.dot_dimension_numbers<[1], [0], [0], [1], [0, 0, 1, 1], [], []>} : vector<32x32xbf16>, vector<32x256xbf16>, vector<32x256xf32> -> vector<32x256xf32>
    %c0_72 = arith.constant 0 : index
    %c0_73 = arith.constant 0 : index
    %c0_74 = arith.constant 0 : index
    %169 = vector.load %arg15[%c0_72, %c0_73, %c0_74] : memref<2x32x32xbf16, #tpu.memory_space<vmem>>, vector<1x32x32xbf16>
    %170 = vector.shape_cast %169 : vector<1x32x32xbf16> to vector<32x32xbf16>
    %171 = arith.truncf %168 : vector<32x256xf32> to vector<32x256xbf16>
    %cst_75 = arith.constant dense<0.000000e+00> : vector<32x256xf32>
    %172 = tpu.matmul %170, %171, %cst_75 {dimension_numbers = #tpu.dot_dimension_numbers<[1], [0], [0], [1], [0, 0, 1, 1], [], []>} : vector<32x32xbf16>, vector<32x256xbf16>, vector<32x256xf32> -> vector<32x256xf32>
    %173 = arith.addf %172, %164 : vector<32x256xf32>
    %174 = arith.truncf %173 : vector<32x256xf32> to vector<32x256xbf16>
    %c1 = arith.constant 1 : index
    %c0_76 = arith.constant 0 : index
    %c0_77 = arith.constant 0 : index
    %175 = vector.load %arg6[%c1, %c0_76, %c0_77] : memref<2x32x32xbf16, #tpu.memory_space<vmem>>, vector<1x32x32xbf16>
    %176 = vector.shape_cast %175 : vector<1x32x32xbf16> to vector<32x32xbf16>
    %cst_78 = arith.constant dense<0.000000e+00> : vector<32x256xf32>
    %177 = tpu.matmul %176, %174, %cst_78 {dimension_numbers = #tpu.dot_dimension_numbers<[1], [0], [0], [1], [0, 0, 1, 1], [], []>} : vector<32x32xbf16>, vector<32x256xbf16>, vector<32x256xf32> -> vector<32x256xf32>
    %c1_79 = arith.constant 1 : index
    %c0_80 = arith.constant 0 : index
    %c0_81 = arith.constant 0 : index
    %178 = vector.load %arg9[%c1_79, %c0_80, %c0_81] : memref<2x32x1xf32, #tpu.memory_space<vmem>>, vector<1x32x1xf32>
    %179 = vector.shape_cast %178 : vector<1x32x1xf32> to vector<32x1xf32>
    %180 = vector.broadcast %179 : vector<32x1xf32> to vector<32x256xf32>
    %181 = arith.addf %177, %180 : vector<32x256xf32>
    %c1_82 = arith.constant 1 : index
    %c0_83 = arith.constant 0 : index
    %c0_84 = arith.constant 0 : index
    %182 = vector.load %arg7[%c1_82, %c0_83, %c0_84] : memref<2x32x32xbf16, #tpu.memory_space<vmem>>, vector<1x32x32xbf16>
    %183 = vector.shape_cast %182 : vector<1x32x32xbf16> to vector<32x32xbf16>
    %cst_85 = arith.constant dense<0.000000e+00> : vector<32x256xf32>
    %184 = tpu.matmul %183, %174, %cst_85 {dimension_numbers = #tpu.dot_dimension_numbers<[1], [0], [0], [1], [0, 0, 1, 1], [], []>} : vector<32x32xbf16>, vector<32x256xbf16>, vector<32x256xf32> -> vector<32x256xf32>
    %c1_86 = arith.constant 1 : index
    %c0_87 = arith.constant 0 : index
    %c0_88 = arith.constant 0 : index
    %185 = vector.load %arg10[%c1_86, %c0_87, %c0_88] : memref<2x32x1xf32, #tpu.memory_space<vmem>>, vector<1x32x1xf32>
    %186 = vector.shape_cast %185 : vector<1x32x1xf32> to vector<32x1xf32>
    %187 = vector.broadcast %186 : vector<32x1xf32> to vector<32x256xf32>
    %188 = arith.addf %184, %187 : vector<32x256xf32>
    %c1_89 = arith.constant 1 : index
    %c0_90 = arith.constant 0 : index
    %c0_91 = arith.constant 0 : index
    %189 = vector.load %arg8[%c1_89, %c0_90, %c0_91] : memref<2x32x32xbf16, #tpu.memory_space<vmem>>, vector<1x32x32xbf16>
    %190 = vector.shape_cast %189 : vector<1x32x32xbf16> to vector<32x32xbf16>
    %cst_92 = arith.constant dense<0.000000e+00> : vector<32x256xf32>
    %191 = tpu.matmul %190, %174, %cst_92 {dimension_numbers = #tpu.dot_dimension_numbers<[1], [0], [0], [1], [0, 0, 1, 1], [], []>} : vector<32x32xbf16>, vector<32x256xbf16>, vector<32x256xf32> -> vector<32x256xf32>
    %c1_93 = arith.constant 1 : index
    %c0_94 = arith.constant 0 : index
    %c0_95 = arith.constant 0 : index
    %192 = vector.load %arg11[%c1_93, %c0_94, %c0_95] : memref<2x32x1xf32, #tpu.memory_space<vmem>>, vector<1x32x1xf32>
    %193 = vector.shape_cast %192 : vector<1x32x1xf32> to vector<32x1xf32>
    %194 = vector.broadcast %193 : vector<32x1xf32> to vector<32x256xf32>
    %195 = arith.addf %191, %194 : vector<32x256xf32>
    %196 = vector.extract_strided_slice %181 {offsets = [0, 0], sizes = [8, 256], strides = [1, 1]} : vector<32x256xf32> to vector<8x256xf32>
    %cst_96 = arith.constant 0.353553385 : f32
    %197 = vector.broadcast %cst_96 : f32 to vector<8x256xf32>
    %198 = arith.mulf %196, %197 : vector<8x256xf32>
    %199 = arith.truncf %198 : vector<8x256xf32> to vector<8x256xbf16>
    %200 = vector.extract_strided_slice %188 {offsets = [0, 0], sizes = [8, 256], strides = [1, 1]} : vector<32x256xf32> to vector<8x256xf32>
    %201 = arith.truncf %200 : vector<8x256xf32> to vector<8x256xbf16>
    %202 = vector.extract_strided_slice %195 {offsets = [0, 0], sizes = [8, 256], strides = [1, 1]} : vector<32x256xf32> to vector<8x256xf32>
    %203 = arith.truncf %202 : vector<8x256xf32> to vector<8x256xbf16>
    %cst_97 = arith.constant dense<0.000000e+00> : vector<256x256xf32>
    %204 = tpu.matmul %201, %199, %cst_97 {dimension_numbers = #tpu.dot_dimension_numbers<[0], [0], [1], [1], [0, 1, 1, 1], [], []>} : vector<8x256xbf16>, vector<8x256xbf16>, vector<256x256xf32> -> vector<256x256xf32>
    %cst_98 = arith.constant dense<0xFF800000> : vector<256xf32>
    %205 = vector.multi_reduction <maximumf>, %204, %cst_98 [0] : vector<256x256xf32> to vector<256xf32>
    %206 = vector.shape_cast %205 : vector<256xf32> to vector<1x256xf32>
    %207 = vector.broadcast %206 : vector<1x256xf32> to vector<256x256xf32>
    %208 = arith.subf %204, %207 : vector<256x256xf32>
    %209 = math.exp %208 : vector<256x256xf32>
    %cst_99 = arith.constant dense<0.000000e+00> : vector<256xf32>
    %210 = vector.multi_reduction <add>, %209, %cst_99 [0] : vector<256x256xf32> to vector<256xf32>
    %211 = vector.shape_cast %210 : vector<256xf32> to vector<1x256xf32>
    %212 = tpu.reciprocal %211 {approx = true} : vector<1x256xf32> -> vector<1x256xf32>
    %213 = vector.broadcast %212 : vector<1x256xf32> to vector<256x256xf32>
    %214 = arith.mulf %209, %213 : vector<256x256xf32>
    %215 = arith.truncf %214 : vector<256x256xf32> to vector<256x256xbf16>
    %cst_100 = arith.constant dense<0.000000e+00> : vector<8x256xf32>
    %216 = tpu.matmul %203, %215, %cst_100 {dimension_numbers = #tpu.dot_dimension_numbers<[1], [0], [0], [1], [0, 0, 1, 1], [], []>} : vector<8x256xbf16>, vector<256x256xbf16>, vector<8x256xf32> -> vector<8x256xf32>
    %c0_101 = arith.constant 0 : index
    %c0_102 = arith.constant 0 : index
    %217 = vector.load %arg17[%c0_101, %c0_102] : memref<32x256xf32, #tpu.memory_space<vmem>>, vector<8x256xf32>
    tpu.vector_store %arg17[%c0_101, %c0_102], %216 {strides = array<i32>} : memref<32x256xf32, #tpu.memory_space<vmem>>, vector<8x256xf32>,
    %218 = vector.extract_strided_slice %181 {offsets = [8, 0], sizes = [8, 256], strides = [1, 1]} : vector<32x256xf32> to vector<8x256xf32>
    %cst_103 = arith.constant 0.353553385 : f32
    %219 = vector.broadcast %cst_103 : f32 to vector<8x256xf32>
    %220 = arith.mulf %218, %219 : vector<8x256xf32>
    %221 = arith.truncf %220 : vector<8x256xf32> to vector<8x256xbf16>
    %222 = vector.extract_strided_slice %188 {offsets = [8, 0], sizes = [8, 256], strides = [1, 1]} : vector<32x256xf32> to vector<8x256xf32>
    %223 = arith.truncf %222 : vector<8x256xf32> to vector<8x256xbf16>
    %224 = vector.extract_strided_slice %195 {offsets = [8, 0], sizes = [8, 256], strides = [1, 1]} : vector<32x256xf32> to vector<8x256xf32>
    %225 = arith.truncf %224 : vector<8x256xf32> to vector<8x256xbf16>
    %cst_104 = arith.constant dense<0.000000e+00> : vector<256x256xf32>
    %226 = tpu.matmul %223, %221, %cst_104 {dimension_numbers = #tpu.dot_dimension_numbers<[0], [0], [1], [1], [0, 1, 1, 1], [], []>} : vector<8x256xbf16>, vector<8x256xbf16>, vector<256x256xf32> -> vector<256x256xf32>
    %cst_105 = arith.constant dense<0xFF800000> : vector<256xf32>
    %227 = vector.multi_reduction <maximumf>, %226, %cst_105 [0] : vector<256x256xf32> to vector<256xf32>
    %228 = vector.shape_cast %227 : vector<256xf32> to vector<1x256xf32>
    %229 = vector.broadcast %228 : vector<1x256xf32> to vector<256x256xf32>
    %230 = arith.subf %226, %229 : vector<256x256xf32>
    %231 = math.exp %230 : vector<256x256xf32>
    %cst_106 = arith.constant dense<0.000000e+00> : vector<256xf32>
    %232 = vector.multi_reduction <add>, %231, %cst_106 [0] : vector<256x256xf32> to vector<256xf32>
    %233 = vector.shape_cast %232 : vector<256xf32> to vector<1x256xf32>
    %234 = tpu.reciprocal %233 {approx = true} : vector<1x256xf32> -> vector<1x256xf32>
    %235 = vector.broadcast %234 : vector<1x256xf32> to vector<256x256xf32>
    %236 = arith.mulf %231, %235 : vector<256x256xf32>
    %237 = arith.truncf %236 : vector<256x256xf32> to vector<256x256xbf16>
    %cst_107 = arith.constant dense<0.000000e+00> : vector<8x256xf32>
    %238 = tpu.matmul %225, %237, %cst_107 {dimension_numbers = #tpu.dot_dimension_numbers<[1], [0], [0], [1], [0, 0, 1, 1], [], []>} : vector<8x256xbf16>, vector<256x256xbf16>, vector<8x256xf32> -> vector<8x256xf32>
    %c8_108 = arith.constant 8 : index
    %c0_109 = arith.constant 0 : index
    %239 = vector.load %arg17[%c8_108, %c0_109] : memref<32x256xf32, #tpu.memory_space<vmem>>, vector<8x256xf32>
    tpu.vector_store %arg17[%c8_108, %c0_109], %238 {strides = array<i32>} : memref<32x256xf32, #tpu.memory_space<vmem>>, vector<8x256xf32>,
    %240 = vector.extract_strided_slice %181 {offsets = [16, 0], sizes = [8, 256], strides = [1, 1]} : vector<32x256xf32> to vector<8x256xf32>
    %cst_110 = arith.constant 0.353553385 : f32
    %241 = vector.broadcast %cst_110 : f32 to vector<8x256xf32>
    %242 = arith.mulf %240, %241 : vector<8x256xf32>
    %243 = arith.truncf %242 : vector<8x256xf32> to vector<8x256xbf16>
    %244 = vector.extract_strided_slice %188 {offsets = [16, 0], sizes = [8, 256], strides = [1, 1]} : vector<32x256xf32> to vector<8x256xf32>
    %245 = arith.truncf %244 : vector<8x256xf32> to vector<8x256xbf16>
    %246 = vector.extract_strided_slice %195 {offsets = [16, 0], sizes = [8, 256], strides = [1, 1]} : vector<32x256xf32> to vector<8x256xf32>
    %247 = arith.truncf %246 : vector<8x256xf32> to vector<8x256xbf16>
    %cst_111 = arith.constant dense<0.000000e+00> : vector<256x256xf32>
    %248 = tpu.matmul %245, %243, %cst_111 {dimension_numbers = #tpu.dot_dimension_numbers<[0], [0], [1], [1], [0, 1, 1, 1], [], []>} : vector<8x256xbf16>, vector<8x256xbf16>, vector<256x256xf32> -> vector<256x256xf32>
    %cst_112 = arith.constant dense<0xFF800000> : vector<256xf32>
    %249 = vector.multi_reduction <maximumf>, %248, %cst_112 [0] : vector<256x256xf32> to vector<256xf32>
    %250 = vector.shape_cast %249 : vector<256xf32> to vector<1x256xf32>
    %251 = vector.broadcast %250 : vector<1x256xf32> to vector<256x256xf32>
    %252 = arith.subf %248, %251 : vector<256x256xf32>
    %253 = math.exp %252 : vector<256x256xf32>
    %cst_113 = arith.constant dense<0.000000e+00> : vector<256xf32>
    %254 = vector.multi_reduction <add>, %253, %cst_113 [0] : vector<256x256xf32> to vector<256xf32>
    %255 = vector.shape_cast %254 : vector<256xf32> to vector<1x256xf32>
    %256 = tpu.reciprocal %255 {approx = true} : vector<1x256xf32> -> vector<1x256xf32>
    %257 = vector.broadcast %256 : vector<1x256xf32> to vector<256x256xf32>
    %258 = arith.mulf %253, %257 : vector<256x256xf32>
    %259 = arith.truncf %258 : vector<256x256xf32> to vector<256x256xbf16>
    %cst_114 = arith.constant dense<0.000000e+00> : vector<8x256xf32>
    %260 = tpu.matmul %247, %259, %cst_114 {dimension_numbers = #tpu.dot_dimension_numbers<[1], [0], [0], [1], [0, 0, 1, 1], [], []>} : vector<8x256xbf16>, vector<256x256xbf16>, vector<8x256xf32> -> vector<8x256xf32>
    %c16_115 = arith.constant 16 : index
    %c0_116 = arith.constant 0 : index
    %261 = vector.load %arg17[%c16_115, %c0_116] : memref<32x256xf32, #tpu.memory_space<vmem>>, vector<8x256xf32>
    tpu.vector_store %arg17[%c16_115, %c0_116], %260 {strides = array<i32>} : memref<32x256xf32, #tpu.memory_space<vmem>>, vector<8x256xf32>,
    %262 = vector.extract_strided_slice %181 {offsets = [24, 0], sizes = [8, 256], strides = [1, 1]} : vector<32x256xf32> to vector<8x256xf32>
    %cst_117 = arith.constant 0.353553385 : f32
    %263 = vector.broadcast %cst_117 : f32 to vector<8x256xf32>
    %264 = arith.mulf %262, %263 : vector<8x256xf32>
    %265 = arith.truncf %264 : vector<8x256xf32> to vector<8x256xbf16>
    %266 = vector.extract_strided_slice %188 {offsets = [24, 0], sizes = [8, 256], strides = [1, 1]} : vector<32x256xf32> to vector<8x256xf32>
    %267 = arith.truncf %266 : vector<8x256xf32> to vector<8x256xbf16>
    %268 = vector.extract_strided_slice %195 {offsets = [24, 0], sizes = [8, 256], strides = [1, 1]} : vector<32x256xf32> to vector<8x256xf32>
    %269 = arith.truncf %268 : vector<8x256xf32> to vector<8x256xbf16>
    %cst_118 = arith.constant dense<0.000000e+00> : vector<256x256xf32>
    %270 = tpu.matmul %267, %265, %cst_118 {dimension_numbers = #tpu.dot_dimension_numbers<[0], [0], [1], [1], [0, 1, 1, 1], [], []>} : vector<8x256xbf16>, vector<8x256xbf16>, vector<256x256xf32> -> vector<256x256xf32>
    %cst_119 = arith.constant dense<0xFF800000> : vector<256xf32>
    %271 = vector.multi_reduction <maximumf>, %270, %cst_119 [0] : vector<256x256xf32> to vector<256xf32>
    %272 = vector.shape_cast %271 : vector<256xf32> to vector<1x256xf32>
    %273 = vector.broadcast %272 : vector<1x256xf32> to vector<256x256xf32>
    %274 = arith.subf %270, %273 : vector<256x256xf32>
    %275 = math.exp %274 : vector<256x256xf32>
    %cst_120 = arith.constant dense<0.000000e+00> : vector<256xf32>
    %276 = vector.multi_reduction <add>, %275, %cst_120 [0] : vector<256x256xf32> to vector<256xf32>
    %277 = vector.shape_cast %276 : vector<256xf32> to vector<1x256xf32>
    %278 = tpu.reciprocal %277 {approx = true} : vector<1x256xf32> -> vector<1x256xf32>
    %279 = vector.broadcast %278 : vector<1x256xf32> to vector<256x256xf32>
    %280 = arith.mulf %275, %279 : vector<256x256xf32>
    %281 = arith.truncf %280 : vector<256x256xf32> to vector<256x256xbf16>
    %cst_121 = arith.constant dense<0.000000e+00> : vector<8x256xf32>
    %282 = tpu.matmul %269, %281, %cst_121 {dimension_numbers = #tpu.dot_dimension_numbers<[1], [0], [0], [1], [0, 0, 1, 1], [], []>} : vector<8x256xbf16>, vector<256x256xbf16>, vector<8x256xf32> -> vector<8x256xf32>
    %c24_122 = arith.constant 24 : index
    %c0_123 = arith.constant 0 : index
    %283 = vector.load %arg17[%c24_122, %c0_123] : memref<32x256xf32, #tpu.memory_space<vmem>>, vector<8x256xf32>
    tpu.vector_store %arg17[%c24_122, %c0_123], %282 {strides = array<i32>} : memref<32x256xf32, #tpu.memory_space<vmem>>, vector<8x256xf32>,
    %c1_124 = arith.constant 1 : index
    %c0_125 = arith.constant 0 : index
    %c0_126 = arith.constant 0 : index
    %284 = vector.load %arg12[%c1_124, %c0_125, %c0_126] : memref<2x32x32xbf16, #tpu.memory_space<vmem>>, vector<1x32x32xbf16>
    %285 = vector.shape_cast %284 : vector<1x32x32xbf16> to vector<32x32xbf16>
    %c0_127 = arith.constant 0 : index
    %c0_128 = arith.constant 0 : index
    %286 = vector.load %arg17[%c0_127, %c0_128] : memref<32x256xf32, #tpu.memory_space<vmem>>, vector<32x256xf32>
    %287 = arith.truncf %286 : vector<32x256xf32> to vector<32x256xbf16>
    %cst_129 = arith.constant dense<0.000000e+00> : vector<32x256xf32>
    %288 = tpu.matmul %285, %287, %cst_129 {dimension_numbers = #tpu.dot_dimension_numbers<[1], [0], [0], [1], [0, 0, 1, 1], [], []>} : vector<32x32xbf16>, vector<32x256xbf16>, vector<32x256xf32> -> vector<32x256xf32>
    %c1_130 = arith.constant 1 : index
    %c0_131 = arith.constant 0 : index
    %c0_132 = arith.constant 0 : index
    %289 = vector.load %arg13[%c1_130, %c0_131, %c0_132] : memref<2x32x1xf32, #tpu.memory_space<vmem>>, vector<1x32x1xf32>
    %290 = vector.shape_cast %289 : vector<1x32x1xf32> to vector<32x1xf32>
    %291 = vector.broadcast %290 : vector<32x1xf32> to vector<32x256xf32>
    %292 = arith.addf %288, %291 : vector<32x256xf32>
    %293 = arith.addf %292, %173 : vector<32x256xf32>
    %c1_133 = arith.constant 1 : index
    %c0_134 = arith.constant 0 : index
    %c0_135 = arith.constant 0 : index
    %294 = vector.load %arg14[%c1_133, %c0_134, %c0_135] : memref<2x32x32xbf16, #tpu.memory_space<vmem>>, vector<1x32x32xbf16>
    %295 = vector.shape_cast %294 : vector<1x32x32xbf16> to vector<32x32xbf16>
    %296 = arith.truncf %293 : vector<32x256xf32> to vector<32x256xbf16>
    %cst_136 = arith.constant dense<0.000000e+00> : vector<32x256xf32>
    %297 = tpu.matmul %295, %296, %cst_136 {dimension_numbers = #tpu.dot_dimension_numbers<[1], [0], [0], [1], [0, 0, 1, 1], [], []>} : vector<32x32xbf16>, vector<32x256xbf16>, vector<32x256xf32> -> vector<32x256xf32>
    %c1_137 = arith.constant 1 : index
    %c0_138 = arith.constant 0 : index
    %c0_139 = arith.constant 0 : index
    %298 = vector.load %arg15[%c1_137, %c0_138, %c0_139] : memref<2x32x32xbf16, #tpu.memory_space<vmem>>, vector<1x32x32xbf16>
    %299 = vector.shape_cast %298 : vector<1x32x32xbf16> to vector<32x32xbf16>
    %300 = arith.truncf %297 : vector<32x256xf32> to vector<32x256xbf16>
    %cst_140 = arith.constant dense<0.000000e+00> : vector<32x256xf32>
    %301 = tpu.matmul %299, %300, %cst_140 {dimension_numbers = #tpu.dot_dimension_numbers<[1], [0], [0], [1], [0, 0, 1, 1], [], []>} : vector<32x32xbf16>, vector<32x256xbf16>, vector<32x256xf32> -> vector<32x256xf32>
    %302 = arith.addf %301, %293 : vector<32x256xf32>
    %c0_141 = arith.constant 0 : index
    %c0_142 = arith.constant 0 : index
    %c0_143 = arith.constant 0 : index
    %303 = vector.load %arg16[%c0_141, %c0_142, %c0_143] : memref<1x32x256xf32, #tpu.memory_space<vmem>>, vector<1x32x256xf32>
    %304 = vector.shape_cast %303 : vector<1x32x256xf32> to vector<32x256xf32>
    %305 = vector.shape_cast %302 : vector<32x256xf32> to vector<1x32x256xf32>
    tpu.vector_store %arg16[%c0_141, %c0_142, %c0_143], %305 {strides = array<i32>} : memref<1x32x256xf32, #tpu.memory_space<vmem>>, vector<1x32x256xf32>,
    return
  }
  func.func @transform_0(%arg0: i32) -> (i32, i32, i32) {
    %c0_i32 = arith.constant 0 : i32
    %c0_i32_0 = arith.constant 0 : i32
    %c0_i32_1 = arith.constant 0 : i32
    return %arg0, %c0_i32, %c0_i32_0 : i32, i32, i32
  }
  func.func @transform_1(%arg0: i32) -> (i32, i32) {
    %c0_i32 = arith.constant 0 : i32
    %c0_i32_0 = arith.constant 0 : i32
    %c0_i32_1 = arith.constant 0 : i32
    return %c0_i32, %c0_i32_0 : i32, i32
  }
  func.func @transform_2(%arg0: i32) -> (i32, i32) {
    %c0_i32 = arith.constant 0 : i32
    %c0_i32_0 = arith.constant 0 : i32
    %c0_i32_1 = arith.constant 0 : i32
    return %c0_i32, %c0_i32_0 : i32, i32
  }
  func.func @transform_3(%arg0: i32) -> (i32, i32) {
    %c0_i32 = arith.constant 0 : i32
    %c0_i32_0 = arith.constant 0 : i32
    %c0_i32_1 = arith.constant 0 : i32
    return %c0_i32, %c0_i32_0 : i32, i32
  }
  func.func @transform_4(%arg0: i32) -> (i32, i32) {
    %c0_i32 = arith.constant 0 : i32
    %c0_i32_0 = arith.constant 0 : i32
    %c0_i32_1 = arith.constant 0 : i32
    return %c0_i32, %c0_i32_0 : i32, i32
  }
  func.func @transform_5(%arg0: i32) -> (i32, i32, i32) {
    %c0_i32 = arith.constant 0 : i32
    %c0_i32_0 = arith.constant 0 : i32
    %c0_i32_1 = arith.constant 0 : i32
    %c0_i32_2 = arith.constant 0 : i32
    return %c0_i32, %c0_i32_0, %c0_i32_1 : i32, i32, i32
  }
  func.func @transform_6(%arg0: i32) -> (i32, i32, i32) {
    %c0_i32 = arith.constant 0 : i32
    %c0_i32_0 = arith.constant 0 : i32
    %c0_i32_1 = arith.constant 0 : i32
    %c0_i32_2 = arith.constant 0 : i32
    return %c0_i32, %c0_i32_0, %c0_i32_1 : i32, i32, i32
  }
  func.func @transform_7(%arg0: i32) -> (i32, i32, i32) {
    %c0_i32 = arith.constant 0 : i32
    %c0_i32_0 = arith.constant 0 : i32
    %c0_i32_1 = arith.constant 0 : i32
    %c0_i32_2 = arith.constant 0 : i32
    return %c0_i32, %c0_i32_0, %c0_i32_1 : i32, i32, i32
  }
  func.func @transform_8(%arg0: i32) -> (i32, i32, i32) {
    %c0_i32 = arith.constant 0 : i32
    %c0_i32_0 = arith.constant 0 : i32
    %c0_i32_1 = arith.constant 0 : i32
    %c0_i32_2 = arith.constant 0 : i32
    return %c0_i32, %c0_i32_0, %c0_i32_1 : i32, i32, i32
  }
  func.func @transform_9(%arg0: i32) -> (i32, i32, i32) {
    %c0_i32 = arith.constant 0 : i32
    %c0_i32_0 = arith.constant 0 : i32
    %c0_i32_1 = arith.constant 0 : i32
    %c0_i32_2 = arith.constant 0 : i32
    return %c0_i32, %c0_i32_0, %c0_i32_1 : i32, i32, i32
  }
  func.func @transform_10(%arg0: i32) -> (i32, i32, i32) {
    %c0_i32 = arith.constant 0 : i32
    %c0_i32_0 = arith.constant 0 : i32
    %c0_i32_1 = arith.constant 0 : i32
    %c0_i32_2 = arith.constant 0 : i32
    return %c0_i32, %c0_i32_0, %c0_i32_1 : i32, i32, i32
  }
  func.func @transform_11(%arg0: i32) -> (i32, i32, i32) {
    %c0_i32 = arith.constant 0 : i32
    %c0_i32_0 = arith.constant 0 : i32
    %c0_i32_1 = arith.constant 0 : i32
    %c0_i32_2 = arith.constant 0 : i32
    return %c0_i32, %c0_i32_0, %c0_i32_1 : i32, i32, i32
  }
  func.func @transform_12(%arg0: i32) -> (i32, i32, i32) {
    %c0_i32 = arith.constant 0 : i32
    %c0_i32_0 = arith.constant 0 : i32
    %c0_i32_1 = arith.constant 0 : i32
    %c0_i32_2 = arith.constant 0 : i32
    return %c0_i32, %c0_i32_0, %c0_i32_1 : i32, i32, i32
  }
  func.func @transform_13(%arg0: i32) -> (i32, i32, i32) {
    %c0_i32 = arith.constant 0 : i32
    %c0_i32_0 = arith.constant 0 : i32
    %c0_i32_1 = arith.constant 0 : i32
    %c0_i32_2 = arith.constant 0 : i32
    return %c0_i32, %c0_i32_0, %c0_i32_1 : i32, i32, i32
  }
  func.func @transform_14(%arg0: i32) -> (i32, i32, i32) {
    %c0_i32 = arith.constant 0 : i32
    %c0_i32_0 = arith.constant 0 : i32
    %c0_i32_1 = arith.constant 0 : i32
    %c0_i32_2 = arith.constant 0 : i32
    return %c0_i32, %c0_i32_0, %c0_i32_1 : i32, i32, i32
  }
  func.func @transform_15(%arg0: i32) -> (i32, i32, i32) {
    %c0_i32 = arith.constant 0 : i32
    %c0_i32_0 = arith.constant 0 : i32
    %c0_i32_1 = arith.constant 0 : i32
    return %arg0, %c0_i32, %c0_i32_0 : i32, i32, i32
  }
}

</mosaic_0001>

<bundles_post_ra>
// kernel: transformer_block_forward.1
= control target key start
LH: loop header
LB: loop body
LE: loop exit
PB: predicated region body
PF: predicated region fallthrough
CT: control target
= control target key end

     0   :  { %s9721_s18 = smov 0   ;;  %s17972_s0 = inlined_call_operand.vmem [shape: f32[2,4,256], index: 0, kind: input, shape index: {}]   ;;  %s17973_s1 = inlined_call_operand.vmem [shape: f32[32,4], index: 1, kind: input, shape index: {}]   ;;  %s17974_s2 = inlined_call_operand.vmem [shape: f32[32,1], index: 2, kind: input, shape index: {}]   ;;  %s17975_s3 = inlined_call_operand.vmem [shape: bf16[32,32], index: 3, kind: input, shape index: {}]   ;;  %s17976_s4 = inlined_call_operand.vmem [shape: f32[32,1], index: 4, kind: input, shape index: {}]   ;;  %s17977_s5 = inlined_call_operand.vmem [shape: bf16[2,32,32], index: 5, kind: input, shape index: {}]   ;;  %s17978_s6 = inlined_call_operand.vmem [shape: bf16[2,32,32], index: 6, kind: input, shape index: {}]   ;;  %s17979_s7 = inlined_call_operand.vmem [shape: bf16[2,32,32], index: 7, kind: input, shape index: {}]   ;;  %s17980_s8 = inlined_call_operand.vmem [shape: f32[2,32,1], index: 8, kind: input, shape index: {}]   ;;  %s17981_s9 = inlined_call_operand.vmem [shape: f32[2,32,1], index: 9, kind: input, shape index: {}]   ;;  %s17982_s10 = inlined_call_operand.vmem [shape: f32[2,32,1], index: 10, kind: input, shape index: {}]   ;;  %s17983_s11 = inlined_call_operand.vmem [shape: bf16[2,32,32], index: 11, kind: input, shape index: {}]   ;;  %s17984_s12 = inlined_call_operand.vmem [shape: f32[2,32,1], index: 12, kind: input, shape index: {}]   ;;  %s17985_s13 = inlined_call_operand.vmem [shape: bf16[2,32,32], index: 13, kind: input, shape index: {}]   ;;  %s17986_s14 = inlined_call_operand.vmem [shape: bf16[2,32,32], index: 14, kind: input, shape index: {}]   ;;  %s17987_s15 = inlined_call_operand.vmem [shape: f32[2,32,256], index: 15, kind: output, shape index: {}]  }
   0x1 LB: > { %s8247_s19 = sadd.s32 4294967295, %s9635_s18   ;;  %p8251_p0 = scmp.ge.s32.totalorder %s9635_s18, 1  ;;  %s9635_s18 = sphi %s9721_s18, %s25_s18  }
   0x2   : > { %p437_p1 = scmp.lt.s32.totalorder %s9635_s18, 3 }
   0x4   : > { %p438_p2 = pnand %p8251_p0, %p437_p1 }
   0x6   : > { %441 = sbr.rel (%p438_p2) target bundleno = 7366 (0x1cc6), region = 80 }
   0xd   : > { %v497_v0 = vld [vmem:[%s17973_s1] sm:$0xff]  ;;  %v9637_v1 = vmov 3   ;;  %v9638_v2 = vmov 1   ;;  %v498_v3 = vld [vmem:[%s17973_s1 + $0x8] sm:$0xff]  ;;  %v17988_v4 = vmov 0   ;;  %v9640_v5 = vmov 2  }
   0xe   : > { %8508 = vset.pattern.permute.xlu0 %v9637_v1  ;;  %8504 = vset.pattern.permute.xlu1 %v9638_v2  ;;  %v500_v6 = vld [vmem:[%s17973_s1 + $0x18] sm:$0xff]  ;;  %v499_v7 = vld [vmem:[%s17973_s1 + $0x10] sm:$0xff]  ;;  %v698_v8 = vld [vmem:[%s17974_s2] sm:$0xff]  ;;  %p485_p3 = scmp.lt.s32.totalorder %s8247_s19, 1  ;;  %v522_v20 = vlaneseq  ;;  %vm828_vm0 = vcmask 261120   ;;  %vm1280_vm1 = vcmask 1043456  }
   0xf   : > { %649 = vperm.xlu0 %8508, %v497_v0   ;;  %549 = vperm.xlu1 %8504, %v497_v0   ;;  %v701_v9 = vld [vmem:[%s17974_s2 + $0x18] sm:$0xff]  ;;  %v795_v10 = vld [vmem:[%s17976_s4 + $0x8] sm:$0xff]  ;;  %v904_v12 = vld [vmem:[%s17980_s8] sm:$0xff]  ;;  %vm1231_vm2 = vcmask 64512  }
  0x10   : > { %867 = vmatprep.mubr.bf16.mxu0 %v17988_v4  ;;  %877 = vmatprep.mubr.bf16.mxu1 %v17988_v4  ;;  %v797_v11 = vld [vmem:[%s17976_s4 + $0x18] sm:$0xff]  ;;  %v699_v13 = vld [vmem:[%s17974_s2 + $0x8] sm:$0xff]  ;;  %v700_v14 = vld [vmem:[%s17974_s2 + $0x10] sm:$0xff]  ;;  %s19915_s19 = smov (!%p485_p3, %s8247_s19), 1  ;;  %v523_v22 = vshrl.u32 %v522_v20, 7 }
  0x11   : > { %v794_v15 = vld [vmem:[%s17976_s4] sm:$0xff]  ;;  %v796_v16 = vld [vmem:[%s17976_s4 + $0x10] sm:$0xff]  ;;  %s8486_s22 = sshll.u32 %s19915_s19, 3  ;;  %s8487_s21 = sshll.u32 %s19915_s19, 6 }
  0x12   : > { %v1001_v17 = vld [vmem:[%s17981_s9] sm:$0xff]  ;;  %s489_s25 = scalar_lea.vmem %s17972_s0, %s8486_s22  ;;  %v524_v24 = vsub.s32 0, %v523_v22  ;;  %v566_v25 = vsub.s32 1, %v523_v22  ;;  %v528_v28 = vsub.s32 4, %v523_v22  ;;  %v570_v30 = vsub.s32 5, %v523_v22  ;;  %s494_s24 = scalar_lea.vmem %s17987_s15, %s8487_s21 }
  0x13   : > { %8509 = vset.pattern.permute.xlu0 %v9640_v5  ;;  %553 = vperm.xlu1 %8504, %v498_v3   ;;  %v496_v29 = vld [vmem:[%s489_s25] sm:$0xff]  ;;  %v616_v33 = vsub.s32 2, %v523_v22  ;;  %v666_v35 = vsub.s32 3, %v523_v22  ;;  %v620_v39 = vsub.s32 6, %v523_v22  ;;  %v670_v42 = vsub.s32 7, %v523_v22 }
  0x14   : > { %599 = vperm.xlu0 %8509, %v497_v0   ;;  %v525_v31 = vrot.slane %v496_v29, %v524_v24  ;;  %v567_v32 = vrot.slane %v496_v29, %v566_v25  ;;  %v529_v34 = vrot.slane %v496_v29, %v528_v28  ;;  %v571_v38 = vrot.slane %v496_v29, %v570_v30 }
  0x15   : > { %v617_v43 = vrot.slane %v496_v29, %v616_v33  ;;  %v667_v45 = vrot.slane %v496_v29, %v666_v35  ;;  %v621_v48 = vrot.slane %v496_v29, %v620_v39  ;;  %v671_v52 = vrot.slane %v496_v29, %v670_v42 }
  0x16   : > { %v535_v40 = vrot.slane %v525_v31, %v524_v24  ;;  %v577_v41 = vrot.slane %v567_v32, %v566_v25  ;;  %v539_v44 = vrot.slane %v529_v34, %v524_v24  ;;  %v581_v47 = vrot.slane %v571_v38, %v566_v25 }
  0x17   : > { %8505 = vset.pattern.permute.xlu1 %v9640_v5  ;;  %v627_v53 = vrot.slane %v617_v43, %v616_v33  ;;  %v9790_v55 = vrot.slane %v667_v45, %v666_v35  ;;  %v631_v57 = vrot.slane %v621_v48, %v616_v33  ;;  %v681_v62 = vrot.slane %v671_v52, %v666_v35 }
  0x18   : > { %611 = vperm.xlu0 %8509, %v500_v6   ;;  %603 = vperm.xlu1 %8505, %v498_v3  }
  0x1c   : > { %8512 = vset.pattern.permute.xlu0 %v17988_v4  ;;  %8506 = vset.pattern.permute.xlu1 %v17988_v4 }
  0x1d   : > { %503 = vperm.xlu0 %8512, %v497_v0   ;;  %513 = vperm.xlu1 %8506, %v499_v7  }
  0x21   : > { %508 = vperm.xlu0 %8512, %v498_v3   ;;  %8507 = vset.pattern.permute.xlu1 %v9638_v2 }
  0x22   : > { %557 = vperm.xlu1 %8507, %v499_v7  }
  0x25   : > { %518 = vperm.xlu0 %8512, %v500_v6  }
  0x26   : > { %561 = vperm.xlu1 %8507, %v500_v6  }
  0x29   : > { %704 = vperm.xlu0 %8512, %v698_v8  }
  0x2a   : > { %8510 = vset.pattern.permute.xlu1 %v9637_v1 }
  0x2b   : > { %653 = vperm.xlu1 %8510, %v498_v3  }
  0x2d   : > { %719 = vperm.xlu0 %8512, %v701_v9  }
  0x2f   : > { %8511 = vset.pattern.permute.xlu1 %v9640_v5 }
  0x30   : > { %607 = vperm.xlu1 %8511, %v499_v7  }
  0x31   : > { %805 = vperm.xlu0 %8512, %v795_v10  }
  0x34   : > { %8513 = vset.pattern.permute.xlu1 %v9637_v1 }
  0x35   : > { %815 = vperm.xlu0 %8512, %v797_v11   ;;  %657 = vperm.xlu1 %8513, %v499_v7  }
  0x39   : > { %910 = vperm.xlu0 %8512, %v904_v12   ;;  %661 = vperm.xlu1 %8513, %v500_v6  }
  0x3d   : > { %8514 = vset.pattern.permute.xlu1 %v17988_v4 }
  0x3e   : > { %709 = vperm.xlu1 %8514, %v699_v13  }
  0x42   : > { %714 = vperm.xlu1 %8514, %v700_v14  }
  0x46   : > { %800 = vperm.xlu1 %8514, %v794_v15  }
  0x4a   : > { %810 = vperm.xlu1 %8514, %v796_v16  }
  0x4e   : > { %1007 = vperm.xlu1 %8514, %v1001_v17  }
  0x8e   : > { %v550_v18 = vpop.permute.xlu1 %549  ;;  %v650_v19 = vpop.permute.xlu0 %649 }
  0x8f   : > { %v582_v51 = vmul.f32 %v577_v41, %v550_v18  ;;  %v583_v56 = vmul.f32 %v581_v47, %v550_v18  ;;  %v682_v1 = vmul.f32 %v9790_v55, %v650_v19  ;;  %v683_v5 = vmul.f32 %v681_v62, %v650_v19 }
  0x92   : > { %v9783_v21 = vpop.permute.xlu1 %553 }
  0x93   : > { %v600_v23 = vpop.permute.xlu0 %599  ;;  %v584_v20 = vmul.f32 %v577_v41, %v9783_v21  ;;  %v585_v19 = vmul.f32 %v581_v47, %v9783_v21 }
  0x94   : > { %v632_v58 = vmul.f32 %v627_v53, %v600_v23  ;;  %v633_v63 = vmul.f32 %v631_v57, %v600_v23 }
  0x97   : > { %v9788_v26 = vpop.permute.xlu1 %603  ;;  %v612_v27 = vpop.permute.xlu0 %611 }
  0x98   : > { %v638_v23 = vmul.f32 %v627_v53, %v612_v27  ;;  %v639_v29 = vmul.f32 %v631_v57, %v612_v27  ;;  %v634_v32 = vmul.f32 %v627_v53, %v9788_v26 }
  0x9c   : > { %v504_v36 = vpop.permute.xlu0 %503  ;;  %v514_v37 = vpop.permute.xlu1 %513 }
  0x9d   : > { %v540_v49 = vmul.f32 %v535_v40, %v504_v36  ;;  %v541_v54 = vmul.f32 %v539_v44, %v504_v36  ;;  %v544_v33 = vmul.f32 %v535_v40, %v514_v37  ;;  %v635_v36 = vmul.f32 %v631_v57, %v9788_v26 }
  0x9e   : > { %v545_v38 = vmul.f32 %v539_v44, %v514_v37 }
  0x9f   : > { %v590_v59 = vadd.f32 %v582_v51, %v540_v49  ;;  %v591_v0 = vadd.f32 %v583_v56, %v541_v54 }
  0xa0   : > { %v509_v46 = vpop.permute.xlu0 %508 }
  0xa1   : > { %v558_v50 = vpop.permute.xlu1 %557  ;;  %v640_v2 = vadd.f32 %v632_v58, %v590_v59  ;;  %v641_v6 = vadd.f32 %v633_v63, %v591_v0  ;;  %v542_v17 = vmul.f32 %v535_v40, %v509_v46  ;;  %v543_v18 = vmul.f32 %v539_v44, %v509_v46 }
  0xa2   : > { %v586_v24 = vmul.f32 %v577_v41, %v558_v50  ;;  %v587_v39 = vmul.f32 %v581_v47, %v558_v50 }
  0xa3   : > { %v690_v8 = vadd.f32 %v682_v1, %v640_v2  ;;  %v691_v9 = vadd.f32 %v683_v5, %v641_v6  ;;  %v592_v34 = vadd.f32 %v584_v20, %v542_v17  ;;  %v593_v35 = vadd.f32 %v585_v19, %v543_v18 }
  0xa4   : > { %v519_v61 = vpop.permute.xlu0 %518  ;;  %v594_v43 = vadd.f32 %v586_v24, %v544_v33  ;;  %v595_v58 = vadd.f32 %v587_v39, %v545_v38 }
  0xa5   : > { %v562_v60 = vpop.permute.xlu1 %561  ;;  %v546_v12 = vmul.f32 %v535_v40, %v519_v61  ;;  %v547_v14 = vmul.f32 %v539_v44, %v519_v61  ;;  %v642_v54 = vadd.f32 %v634_v32, %v592_v34  ;;  %v643_v56 = vadd.f32 %v635_v36, %v593_v35 }
  0xa6   : > { %v588_v13 = vmul.f32 %v577_v41, %v562_v60  ;;  %v589_v15 = vmul.f32 %v581_v47, %v562_v60 }
  0xa8   : > { %v705_v7 = vpop.permute.xlu0 %704  ;;  %v596_v25 = vadd.f32 %v588_v13, %v546_v12  ;;  %v597_v30 = vadd.f32 %v589_v15, %v547_v14 }
  0xa9   : > { %v9793_v10 = vadd.f32 %v705_v7, %v690_v8  ;;  %v9795_v16 = vadd.f32 %v705_v7, %v691_v9 }
  0xaa   : > { %v654_v3 = vpop.permute.xlu1 %653  ;;  %v646_v46 = vadd.f32 %v638_v23, %v596_v25  ;;  %v647_v48 = vadd.f32 %v639_v29, %v597_v30 }
  0xab   : > { %v730_v22 = vsub.f32 0.0, %v9793_v10  ;;  %v731_v31 = vsub.f32 0.0, %v9795_v16  ;;  %v684_v21 = vmul.f32 %v9790_v55, %v654_v3  ;;  %v685_v41 = vmul.f32 %v681_v62, %v654_v3 }
  0xac   : > { %v720_v47 = vpop.permute.xlu0 %719 }
  0xad   : > { %v738_v42 = vmin.f32 %v730_v22, 80.0  ;;  %v739_v27 = vmin.f32 %v731_v31, 80.0  ;;  %v692_v60 = vadd.f32 %v684_v21, %v642_v54  ;;  %v693_v61 = vadd.f32 %v685_v41, %v643_v56 }
  0xaf   : > { %v608_v11 = vpop.permute.xlu1 %607  ;;  %v746_v26 = vmul.f32 1.442695, %v738_v42  ;;  %v748_v63 = vmul.f32 1.442695, %v739_v27 }
  0xb0   : > { %v636_v52 = vmul.f32 %v627_v53, %v608_v11  ;;  %v637_v40 = vmul.f32 %v631_v57, %v608_v11 }
  0xb1   : > { %8541 = vpow2.f32 %v746_v26 }
  0xb2   : > { %v644_v53 = vadd.f32 %v636_v52, %v594_v43  ;;  %v645_v57 = vadd.f32 %v637_v40, %v595_v58  ;;  %8543 = vpow2.f32 %v748_v63 }
  0xb4   : > { %v658_v28 = vpop.permute.xlu1 %657 }
  0xb5   : > { %v686_v50 = vmul.f32 %v9790_v55, %v658_v28  ;;  %v687_v59 = vmul.f32 %v681_v62, %v658_v28 }
  0xb7   : > { %v694_v8 = vadd.f32 %v686_v50, %v644_v53  ;;  %v695_v9 = vadd.f32 %v687_v59, %v645_v57 }
  0xb8   : > { %v662_v45 = vpop.permute.xlu1 %661 }
  0xb9   : > { %v688_v49 = vmul.f32 %v9790_v55, %v662_v45  ;;  %v689_v51 = vmul.f32 %v681_v62, %v662_v45 }
  0xbb   : > { %v696_v37 = vadd.f32 %v688_v49, %v646_v46  ;;  %v697_v44 = vadd.f32 %v689_v51, %v647_v48  ;;  %v8542_v32 = vpop.eup %8541 }
  0xbc   : > { %v8544_v33 = vpop.eup %8543  ;;  %v762_v34 = vadd.f32 1.0, %v8542_v32 }
  0xbd   : > { %v9806_v0 = vadd.f32 %v720_v47, %v696_v37  ;;  %v9808_v1 = vadd.f32 %v720_v47, %v697_v44  ;;  %v710_v2 = vpop.permute.xlu1 %709  ;;  %v763_v35 = vadd.f32 1.0, %v8544_v33 }
  0xbe   : > { %v9810_v3 = vadd.f32 %v710_v2, %v692_v60  ;;  %v9812_v5 = vadd.f32 %v710_v2, %v693_v61 }
  0xbf   : > { %v736_v6 = vsub.f32 0.0, %v9806_v0  ;;  %v737_v55 = vsub.f32 0.0, %v9808_v1 }
  0xc0   : > { %v732_v62 = vsub.f32 0.0, %v9810_v3  ;;  %v733_v7 = vsub.f32 0.0, %v9812_v5 }
  0xc1   : > { %v744_v11 = vmin.f32 %v736_v6, 80.0  ;;  %v745_v12 = vmin.f32 %v737_v55, 80.0  ;;  %v715_v13 = vpop.permute.xlu1 %714 }
  0xc2   : > { %v740_v14 = vmin.f32 %v732_v62, 80.0  ;;  %v741_v15 = vmin.f32 %v733_v7, 80.0  ;;  %v726_v17 = vadd.f32 %v715_v13, %v694_v8  ;;  %v727_v18 = vadd.f32 %v715_v13, %v695_v9 }
  0xc3   : > { %v758_v20 = vmul.f32 1.442695, %v744_v11  ;;  %v760_v22 = vmul.f32 1.442695, %v745_v12 }
  0xc4   : > { %v750_v19 = vmul.f32 1.442695, %v740_v14  ;;  %v752_v23 = vmul.f32 1.442695, %v741_v15  ;;  %v734_v24 = vsub.f32 0.0, %v726_v17  ;;  %v735_v25 = vsub.f32 0.0, %v727_v18 }
  0xc5   : > { %8545 = vpow2.f32 %v758_v20 }
  0xc6   : > { %8547 = vpow2.f32 %v760_v22  ;;  %v742_v28 = vmin.f32 %v734_v24, 80.0  ;;  %v743_v29 = vmin.f32 %v735_v25, 80.0 }
  0xc7   : > { %8549 = vpow2.f32 %v750_v19 }
  0xc8   : > { %8551 = vpow2.f32 %v752_v23  ;;  %v754_v30 = vmul.f32 1.442695, %v742_v28  ;;  %v756_v31 = vmul.f32 1.442695, %v743_v29 }
  0xca   : > { %8553 = vpow2.f32 %v754_v30 }
  0xcb   : > { %8555 = vpow2.f32 %v756_v31 }
  0xcc   : > { %8557 = vrcp.f32 %v762_v34 }
  0xcd   : > { %8559 = vrcp.f32 %v763_v35 }
  0xcf   : > { %v8546_v36 = vpop.eup %8545 }
  0xd0   : > { %v8548_v38 = vpop.eup %8547  ;;  %v768_v39 = vadd.f32 1.0, %v8546_v36 }
  0xd1   : > { %v8550_v42 = vpop.eup %8549  ;;  %v769_v21 = vadd.f32 1.0, %v8548_v38 }
  0xd2   : > { %v8552_v43 = vpop.eup %8551  ;;  %v764_v41 = vadd.f32 1.0, %v8550_v42  ;;  %8561 = vrcp.f32 %v768_v39  ;;  %v8517_v42 = vld [vmem:[%s17977_s5] sm:$0xff]  }
  0xd3   : > { %v765_v45 = vadd.f32 1.0, %v8552_v43  ;;  %v8518_v43 = vld [vmem:[%s17978_s6] sm:$0xff]  }
  0xd4   : > { %v8554_v46 = vpop.eup %8553  ;;  %8563 = vrcp.f32 %v764_v41  ;;  %v8520_v41 = vld [vmem:[%s17979_s7] sm:$0xff]  }
  0xd5   : > { %v8556_v27 = vpop.eup %8555  ;;  %8565 = vrcp.f32 %v765_v45  ;;  %v766_v48 = vadd.f32 1.0, %v8554_v46  ;;  %v8521_v45 = vld [vmem:[%s17978_s6 + $0x8] sm:$0xff]  }
  0xd6   : > { %8567 = vrcp.f32 %v769_v21  ;;  %v767_v49 = vadd.f32 1.0, %v8556_v27  ;;  %v8558_v51 = vpop.eup %8557  ;;  %v8519_v21 = vld [vmem:[%s17977_s5 + $0x8] sm:$0xff]  }
  0xd7   : > { %8569 = vrcp.f32 %v766_v48  ;;  %v8560_v52 = vpop.eup %8559  ;;  %v778_v58 = vmul.f32 %v8558_v51, %v9793_v10 }
  0xd8   : > { %8571 = vrcp.f32 %v767_v49  ;;  %v779_v44 = vmul.f32 %v8560_v52, %v9795_v16  ;;  %v8515_v16 = vld [vmem:[%s17975_s3] sm:$0xff]  }
  0xdc   : > { %v8562_v40 = vpop.eup %8561 }
  0xdd   : > { %v784_v57 = vmul.f32 %v8562_v40, %v9806_v0  ;;  %v806_v0 = vpop.permute.xlu0 %805 }
  0xde   : > { %v8564_v54 = vpop.eup %8563 }
  0xdf   : > { %v8566_v56 = vpop.eup %8565  ;;  %v780_v26 = vmul.f32 %v8564_v54, %v9810_v3 }
  0xe0   : > { %v8568_v37 = vpop.eup %8567  ;;  %v781_v47 = vmul.f32 %v8566_v56, %v9812_v5  ;;  %v8516_v5 = vld [vmem:[%s17975_s3 + $0x8] sm:$0xff]  }
  0xe1   : > { %v8570_v50 = vpop.eup %8569  ;;  %v790_v59 = vpack.c.bf16 %v780_v26, %v778_v58  ;;  %v785_v53 = vmul.f32 %v8568_v37, %v9808_v1  ;;  %v801_v1 = vpop.permute.xlu1 %800 }
  0xe2   : > { %v8572_v60 = vpop.eup %8571  ;;  %v782_v61 = vmul.f32 %v8570_v50, %v726_v17  ;;  %v791_v63 = vpack.c.bf16 %v781_v47, %v779_v44  ;;  %v816_v6 = vpop.permute.xlu0 %815 }
  0xe3   : > { %v783_v2 = vmul.f32 %v8572_v60, %v727_v18 }
  0xe4   : > { %835 = vmatprep.subr.bf16.mxu0 %v791_v63  ;;  %8488 = vmatprep.subr.bf16.mxu1 %v791_v63  ;;  %v792_v3 = vpack.c.bf16 %v784_v57, %v782_v61 }
  0xe5   : > { %836 = vmatpush1.bf16.msra.mxu0 %v790_v59  ;;  %8490 = vmatpush1.bf16.msra.mxu1 %v790_v59  ;;  %v793_v10 = vpack.c.bf16 %v785_v53, %v783_v2  ;;  %v811_v55 = vpop.permute.xlu1 %810 }
  0xe6   : > { %v911_v46 = vpop.permute.xlu0 %910 }
  0xe7   : > { %837 = vmatprep.subr.bf16.mxu0 %v793_v10  ;;  %8489 = vmatprep.subr.bf16.mxu1 %v793_v10 }
  0xe9   : > { %838 = vmatpush1.bf16.msra.mxu0 %v792_v3  ;;  %8491 = vmatpush1.bf16.msra.mxu1 %v792_v3  ;;  %v1008_v27 = vpop.permute.xlu1 %1007 }
  0xec   : > { %8258 = vmatmul.mubr.msk.bf16.vlgmr.msra.gmra.mrb[0].mxu0 %vm828_vm0, %v8515_v16  ;;  %8259 = vmatmul.mubr.msk.bf16.vlgmr.msra.gmra.mrb[0].mxu1 %vm828_vm0, %v8516_v5 }
  0xed   : > { %976 = vmatprep.mubr.bf16.mxu1 %v17988_v4  ;;  %1073 = vmatprep.mubr.bf16.mxu0 %v17988_v4 }
 0x1bf   : > { %v869_v62 = vpop.f32.mrb[0].mxu0  ;;  %v879_v7 = vpop.f32.mrb[0].mxu1 }
 0x1c0   : > { %v871_v8 = vpop.f32.mrb[1].mxu0  ;;  %v881_v9 = vpop.f32.mrb[1].mxu1  ;;  %v870_v14 = vadd.f32 %v869_v62, %v801_v1  ;;  %v880_v31 = vadd.f32 %v879_v7, %v811_v55  ;;  %v1002_v62 = vld [vmem:[%s17981_s9 + $0x8] sm:$0xff] }
 0x1c1   : > { %v872_v11 = vadd.f32 %v871_v8, %v801_v1  ;;  %v873_v12 = vpop.f32.mrb[2].mxu0  ;;  %v883_v13 = vpop.f32.mrb[2].mxu1  ;;  %v882_v20 = vadd.f32 %v881_v9, %v811_v55  ;;  %v8522_v55 = vld [vmem:[%s17979_s7 + $0x8] sm:$0xff]  }
 0x1c2   : > { %v874_v15 = vadd.f32 %v873_v12, %v806_v0  ;;  %v875_v17 = vpop.f32.mrb[3].mxu0  ;;  %v885_v18 = vpop.f32.mrb[3].mxu1  ;;  %v884_v24 = vadd.f32 %v883_v13, %v816_v6  ;;  %v9842_v30 = vadd.f32 %v870_v14, %v778_v58  ;;  %v9854_v38 = vadd.f32 %v880_v31, %v782_v61 }
 0x1c3   : > { %v876_v22 = vadd.f32 %v875_v17, %v806_v0  ;;  %v886_v19 = vadd.f32 %v885_v18, %v816_v6  ;;  %v9836_v25 = vadd.f32 %v872_v11, %v779_v44  ;;  %v9844_v32 = vadd.f32 %v882_v20, %v783_v2  ;;  %v1098_v0 = vld [vmem:[%s17982_s10] sm:$0xff]  ;;  %v905_v6 = vld [vmem:[%s17980_s8 + $0x8] sm:$0xff] }
 0x1c4   : > { %v9834_v23 = vadd.f32 %v874_v15, %v780_v26  ;;  %18497 = vst [vmem:[#allocation7_spill] sm:$0xff] %v9842_v30  ;;  %v9848_v34 = vadd.f32 %v884_v24, %v784_v57  ;;  %18500 = vst [vmem:[#allocation10_spill] sm:$0xff] %v9854_v38 }
 0x1c5   : > { %18494 = vst [vmem:[#allocation4_spill] sm:$0xff] %v9836_v25  ;;  %v9838_v28 = vadd.f32 %v876_v22, %v781_v47  ;;  %v9840_v29 = vadd.f32 %v886_v19, %v785_v53  ;;  %18498 = vst [vmem:[#allocation8_spill] sm:$0xff] %v9844_v32 }
 0x1c6   : > { %18493 = vst [vmem:[#allocation3_spill] sm:$0xff] %v9834_v23  ;;  %18499 = vst [vmem:[#allocation9_spill] sm:$0xff] %v9848_v34  ;;  %v896_v35 = vpack.c.bf16 %v9834_v23, %v9842_v30  ;;  %v898_v39 = vpack.c.bf16 %v9848_v34, %v9854_v38 }
 0x1c7   : > { %18495 = vst [vmem:[#allocation5_spill] sm:$0xff] %v9838_v28  ;;  %18496 = vst [vmem:[#allocation6_spill] sm:$0xff] %v9840_v29  ;;  %v897_v33 = vpack.c.bf16 %v9838_v28, %v9836_v25  ;;  %v899_v36 = vpack.c.bf16 %v9840_v29, %v9844_v32 }
 0x1c9   : > { %944 = vmatprep.subr.bf16.mxu1 %v897_v33  ;;  %1041 = vmatprep.subr.bf16.mxu0 %v897_v33 }
 0x1ca   : > { %945 = vmatpush1.bf16.msra.mxu1 %v896_v35  ;;  %1042 = vmatpush1.bf16.msra.mxu0 %v896_v35 }
 0x1cb   : > { %946 = vmatprep.subr.bf16.mxu1 %v899_v36  ;;  %1043 = vmatprep.subr.bf16.mxu0 %v899_v36 }
 0x1ce   : > { %947 = vmatpush1.bf16.msra.mxu1 %v898_v39  ;;  %1044 = vmatpush1.bf16.msra.mxu0 %v898_v39 }
 0x1cf   : > { %1138 = vmatprep.subr.bf16.mxu1 %v897_v33 }
 0x1d1   : > { %8262 = vmatmul.mubr.msk.bf16.vlgmr.msra.gmra.mrb[4].mxu1 %vm828_vm0, %v8517_v42  ;;  %8266 = vmatmul.mubr.msk.bf16.vlgmr.msra.gmra.mrb[4].mxu0 %vm828_vm0, %v8518_v43 }
 0x1d2   : > { %1139 = vmatpush1.bf16.msra.mxu1 %v896_v35  ;;  %986 = vmatprep.mubr.bf16.mxu1 %v17988_v4 }
 0x1d3   : > { %1140 = vmatprep.subr.bf16.mxu1 %v899_v36  ;;  %1083 = vmatprep.mubr.bf16.mxu0 %v17988_v4 }
 0x1d6   : > { %1141 = vmatpush1.bf16.msra.mxu1 %v898_v39 }
 0x1d9   : > { %8263 = vmatmul.mubr.msk.bf16.gmra.mrb[8].mxu1 %vm828_vm0, %v8519_v21  ;;  %8267 = vmatmul.mubr.msk.bf16.gmra.mrb[8].mxu0 %vm828_vm0, %v8521_v45 }
 0x1da   : > { %1170 = vmatprep.mubr.bf16.mxu1 %v17988_v4  ;;  %1319 = vmatprep.mubr.bf16.mxu0 %v17988_v4 }
 0x1e1   : > { %8270 = vmatmul.mubr.msk.bf16.vlgmr.msra.gmra.mrb[12].mxu1 %vm828_vm0, %v8520_v41 }
 0x1e2   : > { %1180 = vmatprep.mubr.bf16.mxu1 %v17988_v4 }
 0x1e9   : > { %8271 = vmatmul.mubr.msk.bf16.gmra.mrb[16].mxu1 %vm828_vm0, %v8522_v55 }
 0x2a4   : > { %v978_v48 = vpop.f32.mrb[4].mxu1  ;;  %v1075_v49 = vpop.f32.mrb[4].mxu0 }
 0x2a5   : > { %v979_v51 = vadd.f32 %v978_v48, %v911_v46  ;;  %v1076_v52 = vadd.f32 %v1075_v49, %v1008_v27  ;;  %v980_v40 = vpop.f32.mrb[5].mxu1  ;;  %v1077_v54 = vpop.f32.mrb[5].mxu0 }
 0x2a6   : > { %v981_v56 = vadd.f32 %v980_v40, %v911_v46  ;;  %v1078_v58 = vadd.f32 %v1077_v54, %v1008_v27  ;;  %v9883_v26 = vpop.f32.mrb[6].mxu0  ;;  %v9885_v37 = vpop.f32.mrb[6].mxu1  ;;  %v1003_v54 = vld [vmem:[%s17981_s9 + $0x10] sm:$0xff] }
 0x2a7   : > { %18501 = vst [vmem:[#allocation11_spill] sm:$0xff] %v9885_v37  ;;  %v1191_v44 = vmul.f32 0.35355338, %v979_v51  ;;  %v9887_v47 = vpop.f32.mrb[7].mxu0  ;;  %v1195_v50 = vpack.c.bf16 %v1076_v52, %v1076_v52  ;;  %v9889_v59 = vpop.f32.mrb[7].mxu1  ;;  %v1099_v52 = vld [vmem:[%s17982_s10 + $0x8] sm:$0xff] }
 0x2a8   : > { %18502 = vst [vmem:[#allocation12_spill] sm:$0xff] %v9889_v59  ;;  %v1192_v60 = vmul.f32 0.35355338, %v981_v56  ;;  %v1196_v61 = vpack.c.bf16 %v1078_v58, %v1078_v58  ;;  %v906_v56 = vld [vmem:[%s17980_s8 + $0x10] sm:$0xff] }
 0x2a9   : > { %v1193_v63 = vpack.c.bf16 %v1191_v44, %v1191_v44  ;;  %1199 = vxpose.xlu1.c.b16.start.end [1/1] (short) %v1195_v50, 128 }
 0x2aa   : > { %v1194_v2 = vpack.c.bf16 %v1192_v60, %v1192_v60  ;;  %1215 = vxpose.xlu0.c.b16.start.end [1/1] (short) %v1196_v61, 128 }
 0x2ab   : > { %v1282_v53 = vsel %vm1280_vm1, %v1193_v63, 0 }
 0x2ac   : > { %8272 = vmatprep.subr.msk.bf16.mxu0 %vm1280_vm1, %v1194_v2  ;;  %v9893_v57 = vpop.f32.mrb[8].mxu1  ;;  %v9928_v24 = vpop.f32.mrb[8].mxu0 }
 0x2ad   : > { %1288 = vmatpush1.bf16.msra.mxu0 %v1282_v53  ;;  %18503 = vst [vmem:[#allocation13_spill] sm:$0xff] %v9893_v57  ;;  %v9895_v10 = vpop.f32.mrb[9].mxu1  ;;  %v9930_v31 = vpop.f32.mrb[9].mxu0 }
 0x2ae   : > { %18504 = vst [vmem:[#allocation14_spill] sm:$0xff] %v9895_v10  ;;  %v9897_v3 = vpop.f32.mrb[10].mxu1  ;;  %v9932_v33 = vpop.f32.mrb[10].mxu0 }
 0x2af   : > { %18505 = vst [vmem:[#allocation15_spill] sm:$0xff] %v9897_v3  ;;  %v9899_v16 = vpop.f32.mrb[11].mxu1  ;;  %18508 = vst [vmem:[#allocation18_spill] sm:$0xff] %v9932_v33  ;;  %v9936_v35 = vpop.f32.mrb[11].mxu0 }
 0x2b0   : > { %18506 = vst [vmem:[#allocation16_spill] sm:$0xff] %v9899_v16  ;;  %18509 = vst [vmem:[#allocation19_spill] sm:$0xff] %v9936_v35 }
 0x2b4   : > { %v9901_v5 = vpop.f32.mrb[12].mxu1 }
 0x2b5   : > { %18507 = vst [vmem:[#allocation17_spill] sm:$0xff] %v9901_v5  ;;  %v1174_v1 = vpop.f32.mrb[13].mxu1 }
 0x2b6   : > { %v9953_v51 = vpop.f32.mrb[14].mxu1 }
 0x2b7   : > { %18511 = vst [vmem:[#allocation21_spill] sm:$0xff] %v9953_v51  ;;  %v1178_v40 = vpop.f32.mrb[15].mxu1 }
 0x2c9   : > { %1104 = vperm.xlu1 %8514, %v1098_v0  }
 0x2cd   : > { %915 = vperm.xlu1 %8514, %v905_v6  }
 0x2cf   : > { %1012 = vperm.xlu0 %8512, %v1002_v62  }
 0x30f   : > { %v1207_v7 = vpop.trf.xlu1 }
 0x310   : > { %8273 = vmatmul.mubr.msk.bf16.vlgmr.msra.gmra.mrb[12].mxu0 %vm1231_vm2, %v1207_v7  ;;  %v1223_v11 = vpop.trf.xlu0 }
 0x311   : > { %1329 = vmatprep.mubr.bf16.mxu0 %v17988_v4 }
 0x313   : > { %v1208_v8 = vpop.trf.xlu1 }
 0x314   : > { %v1224_v12 = vpop.trf.xlu0 }
 0x317   : > { %v1209_v9 = vpop.trf.xlu1 }
 0x318   : > { %8274 = vmatmul.mubr.msk.bf16.gmra.mrb[16].mxu0 %vm1231_vm2, %v1208_v8  ;;  %v1225_v14 = vpop.trf.xlu0 }
 0x319   : > { %1339 = vmatprep.mubr.bf16.mxu0 %v17988_v4 }
 0x31b   : > { %v1210_v13 = vpop.trf.xlu1 }
 0x31c   : > { %v1226_v17 = vpop.trf.xlu0 }
 0x31f   : > { %v1211_v15 = vpop.trf.xlu1 }
 0x320   : > { %8275 = vmatmul.mubr.msk.bf16.gmra.mrb[20].mxu0 %vm1231_vm2, %v1209_v9  ;;  %v1227_v20 = vpop.trf.xlu0 }
 0x321   : > { %1349 = vmatprep.mubr.bf16.mxu0 %v17988_v4 }
 0x323   : > { %v1212_v18 = vpop.trf.xlu1 }
 0x324   : > { %v1228_v19 = vpop.trf.xlu0 }
 0x327   : > { %v1213_v22 = vpop.trf.xlu1 }
 0x328   : > { %8276 = vmatmul.mubr.msk.bf16.gmra.mrb[24].mxu0 %vm1231_vm2, %v1210_v13  ;;  %v1229_v39 = vpop.trf.xlu0 }
 0x329   : > { %1359 = vmatprep.mubr.bf16.mxu0 %v17988_v4 }
 0x32b   : > { %v1214_v36 = vpop.trf.xlu1 }
 0x32c   : > { %v1230_v43 = vpop.trf.xlu0 }
 0x330   : > { %8277 = vmatmul.mubr.msk.bf16.gmra.mrb[28].mxu0 %vm1231_vm2, %v1211_v15 }
 0x331   : > { %1369 = vmatprep.mubr.bf16.mxu0 %v17988_v4 }
 0x338   : > { %8278 = vmatmul.mubr.msk.bf16.gmra.mrb[32].mxu0 %vm1231_vm2, %v1212_v18 }
 0x339   : > { %1379 = vmatprep.mubr.bf16.mxu0 %v17988_v4 }
 0x340   : > { %8279 = vmatmul.mubr.msk.bf16.gmra.mrb[36].mxu0 %vm1231_vm2, %v1213_v22 }
 0x341   : > { %1389 = vmatprep.mubr.bf16.mxu0 %v17988_v4 }
 0x348   : > { %v9938_v42 = vpop.permute.xlu1 %1104  ;;  %8280 = vmatmul.mubr.msk.bf16.gmra.mrb[40].mxu0 %vm1231_vm2, %v1214_v36 }
 0x349   : > { %18510 = vst [vmem:[#allocation20_spill] sm:$0xff] %v9938_v42  ;;  %v1175_v21 = vadd.f32 %v1174_v1, %v9938_v42  ;;  %1399 = vmatprep.mubr.bf16.mxu0 %v17988_v4 }
 0x34b   : > { %v1198_v41 = vpack.c.bf16 %v1175_v21, %v1175_v21 }
 0x34c   : > { %v9971_v58 = vpop.permute.xlu1 %915 }
 0x34d   : > { %1950 = vmatprep.mubr.bf16.mxu1 %v1198_v41  ;;  %18512 = vst [vmem:[#allocation22_spill] sm:$0xff] %v9971_v58 }
 0x34e   : > { %v1013_v45 = vpop.permute.xlu0 %1012 }
 0x34f   : > { %v1080_v46 = vadd.f32 %v9883_v26, %v1013_v45  ;;  %v1082_v27 = vadd.f32 %v9887_v47, %v1013_v45 }
 0x350   : > { %8281 = vmatmul.mubr.msk.bf16.gmra.mrb[44].mxu0 %vm1231_vm2, %v1223_v11 }
 0x351   : > { %v1965_v48 = vpack.c.bf16 %v1080_v46, %v1080_v46  ;;  %v1966_v49 = vpack.c.bf16 %v1082_v27, %v1082_v27  ;;  %1409 = vmatprep.mubr.bf16.mxu0 %v17988_v4 }
 0x353   : > { %1969 = vxpose.xlu0.c.b16.start.end [1/1] (short) %v1965_v48, 128  ;;  %1985 = vxpose.xlu1.c.b16.start.end [1/1] (short) %v1966_v49, 128 }
 0x358   : > { %8282 = vmatmul.mubr.msk.bf16.gmra.mrb[48].mxu0 %vm1231_vm2, %v1224_v12 }
 0x359   : > { %1419 = vmatprep.mubr.bf16.mxu0 %v17988_v4 }
 0x360   : > { %8283 = vmatmul.mubr.msk.bf16.gmra.mrb[52].mxu0 %vm1231_vm2, %v1225_v14 }
 0x361   : > { %1429 = vmatprep.mubr.bf16.mxu0 %v17988_v4 }
 0x368   : > { %8284 = vmatmul.mubr.msk.bf16.gmra.mrb[56].mxu0 %vm1231_vm2, %v1226_v17 }
 0x369   : > { %1439 = vmatprep.mubr.bf16.mxu0 %v17988_v4 }
 0x370   : > { %8285 = vmatmul.mubr.msk.bf16.gmra.mrb[60].mxu0 %vm1231_vm2, %v1227_v20 }
 0x371   : > { %1449 = vmatprep.mubr.bf16.mxu0 %v17988_v4 }
 0x373   : > { %1109 = vperm.xlu1 %8514, %v1099_v52  }
 0x378   : > { %1017 = vperm.xlu0 %8512, %v1003_v54   ;;  %8286 = vmatmul.mubr.msk.bf16.gmra.mrb[64].mxu0 %vm1231_vm2, %v1228_v19 }
 0x379   : > { %1459 = vmatprep.mubr.bf16.mxu0 %v17988_v4 }
 0x37c   : > { %920 = vperm.xlu0 %8512, %v906_v56  }
 0x380   : > { %8287 = vmatmul.mubr.msk.bf16.gmra.mrb[68].mxu0 %vm1231_vm2, %v1229_v39 }
 0x381   : > { %1469 = vmatprep.mubr.bf16.mxu0 %v17988_v4 }
 0x388   : > { %8288 = vmatmul.mubr.msk.bf16.gmra.mrb[72].mxu0 %vm1231_vm2, %v1230_v43 }
 0x3b9   : > { %v9973_v26 = vpop.trf.xlu1  ;;  %v9975_v44 = vpop.trf.xlu0 }
 0x3ba   : > { %18513 = vst [vmem:[#allocation23_spill] sm:$0xff] %v9973_v26  ;;  %18514 = vst [vmem:[#allocation24_spill] sm:$0xff] %v9975_v44 }
 0x3bd   : > { %v9977_v47 = vpop.trf.xlu1  ;;  %v9979_v50 = vpop.trf.xlu0 }
 0x3be   : > { %18515 = vst [vmem:[#allocation25_spill] sm:$0xff] %v9977_v47  ;;  %18516 = vst [vmem:[#allocation26_spill] sm:$0xff] %v9979_v50 }
 0x3c1   : > { %v9981_v60 = vpop.trf.xlu1  ;;  %v9983_v61 = vpop.trf.xlu0 }
 0x3c2   : > { %18517 = vst [vmem:[#allocation27_spill] sm:$0xff] %v9981_v60  ;;  %18518 = vst [vmem:[#allocation28_spill] sm:$0xff] %v9983_v61 }
 0x3c5   : > { %v9985_v63 = vpop.trf.xlu1  ;;  %v9987_v2 = vpop.trf.xlu0 }
 0x3c6   : > { %18519 = vst [vmem:[#allocation29_spill] sm:$0xff] %v9985_v63  ;;  %18520 = vst [vmem:[#allocation30_spill] sm:$0xff] %v9987_v2 }
 0x3c9   : > { %v9989_v53 = vpop.trf.xlu1  ;;  %v9991_v0 = vpop.trf.xlu0 }
 0x3ca   : > { %18521 = vst [vmem:[#allocation31_spill] sm:$0xff] %v9989_v53  ;;  %18522 = vst [vmem:[#allocation32_spill] sm:$0xff] %v9991_v0 }
 0x3cd   : > { %v9993_v1 = vpop.trf.xlu1  ;;  %v10001_v7 = vpop.trf.xlu0 }
 0x3ce   : > { %18523 = vst [vmem:[#allocation33_spill] sm:$0xff] %v9993_v1  ;;  %18524 = vst [vmem:[#allocation34_spill] sm:$0xff] %v10001_v7 }
 0x3d1   : > { %v10005_v9 = vpop.trf.xlu1  ;;  %v10009_v12 = vpop.trf.xlu0 }
 0x3d2   : > { %18525 = vst [vmem:[#allocation35_spill] sm:$0xff] %v10005_v9  ;;  %18526 = vst [vmem:[#allocation36_spill] sm:$0xff] %v10009_v12 }
 0x3d5   : > { %v10015_v15 = vpop.trf.xlu1  ;;  %v10027_v36 = vpop.trf.xlu0 }
 0x3d6   : > { %18527 = vst [vmem:[#allocation37_spill] sm:$0xff] %v10015_v15  ;;  %18528 = vst [vmem:[#allocation38_spill] sm:$0xff] %v10027_v36  ;;  %v1004_v15 = vld [vmem:[%s17981_s9 + $0x18] sm:$0xff] }
 0x3e3   : > { %v9995_v6 = vpop.f32.mrb[12].mxu0 }
 0x3e4   : > { %v9997_v55 = vpop.f32.mrb[13].mxu0 }
 0x3e5   : > { %v9999_v62 = vpop.f32.mrb[14].mxu0 }
 0x3e6   : > { %v10003_v8 = vpop.f32.mrb[15].mxu0 }
 0x3eb   : > { %v10007_v11 = vpop.f32.mrb[16].mxu0 }
 0x3ec   : > { %v1480_v13 = vmax.f32 %v9995_v6, %v10007_v11  ;;  %v10013_v14 = vpop.f32.mrb[17].mxu0 }
 0x3ed   : > { %v1517_v17 = vmax.f32 %v9997_v55, %v10013_v14  ;;  %v10019_v18 = vpop.f32.mrb[18].mxu0 }
 0x3ee   : > { %v1481_v20 = vmax.f32 %v9999_v62, %v10019_v18  ;;  %v10023_v22 = vpop.f32.mrb[19].mxu0 }
 0x3ef   : > { %v1518_v19 = vmax.f32 %v10003_v8, %v10023_v22 }
 0x3f2   : > { %v10029_v39 = vpop.permute.xlu1 %1109 }
 0x3f3   : > { %18529 = vst [vmem:[#allocation39_spill] sm:$0xff] %v10029_v39  ;;  %v1179_v43 = vadd.f32 %v1178_v40, %v10029_v39  ;;  %v10032_v21 = vpop.f32.mrb[20].mxu0 }
 0x3f4   : > { %v1482_v41 = vmax.f32 %v1480_v13, %v10032_v21  ;;  %v10035_v45 = vpop.f32.mrb[21].mxu0 }
 0x3f5   : > { %v1519_v46 = vmax.f32 %v1517_v17, %v10035_v45  ;;  %v10038_v27 = vpop.f32.mrb[22].mxu0  ;;  %v1968_v48 = vpack.c.bf16 %v1179_v43, %v1179_v43 }
 0x3f6   : > { %v1483_v49 = vmax.f32 %v1481_v20, %v10038_v27  ;;  %v10041_v52 = vpop.f32.mrb[23].mxu0 }
 0x3f7   : > { %v1520_v54 = vmax.f32 %v1518_v19, %v10041_v52  ;;  %v1018_v56 = vpop.permute.xlu0 %1017  ;;  %2718 = vmatprep.mubr.bf16.mxu0 %v1968_v48 }
 0x3f8   : > { %v1086_v40 = vadd.f32 %v9928_v24, %v1018_v56  ;;  %v1088_v4 = vadd.f32 %v9930_v31, %v1018_v56 }
 0x3fa   : > { %v2733_v13 = vpack.c.bf16 %v1086_v40, %v1086_v40  ;;  %v2734_v38 = vpack.c.bf16 %v1088_v4, %v1088_v4 }
 0x3fb   : > { %v10046_v29 = vpop.f32.mrb[24].mxu0 }
 0x3fc   : > { %v1484_v17 = vmax.f32 %v1482_v41, %v10046_v29  ;;  %2753 = vxpose.xlu0.c.b16.start.end [1/1] (short) %v2734_v38, 128  ;;  %2737 = vxpose.xlu1.c.b16.start.end [1/1] (short) %v2733_v13, 128  ;;  %v10049_v43 = vpop.f32.mrb[25].mxu0 }
 0x3fd   : > { %v1521_v20 = vmax.f32 %v1519_v46, %v10049_v43  ;;  %v10052_v32 = vpop.f32.mrb[26].mxu0 }
 0x3fe   : > { %v1485_v19 = vmax.f32 %v1483_v49, %v10052_v32  ;;  %v10055_v48 = vpop.f32.mrb[27].mxu0 }
 0x3ff   : > { %v1522_v24 = vmax.f32 %v1520_v54, %v10055_v48 }
 0x403   : > { %v10058_v31 = vpop.f32.mrb[28].mxu0 }
 0x404   : > { %v1486_v4 = vmax.f32 %v1484_v17, %v10058_v31  ;;  %v10061_v56 = vpop.f32.mrb[29].mxu0 }
 0x405   : > { %v1523_v38 = vmax.f32 %v1521_v20, %v10061_v56  ;;  %v10064_v41 = vpop.f32.mrb[30].mxu0 }
 0x406   : > { %v1487_v46 = vmax.f32 %v1485_v19, %v10064_v41  ;;  %v10067_v40 = vpop.f32.mrb[31].mxu0 }
 0x407   : > { %v1524_v49 = vmax.f32 %v1522_v24, %v10067_v40 }
 0x40b   : > { %v10070_v13 = vpop.f32.mrb[32].mxu0 }
 0x40c   : > { %v1488_v54 = vmax.f32 %v1486_v4, %v10070_v13  ;;  %v10073_v34 = vpop.f32.mrb[33].mxu0 }
 0x40d   : > { %18530 = vst [vmem:[#allocation40_spill] sm:$0xff] %v10073_v34  ;;  %v1525_v17 = vmax.f32 %v1523_v38, %v10073_v34  ;;  %v10076_v30 = vpop.f32.mrb[34].mxu0 }
 0x40e   : > { %v1489_v20 = vmax.f32 %v1487_v46, %v10076_v30  ;;  %v10079_v28 = vpop.f32.mrb[35].mxu0 }
 0x40f   : > { %18531 = vst [vmem:[#allocation41_spill] sm:$0xff] %v10079_v28  ;;  %v1526_v19 = vmax.f32 %v1524_v49, %v10079_v28  ;;  %v1100_v49 = vld [vmem:[%s17982_s10 + $0x10] sm:$0xff]  ;;  %v10215_v28 = vpop.permute.xlu0 %920 }
 0x410   : > { %18553 = vst [vmem:[#allocation63_spill] sm:$0xff] %v10215_v28 }
 0x413   : > { %v10082_v25 = vpop.f32.mrb[36].mxu0 }
 0x414   : > { %v1490_v24 = vmax.f32 %v1488_v54, %v10082_v25  ;;  %v10085_v23 = vpop.f32.mrb[37].mxu0 }
 0x415   : > { %18532 = vst [vmem:[#allocation42_spill] sm:$0xff] %v10085_v23  ;;  %v1527_v4 = vmax.f32 %v1525_v17, %v10085_v23  ;;  %v10088_v16 = vpop.f32.mrb[38].mxu0 }
 0x416   : > { %v1491_v38 = vmax.f32 %v1489_v20, %v10088_v16  ;;  %v10091_v3 = vpop.f32.mrb[39].mxu0  ;;  %v907_v20 = vld [vmem:[%s17980_s8 + $0x18] sm:$0xff] }
 0x417   : > { %18533 = vst [vmem:[#allocation43_spill] sm:$0xff] %v10091_v3  ;;  %v1528_v46 = vmax.f32 %v1526_v19, %v10091_v3 }
 0x41b   : > { %v10097_v51 = vpop.f32.mrb[40].mxu0 }
 0x41c   : > { %v1492_v54 = vmax.f32 %v1490_v24, %v10097_v51  ;;  %1114 = vperm.xlu1 %8514, %v1100_v49   ;;  %v10100_v39 = vpop.f32.mrb[41].mxu0 }
 0x41d   : > { %18534 = vst [vmem:[#allocation44_spill] sm:$0xff] %v10100_v39  ;;  %v1529_v17 = vmax.f32 %v1527_v4, %v10100_v39  ;;  %v10103_v10 = vpop.f32.mrb[42].mxu0 }
 0x41e   : > { %v1493_v19 = vmax.f32 %v1491_v38, %v10103_v10  ;;  %v10109_v57 = vpop.f32.mrb[43].mxu0 }
 0x41f   : > { %18535 = vst [vmem:[#allocation45_spill] sm:$0xff] %v10109_v57  ;;  %v1530_v24 = vmax.f32 %v1528_v46, %v10109_v57 }
 0x420   : > { %925 = vperm.xlu1 %8514, %v907_v20  }
 0x421   : > { %1022 = vperm.xlu0 %8512, %v1004_v15  }
 0x423   : > { %v10115_v49 = vpop.f32.mrb[44].mxu0 }
 0x424   : > { %v1494_v4 = vmax.f32 %v1492_v54, %v10115_v49  ;;  %v10118_v9 = vpop.f32.mrb[45].mxu0 }
 0x425   : > { %18536 = vst [vmem:[#allocation46_spill] sm:$0xff] %v10118_v9  ;;  %v1531_v1 = vmax.f32 %v1529_v17, %v10118_v9  ;;  %v10121_v53 = vpop.f32.mrb[46].mxu0 }
 0x426   : > { %v1495_v38 = vmax.f32 %v1493_v19, %v10121_v53  ;;  %v10124_v63 = vpop.f32.mrb[47].mxu0 }
 0x427   : > { %18537 = vst [vmem:[#allocation47_spill] sm:$0xff] %v10124_v63  ;;  %v1532_v60 = vmax.f32 %v1530_v24, %v10124_v63 }
 0x42b   : > { %v10127_v47 = vpop.f32.mrb[48].mxu0 }
 0x42c   : > { %v1496_v15 = vmax.f32 %v1494_v4, %v10127_v47  ;;  %v10130_v46 = vpop.f32.mrb[49].mxu0 }
 0x42d   : > { %18538 = vst [vmem:[#allocation48_spill] sm:$0xff] %v10130_v46  ;;  %v1533_v54 = vmax.f32 %v1531_v1, %v10130_v46  ;;  %v10133_v20 = vpop.f32.mrb[50].mxu0 }
 0x42e   : > { %v1497_v17 = vmax.f32 %v1495_v38, %v10133_v20  ;;  %v10136_v26 = vpop.f32.mrb[51].mxu0 }
 0x42f   : > { %18539 = vst [vmem:[#allocation49_spill] sm:$0xff] %v10136_v26  ;;  %v1534_v19 = vmax.f32 %v1532_v60, %v10136_v26  ;;  %v10210_v26 = vpop.f32.mrb[16].mxu1 }
 0x430   : > { %18551 = vst [vmem:[#allocation61_spill] sm:$0xff] %v10210_v26  ;;  %v10213_v46 = vpop.f32.mrb[17].mxu1 }
 0x431   : > { %18552 = vst [vmem:[#allocation62_spill] sm:$0xff] %v10213_v46 }
 0x433   : > { %v10139_v36 = vpop.f32.mrb[52].mxu0 }
 0x434   : > { %v1498_v24 = vmax.f32 %v1496_v15, %v10139_v36  ;;  %v10142_v12 = vpop.f32.mrb[53].mxu0 }
 0x435   : > { %18540 = vst [vmem:[#allocation50_spill] sm:$0xff] %v10142_v12  ;;  %v1535_v4 = vmax.f32 %v1533_v54, %v10142_v12  ;;  %v10145_v7 = vpop.f32.mrb[54].mxu0 }
 0x436   : > { %v1499_v1 = vmax.f32 %v1497_v17, %v10145_v7  ;;  %v10148_v0 = vpop.f32.mrb[55].mxu0 }
 0x437   : > { %18541 = vst [vmem:[#allocation51_spill] sm:$0xff] %v10148_v0  ;;  %v1536_v38 = vmax.f32 %v1534_v19, %v10148_v0 }
 0x43b   : > { %v10151_v2 = vpop.f32.mrb[56].mxu0 }
 0x43c   : > { %v1500_v60 = vmax.f32 %v1498_v24, %v10151_v2  ;;  %v10154_v61 = vpop.f32.mrb[57].mxu0 }
 0x43d   : > { %18542 = vst [vmem:[#allocation52_spill] sm:$0xff] %v10154_v61  ;;  %v1537_v15 = vmax.f32 %v1535_v4, %v10154_v61  ;;  %v10157_v50 = vpop.f32.mrb[58].mxu0 }
 0x43e   : > { %v1501_v54 = vmax.f32 %v1499_v1, %v10157_v50  ;;  %v10160_v44 = vpop.f32.mrb[59].mxu0 }
 0x43f   : > { %18543 = vst [vmem:[#allocation53_spill] sm:$0xff] %v10160_v44  ;;  %v1538_v17 = vmax.f32 %v1536_v38, %v10160_v44 }
 0x443   : > { %v10163_v5 = vpop.f32.mrb[60].mxu0 }
 0x444   : > { %v10165_v42 = vpop.f32.mrb[61].mxu0  ;;  %v1502_v19 = vmax.f32 %v1500_v60, %v10163_v5 }
 0x445   : > { %18544 = vst [vmem:[#allocation54_spill] sm:$0xff] %v10165_v42  ;;  %v10168_v59 = vpop.f32.mrb[62].mxu0  ;;  %v1539_v24 = vmax.f32 %v1537_v15, %v10165_v42 }
 0x446   : > { %v10171_v37 = vpop.f32.mrb[63].mxu0  ;;  %v1503_v4 = vmax.f32 %v1501_v54, %v10168_v59 }
 0x447   : > { %18545 = vst [vmem:[#allocation55_spill] sm:$0xff] %v10171_v37  ;;  %v1540_v1 = vmax.f32 %v1538_v17, %v10171_v37 }
 0x44b   : > { %v10175_v58 = vpop.f32.mrb[64].mxu0 }
 0x44c   : > { %v10177_v35 = vpop.f32.mrb[65].mxu0  ;;  %v1504_v38 = vmax.f32 %v1502_v19, %v10175_v58 }
 0x44d   : > { %18546 = vst [vmem:[#allocation56_spill] sm:$0xff] %v10177_v35  ;;  %v10180_v33 = vpop.f32.mrb[66].mxu0  ;;  %v1541_v60 = vmax.f32 %v1539_v24, %v10177_v35 }
 0x44e   : > { %v10183_v44 = vpop.f32.mrb[67].mxu0  ;;  %v1505_v15 = vmax.f32 %v1503_v4, %v10180_v33 }
 0x44f   : > { %18547 = vst [vmem:[#allocation57_spill] sm:$0xff] %v10183_v44  ;;  %v1542_v42 = vmax.f32 %v1540_v1, %v10183_v44 }
 0x453   : > { %v10187_v61 = vpop.f32.mrb[68].mxu0 }
 0x454   : > { %v1506_v54 = vmax.f32 %v1504_v38, %v10187_v61  ;;  %v10190_v17 = vpop.f32.mrb[69].mxu0 }
 0x455   : > { %18548 = vst [vmem:[#allocation58_spill] sm:$0xff] %v10190_v17  ;;  %v1543_v37 = vmax.f32 %v1541_v60, %v10190_v17  ;;  %v10193_v0 = vpop.f32.mrb[70].mxu0 }
 0x456   : > { %v1507_v19 = vmax.f32 %v1505_v15, %v10193_v0  ;;  %v10196_v12 = vpop.f32.mrb[71].mxu0 }
 0x457   : > { %18549 = vst [vmem:[#allocation59_spill] sm:$0xff] %v10196_v12  ;;  %v1544_v24 = vmax.f32 %v1542_v42, %v10196_v12 }
 0x45b   : > { %v10199_v35 = vpop.f32.mrb[72].mxu0 }
 0x45c   : > { %v1508_v4 = vmax.f32 %v1506_v54, %v10199_v35  ;;  %v10202_v1 = vpop.f32.mrb[73].mxu0 }
 0x45d   : > { %18550 = vst [vmem:[#allocation60_spill] sm:$0xff] %v10202_v1  ;;  %v1545_v38 = vmax.f32 %v1543_v37, %v10202_v1  ;;  %v10205_v44 = vpop.f32.mrb[74].mxu0 }
 0x45e   : > { %v1509_v60 = vmax.f32 %v1507_v19, %v10205_v44  ;;  %v10208_v17 = vpop.f32.mrb[75].mxu0 }
 0x45f   : > { %v1546_v15 = vmax.f32 %v1544_v24, %v10208_v17 }
 0x460   : > { %v1510_v42 = vmax.f32 %v1508_v4, %v1509_v60 }
 0x461   : > { %v1547_v12 = vmax.f32 %v1545_v38, %v1546_v15  ;;  %v18563_v38 = vld [vmem:[#allocation43_spill] sm:$0xff] }
 0x462   : > { %v1511_v63 = vrot.slane %v1510_v42, 4  ;;  %v18568_v15 = vld [vmem:[#allocation47_spill] sm:$0xff] }
 0x463   : > { %v1548_v54 = vrot.slane %v1547_v12, 4 }
 0x464   : > { %v1512_v9 = vmax.f32 %v1510_v42, %v1511_v63 }
 0x465   : > { %v1549_v57 = vmax.f32 %v1547_v12, %v1548_v54 }
 0x466   : > { %v1513_v39 = vrot.slane %v1512_v9, 2 }
 0x467   : > { %v1550_v37 = vrot.slane %v1549_v57, 2 }
 0x468   : > { %v1514_v1 = vmax.f32 %v1512_v9, %v1513_v39  ;;  %v10245_v39 = vpop.trf.xlu0 }
 0x469   : > { %v1551_v3 = vmax.f32 %v1549_v57, %v1550_v37  ;;  %18554 = vst [vmem:[#allocation64_spill] sm:$0xff] %v10245_v39 }
 0x46a   : > { %v1515_v23 = vrot.slane %v1514_v1, 1 }
 0x46b   : > { %v1552_v19 = vrot.slane %v1551_v3, 1 }
 0x46c   : > { %v10217_v34 = vmax.f32 %v1514_v1, %v1515_v23 }
 0x46d   : > { %v10219_v26 = vmax.f32 %v1551_v3, %v1552_v19 }
 0x46e   : > { %v1554_v24 = vsub.f32 %v9995_v6, %v10217_v34  ;;  %v1556_v4 = vsub.f32 %v9999_v62, %v10217_v34  ;;  %v1558_v63 = vsub.f32 %v10007_v11, %v10217_v34  ;;  %v1560_v57 = vsub.f32 %v10019_v18, %v10217_v34  ;;  %v18575_v18 = vld [vmem:[#allocation52_spill] sm:$0xff] }
 0x46f   : > { %v1562_v9 = vsub.f32 %v10032_v21, %v10217_v34  ;;  %v1564_v23 = vsub.f32 %v10038_v27, %v10217_v34  ;;  %v1566_v3 = vsub.f32 %v10046_v29, %v10217_v34  ;;  %v1568_v6 = vsub.f32 %v10052_v32, %v10217_v34  ;;  %v18571_v21 = vld [vmem:[#allocation49_spill] sm:$0xff] }
 0x470   : > { %v1570_v62 = vsub.f32 %v10058_v31, %v10217_v34  ;;  %v1572_v11 = vsub.f32 %v10064_v41, %v10217_v34  ;;  %v1574_v12 = vsub.f32 %v10070_v13, %v10217_v34  ;;  %v1618_v1 = vmul.f32 1.442695, %v1554_v24  ;;  %v10289_v41 = vpop.trf.xlu0  ;;  %v18573_v13 = vld [vmem:[#allocation51_spill] sm:$0xff] }
 0x471   : > { %v1622_v19 = vmul.f32 1.442695, %v1556_v4  ;;  %18555 = vst [vmem:[#allocation65_spill] sm:$0xff] %v10289_v41  ;;  %v1626_v60 = vmul.f32 1.442695, %v1558_v63  ;;  %v18582_v39 = vsub.f32 %v10082_v25, %v10217_v34 }
 0x472   : > { %8573 = vpow2.f32 %v1618_v1  ;;  %v1630_v42 = vmul.f32 1.442695, %v1560_v57  ;;  %v1634_v31 = vmul.f32 1.442695, %v1562_v9  ;;  %v1638_v37 = vmul.f32 1.442695, %v1564_v23 }
 0x473   : > { %8575 = vpow2.f32 %v1622_v19  ;;  %v1642_v24 = vmul.f32 1.442695, %v1566_v3  ;;  %v1646_v4 = vmul.f32 1.442695, %v1568_v6  ;;  %v18560_v19 = vld [vmem:[#allocation40_spill] sm:$0xff]  ;;  %v18561_v57 = vld [vmem:[#allocation41_spill] sm:$0xff] }
 0x474   : > { %8577 = vpow2.f32 %v1626_v60  ;;  %v10293_v54 = vpop.trf.xlu0  ;;  %v1650_v60 = vmul.f32 1.442695, %v1570_v62  ;;  %v1654_v1 = vmul.f32 1.442695, %v1572_v11  ;;  %v18562_v6 = vld [vmem:[#allocation42_spill] sm:$0xff]  ;;  %v18566_v62 = vld [vmem:[#allocation45_spill] sm:$0xff] }
 0x475   : > { %18556 = vst [vmem:[#allocation66_spill] sm:$0xff] %v10293_v54  ;;  %8579 = vpow2.f32 %v1630_v42  ;;  %v18567_v11 = vld [vmem:[#allocation46_spill] sm:$0xff]  ;;  %v1658_v32 = vmul.f32 1.442695, %v1574_v12 }
 0x476   : > { %8581 = vpow2.f32 %v1634_v31  ;;  %v18572_v23 = vld [vmem:[#allocation50_spill] sm:$0xff] }
 0x477   : > { %8583 = vpow2.f32 %v1638_v37  ;;  %v18565_v37 = vld [vmem:[#allocation44_spill] sm:$0xff]  ;;  %v18579_v54 = vld [vmem:[#allocation54_spill] sm:$0xff] }
 0x478   : > { %v10311_v31 = vpop.trf.xlu0  ;;  %8585 = vpow2.f32 %v1642_v24 }
 0x479   : > { %18558 = vst [vmem:[#allocation68_spill] sm:$0xff] %v10311_v31  ;;  %8587 = vpow2.f32 %v1646_v4  ;;  %v18569_v4 = vld [vmem:[#allocation48_spill] sm:$0xff] }
 0x47a   : > { %8589 = vpow2.f32 %v1650_v60 }
 0x47b   : > { %8591 = vpow2.f32 %v1654_v1  ;;  %v18584_v1 = vld [vmem:[#allocation58_spill] sm:$0xff] }
 0x47c   : > { %v10303_v9 = vpop.eup %8573  ;;  %v10359_v46 = vpop.trf.xlu0  ;;  %8593 = vpow2.f32 %v1658_v32 }
 0x47d   : > { %18557 = vst [vmem:[#allocation67_spill] sm:$0xff] %v10303_v9  ;;  %v10313_v42 = vpop.eup %8575  ;;  %18577 = vst [vmem:[#allocation42_spill] sm:$0xff] %v10359_v46  ;;  %v18583_v46 = vld [vmem:[#allocation57_spill] sm:$0xff] }
 0x47e   : > { %18559 = vst [vmem:[#allocation69_spill] sm:$0xff] %v10313_v42  ;;  %v1746_v3 = vadd.f32 %v10313_v42, %v10303_v9  ;;  %v10327_v24 = vpop.eup %8577  ;;  %v18588_v9 = vsub.f32 %v10088_v16, %v10217_v34  ;;  %v18592_v16 = vsub.f32 %v10103_v10, %v10217_v34 }
 0x47f   : > { %18564 = vst [vmem:[#allocation40_spill] sm:$0xff] %v10327_v24  ;;  %v10343_v31 = vpop.eup %8579 }
 0x480   : > { %v1747_v63 = vadd.f32 %v10327_v24, %v1746_v3  ;;  %18570 = vst [vmem:[#allocation41_spill] sm:$0xff] %v10343_v31  ;;  %v18574_v3 = vsub.f32 %v10076_v30, %v10217_v34  ;;  %v10361_v27 = vpop.eup %8581  ;;  %v18580_v24 = vld [vmem:[#allocation55_spill] sm:$0xff]  ;;  %v1670_v42 = vmul.f32 1.442695, %v18588_v9  ;;  %v18593_v9 = vsub.f32 %v10115_v49, %v10217_v34 }
 0x481   : > { %18578 = vst [vmem:[#allocation43_spill] sm:$0xff] %v10361_v27  ;;  %v10377_v60 = vpop.eup %8583  ;;  %v18586_v30 = vld [vmem:[#allocation59_spill] sm:$0xff]  ;;  %v18597_v49 = vsub.f32 %v10003_v8, %v10219_v26 }
 0x482   : > { %v1662_v41 = vmul.f32 1.442695, %v18574_v3  ;;  %v1748_v29 = vadd.f32 %v10343_v31, %v1747_v63  ;;  %v1666_v31 = vmul.f32 1.442695, %v18582_v39  ;;  %18585 = vst [vmem:[#allocation44_spill] sm:$0xff] %v10377_v60  ;;  %v18587_v63 = vld [vmem:[#allocation60_spill] sm:$0xff]  ;;  %v18591_v3 = vsub.f32 %v10097_v51, %v10217_v34 }
 0x483   : > { %v18594_v51 = vsub.f32 %v10121_v53, %v10217_v34  ;;  %v18598_v53 = vsub.f32 %v10127_v47, %v10217_v34  ;;  %v18602_v47 = vsub.f32 %v10023_v22, %v10219_v26  ;;  %v18607_v22 = vsub.f32 %v10145_v7, %v10217_v34 }
 0x484   : > { %v1749_v28 = vadd.f32 %v10361_v27, %v1748_v29  ;;  %v10386_v29 = vpop.eup %8585  ;;  %8595 = vpow2.f32 %v1662_v41  ;;  %v10392_v27 = vpop.trf.xlu0  ;;  %v1674_v25 = vmul.f32 1.442695, %v18591_v3  ;;  %v1678_v41 = vmul.f32 1.442695, %v18592_v16 }
 0x485   : > { %18589 = vst [vmem:[#allocation45_spill] sm:$0xff] %v10392_v27  ;;  %v10394_v12 = vpop.eup %8587  ;;  %8597 = vpow2.f32 %v1666_v31  ;;  %v1686_v3 = vmul.f32 1.442695, %v18594_v51  ;;  %v18610_v7 = vsub.f32 %v10049_v43, %v10219_v26 }
 0x486   : > { %v1750_v39 = vadd.f32 %v10377_v60, %v1749_v28  ;;  %18590 = vst [vmem:[#allocation46_spill] sm:$0xff] %v10394_v12  ;;  %v10400_v60 = vpop.eup %8589  ;;  %8599 = vpow2.f32 %v1670_v42  ;;  %v18595_v42 = vsub.f32 %v9997_v55, %v10219_v26  ;;  %v18599_v55 = vsub.f32 %v10013_v14, %v10219_v26 }
 0x487   : > { %v10409_v31 = vpop.eup %8591  ;;  %8601 = vpow2.f32 %v1674_v25  ;;  %v1690_v25 = vmul.f32 1.442695, %v18598_v53 }
 0x488   : > { %v1751_v32 = vadd.f32 %v10386_v29, %v1750_v39  ;;  %v1682_v39 = vmul.f32 1.442695, %v18593_v9  ;;  %v1620_v10 = vmul.f32 1.442695, %v18595_v42  ;;  %v10418_v16 = vpop.trf.xlu0  ;;  %8603 = vpow2.f32 %v1678_v41 }
 0x489   : > { %18596 = vst [vmem:[#allocation47_spill] sm:$0xff] %v10418_v16  ;;  %v1628_v51 = vmul.f32 1.442695, %v18599_v55  ;;  %v18600_v41 = vsub.f32 %v10133_v20, %v10217_v34  ;;  %v18608_v55 = vsub.f32 %v10041_v52, %v10219_v26  ;;  %v18611_v52 = vsub.f32 %v10157_v50, %v10217_v34 }
 0x48a   : > { %v1752_v28 = vadd.f32 %v10394_v12, %v1751_v32  ;;  %v10420_v12 = vpop.eup %8593  ;;  %8605 = vpow2.f32 %v1682_v39  ;;  %v18615_v50 = vsub.f32 %v10163_v5, %v10217_v34 }
 0x48b   : > { %8607 = vpow2.f32 %v1686_v3  ;;  %v1694_v42 = vmul.f32 1.442695, %v18600_v41  ;;  %v18603_v3 = vsub.f32 %v10139_v36, %v10217_v34  ;;  %v1640_v41 = vmul.f32 1.442695, %v18608_v55 }
 0x48c   : > { %v1753_v27 = vadd.f32 %v10400_v60, %v1752_v28  ;;  %v1624_v28 = vmul.f32 1.442695, %v18597_v49  ;;  %8609 = vpow2.f32 %v1620_v10  ;;  %v10447_v53 = vpop.trf.xlu0  ;;  %v18606_v10 = vsub.f32 %v10035_v45, %v10219_v26 }
 0x48d   : > { %v1698_v14 = vmul.f32 1.442695, %v18603_v3  ;;  %18604 = vst [vmem:[#allocation49_spill] sm:$0xff] %v10447_v53 }
 0x48e   : > { %v1754_v32 = vadd.f32 %v10409_v31, %v1753_v27  ;;  %v10429_v9 = vpop.eup %8595  ;;  %8611 = vpow2.f32 %v1624_v28  ;;  %v1636_v28 = vmul.f32 1.442695, %v18606_v10  ;;  %v18612_v10 = vsub.f32 %v10055_v48, %v10219_v26 }
 0x48f   : > { %v10438_v39 = vpop.eup %8597  ;;  %8613 = vpow2.f32 %v1690_v25  ;;  %v1702_v25 = vmul.f32 1.442695, %v18607_v22  ;;  %v18613_v22 = vld [vmem:[#allocation18_spill] sm:$0xff]  ;;  %v18616_v48 = vsub.f32 %v10061_v56, %v10219_v26  ;;  %v18618_v56 = vsub.f32 %v10067_v40, %v10219_v26 }
 0x490   : > { %v1755_v27 = vadd.f32 %v10420_v12, %v1754_v32  ;;  %18601 = vst [vmem:[#allocation48_spill] sm:$0xff] %v10438_v39  ;;  %v1632_v32 = vmul.f32 1.442695, %v18602_v47  ;;  %v10449_v20 = vpop.eup %8599  ;;  %8615 = vpow2.f32 %v1628_v51  ;;  %v18609_v51 = vsub.f32 %v10151_v2, %v10217_v34 }
 0x491   : > { %18605 = vst [vmem:[#allocation50_spill] sm:$0xff] %v10449_v20  ;;  %8617 = vpow2.f32 %v1694_v42  ;;  %v10458_v36 = vpop.eup %8601  ;;  %v1644_v47 = vmul.f32 1.442695, %v18610_v7  ;;  %v18620_v40 = vsub.f32 %v18560_v19, %v10219_v26 }
 0x492   : > { %v1756_v8 = vadd.f32 %v10429_v9, %v1755_v27  ;;  %8619 = vpow2.f32 %v1632_v32  ;;  %v1706_v45 = vmul.f32 1.442695, %v18609_v51  ;;  %v1710_v32 = vmul.f32 1.442695, %v18611_v52 }
 0x493   : > { %8621 = vpow2.f32 %v1698_v14 }
 0x494   : > { %v1757_v49 = vadd.f32 %v10438_v39, %v1756_v8  ;;  %v10467_v8 = vpop.eup %8603  ;;  %8623 = vpow2.f32 %v1636_v28  ;;  %v1648_v28 = vmul.f32 1.442695, %v18612_v10 }
 0x495   : > { %v10472_v3 = vpop.eup %8605  ;;  %8625 = vpow2.f32 %v1702_v25  ;;  %v1714_v25 = vmul.f32 1.442695, %v18615_v50 }
 0x496   : > { %v1758_v27 = vadd.f32 %v10449_v20, %v1757_v49  ;;  %v10478_v49 = vpop.eup %8607  ;;  %8627 = vpow2.f32 %v1640_v41  ;;  %v1652_v41 = vmul.f32 1.442695, %v18616_v48 }
 0x497   : > { %v10485_v51 = vpop.eup %8609  ;;  %8629 = vpow2.f32 %v1706_v45  ;;  %v18617_v45 = vsub.f32 %v10168_v59, %v10217_v34  ;;  %v18619_v59 = vsub.f32 %v10175_v58, %v10217_v34 }
 0x498   : > { %v1759_v42 = vadd.f32 %v10458_v36, %v1758_v27  ;;  %v18614_v27 = vld [vmem:[#allocation19_spill] sm:$0xff]  ;;  %v10491_v7 = vpop.eup %8611  ;;  %8631 = vpow2.f32 %v1644_v47  ;;  %v1656_v47 = vmul.f32 1.442695, %v18618_v56 }
 0x499   : > { %8633 = vpow2.f32 %v1710_v32  ;;  %v1722_v32 = vmul.f32 1.442695, %v18619_v59 }
 0x49a   : > { %v1760_v14 = vadd.f32 %v10467_v8, %v1759_v42  ;;  %8635 = vpow2.f32 %v1648_v28  ;;  %v1660_v28 = vmul.f32 1.442695, %v18620_v40 }
 0x49b   : > { %8637 = vpow2.f32 %v1714_v25  ;;  %v18621_v25 = vsub.f32 %v10180_v33, %v10217_v34 }
 0x49c   : > { %v1761_v42 = vadd.f32 %v10472_v3, %v1760_v14  ;;  %v1783_v14 = vadd.f32 %v10491_v7, %v10485_v51  ;;  %8639 = vpow2.f32 %v1652_v41  ;;  %v18622_v41 = vsub.f32 %v18561_v57, %v10219_v26 }
 0x49e   : > { %v1762_v5 = vadd.f32 %v10478_v49, %v1761_v42 }
 0x4a0   : > { %v1023_v2 = vpop.permute.xlu0 %1022 }
 0x4a1   : > { %v1090_v43 = vadd.f32 %v18613_v22, %v1023_v2  ;;  %v1092_v55 = vadd.f32 %v18614_v27, %v1023_v2  ;;  %v10496_v22 = vpop.eup %8613  ;;  %v1718_v2 = vmul.f32 1.442695, %v18617_v45 }
 0x4a2   : > { %v10504_v27 = vpop.eup %8615 }
 0x4a3   : > { %v3501_v52 = vpack.c.bf16 %v1090_v43, %v1090_v43  ;;  %v3502_v10 = vpack.c.bf16 %v1092_v55, %v1092_v55  ;;  %v10509_v43 = vpop.eup %8617  ;;  %v1763_v55 = vadd.f32 %v10496_v22, %v1762_v5  ;;  %v1784_v50 = vadd.f32 %v10504_v27, %v1783_v14 }
 0x4a4   : > { %v10516_v42 = vpop.eup %8619  ;;  %8641 = vpow2.f32 %v1718_v2  ;;  %v1664_v5 = vmul.f32 1.442695, %v18622_v41  ;;  %v18623_v2 = vsub.f32 %v10187_v61, %v10217_v34 }
 0x4a5   : > { %3505 = vxpose.xlu0.c.b16.start.end [1/1] (short) %v3501_v52, 128  ;;  %3521 = vxpose.xlu1.c.b16.start.end [1/1] (short) %v3502_v10, 128  ;;  %v10521_v48 = vpop.eup %8621  ;;  %v1726_v52 = vmul.f32 1.442695, %v18621_v25  ;;  %v1764_v58 = vadd.f32 %v10509_v43, %v1763_v55  ;;  %v1785_v10 = vadd.f32 %v10516_v42, %v1784_v50  ;;  %8643 = vpow2.f32 %v1656_v47 }
 0x4a6   : > { %v10528_v45 = vpop.eup %8623  ;;  %8645 = vpow2.f32 %v1722_v32  ;;  %v1730_v14 = vmul.f32 1.442695, %v18623_v2  ;;  %v18624_v47 = vsub.f32 %v18562_v6, %v10219_v26  ;;  %v18625_v32 = vsub.f32 %v10193_v0, %v10217_v34 }
 0x4a7   : > { %v10533_v19 = vpop.eup %8625  ;;  %v1765_v33 = vadd.f32 %v10521_v48, %v1764_v58  ;;  %v1786_v56 = vadd.f32 %v10528_v45, %v1785_v10  ;;  %8647 = vpow2.f32 %v1660_v28  ;;  %v18626_v28 = vsub.f32 %v18563_v38, %v10219_v26 }
 0x4a8   : > { %v10540_v59 = vpop.eup %8627  ;;  %v1668_v55 = vmul.f32 1.442695, %v18624_v47  ;;  %8649 = vpow2.f32 %v1726_v52  ;;  %v1734_v50 = vmul.f32 1.442695, %v18625_v32  ;;  %v18627_v52 = vsub.f32 %v10199_v35, %v10217_v34 }
 0x4a9   : > { %v10545_v57 = vpop.eup %8629  ;;  %v1766_v61 = vadd.f32 %v10533_v19, %v1765_v33  ;;  %v1787_v40 = vadd.f32 %v10540_v59, %v1786_v56  ;;  %8651 = vpow2.f32 %v1664_v5  ;;  %v1672_v58 = vmul.f32 1.442695, %v18626_v28 }
 0x4aa   : > { %v10552_v25 = vpop.eup %8631  ;;  %8653 = vpow2.f32 %v1730_v14  ;;  %v1738_v10 = vmul.f32 1.442695, %v18627_v52  ;;  %v18628_v5 = vsub.f32 %v18565_v37, %v10219_v26  ;;  %v18629_v14 = vsub.f32 %v10205_v44, %v10217_v34 }
 0x4ab   : > { %v10557_v6 = vpop.eup %8633  ;;  %v1767_v0 = vadd.f32 %v10545_v57, %v1766_v61  ;;  %v1788_v41 = vadd.f32 %v10552_v25, %v1787_v40  ;;  %8655 = vpow2.f32 %v1668_v55  ;;  %v18630_v55 = vsub.f32 %v18566_v62, %v10219_v26 }
 0x4ac   : > { %v10564_v2 = vpop.eup %8635  ;;  %v1676_v33 = vmul.f32 1.442695, %v18628_v5  ;;  %8657 = vpow2.f32 %v1734_v50  ;;  %v1742_v56 = vmul.f32 1.442695, %v18629_v14  ;;  %v18631_v44 = vsub.f32 %v18567_v11, %v10219_v26 }
 0x4ad   : > { %v10569_v38 = vpop.eup %8637  ;;  %v1768_v35 = vadd.f32 %v10557_v6, %v1767_v0  ;;  %v1789_v47 = vadd.f32 %v10564_v2, %v1788_v41  ;;  %8659 = vpow2.f32 %v1672_v58  ;;  %v1680_v61 = vmul.f32 1.442695, %v18630_v55 }
 0x4ae   : > { %v10576_v32 = vpop.eup %8639  ;;  %8661 = vpow2.f32 %v1738_v10  ;;  %v1684_v28 = vmul.f32 1.442695, %v18631_v44  ;;  %v18632_v10 = vsub.f32 %v18568_v15, %v10219_v26 }
 0x4af   : > { %v10581_v37 = vpop.eup %8641  ;;  %v1769_v50 = vadd.f32 %v10569_v38, %v1768_v35  ;;  %v1790_v40 = vadd.f32 %v10576_v32, %v1789_v47  ;;  %8663 = vpow2.f32 %v1676_v33 }
 0x4b0   : > { %v10585_v34 = vpop.eup %8643  ;;  %8665 = vpow2.f32 %v1742_v56  ;;  %v1688_v41 = vmul.f32 1.442695, %v18632_v10  ;;  %v18633_v56 = vsub.f32 %v18569_v4, %v10219_v26 }
 0x4b1   : > { %v10590_v52 = vpop.eup %8645  ;;  %v1770_v62 = vadd.f32 %v10581_v37, %v1769_v50  ;;  %v1791_v58 = vadd.f32 %v10585_v34, %v1790_v40  ;;  %8667 = vpow2.f32 %v1680_v61  ;;  %v18634_v50 = vsub.f32 %v18571_v21, %v10219_v26 }
 0x4b2   : > { %v10594_v0 = vpop.eup %8647  ;;  %8669 = vpow2.f32 %v1684_v28  ;;  %v1692_v35 = vmul.f32 1.442695, %v18633_v56  ;;  %v18637_v56 = vsub.f32 %v18573_v13, %v10219_v26  ;;  %v18639_v13 = vld [vmem:[#allocation53_spill] sm:$0xff] }
 0x4b3   : > { %v10599_v5 = vpop.eup %8649  ;;  %v1771_v33 = vadd.f32 %v10590_v52, %v1770_v62  ;;  %v1792_v11 = vadd.f32 %v10594_v0, %v1791_v58  ;;  %8671 = vpow2.f32 %v1688_v41  ;;  %v1696_v40 = vmul.f32 1.442695, %v18634_v50 }
 0x4b4   : > { %v10603_v14 = vpop.eup %8651  ;;  %8673 = vpow2.f32 %v1692_v35  ;;  %v18636_v58 = vsub.f32 %v18572_v23, %v10219_v26 }
 0x4b5   : > { %v10608_v47 = vpop.eup %8653  ;;  %v1772_v55 = vadd.f32 %v10599_v5, %v1771_v33  ;;  %v1793_v15 = vadd.f32 %v10603_v14, %v1792_v11  ;;  %8675 = vpow2.f32 %v1696_v40 }
 0x4b6   : > { %v10612_v61 = vpop.eup %8655  ;;  %v1700_v10 = vmul.f32 1.442695, %v18636_v58 }
 0x4b7   : > { %v10617_v44 = vpop.eup %8657  ;;  %v1773_v28 = vadd.f32 %v10608_v47, %v1772_v55  ;;  %v1794_v4 = vadd.f32 %v10612_v61, %v1793_v15  ;;  %v1704_v55 = vmul.f32 1.442695, %v18637_v56  ;;  %v18640_v56 = vsub.f32 %v18639_v13, %v10219_v26 }
 0x4b8   : > { %v10621_v62 = vpop.eup %8659  ;;  %8677 = vpow2.f32 %v1700_v10  ;;  %v4281_v10 = vld [vmem:[%s17984_s12] sm:$0xff] }
 0x4b9   : > { %18635 = vst [vmem:[#allocation51_spill] sm:$0xff] %v10621_v62  ;;  %v10626_v33 = vpop.eup %8661  ;;  %v1774_v41 = vadd.f32 %v10617_v44, %v1773_v28  ;;  %v1795_v21 = vadd.f32 %v10621_v62, %v1794_v4  ;;  %v18638_v28 = vsub.f32 %v18575_v18, %v10219_v26  ;;  %8679 = vpow2.f32 %v1704_v55 }
 0x4ba   : > { %v10630_v11 = vpop.eup %8663 }
 0x4bb   : > { %v10635_v15 = vpop.eup %8665  ;;  %v1775_v35 = vadd.f32 %v10626_v33, %v1774_v41  ;;  %v1796_v23 = vadd.f32 %v10630_v11, %v1795_v21  ;;  %v1708_v4 = vmul.f32 1.442695, %v18638_v28  ;;  %v1712_v41 = vmul.f32 1.442695, %v18640_v56 }
 0x4bc   : > { %v10639_v50 = vpop.eup %8667 }
 0x4bd   : > { %v1776_v58 = vadd.f32 %v10635_v15, %v1775_v35  ;;  %v1797_v40 = vadd.f32 %v10639_v50, %v1796_v23  ;;  %v10646_v53 = vpop.eup %8669  ;;  %8681 = vpow2.f32 %v1708_v4  ;;  %v18641_v35 = vsub.f32 %v18579_v54, %v10219_v26  ;;  %v4283_v4 = vld [vmem:[%s17984_s12 + $0x10] sm:$0xff] }
 0x4be   : > { %v10655_v18 = vpop.eup %8671  ;;  %8683 = vpow2.f32 %v1712_v41 }
 0x4bf   : > { %v1777_v16 = vrot.slane %v1776_v58, 4  ;;  %v1798_v21 = vadd.f32 %v10646_v53, %v1797_v40  ;;  %v1716_v23 = vmul.f32 1.442695, %v18641_v35  ;;  %v10661_v20 = vpop.eup %8673  ;;  %v18642_v40 = vsub.f32 %v18580_v24, %v10219_v26  ;;  %v1101_v24 = vld [vmem:[%s17982_s10 + $0x18] sm:$0xff] }
 0x4c0   : > { %v10670_v54 = vpop.eup %8675 }
 0x4c1   : > { %v1778_v28 = vadd.f32 %v1777_v16, %v1776_v58  ;;  %v1799_v55 = vadd.f32 %v10655_v18, %v1798_v21  ;;  %v1720_v13 = vmul.f32 1.442695, %v18642_v40  ;;  %8685 = vpow2.f32 %v1716_v23  ;;  %v18643_v16 = vld [vmem:[#allocation56_spill] sm:$0xff] }
 0x4c2   : > { %v18644_v58 = vsub.f32 %v18643_v16, %v10219_v26  ;;  %v10679_v35 = vpop.eup %8677  ;;  %v8368_v16 = vld [vmem:[%s17981_s9 + $0x20] sm:$0xff] }
 0x4c3   : > { %v1779_v56 = vrot.slane %v1778_v28, 2  ;;  %v1800_v39 = vadd.f32 %v10661_v20, %v1799_v55  ;;  %8687 = vpow2.f32 %v1720_v13  ;;  %v18645_v55 = vsub.f32 %v18583_v46, %v10219_v26  ;;  %v4282_v46 = vld [vmem:[%s17984_s12 + $0x8] sm:$0xff] }
 0x4c4   : > { %v1724_v21 = vmul.f32 1.442695, %v18644_v58  ;;  %v10688_v58 = vpop.eup %8679  ;;  %v18647_v13 = vsub.f32 %v18586_v30, %v10219_v26  ;;  %v4284_v30 = vld [vmem:[%s17984_s12 + $0x18] sm:$0xff] }
 0x4c5   : > { %4287 = vperm.xlu1 %8514, %v4281_v10   ;;  %v1780_v41 = vadd.f32 %v1779_v56, %v1778_v28  ;;  %v1801_v10 = vadd.f32 %v10670_v54, %v1800_v39  ;;  %v1728_v40 = vmul.f32 1.442695, %v18645_v55  ;;  %v18646_v39 = vsub.f32 %v18584_v1, %v10219_v26 }
 0x4c6   : > { %8689 = vpow2.f32 %v1724_v21  ;;  %v1736_v56 = vmul.f32 1.442695, %v18647_v13  ;;  %v18648_v55 = vsub.f32 %v18587_v63, %v10219_v26  ;;  %v8356_v63 = vld [vmem:[%s17980_s8 + $0x20] sm:$0xff] }
 0x4c7   : > { %v1781_v23 = vrot.slane %v1780_v41, 1  ;;  %v1802_v62 = vadd.f32 %v10679_v35, %v1801_v10  ;;  %v1732_v28 = vmul.f32 1.442695, %v18646_v39  ;;  %8691 = vpow2.f32 %v1728_v40 }
 0x4c8   : > { %v1740_v39 = vmul.f32 1.442695, %v18648_v55  ;;  %v18649_v40 = vsub.f32 %v10208_v17, %v10219_v26 }
 0x4c9   : > { %4297 = vperm.xlu1 %8514, %v4283_v4   ;;  %v1803_v4 = vadd.f32 %v10688_v58, %v1802_v62  ;;  %v1782_v10 = vadd.f32 %v1781_v23, %v1780_v41  ;;  %8693 = vpow2.f32 %v1732_v28 }
 0x4ca   : > { %1119 = vperm.xlu0 %8512, %v1101_v24   ;;  %v10700_v24 = vpop.eup %8681  ;;  %8695 = vpow2.f32 %v1736_v56  ;;  %v1744_v23 = vmul.f32 1.442695, %v18649_v40 }
 0x4cb   : > { %v1804_v21 = vadd.f32 %v10700_v24, %v1803_v4  ;;  %v10703_v1 = vpop.eup %8683  ;;  %8697 = vrcp.f32 %v1782_v10 }
 0x4cc   : > { %v10712_v41 = vpop.eup %8685  ;;  %8699 = vpow2.f32 %v1740_v39 }
 0x4cd   : > { %4651 = vperm.xlu1 %8514, %v8368_v16   ;;  %v1805_v62 = vadd.f32 %v10703_v1, %v1804_v21  ;;  %v10718_v28 = vpop.eup %8687  ;;  %8701 = vpow2.f32 %v1744_v23 }
 0x4ce   : > { %4292 = vperm.xlu0 %8512, %v4282_v46  }
 0x4cf   : > { %v1806_v16 = vadd.f32 %v10712_v41, %v1805_v62 }
 0x4d0   : > { %v10724_v13 = vpop.eup %8689 }
 0x4d1   : > { %v1807_v46 = vadd.f32 %v10718_v28, %v1806_v16  ;;  %v10727_v26 = vpop.eup %8691 }
 0x4d2   : > { %4302 = vperm.xlu0 %8512, %v4284_v30  }
 0x4d3   : > { %v1808_v56 = vadd.f32 %v10724_v13, %v1807_v46  ;;  %v10730_v4 = vpop.eup %8693 }
 0x4d4   : > { %v10732_v10 = vpop.eup %8695 }
 0x4d5   : > { %v1809_v17 = vadd.f32 %v10727_v26, %v1808_v56  ;;  %v10735_v55 = vpop.eup %8697 }
 0x4d6   : > { %4552 = vperm.xlu0 %8512, %v8356_v63   ;;  %v10738_v30 = vpop.eup %8699  ;;  %v10743_v40 = vmul.f32 %v10735_v55, %v10458_v36  ;;  %v10747_v23 = vmul.f32 %v10735_v55, %v10467_v8  ;;  %v10753_v63 = vmul.f32 %v10735_v55, %v10472_v3  ;;  %v10757_v46 = vmul.f32 %v10735_v55, %v10478_v49 }
 0x4d7   : > { %v1810_v21 = vadd.f32 %v10730_v4, %v1809_v17  ;;  %v10749_v16 = vpop.eup %8701  ;;  %v10764_v17 = vmul.f32 %v10735_v55, %v10496_v22  ;;  %v10768_v8 = vmul.f32 %v10735_v55, %v10509_v43  ;;  %v10774_v49 = vmul.f32 %v10735_v55, %v10521_v48 }
 0x4d8   : > { %v10792_v48 = vmul.f32 %v10735_v55, %v10569_v38  ;;  %v10798_v3 = vmul.f32 %v10735_v55, %v10581_v37  ;;  %v10806_v43 = vmul.f32 %v10735_v55, %v10599_v5  ;;  %v10812_v36 = vmul.f32 %v10735_v55, %v10608_v47 }
 0x4d9   : > { %v1811_v39 = vadd.f32 %v10732_v10, %v1810_v21  ;;  %v10778_v21 = vmul.f32 %v10735_v55, %v10533_v19  ;;  %v10816_v37 = vmul.f32 %v10735_v55, %v10617_v44  ;;  %v10824_v5 = vmul.f32 %v10735_v55, %v10626_v33  ;;  %v18662_v44 = vld [vmem:[#allocation41_spill] sm:$0xff] }
 0x4da   : > { %18651 = vst [vmem:[#allocation54_spill] sm:$0xff] %v10792_v48  ;;  %18652 = vst [vmem:[#allocation55_spill] sm:$0xff] %v10798_v3  ;;  %v10834_v3 = vpop.f32.mrb[18].mxu1 }
 0x4db   : > { %v1812_v62 = vadd.f32 %v10738_v30, %v1811_v39  ;;  %v10782_v39 = vmul.f32 %v10735_v55, %v10545_v57  ;;  %v10802_v57 = vmul.f32 %v10735_v55, %v10590_v52  ;;  %18654 = vst [vmem:[#allocation58_spill] sm:$0xff] %v10806_v43  ;;  %18655 = vst [vmem:[#allocation59_spill] sm:$0xff] %v10812_v36  ;;  %v10836_v19 = vpop.f32.mrb[19].mxu1  ;;  %v18660_v43 = vld [vmem:[#allocation69_spill] sm:$0xff] }
 0x4dc   : > { %18656 = vst [vmem:[#allocation60_spill] sm:$0xff] %v10824_v5  ;;  %18657 = vst [vmem:[#allocation18_spill] sm:$0xff] %v10834_v3  ;;  %v18664_v3 = vld [vmem:[#allocation44_spill] sm:$0xff] }
 0x4dd   : > { %v1813_v56 = vadd.f32 %v10749_v16, %v1812_v62  ;;  %18650 = vst [vmem:[#allocation52_spill] sm:$0xff] %v10782_v39  ;;  %v10788_v62 = vmul.f32 %v10735_v55, %v10557_v6  ;;  %18653 = vst [vmem:[#allocation57_spill] sm:$0xff] %v10802_v57  ;;  %v18659_v57 = vld [vmem:[#allocation67_spill] sm:$0xff]  ;;  %v1824_v39 = vmul.f32 %v10735_v55, %v18660_v43 }
 0x4de   : > { %18658 = vst [vmem:[#allocation19_spill] sm:$0xff] %v10836_v19  ;;  %v18663_v19 = vld [vmem:[#allocation43_spill] sm:$0xff] }
 0x4df   : > { %v1814_v22 = vrot.slane %v1813_v56, 4 }
 0x4e1   : > { %v1815_v6 = vadd.f32 %v1814_v22, %v1813_v56  ;;  %v10828_v56 = vmul.f32 %v10735_v55, %v10635_v15  ;;  %v1822_v15 = vmul.f32 %v10735_v55, %v18659_v57  ;;  %v18661_v22 = vld [vmem:[#allocation40_spill] sm:$0xff] }
 0x4e2   : > { %v1826_v36 = vmul.f32 %v10735_v55, %v18661_v22 }
 0x4e3   : > { %v1816_v47 = vrot.slane %v1815_v6, 2 }
 0x4e5   : > { %v1817_v38 = vadd.f32 %v1816_v47, %v1815_v6  ;;  %v1828_v6 = vmul.f32 %v10735_v55, %v18662_v44  ;;  %v1886_v44 = vpack.c.bf16 %v1824_v39, %v1822_v15 }
 0x4e7   : > { %v1818_v52 = vrot.slane %v1817_v38, 1 }
 0x4e9   : > { %v1819_v48 = vadd.f32 %v1818_v52, %v1817_v38 }
 0x4eb   : > { %8703 = vrcp.f32 %v1819_v48 }
 0x4f5   : > { %v10838_v33 = vpop.eup %8703 }
 0x4f6   : > { %v1823_v38 = vmul.f32 %v10838_v33, %v10485_v51  ;;  %v1825_v48 = vmul.f32 %v10838_v33, %v10491_v7  ;;  %v1827_v52 = vmul.f32 %v10838_v33, %v10504_v27  ;;  %v1829_v57 = vmul.f32 %v10838_v33, %v10516_v42 }
 0x4f7   : > { %v1831_v43 = vmul.f32 %v10838_v33, %v10528_v45  ;;  %v1833_v22 = vmul.f32 %v10838_v33, %v10540_v59  ;;  %v1830_v51 = vmul.f32 %v10735_v55, %v18663_v19  ;;  %v1832_v7 = vmul.f32 %v10735_v55, %v18664_v3 }
 0x4f8   : > { %v1887_v47 = vpack.c.bf16 %v1825_v48, %v1823_v38  ;;  %v1834_v27 = vmul.f32 %v10735_v55, %v10386_v29  ;;  %v1889_v5 = vpack.c.bf16 %v1829_v57, %v1827_v52  ;;  %v1888_v42 = vpack.c.bf16 %v1828_v6, %v1826_v36  ;;  %v18665_v57 = vld [vmem:[#allocation46_spill] sm:$0xff] }
 0x4f9   : > { %v1835_v38 = vmul.f32 %v10838_v33, %v10552_v25  ;;  %v10870_v45 = vmul.f32 %v10838_v33, %v10630_v11  ;;  %v1837_v59 = vmul.f32 %v10838_v33, %v10564_v2  ;;  %v1853_v3 = vmul.f32 %v10838_v33, %v10639_v50 }
 0x4fa   : > { %1918 = vmatprep.subr.bf16.mxu1 %v1887_v47  ;;  %v10878_v29 = vmul.f32 %v10838_v33, %v10646_v53  ;;  %v1857_v36 = vmul.f32 %v10838_v33, %v10655_v18  ;;  %v1891_v25 = vpack.c.bf16 %v1833_v22, %v1831_v43  ;;  %v1859_v11 = vmul.f32 %v10838_v33, %v10661_v20 }
 0x4fb   : > { %1919 = vmatpush1.bf16.msra.mxu1 %v1886_v44  ;;  %v1861_v39 = vmul.f32 %v10838_v33, %v10670_v54  ;;  %v1863_v2 = vmul.f32 %v10838_v33, %v10679_v35  ;;  %v1901_v50 = vpack.c.bf16 %v1853_v3, %v10870_v45  ;;  %v1865_v53 = vmul.f32 %v10838_v33, %v10688_v58  ;;  %v18666_v45 = vld [vmem:[#allocation51_spill] sm:$0xff] }
 0x4fc   : > { %1920 = vmatprep.subr.bf16.mxu1 %v1889_v5  ;;  %v1903_v19 = vpack.c.bf16 %v1857_v36, %v10878_v29  ;;  %v1867_v18 = vmul.f32 %v10838_v33, %v10700_v24  ;;  %v1869_v20 = vmul.f32 %v10838_v33, %v10703_v1  ;;  %v1871_v54 = vmul.f32 %v10838_v33, %v10712_v41  ;;  %v18668_v29 = vld [vmem:[#allocation50_spill] sm:$0xff] }
 0x4fd   : > { %v1905_v5 = vpack.c.bf16 %v1861_v39, %v1859_v11  ;;  %v1873_v35 = vmul.f32 %v10838_v33, %v10718_v28  ;;  %v1907_v15 = vpack.c.bf16 %v1865_v53, %v1863_v2  ;;  %v1875_v6 = vmul.f32 %v10838_v33, %v10724_v13 }
 0x4fe   : > { %v1877_v58 = vmul.f32 %v10838_v33, %v10727_v26  ;;  %v1879_v24 = vmul.f32 %v10838_v33, %v10730_v4  ;;  %v1909_v48 = vpack.c.bf16 %v1869_v20, %v1867_v18  ;;  %v1881_v41 = vmul.f32 %v10838_v33, %v10732_v10  ;;  %v18684_v18 = vld [vmem:[#allocation12_spill] sm:$0xff]  ;;  %v18687_v20 = vld [vmem:[#allocation57_spill] sm:$0xff] }
 0x4ff   : > { %1921 = vmatpush1.bf16.msra.mxu1 %v1888_v42  ;;  %v1911_v1 = vpack.c.bf16 %v1873_v35, %v1871_v54  ;;  %v1883_v28 = vmul.f32 %v10838_v33, %v10738_v30  ;;  %v1890_v52 = vpack.c.bf16 %v1832_v7, %v1830_v51  ;;  %v1836_v47 = vmul.f32 %v10735_v55, %v18665_v57 }
 0x500   : > { %1922 = vmatprep.subr.bf16.mxu1 %v1891_v25  ;;  %v1913_v13 = vpack.c.bf16 %v1877_v58, %v1875_v6  ;;  %v1885_v26 = vmul.f32 %v10838_v33, %v10749_v16  ;;  %v1893_v43 = vpack.c.bf16 %v1837_v59, %v1835_v38  ;;  %v1839_v4 = vmul.f32 %v10838_v33, %v10576_v32  ;;  %v18691_v58 = vld [vmem:[#allocation20_spill] sm:$0xff] }
 0x501   : > { %v1841_v22 = vmul.f32 %v10838_v33, %v10585_v34  ;;  %v1915_v44 = vpack.c.bf16 %v1881_v41, %v1879_v24  ;;  %v1892_v30 = vpack.c.bf16 %v1836_v47, %v1834_v27  ;;  %v1838_v51 = vmul.f32 %v10735_v55, %v10400_v60  ;;  %v18692_v24 = vld [vmem:[#allocation17_spill] sm:$0xff] }
 0x502   : > { %v1917_v10 = vpack.c.bf16 %v1885_v26, %v1883_v28  ;;  %v1840_v7 = vmul.f32 %v10735_v55, %v10409_v31  ;;  %v1843_v16 = vmul.f32 %v10838_v33, %v10594_v0  ;;  %v1845_v32 = vmul.f32 %v10838_v33, %v10603_v14  ;;  %v18667_v14 = vld [vmem:[#allocation48_spill] sm:$0xff] }
 0x503   : > { %1923 = vmatpush1.bf16.msra.mxu1 %v1890_v52  ;;  %v1895_v42 = vpack.c.bf16 %v1841_v22, %v1839_v4  ;;  %v1842_v38 = vmul.f32 %v10735_v55, %v10420_v12  ;;  %v1844_v27 = vmul.f32 %v10735_v55, %v10429_v9  ;;  %v1847_v31 = vmul.f32 %v10838_v33, %v10612_v61  ;;  %v18694_v52 = vld [vmem:[#allocation60_spill] sm:$0xff]  ;;  %v18701_v22 = vld [vmem:[#allocation18_spill] sm:$0xff] }
 0x504   : > { %1924 = vmatprep.subr.bf16.mxu1 %v1893_v43  ;;  %v1894_v34 = vpack.c.bf16 %v1840_v7, %v1838_v51  ;;  %v1897_v60 = vpack.c.bf16 %v1845_v32, %v1843_v16  ;;  %v1849_v59 = vmul.f32 %v10838_v33, %v18666_v45  ;;  %v1846_v3 = vmul.f32 %v10735_v55, %v18667_v14  ;;  %v18699_v4 = vld [vmem:[#allocation24_spill] sm:$0xff]  ;;  %v18705_v51 = vld [vmem:[#allocation30_spill] sm:$0xff]  ;;  %v18715_v45 = vld [vmem:[#allocation27_spill] sm:$0xff] }
 0x505   : > { %v1896_v0 = vpack.c.bf16 %v1844_v27, %v1842_v38  ;;  %v1848_v36 = vmul.f32 %v10735_v55, %v18668_v29  ;;  %v18670_v61 = vpack.c.bf16 %v10747_v23, %v10743_v40  ;;  %v18671_v33 = vpack.c.bf16 %v10757_v46, %v10753_v63  ;;  %v18676_v40 = vld [vmem:[#allocation52_spill] sm:$0xff]  ;;  %v18679_v46 = vld [vmem:[#allocation55_spill] sm:$0xff]  ;;  %v18709_v32 = vld [vmem:[#allocation38_spill] sm:$0xff] }
 0x506   : > { %v1899_v12 = vpack.c.bf16 %v1849_v59, %v1847_v31  ;;  %v18673_v55 = vpack.c.bf16 %v10768_v8, %v10764_v17  ;;  %v18675_v2 = vpack.c.bf16 %v10778_v21, %v10774_v49  ;;  %v18677_v23 = vpack.c.bf16 %v10788_v62, %v18676_v40  ;;  %v18682_v17 = vld [vmem:[#allocation22_spill] sm:$0xff]  ;;  %v18683_v8 = vld [vmem:[#allocation11_spill] sm:$0xff]  ;;  %v18706_v7 = vld [vmem:[#allocation32_spill] sm:$0xff] }
 0x507   : > { %1925 = vmatpush1.bf16.msra.mxu1 %v1892_v30  ;;  %v1898_v9 = vpack.c.bf16 %v1848_v36, %v1846_v3  ;;  %v983_v53 = vadd.f32 %v18683_v8, %v18682_v17  ;;  %v985_v49 = vadd.f32 %v18684_v18, %v18682_v17  ;;  %v18695_v57 = vpack.c.bf16 %v10828_v56, %v18694_v52  ;;  %v18704_v30 = vld [vmem:[#allocation28_spill] sm:$0xff]  ;;  %v18711_v38 = vld [vmem:[#allocation23_spill] sm:$0xff]  ;;  %v18718_v14 = vld [vmem:[#allocation29_spill] sm:$0xff] }
 0x508   : > { %1926 = vmatprep.subr.bf16.mxu1 %v1895_v42  ;;  %v18697_v26 = vmov 0   ;;  %v18707_v42 = vld [vmem:[#allocation34_spill] sm:$0xff]  ;;  %v18708_v16 = vld [vmem:[#allocation36_spill] sm:$0xff]  ;;  %v18720_v29 = vld [vmem:[#allocation31_spill] sm:$0xff] }
 0x509   : > { %v1961_v54 = vmul.f32 0.35355338, %v983_v53  ;;  %v1962_v35 = vmul.f32 0.35355338, %v985_v49 }
 0x50b   : > { %1927 = vmatpush1.bf16.msra.mxu1 %v1894_v34  ;;  %v10938_v25 = vpop.trf.xlu0  ;;  %v1963_v41 = vpack.c.bf16 %v1961_v54, %v1961_v54  ;;  %v1964_v28 = vpack.c.bf16 %v1962_v35, %v1962_v35  ;;  %v11020_v34 = vpop.trf.xlu1 }
 0x50c   : > { %1928 = vmatprep.subr.bf16.mxu1 %v1897_v60  ;;  %18669 = vst [vmem:[#allocation53_spill] sm:$0xff] %v10938_v25  ;;  %18710 = vst [vmem:[#allocation48_spill] sm:$0xff] %v11020_v34  ;;  %v18713_v60 = vld [vmem:[#allocation25_spill] sm:$0xff] }
 0x50f   : > { %1929 = vmatpush1.bf16.msra.mxu1 %v1896_v0  ;;  %v10946_v11 = vpop.trf.xlu0  ;;  %v11025_v27 = vpop.trf.xlu1 }
 0x510   : > { %1930 = vmatprep.subr.bf16.mxu1 %v1899_v12  ;;  %18672 = vst [vmem:[#allocation56_spill] sm:$0xff] %v10946_v11  ;;  %18712 = vst [vmem:[#allocation50_spill] sm:$0xff] %v11025_v27  ;;  %v18722_v12 = vld [vmem:[#allocation33_spill] sm:$0xff] }
 0x513   : > { %1931 = vmatpush1.bf16.msra.mxu1 %v1898_v9  ;;  %v10951_v39 = vpop.trf.xlu0  ;;  %v11030_v31 = vpop.trf.xlu1 }
 0x514   : > { %1932 = vmatprep.subr.bf16.mxu1 %v1901_v50  ;;  %18674 = vst [vmem:[#allocation67_spill] sm:$0xff] %v10951_v39  ;;  %v18680_v50 = vld [vmem:[#allocation54_spill] sm:$0xff]  ;;  %18714 = vst [vmem:[#allocation52_spill] sm:$0xff] %v11030_v31 }
 0x517   : > { %1933 = vmatpush1.bf16.msra.mxu1 %v18670_v61  ;;  %v10959_v63 = vpop.trf.xlu0  ;;  %v11035_v59 = vpop.trf.xlu1 }
 0x518   : > { %1934 = vmatprep.subr.bf16.mxu1 %v1903_v19  ;;  %18678 = vst [vmem:[#allocation69_spill] sm:$0xff] %v10959_v63  ;;  %v18681_v19 = vpack.c.bf16 %v18679_v46, %v18680_v50  ;;  %18716 = vst [vmem:[#allocation55_spill] sm:$0xff] %v11035_v59 }
 0x51b   : > { %1935 = vmatpush1.bf16.msra.mxu1 %v18671_v33  ;;  %v10968_v21 = vpop.trf.xlu0  ;;  %v11037_v0 = vpop.trf.xlu1  ;;  %v18725_v33 = vld [vmem:[#allocation35_spill] sm:$0xff] }
 0x51c   : > { %1936 = vmatprep.subr.bf16.mxu1 %v1905_v5  ;;  %18685 = vst [vmem:[#allocation40_spill] sm:$0xff] %v10968_v21  ;;  %v18686_v5 = vld [vmem:[#allocation58_spill] sm:$0xff]  ;;  %18717 = vst [vmem:[#allocation54_spill] sm:$0xff] %v11037_v0 }
 0x51d   : > { %v18688_v62 = vpack.c.bf16 %v18686_v5, %v18687_v20 }
 0x51f   : > { %1937 = vmatpush1.bf16.msra.mxu1 %v18673_v55  ;;  %v11042_v3 = vpop.trf.xlu1  ;;  %v18726_v55 = vld [vmem:[#allocation62_spill] sm:$0xff] }
 0x520   : > { %1938 = vmatprep.subr.bf16.mxu1 %v1907_v15  ;;  %v18689_v15 = vld [vmem:[#allocation59_spill] sm:$0xff]  ;;  %18719 = vst [vmem:[#allocation22_spill] sm:$0xff] %v11042_v3 }
 0x521   : > { %v18690_v6 = vpack.c.bf16 %v10816_v37, %v18689_v15 }
 0x523   : > { %1939 = vmatpush1.bf16.msra.mxu1 %v18675_v2  ;;  %v11047_v36 = vpop.trf.xlu1 }
 0x524   : > { %1940 = vmatprep.subr.bf16.mxu1 %v1909_v48  ;;  %v1173_v48 = vadd.f32 %v18692_v24, %v18691_v58  ;;  %18721 = vst [vmem:[#allocation11_spill] sm:$0xff] %v11047_v36 }
 0x526   : > { %v1197_v47 = vpack.c.bf16 %v1173_v48, %v1173_v48 }
 0x527   : > { %1941 = vmatpush1.bf16.msra.mxu1 %v18677_v23  ;;  %v11052_v9 = vpop.trf.xlu1  ;;  %v18727_v23 = vld [vmem:[#allocation37_spill] sm:$0xff] }
 0x528   : > { %1942 = vmatprep.subr.bf16.mxu1 %v1911_v1  ;;  %v10978_v1 = vpop.trf.xlu0  ;;  %18723 = vst [vmem:[#allocation12_spill] sm:$0xff] %v11052_v9 }
 0x529   : > { %18693 = vst [vmem:[#allocation41_spill] sm:$0xff] %v10978_v1 }
 0x52b   : > { %1943 = vmatpush1.bf16.msra.mxu1 %v18681_v19  ;;  %v11054_v61 = vpop.permute.xlu1 %1114 }
 0x52c   : > { %1944 = vmatprep.subr.bf16.mxu1 %v1913_v13  ;;  %v2050_v13 = vsel %vm1280_vm1, %v1963_v41, 0  ;;  %v10985_v37 = vpop.trf.xlu0  ;;  %18724 = vst [vmem:[#allocation58_spill] sm:$0xff] %v11054_v61  ;;  %v1185_v2 = vadd.f32 %v18726_v55, %v11054_v61 }
 0x52d   : > { %18696 = vst [vmem:[#allocation43_spill] sm:$0xff] %v10985_v37 }
 0x52e   : > { %v2736_v40 = vpack.c.bf16 %v1185_v2, %v1185_v2 }
 0x52f   : > { %1945 = vmatpush1.bf16.msra.mxu1 %v18688_v62 }
 0x530   : > { %1946 = vmatprep.subr.bf16.mxu1 %v1915_v44  ;;  %v10988_v43 = vpop.trf.xlu0 }
 0x531   : > { %18698 = vst [vmem:[#allocation44_spill] sm:$0xff] %v10988_v43 }
 0x533   : > { %1947 = vmatpush1.bf16.msra.mxu1 %v18690_v6 }
 0x534   : > { %1948 = vmatprep.subr.bf16.mxu1 %v1917_v10  ;;  %v18703_v10 = vld [vmem:[#allocation26_spill] sm:$0xff] }
 0x537   : > { %1949 = vmatpush1.bf16.msra.mxu1 %v18695_v57 }
 0x538   : > { %8289 = vmatprep.subr.msk.bf16.mxu1 %vm1280_vm1, %v1964_v28 }
 0x53a   : > { %1951 = vmatmul.mubr.bf16.vlgmr.msra.gmra.mrb[20].mxu1 %v1197_v47 }
 0x53b   : > { %2056 = vmatpush1.bf16.msra.mxu1 %v2050_v13  ;;  %2087 = vmatprep.mubr.bf16.mxu1 %v18697_v26 }
 0x542   : > { %8290 = vmatmul.mubr.msk.bf16.vlgmr.msra.gmra.mrb[24].mxu1 %vm1231_vm2, %v18699_v4 }
 0x543   : > { %2097 = vmatprep.mubr.bf16.mxu1 %v18697_v26 }
 0x549   : > { %v10993_v56 = vpop.permute.xlu0 %1119 }
 0x54a   : > { %18700 = vst [vmem:[#allocation46_spill] sm:$0xff] %v10993_v56  ;;  %v10997_v44 = vadd.f32 %v18701_v22, %v10993_v56  ;;  %8291 = vmatmul.mubr.msk.bf16.gmra.mrb[28].mxu1 %vm1231_vm2, %v18703_v10 }
 0x54b   : > { %2107 = vmatprep.mubr.bf16.mxu1 %v18697_v26 }
 0x54c   : > { %18702 = vst [vmem:[#allocation51_spill] sm:$0xff] %v10997_v44 }
 0x552   : > { %8292 = vmatmul.mubr.msk.bf16.gmra.mrb[32].mxu1 %vm1231_vm2, %v18704_v30 }
 0x553   : > { %2117 = vmatprep.mubr.bf16.mxu1 %v18697_v26 }
 0x55a   : > { %8293 = vmatmul.mubr.msk.bf16.gmra.mrb[36].mxu1 %vm1231_vm2, %v18705_v51 }
 0x55b   : > { %2127 = vmatprep.mubr.bf16.mxu1 %v18697_v26 }
 0x562   : > { %8294 = vmatmul.mubr.msk.bf16.gmra.mrb[40].mxu1 %vm1231_vm2, %v18706_v7 }
 0x563   : > { %2137 = vmatprep.mubr.bf16.mxu1 %v18697_v26 }
 0x56a   : > { %8295 = vmatmul.mubr.msk.bf16.gmra.mrb[44].mxu1 %vm1231_vm2, %v18707_v42 }
 0x56b   : > { %2147 = vmatprep.mubr.bf16.mxu1 %v18697_v26 }
 0x572   : > { %8296 = vmatmul.mubr.msk.bf16.gmra.mrb[48].mxu1 %vm1231_vm2, %v18708_v16 }
 0x573   : > { %2157 = vmatprep.mubr.bf16.mxu1 %v18697_v26 }
 0x57a   : > { %8297 = vmatmul.mubr.msk.bf16.gmra.mrb[52].mxu1 %vm1231_vm2, %v18709_v32 }
 0x57b   : > { %2167 = vmatprep.mubr.bf16.mxu1 %v18697_v26 }
 0x582   : > { %8298 = vmatmul.mubr.msk.bf16.gmra.mrb[56].mxu1 %vm1231_vm2, %v18711_v38 }
 0x583   : > { %2177 = vmatprep.mubr.bf16.mxu1 %v18697_v26 }
 0x58a   : > { %8299 = vmatmul.mubr.msk.bf16.gmra.mrb[60].mxu1 %vm1231_vm2, %v18713_v60 }
 0x58b   : > { %2187 = vmatprep.mubr.bf16.mxu1 %v18697_v26 }
 0x592   : > { %8300 = vmatmul.mubr.msk.bf16.gmra.mrb[64].mxu1 %vm1231_vm2, %v18715_v45 }
 0x593   : > { %2197 = vmatprep.mubr.bf16.mxu1 %v18697_v26 }
 0x59a   : > { %8301 = vmatmul.mubr.msk.bf16.gmra.mrb[68].mxu1 %vm1231_vm2, %v18718_v14 }
 0x59b   : > { %2207 = vmatprep.mubr.bf16.mxu1 %v18697_v26 }
 0x5a2   : > { %8302 = vmatmul.mubr.msk.bf16.gmra.mrb[72].mxu1 %vm1231_vm2, %v18720_v29 }
 0x5a3   : > { %2217 = vmatprep.mubr.bf16.mxu1 %v18697_v26 }
 0x5aa   : > { %8303 = vmatmul.mubr.msk.bf16.gmra.mrb[76].mxu1 %vm1231_vm2, %v18722_v12 }
 0x5ab   : > { %2227 = vmatprep.mubr.bf16.mxu1 %v18697_v26 }
 0x5b2   : > { %8304 = vmatmul.mubr.msk.bf16.gmra.mrb[80].mxu1 %vm1231_vm2, %v18725_v33 }
 0x5b3   : > { %2237 = vmatprep.mubr.bf16.mxu1 %v18697_v26 }
 0x5ba   : > { %8305 = vmatmul.mubr.msk.bf16.gmra.mrb[84].mxu1 %vm1231_vm2, %v18727_v23 }
 0x5bb   : > { %3486 = vmatprep.mubr.bf16.mxu1 %v2736_v40 }
 0x60d   : > { %v11063_v46 = vpop.f32.mrb[20].mxu1 }
 0x60e   : > { %18728 = vst [vmem:[#allocation57_spill] sm:$0xff] %v11063_v46  ;;  %v11065_v50 = vpop.f32.mrb[21].mxu1 }
 0x60f   : > { %18729 = vst [vmem:[#allocation59_spill] sm:$0xff] %v11065_v50  ;;  %v1956_v19 = vpop.f32.mrb[22].mxu1 }
 0x610   : > { %v1957_v17 = vpop.f32.mrb[23].mxu1 }
 0x615   : > { %v11067_v8 = vpop.f32.mrb[24].mxu1 }
 0x616   : > { %v11069_v53 = vpop.f32.mrb[25].mxu1 }
 0x617   : > { %v11071_v18 = vpop.f32.mrb[26].mxu1 }
 0x618   : > { %v11073_v49 = vpop.f32.mrb[27].mxu1 }
 0x61d   : > { %v11075_v5 = vpop.f32.mrb[28].mxu1 }
 0x61e   : > { %v2248_v20 = vmax.f32 %v11067_v8, %v11075_v5  ;;  %v11079_v62 = vpop.f32.mrb[29].mxu1 }
 0x61f   : > { %v2285_v54 = vmax.f32 %v11069_v53, %v11079_v62  ;;  %v11083_v35 = vpop.f32.mrb[30].mxu1 }
 0x620   : > { %v2249_v15 = vmax.f32 %v11071_v18, %v11083_v35  ;;  %v11087_v6 = vpop.f32.mrb[31].mxu1 }
 0x621   : > { %v2286_v58 = vmax.f32 %v11073_v49, %v11087_v6 }
 0x625   : > { %v11091_v24 = vpop.f32.mrb[32].mxu1 }
 0x626   : > { %v2250_v48 = vmax.f32 %v2248_v20, %v11091_v24  ;;  %v11094_v41 = vpop.f32.mrb[33].mxu1 }
 0x627   : > { %v2287_v28 = vmax.f32 %v2285_v54, %v11094_v41  ;;  %v11097_v52 = vpop.f32.mrb[34].mxu1 }
 0x628   : > { %v2251_v57 = vmax.f32 %v2249_v15, %v11097_v52  ;;  %v11100_v47 = vpop.f32.mrb[35].mxu1 }
 0x629   : > { %v2288_v13 = vmax.f32 %v2286_v58, %v11100_v47 }
 0x62d   : > { %v11103_v4 = vpop.f32.mrb[36].mxu1 }
 0x62e   : > { %v2252_v22 = vmax.f32 %v2250_v48, %v11103_v4  ;;  %v11106_v10 = vpop.f32.mrb[37].mxu1 }
 0x62f   : > { %v2289_v30 = vmax.f32 %v2287_v28, %v11106_v10  ;;  %v11109_v51 = vpop.f32.mrb[38].mxu1 }
 0x630   : > { %v2253_v7 = vmax.f32 %v2251_v57, %v11109_v51  ;;  %v11112_v42 = vpop.f32.mrb[39].mxu1 }
 0x631   : > { %v2290_v16 = vmax.f32 %v2288_v13, %v11112_v42 }
 0x635   : > { %v11115_v32 = vpop.f32.mrb[40].mxu1 }
 0x636   : > { %v2254_v38 = vmax.f32 %v2252_v22, %v11115_v32  ;;  %v11118_v60 = vpop.f32.mrb[41].mxu1 }
 0x637   : > { %v2291_v45 = vmax.f32 %v2289_v30, %v11118_v60  ;;  %v11121_v14 = vpop.f32.mrb[42].mxu1 }
 0x638   : > { %v2255_v29 = vmax.f32 %v2253_v7, %v11121_v14  ;;  %v11124_v12 = vpop.f32.mrb[43].mxu1 }
 0x639   : > { %v2292_v33 = vmax.f32 %v2290_v16, %v11124_v12 }
 0x63d   : > { %v11127_v55 = vpop.f32.mrb[44].mxu1 }
 0x63e   : > { %v2256_v2 = vmax.f32 %v2254_v38, %v11127_v55  ;;  %v11130_v40 = vpop.f32.mrb[45].mxu1 }
 0x63f   : > { %v2293_v23 = vmax.f32 %v2291_v45, %v11130_v40  ;;  %v11133_v19 = vpop.f32.mrb[46].mxu1 }
 0x640   : > { %v2257_v17 = vmax.f32 %v2255_v29, %v11133_v19  ;;  %v11136_v20 = vpop.f32.mrb[47].mxu1 }
 0x641   : > { %18730 = vst [vmem:[#allocation20_spill] sm:$0xff] %v11136_v20  ;;  %v2294_v54 = vmax.f32 %v2292_v33, %v11136_v20 }
 0x645   : > { %v11139_v15 = vpop.f32.mrb[48].mxu1 }
 0x646   : > { %v2258_v58 = vmax.f32 %v2256_v2, %v11139_v15  ;;  %v11142_v48 = vpop.f32.mrb[49].mxu1 }
 0x647   : > { %18731 = vst [vmem:[#allocation17_spill] sm:$0xff] %v11142_v48  ;;  %v2295_v28 = vmax.f32 %v2293_v23, %v11142_v48  ;;  %v11145_v57 = vpop.f32.mrb[50].mxu1 }
 0x648   : > { %v2259_v13 = vmax.f32 %v2257_v17, %v11145_v57  ;;  %v11148_v22 = vpop.f32.mrb[51].mxu1 }
 0x649   : > { %18732 = vst [vmem:[#allocation60_spill] sm:$0xff] %v11148_v22  ;;  %v2296_v30 = vmax.f32 %v2294_v54, %v11148_v22 }
 0x64d   : > { %v11151_v7 = vpop.f32.mrb[52].mxu1 }
 0x64e   : > { %v2260_v16 = vmax.f32 %v2258_v58, %v11151_v7  ;;  %v11154_v38 = vpop.f32.mrb[53].mxu1 }
 0x64f   : > { %18733 = vst [vmem:[#allocation24_spill] sm:$0xff] %v11154_v38  ;;  %v2297_v45 = vmax.f32 %v2295_v28, %v11154_v38  ;;  %v11157_v29 = vpop.f32.mrb[54].mxu1 }
 0x650   : > { %v2261_v33 = vmax.f32 %v2259_v13, %v11157_v29  ;;  %v11160_v2 = vpop.f32.mrb[55].mxu1 }
 0x651   : > { %18734 = vst [vmem:[#allocation18_spill] sm:$0xff] %v11160_v2  ;;  %v2298_v23 = vmax.f32 %v2296_v30, %v11160_v2 }
 0x655   : > { %v11163_v17 = vpop.f32.mrb[56].mxu1 }
 0x656   : > { %v2262_v54 = vmax.f32 %v2260_v16, %v11163_v17  ;;  %v11166_v44 = vpop.f32.mrb[57].mxu1 }
 0x657   : > { %18735 = vst [vmem:[#allocation26_spill] sm:$0xff] %v11166_v44  ;;  %v2299_v58 = vmax.f32 %v2297_v45, %v11166_v44  ;;  %v11169_v43 = vpop.f32.mrb[58].mxu1 }
 0x658   : > { %v2263_v28 = vmax.f32 %v2261_v33, %v11169_v43  ;;  %v11172_v37 = vpop.f32.mrb[59].mxu1 }
 0x659   : > { %18736 = vst [vmem:[#allocation28_spill] sm:$0xff] %v11172_v37  ;;  %v2300_v13 = vmax.f32 %v2298_v23, %v11172_v37 }
 0x65d   : > { %v11175_v1 = vpop.f32.mrb[60].mxu1 }
 0x65e   : > { %v11177_v21 = vpop.f32.mrb[61].mxu1  ;;  %v2264_v30 = vmax.f32 %v2262_v54, %v11175_v1 }
 0x65f   : > { %18737 = vst [vmem:[#allocation30_spill] sm:$0xff] %v11177_v21  ;;  %v11180_v63 = vpop.f32.mrb[62].mxu1  ;;  %v2301_v16 = vmax.f32 %v2299_v58, %v11177_v21 }
 0x660   : > { %v11183_v39 = vpop.f32.mrb[63].mxu1  ;;  %v2265_v45 = vmax.f32 %v2263_v28, %v11180_v63 }
 0x661   : > { %18738 = vst [vmem:[#allocation32_spill] sm:$0xff] %v11183_v39  ;;  %v2302_v33 = vmax.f32 %v2300_v13, %v11183_v39 }
 0x665   : > { %v11187_v11 = vpop.f32.mrb[64].mxu1 }
 0x666   : > { %v11189_v25 = vpop.f32.mrb[65].mxu1  ;;  %v2266_v23 = vmax.f32 %v2264_v30, %v11187_v11 }
 0x667   : > { %18739 = vst [vmem:[#allocation34_spill] sm:$0xff] %v11189_v25  ;;  %v11192_v61 = vpop.f32.mrb[66].mxu1  ;;  %v2303_v54 = vmax.f32 %v2301_v16, %v11189_v25 }
 0x668   : > { %v11195_v50 = vpop.f32.mrb[67].mxu1  ;;  %v2267_v58 = vmax.f32 %v2265_v45, %v11192_v61 }
 0x669   : > { %18740 = vst [vmem:[#allocation36_spill] sm:$0xff] %v11195_v50  ;;  %v2304_v46 = vmax.f32 %v2302_v33, %v11195_v50 }
 0x66d   : > { %v11199_v56 = vpop.f32.mrb[68].mxu1 }
 0x66e   : > { %v2268_v28 = vmax.f32 %v2266_v23, %v11199_v56  ;;  %v11202_v13 = vpop.f32.mrb[69].mxu1 }
 0x66f   : > { %18741 = vst [vmem:[#allocation38_spill] sm:$0xff] %v11202_v13  ;;  %v2305_v9 = vmax.f32 %v2303_v54, %v11202_v13  ;;  %v11205_v36 = vpop.f32.mrb[70].mxu1 }
 0x670   : > { %v2269_v30 = vmax.f32 %v2267_v58, %v11205_v36  ;;  %v11208_v3 = vpop.f32.mrb[71].mxu1 }
 0x671   : > { %18742 = vst [vmem:[#allocation23_spill] sm:$0xff] %v11208_v3  ;;  %v2306_v16 = vmax.f32 %v2304_v46, %v11208_v3 }
 0x675   : > { %v11211_v0 = vpop.f32.mrb[72].mxu1 }
 0x676   : > { %v2270_v45 = vmax.f32 %v2268_v28, %v11211_v0  ;;  %v11214_v33 = vpop.f32.mrb[73].mxu1 }
 0x677   : > { %18743 = vst [vmem:[#allocation25_spill] sm:$0xff] %v11214_v33  ;;  %v2307_v23 = vmax.f32 %v2305_v9, %v11214_v33  ;;  %v11217_v59 = vpop.f32.mrb[74].mxu1 }
 0x678   : > { %v2271_v54 = vmax.f32 %v2269_v30, %v11217_v59  ;;  %v11220_v31 = vpop.f32.mrb[75].mxu1 }
 0x679   : > { %18744 = vst [vmem:[#allocation27_spill] sm:$0xff] %v11220_v31  ;;  %v2308_v58 = vmax.f32 %v2306_v16, %v11220_v31 }
 0x67d   : > { %v11223_v27 = vpop.f32.mrb[76].mxu1 }
 0x67e   : > { %v2272_v46 = vmax.f32 %v2270_v45, %v11223_v27  ;;  %v11226_v34 = vpop.f32.mrb[77].mxu1 }
 0x67f   : > { %18745 = vst [vmem:[#allocation29_spill] sm:$0xff] %v11226_v34  ;;  %v2309_v28 = vmax.f32 %v2307_v23, %v11226_v34  ;;  %v11229_v26 = vpop.f32.mrb[78].mxu1 }
 0x680   : > { %v2273_v9 = vmax.f32 %v2271_v54, %v11229_v26  ;;  %v11232_v33 = vpop.f32.mrb[79].mxu1 }
 0x681   : > { %18746 = vst [vmem:[#allocation31_spill] sm:$0xff] %v11232_v33  ;;  %v2310_v30 = vmax.f32 %v2308_v58, %v11232_v33 }
 0x685   : > { %v11235_v3 = vpop.f32.mrb[80].mxu1 }
 0x686   : > { %v2274_v16 = vmax.f32 %v2272_v46, %v11235_v3  ;;  %v11238_v31 = vpop.f32.mrb[81].mxu1 }
 0x687   : > { %18747 = vst [vmem:[#allocation33_spill] sm:$0xff] %v11238_v31  ;;  %v2311_v45 = vmax.f32 %v2309_v28, %v11238_v31  ;;  %v11241_v13 = vpop.f32.mrb[82].mxu1 }
 0x688   : > { %v2275_v23 = vmax.f32 %v2273_v9, %v11241_v13  ;;  %v11244_v34 = vpop.f32.mrb[83].mxu1 }
 0x689   : > { %18748 = vst [vmem:[#allocation35_spill] sm:$0xff] %v11244_v34  ;;  %v2312_v54 = vmax.f32 %v2310_v30, %v11244_v34 }
 0x68d   : > { %v11247_v50 = vpop.f32.mrb[84].mxu1 }
 0x68e   : > { %v2276_v58 = vmax.f32 %v2274_v16, %v11247_v50  ;;  %v11250_v33 = vpop.f32.mrb[85].mxu1 }
 0x68f   : > { %18749 = vst [vmem:[#allocation62_spill] sm:$0xff] %v11250_v33  ;;  %v2313_v46 = vmax.f32 %v2311_v45, %v11250_v33  ;;  %v11253_v25 = vpop.f32.mrb[86].mxu1 }
 0x690   : > { %v2277_v28 = vmax.f32 %v2275_v23, %v11253_v25  ;;  %v11256_v31 = vpop.f32.mrb[87].mxu1 }
 0x691   : > { %18750 = vst [vmem:[#allocation37_spill] sm:$0xff] %v11256_v31  ;;  %v2314_v9 = vmax.f32 %v2312_v54, %v11256_v31 }
 0x692   : > { %v2278_v39 = vmax.f32 %v2276_v58, %v2277_v28 }
 0x693   : > { %v2315_v21 = vmax.f32 %v2313_v46, %v2314_v9 }
 0x694   : > { %v2279_v37 = vrot.slane %v2278_v39, 4 }
 0x695   : > { %v2316_v30 = vrot.slane %v2315_v21, 4 }
 0x696   : > { %v2280_v34 = vmax.f32 %v2278_v39, %v2279_v37 }
 0x697   : > { %v2317_v44 = vmax.f32 %v2315_v21, %v2316_v30 }
 0x698   : > { %v2281_v2 = vrot.slane %v2280_v34, 2 }
 0x699   : > { %v2318_v16 = vrot.slane %v2317_v44, 2 }
 0x69a   : > { %v2282_v38 = vmax.f32 %v2280_v34, %v2281_v2 }
 0x69b   : > { %v2319_v22 = vmax.f32 %v2317_v44, %v2318_v16 }
 0x69c   : > { %v2283_v48 = vrot.slane %v2282_v38, 1 }
 0x69d   : > { %v2320_v45 = vrot.slane %v2319_v22, 1 }
 0x69e   : > { %v11259_v33 = vmax.f32 %v2282_v38, %v2283_v48 }
 0x69f   : > { %v11261_v20 = vmax.f32 %v2319_v22, %v2320_v45 }
 0x6a0   : > { %v2322_v23 = vsub.f32 %v11067_v8, %v11259_v33  ;;  %v2324_v54 = vsub.f32 %v11071_v18, %v11259_v33  ;;  %v2326_v39 = vsub.f32 %v11075_v5, %v11259_v33  ;;  %v2328_v21 = vsub.f32 %v11083_v35, %v11259_v33 }
 0x6a1   : > { %v2330_v37 = vsub.f32 %v11091_v24, %v11259_v33  ;;  %v2332_v44 = vsub.f32 %v11097_v52, %v11259_v33  ;;  %v2334_v34 = vsub.f32 %v11103_v4, %v11259_v33  ;;  %v2336_v8 = vsub.f32 %v11109_v51, %v11259_v33  ;;  %v18773_v4 = vld [vmem:[#allocation31_spill] sm:$0xff] }
 0x6a2   : > { %v2338_v18 = vsub.f32 %v11115_v32, %v11259_v33  ;;  %v2340_v5 = vsub.f32 %v11121_v14, %v11259_v33  ;;  %v2342_v35 = vsub.f32 %v11127_v55, %v11259_v33  ;;  %v2344_v24 = vsub.f32 %v11133_v19, %v11259_v33  ;;  %v18766_v55 = vld [vmem:[#allocation38_spill] sm:$0xff]  ;;  %v18769_v32 = vld [vmem:[#allocation25_spill] sm:$0xff] }
 0x6a3   : > { %v2386_v2 = vmul.f32 1.442695, %v2322_v23  ;;  %v2390_v9 = vmul.f32 1.442695, %v2324_v54  ;;  %v2394_v38 = vmul.f32 1.442695, %v2326_v39  ;;  %v18778_v19 = vsub.f32 %v11151_v7, %v11259_v33 }
 0x6a4   : > { %v2398_v45 = vmul.f32 1.442695, %v2328_v21  ;;  %v2402_v58 = vmul.f32 1.442695, %v2330_v37  ;;  %v2406_v22 = vmul.f32 1.442695, %v2332_v44  ;;  %v18781_v7 = vsub.f32 %v11169_v43, %v11259_v33 }
 0x6a5   : > { %8705 = vpow2.f32 %v2386_v2  ;;  %v2410_v46 = vmul.f32 1.442695, %v2334_v34  ;;  %v2414_v48 = vmul.f32 1.442695, %v2336_v8  ;;  %v2418_v37 = vmul.f32 1.442695, %v2338_v18 }
 0x6a6   : > { %8707 = vpow2.f32 %v2390_v9  ;;  %v18753_v18 = vld [vmem:[#allocation20_spill] sm:$0xff]  ;;  %v18754_v34 = vld [vmem:[#allocation17_spill] sm:$0xff]  ;;  %v2426_v23 = vmul.f32 1.442695, %v2342_v35  ;;  %v18761_v21 = vld [vmem:[#allocation30_spill] sm:$0xff] }
 0x6a7   : > { %8709 = vpow2.f32 %v2394_v38  ;;  %v18755_v8 = vld [vmem:[#allocation60_spill] sm:$0xff]  ;;  %v18764_v54 = vld [vmem:[#allocation34_spill] sm:$0xff]  ;;  %v18770_v35 = vld [vmem:[#allocation27_spill] sm:$0xff]  ;;  %v2442_v39 = vmul.f32 1.442695, %v18778_v19 }
 0x6a8   : > { %8711 = vpow2.f32 %v2398_v45  ;;  %v2422_v45 = vmul.f32 1.442695, %v2340_v5  ;;  %v18757_v2 = vld [vmem:[#allocation24_spill] sm:$0xff]  ;;  %v18759_v5 = vld [vmem:[#allocation26_spill] sm:$0xff]  ;;  %v2454_v19 = vmul.f32 1.442695, %v18781_v7 }
 0x6a9   : > { %8713 = vpow2.f32 %v2402_v58  ;;  %v18758_v58 = vld [vmem:[#allocation18_spill] sm:$0xff]  ;;  %v18760_v44 = vld [vmem:[#allocation28_spill] sm:$0xff] }
 0x6aa   : > { %8715 = vpow2.f32 %v2406_v22  ;;  %v18765_v9 = vld [vmem:[#allocation36_spill] sm:$0xff] }
 0x6ab   : > { %8717 = vpow2.f32 %v2410_v46 }
 0x6ac   : > { %8719 = vpow2.f32 %v2414_v48  ;;  %v18763_v48 = vld [vmem:[#allocation32_spill] sm:$0xff] }
 0x6ad   : > { %8721 = vpow2.f32 %v2418_v37 }
 0x6ae   : > { %8723 = vpow2.f32 %v2422_v45  ;;  %v18774_v45 = vld [vmem:[#allocation33_spill] sm:$0xff] }
 0x6af   : > { %v11339_v38 = vpop.eup %8705  ;;  %8725 = vpow2.f32 %v2426_v23 }
 0x6b0   : > { %18751 = vst [vmem:[#allocation70_spill] sm:$0xff] %v11339_v38  ;;  %v11347_v22 = vpop.eup %8707 }
 0x6b1   : > { %18752 = vst [vmem:[#allocation71_spill] sm:$0xff] %v11347_v22  ;;  %v2514_v28 = vadd.f32 %v11347_v22, %v11339_v38  ;;  %v11361_v46 = vpop.eup %8709  ;;  %v18777_v38 = vsub.f32 %v11145_v57, %v11259_v33  ;;  %v18780_v57 = vsub.f32 %v11163_v17, %v11259_v33  ;;  %v18783_v17 = vsub.f32 %v11073_v49, %v11261_v20 }
 0x6b2   : > { %18756 = vst [vmem:[#allocation20_spill] sm:$0xff] %v11361_v46  ;;  %v11374_v14 = vpop.eup %8711 }
 0x6b3   : > { %v2515_v16 = vadd.f32 %v11361_v46, %v2514_v28  ;;  %18762 = vst [vmem:[#allocation17_spill] sm:$0xff] %v11374_v14  ;;  %v2430_v28 = vmul.f32 1.442695, %v2344_v24  ;;  %v11390_v52 = vpop.eup %8713  ;;  %v18775_v46 = vld [vmem:[#allocation35_spill] sm:$0xff]  ;;  %v18776_v24 = vld [vmem:[#allocation62_spill] sm:$0xff] }
 0x6b4   : > { %18768 = vst [vmem:[#allocation60_spill] sm:$0xff] %v11390_v52  ;;  %v11406_v37 = vpop.eup %8715  ;;  %v2438_v22 = vmul.f32 1.442695, %v18777_v38  ;;  %v2450_v38 = vmul.f32 1.442695, %v18780_v57 }
 0x6b5   : > { %v2516_v30 = vadd.f32 %v11374_v14, %v2515_v16  ;;  %v18772_v16 = vsub.f32 %v11139_v15, %v11259_v33  ;;  %8727 = vpow2.f32 %v2430_v28 }
 0x6b7   : > { %v2434_v14 = vmul.f32 1.442695, %v18772_v16  ;;  %v2517_v51 = vadd.f32 %v11390_v52, %v2516_v30  ;;  %v11415_v16 = vpop.eup %8717 }
 0x6b8   : > { %v11421_v52 = vpop.eup %8719 }
 0x6b9   : > { %v2518_v30 = vadd.f32 %v11406_v37, %v2517_v51  ;;  %8729 = vpow2.f32 %v2434_v14  ;;  %v11427_v31 = vpop.eup %8721  ;;  %v18779_v51 = vsub.f32 %v11157_v29, %v11259_v33 }
 0x6ba   : > { %8731 = vpow2.f32 %v2438_v22  ;;  %v11436_v14 = vpop.eup %8723  ;;  %v18782_v22 = vsub.f32 %v11069_v53, %v11261_v20  ;;  %v18785_v53 = vsub.f32 %v11079_v62, %v11261_v20 }
 0x6bb   : > { %v2519_v23 = vadd.f32 %v11415_v16, %v2518_v30  ;;  %v2446_v28 = vmul.f32 1.442695, %v18779_v51  ;;  %8733 = vpow2.f32 %v2442_v39  ;;  %v11445_v51 = vpop.eup %8725  ;;  %v18784_v39 = vsub.f32 %v11175_v1, %v11259_v33 }
 0x6bc   : > { %v2388_v29 = vmul.f32 1.442695, %v18782_v22  ;;  %v18788_v1 = vsub.f32 %v11087_v6, %v11261_v20 }
 0x6bd   : > { %v2520_v15 = vadd.f32 %v11421_v52, %v2519_v23  ;;  %8735 = vpow2.f32 %v2446_v28  ;;  %v2458_v57 = vmul.f32 1.442695, %v18784_v39  ;;  %v18786_v28 = vsub.f32 %v11180_v63, %v11259_v33 }
 0x6be   : > { %8737 = vpow2.f32 %v2450_v38  ;;  %v18791_v63 = vsub.f32 %v11094_v41, %v11261_v20 }
 0x6bf   : > { %v2521_v30 = vadd.f32 %v11427_v31, %v2520_v15  ;;  %v2392_v15 = vmul.f32 1.442695, %v18783_v17  ;;  %v11454_v7 = vpop.eup %8727  ;;  %8739 = vpow2.f32 %v2454_v19  ;;  %v2462_v22 = vmul.f32 1.442695, %v18786_v28 }
 0x6c0   : > { %8741 = vpow2.f32 %v2388_v29  ;;  %v18789_v19 = vsub.f32 %v11187_v11, %v11259_v33  ;;  %v2404_v29 = vmul.f32 1.442695, %v18791_v63  ;;  %v18793_v11 = vsub.f32 %v11100_v47, %v11261_v20 }
 0x6c1   : > { %v2522_v23 = vadd.f32 %v11436_v14, %v2521_v30  ;;  %v2396_v30 = vmul.f32 1.442695, %v18785_v53  ;;  %8743 = vpow2.f32 %v2392_v15  ;;  %v18792_v15 = vsub.f32 %v11192_v61, %v11259_v33 }
 0x6c2   : > { %8745 = vpow2.f32 %v2458_v57  ;;  %v2466_v62 = vmul.f32 1.442695, %v18789_v19  ;;  %v2408_v53 = vmul.f32 1.442695, %v18793_v11  ;;  %v18795_v61 = vsub.f32 %v11106_v10, %v11261_v20 }
 0x6c3   : > { %v2523_v43 = vadd.f32 %v11445_v51, %v2522_v23  ;;  %v11463_v38 = vpop.eup %8729  ;;  %v2400_v23 = vmul.f32 1.442695, %v18788_v1  ;;  %8747 = vpow2.f32 %v2396_v30  ;;  %v2470_v6 = vmul.f32 1.442695, %v18792_v15 }
 0x6c4   : > { %18787 = vst [vmem:[#allocation24_spill] sm:$0xff] %v11463_v38  ;;  %v11472_v39 = vpop.eup %8731  ;;  %8749 = vpow2.f32 %v2462_v22  ;;  %v18794_v30 = vsub.f32 %v11199_v56, %v11259_v33  ;;  %v18796_v47 = vsub.f32 %v11205_v36, %v11259_v33  ;;  %v18798_v10 = vsub.f32 %v11211_v0, %v11259_v33 }
 0x6c5   : > { %v2524_v49 = vadd.f32 %v11454_v7, %v2523_v43  ;;  %18790 = vst [vmem:[#allocation18_spill] sm:$0xff] %v11472_v39  ;;  %v11481_v43 = vpop.eup %8733  ;;  %8751 = vpow2.f32 %v2400_v23 }
 0x6c6   : > { %8753 = vpow2.f32 %v2466_v62  ;;  %v2474_v41 = vmul.f32 1.442695, %v18794_v30  ;;  %v2478_v23 = vmul.f32 1.442695, %v18796_v47  ;;  %v18797_v62 = vsub.f32 %v11112_v42, %v11261_v20 }
 0x6c7   : > { %v2525_v17 = vadd.f32 %v11463_v38, %v2524_v49  ;;  %v11490_v22 = vpop.eup %8735  ;;  %8755 = vpow2.f32 %v2404_v29  ;;  %v2412_v49 = vmul.f32 1.442695, %v18795_v61  ;;  %v2482_v29 = vmul.f32 1.442695, %v18798_v10 }
 0x6c8   : > { %v11495_v1 = vpop.eup %8737  ;;  %8757 = vpow2.f32 %v2470_v6  ;;  %v18799_v6 = vsub.f32 %v11118_v60, %v11261_v20  ;;  %v18800_v42 = vsub.f32 %v11217_v59, %v11259_v33  ;;  %v18804_v10 = vsub.f32 %v11229_v26, %v11259_v33 }
 0x6c9   : > { %v2526_v57 = vadd.f32 %v11472_v39, %v2525_v17  ;;  %v11501_v56 = vpop.eup %8739  ;;  %8759 = vpow2.f32 %v2408_v53  ;;  %v2416_v17 = vmul.f32 1.442695, %v18797_v62  ;;  %v18803_v62 = vsub.f32 %v11130_v40, %v11261_v20 }
 0x6ca   : > { %v11506_v63 = vpop.eup %8741  ;;  %8761 = vpow2.f32 %v2474_v41  ;;  %v2486_v53 = vmul.f32 1.442695, %v18800_v42 }
 0x6cb   : > { %v2527_v28 = vadd.f32 %v11481_v43, %v2526_v57  ;;  %v11512_v36 = vpop.eup %8743  ;;  %8763 = vpow2.f32 %v2412_v49  ;;  %v2420_v57 = vmul.f32 1.442695, %v18799_v6  ;;  %v18802_v49 = vsub.f32 %v11223_v27, %v11259_v33 }
 0x6cc   : > { %v11517_v11 = vpop.eup %8745  ;;  %8765 = vpow2.f32 %v2478_v23  ;;  %v2551_v0 = vadd.f32 %v11512_v36, %v11506_v63 }
 0x6cd   : > { %v2528_v19 = vadd.f32 %v11490_v22, %v2527_v28  ;;  %v11525_v41 = vpop.eup %8747  ;;  %8767 = vpow2.f32 %v2416_v17  ;;  %v18801_v28 = vsub.f32 %v11124_v12, %v11261_v20  ;;  %v2490_v59 = vmul.f32 1.442695, %v18802_v49 }
 0x6ce   : > { %v11530_v61 = vpop.eup %8749  ;;  %8769 = vpow2.f32 %v2482_v29  ;;  %v2552_v23 = vadd.f32 %v11525_v41, %v2551_v0  ;;  %v2428_v17 = vmul.f32 1.442695, %v18803_v62  ;;  %v2494_v29 = vmul.f32 1.442695, %v18804_v10 }
 0x6cf   : > { %v2529_v15 = vadd.f32 %v11495_v1, %v2528_v19  ;;  %v2424_v60 = vmul.f32 1.442695, %v18801_v28  ;;  %v11537_v19 = vpop.eup %8751  ;;  %8771 = vpow2.f32 %v2420_v57  ;;  %v18805_v57 = vsub.f32 %v18753_v18, %v11261_v20 }
 0x6d0   : > { %v11542_v12 = vpop.eup %8753  ;;  %8773 = vpow2.f32 %v2486_v53  ;;  %v18806_v53 = vsub.f32 %v11235_v3, %v11259_v33 }
 0x6d1   : > { %v2530_v30 = vadd.f32 %v11501_v56, %v2529_v15  ;;  %v2553_v15 = vadd.f32 %v11537_v19, %v2552_v23  ;;  %v11549_v6 = vpop.eup %8755  ;;  %8775 = vpow2.f32 %v2424_v60  ;;  %v2432_v42 = vmul.f32 1.442695, %v18805_v57 }
 0x6d2   : > { %v11554_v40 = vpop.eup %8757  ;;  %8777 = vpow2.f32 %v2490_v59  ;;  %v18807_v60 = vsub.f32 %v18754_v34, %v11261_v20  ;;  %v18808_v59 = vsub.f32 %v11241_v13, %v11259_v33 }
 0x6d3   : > { %v2531_v47 = vadd.f32 %v11517_v11, %v2530_v30  ;;  %v2498_v30 = vmul.f32 1.442695, %v18806_v53  ;;  %v2554_v0 = vadd.f32 %v11549_v6, %v2553_v15  ;;  %v11561_v28 = vpop.eup %8759  ;;  %8779 = vpow2.f32 %v2428_v17 }
 0x6d4   : > { %v2436_v49 = vmul.f32 1.442695, %v18807_v60  ;;  %v11566_v18 = vpop.eup %8761  ;;  %8781 = vpow2.f32 %v2494_v29  ;;  %v18809_v17 = vsub.f32 %v18755_v8, %v11261_v20  ;;  %v18810_v29 = vsub.f32 %v11247_v50, %v11259_v33 }
 0x6d5   : > { %v2532_v27 = vadd.f32 %v11530_v61, %v2531_v47  ;;  %v2502_v47 = vmul.f32 1.442695, %v18808_v59  ;;  %v2555_v23 = vadd.f32 %v11561_v28, %v2554_v0  ;;  %v11573_v62 = vpop.eup %8763  ;;  %8783 = vpow2.f32 %v2432_v42 }
 0x6d6   : > { %v2440_v10 = vmul.f32 1.442695, %v18809_v17  ;;  %v11578_v34 = vpop.eup %8765  ;;  %8785 = vpow2.f32 %v2498_v30  ;;  %v18811_v42 = vsub.f32 %v18757_v2, %v11261_v20  ;;  %v18812_v30 = vsub.f32 %v11253_v25, %v11259_v33 }
 0x6d7   : > { %v2533_v26 = vadd.f32 %v11542_v12, %v2532_v27  ;;  %v2506_v27 = vmul.f32 1.442695, %v18810_v29  ;;  %v2556_v15 = vadd.f32 %v11573_v62, %v2555_v23  ;;  %v11585_v57 = vpop.eup %8767  ;;  %8787 = vpow2.f32 %v2436_v49 }
 0x6d8   : > { %v2444_v53 = vmul.f32 1.442695, %v18811_v42  ;;  %v11590_v8 = vpop.eup %8769  ;;  %8789 = vpow2.f32 %v2502_v47  ;;  %v18813_v49 = vsub.f32 %v18758_v58, %v11261_v20  ;;  %v18814_v33 = vsub.f32 %v18759_v5, %v11261_v20 }
 0x6d9   : > { %v2534_v3 = vadd.f32 %v11554_v40, %v2533_v26  ;;  %v2510_v26 = vmul.f32 1.442695, %v18812_v30  ;;  %v2557_v0 = vadd.f32 %v11585_v57, %v2556_v15  ;;  %v11597_v60 = vpop.eup %8771  ;;  %8791 = vpow2.f32 %v2440_v10 }
 0x6da   : > { %v2448_v59 = vmul.f32 1.442695, %v18813_v49  ;;  %v11602_v2 = vpop.eup %8773  ;;  %8793 = vpow2.f32 %v2506_v27  ;;  %v2452_v23 = vmul.f32 1.442695, %v18814_v33  ;;  %v18815_v27 = vsub.f32 %v18760_v44, %v11261_v20 }
 0x6db   : > { %v2535_v13 = vadd.f32 %v11566_v18, %v2534_v3  ;;  %v2558_v3 = vadd.f32 %v11597_v60, %v2557_v0  ;;  %v11606_v25 = vpop.eup %8775  ;;  %8795 = vpow2.f32 %v2444_v53  ;;  %v18816_v30 = vsub.f32 %v18761_v21, %v11261_v20 }
 0x6dc   : > { %v11611_v17 = vpop.eup %8777  ;;  %8797 = vpow2.f32 %v2510_v26 }
 0x6dd   : > { %v2536_v50 = vadd.f32 %v11578_v34, %v2535_v13  ;;  %v2559_v10 = vadd.f32 %v11606_v25, %v2558_v3  ;;  %v11615_v29 = vpop.eup %8779  ;;  %8799 = vpow2.f32 %v2448_v59  ;;  %v2456_v13 = vmul.f32 1.442695, %v18815_v27 }
 0x6de   : > { %v11620_v15 = vpop.eup %8781  ;;  %8801 = vpow2.f32 %v2452_v23  ;;  %v2460_v26 = vmul.f32 1.442695, %v18816_v30  ;;  %v18818_v59 = vsub.f32 %v18763_v48, %v11261_v20 }
 0x6df   : > { %v2537_v47 = vadd.f32 %v11590_v8, %v2536_v50  ;;  %v2560_v5 = vadd.f32 %v11615_v29, %v2559_v10  ;;  %v11624_v53 = vpop.eup %8783  ;;  %8803 = vpow2.f32 %v2456_v13 }
 0x6e0   : > { %v11629_v50 = vpop.eup %8785  ;;  %8805 = vpow2.f32 %v2460_v26 }
 0x6e1   : > { %v2538_v58 = vadd.f32 %v11602_v2, %v2537_v47  ;;  %v2561_v44 = vadd.f32 %v11624_v53, %v2560_v5  ;;  %v11633_v49 = vpop.eup %8787  ;;  %v2464_v47 = vmul.f32 1.442695, %v18818_v59  ;;  %v18821_v5 = vsub.f32 %v18765_v9, %v11261_v20  ;;  %v18823_v9 = vld [vmem:[#allocation23_spill] sm:$0xff] }
 0x6e2   : > { %18817 = vst [vmem:[#allocation26_spill] sm:$0xff] %v11633_v49  ;;  %v11638_v3 = vpop.eup %8789  ;;  %v18822_v59 = vsub.f32 %v18766_v55, %v11261_v20  ;;  %v18825_v55 = vsub.f32 %v18769_v32, %v11261_v20 }
 0x6e3   : > { %v2539_v42 = vadd.f32 %v11611_v17, %v2538_v58  ;;  %v2562_v21 = vadd.f32 %v11633_v49, %v2561_v44  ;;  %v11642_v23 = vpop.eup %8791  ;;  %v18820_v58 = vsub.f32 %v18764_v54, %v11261_v20  ;;  %8807 = vpow2.f32 %v2464_v47 }
 0x6e4   : > { %18819 = vst [vmem:[#allocation28_spill] sm:$0xff] %v11642_v23  ;;  %v11647_v27 = vpop.eup %8793  ;;  %v2472_v30 = vmul.f32 1.442695, %v18821_v5  ;;  %v18824_v5 = vsub.f32 %v18823_v9, %v11261_v20 }
 0x6e5   : > { %v2540_v0 = vadd.f32 %v11620_v15, %v2539_v42  ;;  %v2468_v10 = vmul.f32 1.442695, %v18820_v58  ;;  %v2563_v48 = vadd.f32 %v11642_v23, %v2562_v21  ;;  %v11651_v42 = vpop.eup %8795 }
 0x6e7   : > { %v2541_v33 = vadd.f32 %v11629_v50, %v2540_v0  ;;  %v11656_v0 = vpop.eup %8797  ;;  %v2564_v54 = vadd.f32 %v11651_v42, %v2563_v48  ;;  %8809 = vpow2.f32 %v2468_v10  ;;  %v2484_v10 = vmul.f32 1.442695, %v18825_v55 }
 0x6e8   : > { %v11660_v44 = vpop.eup %8799  ;;  %8811 = vpow2.f32 %v2472_v30  ;;  %v18826_v30 = vsub.f32 %v18770_v35, %v11261_v20  ;;  %v18829_v35 = vsub.f32 %v18773_v4, %v11261_v20 }
 0x6e9   : > { %v2542_v13 = vadd.f32 %v11638_v3, %v2541_v33  ;;  %v2476_v33 = vmul.f32 1.442695, %v18822_v59  ;;  %v2565_v47 = vadd.f32 %v11660_v44, %v2564_v54  ;;  %v11667_v58 = vpop.eup %8801 }
 0x6ea   : > { %v11673_v38 = vpop.eup %8803  ;;  %v2488_v9 = vmul.f32 1.442695, %v18826_v30 }
 0x6eb   : > { %v2543_v26 = vadd.f32 %v11647_v27, %v2542_v13  ;;  %v2480_v13 = vmul.f32 1.442695, %v18824_v5  ;;  %v2566_v48 = vadd.f32 %v11667_v58, %v2565_v47  ;;  %8813 = vpow2.f32 %v2476_v33  ;;  %v11679_v59 = vpop.eup %8805  ;;  %v18827_v33 = vld [vmem:[#allocation29_spill] sm:$0xff] }
 0x6ec   : > { %v18828_v32 = vsub.f32 %v18827_v33, %v11261_v20 }
 0x6ed   : > { %v2544_v21 = vadd.f32 %v11656_v0, %v2543_v26  ;;  %v2567_v54 = vadd.f32 %v11673_v38, %v2566_v48  ;;  %8815 = vpow2.f32 %v2480_v13  ;;  %v11685_v23 = vpop.eup %8807  ;;  %v2496_v13 = vmul.f32 1.442695, %v18829_v35 }
 0x6ee   : > { %8817 = vpow2.f32 %v2484_v10  ;;  %v2492_v55 = vmul.f32 1.442695, %v18828_v32  ;;  %v18830_v10 = vsub.f32 %v18774_v45, %v11261_v20 }
 0x6ef   : > { %v2545_v39 = vrot.slane %v2544_v21, 4  ;;  %v2568_v47 = vadd.f32 %v11679_v59, %v2567_v54  ;;  %8819 = vpow2.f32 %v2488_v9 }
 0x6f0   : > { %8821 = vpow2.f32 %v2492_v55  ;;  %v2500_v33 = vmul.f32 1.442695, %v18830_v10  ;;  %v18832_v55 = vsub.f32 %v18776_v24, %v11261_v20 }
 0x6f1   : > { %v2546_v26 = vadd.f32 %v2545_v39, %v2544_v21  ;;  %v2569_v21 = vadd.f32 %v11685_v23, %v2568_v47  ;;  %v11691_v48 = vpop.eup %8809  ;;  %8823 = vpow2.f32 %v2496_v13 }
 0x6f2   : > { %v11697_v49 = vpop.eup %8811  ;;  %8825 = vpow2.f32 %v2500_v33  ;;  %v2508_v45 = vmul.f32 1.442695, %v18832_v55 }
 0x6f3   : > { %v2547_v5 = vrot.slane %v2546_v26, 2  ;;  %v2570_v54 = vadd.f32 %v11691_v48, %v2569_v21 }
 0x6f5   : > { %v2548_v39 = vadd.f32 %v2547_v5, %v2546_v26  ;;  %v18831_v26 = vsub.f32 %v18775_v46, %v11261_v20  ;;  %v2571_v9 = vadd.f32 %v11697_v49, %v2570_v54  ;;  %v11706_v47 = vpop.eup %8813  ;;  %v18833_v54 = vld [vmem:[#allocation37_spill] sm:$0xff] }
 0x6f6   : > { %v18834_v10 = vsub.f32 %v18833_v54, %v11261_v20 }
 0x6f7   : > { %v2549_v30 = vrot.slane %v2548_v39, 1  ;;  %v2504_v5 = vmul.f32 1.442695, %v18831_v26  ;;  %v2572_v32 = vadd.f32 %v11706_v47, %v2571_v9  ;;  %v11709_v21 = vpop.eup %8815 }
 0x6f8   : > { %v11715_v46 = vpop.eup %8817 }
 0x6f9   : > { %v2550_v4 = vadd.f32 %v2549_v30, %v2548_v39  ;;  %8827 = vpow2.f32 %v2504_v5  ;;  %v2573_v35 = vadd.f32 %v11709_v21, %v2572_v32  ;;  %v2512_v39 = vmul.f32 1.442695, %v18834_v10  ;;  %v11721_v30 = vpop.eup %8819 }
 0x6fa   : > { %v11724_v26 = vpop.eup %8821 }
 0x6fb   : > { %8829 = vrcp.f32 %v2550_v4  ;;  %v2574_v13 = vadd.f32 %v11715_v46, %v2573_v35  ;;  %v11727_v5 = vpop.eup %8823 }
 0x6fc   : > { %8831 = vpow2.f32 %v2508_v45  ;;  %v11730_v4 = vpop.eup %8825 }
 0x6fd   : > { %v2575_v33 = vadd.f32 %v11721_v30, %v2574_v13  ;;  %8833 = vpow2.f32 %v2512_v39 }
 0x6ff   : > { %v2576_v24 = vadd.f32 %v11724_v26, %v2575_v33 }
 0x701   : > { %v2577_v9 = vadd.f32 %v11727_v5, %v2576_v24 }
 0x703   : > { %v11732_v20 = vpop.eup %8827  ;;  %v2578_v32 = vadd.f32 %v11730_v4, %v2577_v9 }
 0x705   : > { %v11735_v55 = vpop.eup %8829  ;;  %v2579_v45 = vadd.f32 %v11732_v20, %v2578_v32 }
 0x706   : > { %v11738_v35 = vpop.eup %8831  ;;  %v11743_v10 = vmul.f32 %v11735_v55, %v11481_v43  ;;  %v11747_v39 = vmul.f32 %v11735_v55, %v11490_v22  ;;  %v11753_v33 = vmul.f32 %v11735_v55, %v11495_v1  ;;  %v11757_v24 = vmul.f32 %v11735_v55, %v11501_v56 }
 0x707   : > { %v2580_v54 = vadd.f32 %v11738_v35, %v2579_v45  ;;  %v11749_v13 = vpop.eup %8833  ;;  %v11764_v32 = vmul.f32 %v11735_v55, %v11517_v11  ;;  %v11768_v22 = vmul.f32 %v11735_v55, %v11530_v61  ;;  %v11774_v56 = vmul.f32 %v11735_v55, %v11542_v12 }
 0x708   : > { %v11778_v45 = vmul.f32 %v11735_v55, %v11554_v40  ;;  %v11788_v43 = vmul.f32 %v11735_v55, %v11578_v34  ;;  %v11792_v12 = vmul.f32 %v11735_v55, %v11590_v8  ;;  %v11798_v1 = vmul.f32 %v11735_v55, %v11602_v2 }
 0x709   : > { %v2581_v9 = vadd.f32 %v11749_v13, %v2580_v54  ;;  %18835 = vst [vmem:[#allocation30_spill] sm:$0xff] %v11764_v32  ;;  %v11782_v54 = vmul.f32 %v11735_v55, %v11566_v18  ;;  %v11802_v18 = vmul.f32 %v11735_v55, %v11611_v17  ;;  %v11806_v61 = vmul.f32 %v11735_v55, %v11620_v15 }
 0x70a   : > { %18837 = vst [vmem:[#allocation34_spill] sm:$0xff] %v11788_v43  ;;  %18838 = vst [vmem:[#allocation36_spill] sm:$0xff] %v11792_v12  ;;  %v11812_v32 = vmul.f32 %v11735_v55, %v11629_v50  ;;  %v11816_v2 = vmul.f32 %v11735_v55, %v11638_v3  ;;  %v11824_v15 = vmul.f32 %v11735_v55, %v11647_v27  ;;  %v18845_v43 = vld [vmem:[#allocation17_spill] sm:$0xff] }
 0x70b   : > { %18836 = vst [vmem:[#allocation32_spill] sm:$0xff] %v11782_v54  ;;  %v2582_v11 = vrot.slane %v2581_v9, 4  ;;  %18839 = vst [vmem:[#allocation38_spill] sm:$0xff] %v11798_v1  ;;  %v18844_v1 = vld [vmem:[#allocation20_spill] sm:$0xff] }
 0x70c   : > { %18840 = vst [vmem:[#allocation25_spill] sm:$0xff] %v11802_v18  ;;  %18841 = vst [vmem:[#allocation27_spill] sm:$0xff] %v11806_v61  ;;  %v18842_v18 = vld [vmem:[#allocation70_spill] sm:$0xff]  ;;  %v18843_v61 = vld [vmem:[#allocation71_spill] sm:$0xff]  ;;  %v2594_v54 = vmul.f32 %v11735_v55, %v18844_v1 }
 0x70d   : > { %v2583_v34 = vadd.f32 %v2582_v11, %v2581_v9  ;;  %v11828_v9 = vmul.f32 %v11735_v55, %v11656_v0  ;;  %v2590_v27 = vmul.f32 %v11735_v55, %v18842_v18  ;;  %v2592_v0 = vmul.f32 %v11735_v55, %v18843_v61 }
 0x70e   : > { %v2596_v11 = vmul.f32 %v11735_v55, %v18845_v43 }
 0x70f   : > { %v2584_v50 = vrot.slane %v2583_v34, 2  ;;  %v2654_v43 = vpack.c.bf16 %v2592_v0, %v2590_v27 }
 0x711   : > { %v2585_v8 = vadd.f32 %v2584_v50, %v2583_v34  ;;  %v18846_v50 = vld [vmem:[#allocation60_spill] sm:$0xff] }
 0x713   : > { %v2586_v17 = vrot.slane %v2585_v8, 1 }
 0x715   : > { %v2587_v12 = vadd.f32 %v2586_v17, %v2585_v8 }
 0x717   : > { %8835 = vrcp.f32 %v2587_v12 }
 0x721   : > { %v11834_v40 = vpop.eup %8835 }
 0x722   : > { %v2591_v34 = vmul.f32 %v11834_v40, %v11506_v63  ;;  %v2593_v12 = vmul.f32 %v11834_v40, %v11512_v36  ;;  %v2595_v8 = vmul.f32 %v11834_v40, %v11525_v41  ;;  %v2597_v18 = vmul.f32 %v11834_v40, %v11537_v19 }
 0x723   : > { %v2599_v61 = vmul.f32 %v11834_v40, %v11549_v6  ;;  %v2601_v1 = vmul.f32 %v11834_v40, %v11561_v28  ;;  %v2598_v63 = vmul.f32 %v11735_v55, %v18846_v50  ;;  %v2600_v36 = vmul.f32 %v11735_v55, %v11406_v37 }
 0x724   : > { %v2655_v17 = vpack.c.bf16 %v2593_v12, %v2591_v34  ;;  %v2602_v41 = vmul.f32 %v11735_v55, %v11415_v16  ;;  %v2657_v3 = vpack.c.bf16 %v2597_v18, %v2595_v8  ;;  %v2656_v19 = vpack.c.bf16 %v2596_v11, %v2594_v54 }
 0x725   : > { %v2603_v34 = vmul.f32 %v11834_v40, %v11573_v62  ;;  %v11866_v6 = vmul.f32 %v11834_v40, %v11651_v42  ;;  %v2605_v28 = vmul.f32 %v11834_v40, %v11585_v57  ;;  %v2621_v37 = vmul.f32 %v11834_v40, %v11660_v44 }
 0x726   : > { %2686 = vmatprep.subr.bf16.mxu0 %v2655_v17  ;;  %v2623_v16 = vmul.f32 %v11834_v40, %v11667_v58  ;;  %v2625_v54 = vmul.f32 %v11834_v40, %v11673_v38  ;;  %v2659_v11 = vpack.c.bf16 %v2601_v1, %v2599_v61  ;;  %v2627_v62 = vmul.f32 %v11834_v40, %v11679_v59 }
 0x727   : > { %2687 = vmatpush1.bf16.msra.mxu0 %v2654_v43  ;;  %v2629_v42 = vmul.f32 %v11834_v40, %v11685_v23  ;;  %v2631_v57 = vmul.f32 %v11834_v40, %v11691_v48  ;;  %v2669_v27 = vpack.c.bf16 %v2621_v37, %v11866_v6  ;;  %v2633_v58 = vmul.f32 %v11834_v40, %v11697_v49  ;;  %v18850_v37 = vld [vmem:[#allocation18_spill] sm:$0xff] }
 0x728   : > { %2688 = vmatprep.subr.bf16.mxu0 %v2657_v3  ;;  %v2671_v44 = vpack.c.bf16 %v2625_v54, %v2623_v16  ;;  %v2635_v38 = vmul.f32 %v11834_v40, %v11706_v47  ;;  %v2637_v0 = vmul.f32 %v11834_v40, %v11709_v21  ;;  %v2639_v59 = vmul.f32 %v11834_v40, %v11715_v46 }
 0x729   : > { %v2673_v3 = vpack.c.bf16 %v2629_v42, %v2627_v62  ;;  %v2641_v23 = vmul.f32 %v11834_v40, %v11721_v30  ;;  %v2675_v48 = vpack.c.bf16 %v2633_v58, %v2631_v57  ;;  %v2643_v12 = vmul.f32 %v11834_v40, %v11724_v26  ;;  %v18856_v42 = vld [vmem:[#allocation34_spill] sm:$0xff]  ;;  %v18857_v57 = vld [vmem:[#allocation32_spill] sm:$0xff] }
 0x72a   : > { %v2645_v49 = vmul.f32 %v11834_v40, %v11727_v5  ;;  %v2647_v47 = vmul.f32 %v11834_v40, %v11730_v4  ;;  %v2677_v8 = vpack.c.bf16 %v2637_v0, %v2635_v38  ;;  %v2649_v46 = vmul.f32 %v11834_v40, %v11732_v20  ;;  %v18864_v58 = vld [vmem:[#allocation14_spill] sm:$0xff] }
 0x72b   : > { %2689 = vmatpush1.bf16.msra.mxu0 %v2656_v19  ;;  %v2679_v21 = vpack.c.bf16 %v2641_v23, %v2639_v59  ;;  %v2651_v30 = vmul.f32 %v11834_v40, %v11738_v35  ;;  %v2658_v18 = vpack.c.bf16 %v2600_v36, %v2598_v63  ;;  %v2604_v17 = vmul.f32 %v11735_v55, %v11421_v52  ;;  %v18847_v19 = vld [vmem:[#allocation26_spill] sm:$0xff] }
 0x72c   : > { %2690 = vmatprep.subr.bf16.mxu0 %v2659_v11  ;;  %v2681_v26 = vpack.c.bf16 %v2645_v49, %v2643_v12  ;;  %v2653_v5 = vmul.f32 %v11834_v40, %v11749_v13  ;;  %v2661_v61 = vpack.c.bf16 %v2605_v28, %v2603_v34  ;;  %v2607_v4 = vmul.f32 %v11834_v40, %v11597_v60  ;;  %v18848_v34 = vld [vmem:[#allocation28_spill] sm:$0xff]  ;;  %v18853_v11 = vld [vmem:[#allocation30_spill] sm:$0xff]  ;;  %v18870_v12 = vld [vmem:[#allocation21_spill] sm:$0xff] }
 0x72d   : > { %v2609_v1 = vmul.f32 %v11834_v40, %v11606_v25  ;;  %v2683_v43 = vpack.c.bf16 %v2649_v46, %v2647_v47  ;;  %v2660_v35 = vpack.c.bf16 %v2604_v17, %v2602_v41  ;;  %v2606_v50 = vmul.f32 %v11735_v55, %v11427_v31  ;;  %v18877_v17 = vld [vmem:[#allocation54_spill] sm:$0xff] }
 0x72e   : > { %v2685_v20 = vpack.c.bf16 %v2653_v5, %v2651_v30  ;;  %v2608_v52 = vmul.f32 %v11735_v55, %v11436_v14  ;;  %v2611_v13 = vmul.f32 %v11834_v40, %v11615_v29  ;;  %v2613_v60 = vmul.f32 %v11834_v40, %v11624_v53  ;;  %v18849_v53 = vld [vmem:[#allocation24_spill] sm:$0xff]  ;;  %v18879_v5 = vld [vmem:[#allocation11_spill] sm:$0xff] }
 0x72f   : > { %2691 = vmatpush1.bf16.msra.mxu0 %v2658_v18  ;;  %v2663_v63 = vpack.c.bf16 %v2609_v1, %v2607_v4  ;;  %v2610_v36 = vmul.f32 %v11735_v55, %v11445_v51  ;;  %v2612_v41 = vmul.f32 %v11735_v55, %v11454_v7  ;;  %v2615_v14 = vmul.f32 %v11834_v40, %v18847_v19  ;;  %v18881_v4 = vld [vmem:[#allocation64_spill] sm:$0xff]  ;;  %v18882_v1 = vld [vmem:[#allocation65_spill] sm:$0xff] }
 0x730   : > { %2692 = vmatprep.subr.bf16.mxu0 %v2661_v61  ;;  %v2662_v25 = vpack.c.bf16 %v2608_v52, %v2606_v50  ;;  %v2665_v31 = vpack.c.bf16 %v2613_v60, %v2611_v13  ;;  %v2617_v6 = vmul.f32 %v11834_v40, %v18848_v34  ;;  %v2614_v28 = vmul.f32 %v11735_v55, %v18849_v53  ;;  %v18880_v61 = vld [vmem:[#allocation12_spill] sm:$0xff]  ;;  %v18886_v50 = vld [vmem:[#allocation45_spill] sm:$0xff]  ;;  %v18887_v52 = vld [vmem:[#allocation47_spill] sm:$0xff] }
 0x731   : > { %v2664_v29 = vpack.c.bf16 %v2612_v41, %v2610_v36  ;;  %v2616_v16 = vmul.f32 %v11735_v55, %v18850_v37  ;;  %v18851_v54 = vpack.c.bf16 %v11747_v39, %v11743_v10  ;;  %v18852_v40 = vpack.c.bf16 %v11757_v24, %v11753_v33  ;;  %v18859_v39 = vld [vmem:[#allocation38_spill] sm:$0xff]  ;;  %v18862_v24 = vld [vmem:[#allocation63_spill] sm:$0xff]  ;;  %v18890_v36 = vld [vmem:[#allocation49_spill] sm:$0xff] }
 0x732   : > { %v2667_v51 = vpack.c.bf16 %v2617_v6, %v2615_v14  ;;  %v18854_v62 = vpack.c.bf16 %v11768_v22, %v18853_v11  ;;  %v18855_v55 = vpack.c.bf16 %v11778_v45, %v11774_v56  ;;  %v18858_v10 = vpack.c.bf16 %v18856_v42, %v18857_v57  ;;  %v18866_v56 = vld [vmem:[#allocation25_spill] sm:$0xff]  ;;  %v18889_v13 = vld [vmem:[#allocation19_spill] sm:$0xff] }
 0x733   : > { %2693 = vmatpush1.bf16.msra.mxu0 %v2660_v35  ;;  %v2666_v7 = vpack.c.bf16 %v2616_v16, %v2614_v28  ;;  %v991_v38 = vadd.f32 %v18864_v58, %v18862_v24  ;;  %v18868_v23 = vpack.c.bf16 %v11816_v2, %v11812_v32  ;;  %v18872_v18 = vmov 0   ;;  %v18873_v32 = vld [vmem:[#allocation48_spill] sm:$0xff]  ;;  %v18874_v2 = vld [vmem:[#allocation50_spill] sm:$0xff] }
 0x734   : > { %2694 = vmatprep.subr.bf16.mxu0 %v2663_v63  ;;  %v18885_v35 = vld [vmem:[#allocation42_spill] sm:$0xff] }
 0x735   : > { %v2730_v59 = vmul.f32 0.35355338, %v991_v38  ;;  %v18888_v63 = vld [vmem:[#allocation46_spill] sm:$0xff] }
 0x736   : > { %v1189_v60 = vadd.f32 %v18889_v13, %v18888_v63 }
 0x737   : > { %2695 = vmatpush1.bf16.msra.mxu0 %v2662_v25 }
 0x738   : > { %2696 = vmatprep.subr.bf16.mxu0 %v2665_v31  ;;  %v3504_v25 = vpack.c.bf16 %v1189_v60, %v1189_v60 }
 0x73b   : > { %2697 = vmatpush1.bf16.msra.mxu0 %v2664_v29 }
 0x73c   : > { %2698 = vmatprep.subr.bf16.mxu0 %v2667_v51 }
 0x73f   : > { %2699 = vmatpush1.bf16.msra.mxu0 %v2666_v7 }
 0x740   : > { %2700 = vmatprep.subr.bf16.mxu0 %v2669_v27  ;;  %v18860_v27 = vld [vmem:[#allocation36_spill] sm:$0xff] }
 0x741   : > { %v18861_v33 = vpack.c.bf16 %v18859_v39, %v18860_v27 }
 0x743   : > { %2701 = vmatpush1.bf16.msra.mxu0 %v18851_v54 }
 0x744   : > { %2702 = vmatprep.subr.bf16.mxu0 %v2671_v44  ;;  %v18863_v44 = vld [vmem:[#allocation13_spill] sm:$0xff] }
 0x745   : > { %v989_v22 = vadd.f32 %v18863_v44, %v18862_v24 }
 0x747   : > { %2703 = vmatpush1.bf16.msra.mxu0 %v18852_v40  ;;  %v2729_v0 = vmul.f32 0.35355338, %v989_v22 }
 0x748   : > { %2704 = vmatprep.subr.bf16.mxu0 %v2673_v3  ;;  %v18865_v3 = vld [vmem:[#allocation27_spill] sm:$0xff] }
 0x749   : > { %v18867_v45 = vpack.c.bf16 %v18865_v3, %v18866_v56  ;;  %v2731_v47 = vpack.c.bf16 %v2729_v0, %v2729_v0 }
 0x74b   : > { %2705 = vmatpush1.bf16.msra.mxu0 %v18854_v62  ;;  %v2818_v30 = vsel %vm1280_vm1, %v2731_v47, 0 }
 0x74c   : > { %2706 = vmatprep.subr.bf16.mxu0 %v2675_v48  ;;  %v18869_v48 = vld [vmem:[#allocation39_spill] sm:$0xff] }
 0x74d   : > { %v1177_v49 = vadd.f32 %v18870_v12, %v18869_v48 }
 0x74f   : > { %2707 = vmatpush1.bf16.msra.mxu0 %v18855_v55  ;;  %v1967_v46 = vpack.c.bf16 %v1177_v49, %v1177_v49 }
 0x750   : > { %2708 = vmatprep.subr.bf16.mxu0 %v2677_v8  ;;  %v2732_v8 = vpack.c.bf16 %v2730_v59, %v2730_v59 }
 0x753   : > { %2709 = vmatpush1.bf16.msra.mxu0 %v18858_v10 }
 0x754   : > { %2710 = vmatprep.subr.bf16.mxu0 %v2679_v21  ;;  %v18871_v21 = vpack.c.bf16 %v11828_v9, %v11824_v15  ;;  %v18875_v15 = vld [vmem:[#allocation52_spill] sm:$0xff]  ;;  %v18876_v9 = vld [vmem:[#allocation55_spill] sm:$0xff] }
 0x757   : > { %2711 = vmatpush1.bf16.msra.mxu0 %v18861_v33 }
 0x758   : > { %2712 = vmatprep.subr.bf16.mxu0 %v2681_v26  ;;  %v18878_v26 = vld [vmem:[#allocation22_spill] sm:$0xff] }
 0x75b   : > { %2713 = vmatpush1.bf16.msra.mxu0 %v18867_v45 }
 0x75c   : > { %2714 = vmatprep.subr.bf16.mxu0 %v2683_v43  ;;  %v18883_v43 = vld [vmem:[#allocation66_spill] sm:$0xff] }
 0x75f   : > { %2715 = vmatpush1.bf16.msra.mxu0 %v18868_v23 }
 0x760   : > { %2716 = vmatprep.subr.bf16.mxu0 %v2685_v20  ;;  %v18884_v20 = vld [vmem:[#allocation68_spill] sm:$0xff] }
 0x763   : > { %2717 = vmatpush1.bf16.msra.mxu0 %v18871_v21 }
 0x764   : > { %8306 = vmatprep.subr.msk.bf16.mxu0 %vm1280_vm1, %v2732_v8 }
 0x766   : > { %2719 = vmatmul.mubr.bf16.vlgmr.msra.gmra.mrb[76].mxu0 %v1967_v46 }
 0x767   : > { %2824 = vmatpush1.bf16.msra.mxu0 %v2818_v30  ;;  %2855 = vmatprep.mubr.bf16.mxu0 %v18872_v18 }
 0x76e   : > { %8307 = vmatmul.mubr.msk.bf16.vlgmr.msra.gmra.mrb[80].mxu0 %vm1231_vm2, %v18873_v32 }
 0x76f   : > { %2865 = vmatprep.mubr.bf16.mxu0 %v18872_v18 }
 0x776   : > { %8308 = vmatmul.mubr.msk.bf16.gmra.mrb[84].mxu0 %vm1231_vm2, %v18874_v2 }
 0x777   : > { %2875 = vmatprep.mubr.bf16.mxu0 %v18872_v18 }
 0x77e   : > { %8309 = vmatmul.mubr.msk.bf16.gmra.mrb[88].mxu0 %vm1231_vm2, %v18875_v15 }
 0x77f   : > { %2885 = vmatprep.mubr.bf16.mxu0 %v18872_v18 }
 0x786   : > { %8310 = vmatmul.mubr.msk.bf16.gmra.mrb[92].mxu0 %vm1231_vm2, %v18876_v9 }
 0x787   : > { %2895 = vmatprep.mubr.bf16.mxu0 %v18872_v18 }
 0x78e   : > { %8311 = vmatmul.mubr.msk.bf16.gmra.mrb[96].mxu0 %vm1231_vm2, %v18877_v17 }
 0x78f   : > { %2905 = vmatprep.mubr.bf16.mxu0 %v18872_v18 }
 0x796   : > { %8312 = vmatmul.mubr.msk.bf16.gmra.mrb[100].mxu0 %vm1231_vm2, %v18878_v26 }
 0x797   : > { %2915 = vmatprep.mubr.bf16.mxu0 %v18872_v18 }
 0x79e   : > { %8313 = vmatmul.mubr.msk.bf16.gmra.mrb[104].mxu0 %vm1231_vm2, %v18879_v5 }
 0x79f   : > { %2925 = vmatprep.mubr.bf16.mxu0 %v18872_v18 }
 0x7a6   : > { %8314 = vmatmul.mubr.msk.bf16.gmra.mrb[108].mxu0 %vm1231_vm2, %v18880_v61 }
 0x7a7   : > { %2935 = vmatprep.mubr.bf16.mxu0 %v18872_v18 }
 0x7ae   : > { %8315 = vmatmul.mubr.msk.bf16.gmra.mrb[112].mxu0 %vm1231_vm2, %v18881_v4 }
 0x7af   : > { %2945 = vmatprep.mubr.bf16.mxu0 %v18872_v18 }
 0x7b6   : > { %8316 = vmatmul.mubr.msk.bf16.gmra.mrb[116].mxu0 %vm1231_vm2, %v18882_v1 }
 0x7b7   : > { %2955 = vmatprep.mubr.bf16.mxu0 %v18872_v18 }
 0x7be   : > { %8317 = vmatmul.mubr.msk.bf16.gmra.mrb[120].mxu0 %vm1231_vm2, %v18883_v43 }
 0x7bf   : > { %2965 = vmatprep.mubr.bf16.mxu0 %v18872_v18 }
 0x7c6   : > { %8318 = vmatmul.mubr.msk.bf16.gmra.mrb[124].mxu0 %vm1231_vm2, %v18884_v20 }
 0x7c7   : > { %2975 = vmatprep.mubr.bf16.mxu0 %v18872_v18 }
 0x7ce   : > { %8319 = vmatmul.mubr.msk.bf16.gmra.mrb[128].mxu0 %vm1231_vm2, %v18885_v35 }
 0x7cf   : > { %2985 = vmatprep.mubr.bf16.mxu0 %v18872_v18 }
 0x7d6   : > { %8320 = vmatmul.mubr.msk.bf16.gmra.mrb[132].mxu0 %vm1231_vm2, %v18886_v50 }
 0x7d7   : > { %2995 = vmatprep.mubr.bf16.mxu0 %v18872_v18 }
 0x7de   : > { %8321 = vmatmul.mubr.msk.bf16.gmra.mrb[136].mxu0 %vm1231_vm2, %v18887_v52 }
 0x7df   : > { %3005 = vmatprep.mubr.bf16.mxu0 %v18872_v18 }
 0x7e6   : > { %8322 = vmatmul.mubr.msk.bf16.gmra.mrb[140].mxu0 %vm1231_vm2, %v18890_v36 }
 0x7e7   : > { %4254 = vmatprep.mubr.bf16.mxu0 %v3504_v25 }
 0x839   : > { %v12016_v41 = vpop.f32.mrb[76].mxu0 }
 0x83a   : > { %18891 = vst [vmem:[#allocation31_spill] sm:$0xff] %v12016_v41  ;;  %v12020_v14 = vpop.f32.mrb[77].mxu0 }
 0x83b   : > { %18893 = vst [vmem:[#allocation33_spill] sm:$0xff] %v12020_v14  ;;  %v2724_v29 = vpop.f32.mrb[78].mxu0 }
 0x83c   : > { %v2725_v53 = vpop.f32.mrb[79].mxu0 }
 0x841   : > { %v12024_v28 = vpop.f32.mrb[80].mxu0 }
 0x842   : > { %v12026_v37 = vpop.f32.mrb[81].mxu0 }
 0x843   : > { %v12028_v16 = vpop.f32.mrb[82].mxu0 }
 0x844   : > { %v12030_v51 = vpop.f32.mrb[83].mxu0 }
 0x849   : > { %v12032_v7 = vpop.f32.mrb[84].mxu0 }
 0x84a   : > { %v3016_v54 = vmax.f32 %v12024_v28, %v12032_v7  ;;  %v12036_v40 = vpop.f32.mrb[85].mxu0 }
 0x84b   : > { %v3053_v11 = vmax.f32 %v12026_v37, %v12036_v40  ;;  %v12040_v62 = vpop.f32.mrb[86].mxu0 }
 0x84c   : > { %v3017_v55 = vmax.f32 %v12028_v16, %v12040_v62  ;;  %v12044_v42 = vpop.f32.mrb[87].mxu0 }
 0x84d   : > { %v3054_v57 = vmax.f32 %v12030_v51, %v12044_v42 }
 0x851   : > { %v12048_v10 = vpop.f32.mrb[88].mxu0 }
 0x852   : > { %v3018_v39 = vmax.f32 %v3016_v54, %v12048_v10  ;;  %v12051_v27 = vpop.f32.mrb[89].mxu0 }
 0x853   : > { %v3055_v33 = vmax.f32 %v3053_v11, %v12051_v27  ;;  %v12054_v24 = vpop.f32.mrb[90].mxu0 }
 0x854   : > { %v3019_v44 = vmax.f32 %v3017_v55, %v12054_v24  ;;  %v12057_v22 = vpop.f32.mrb[91].mxu0 }
 0x855   : > { %v3056_v58 = vmax.f32 %v3054_v57, %v12057_v22 }
 0x859   : > { %v12060_v38 = vpop.f32.mrb[92].mxu0 }
 0x85a   : > { %v3020_v3 = vmax.f32 %v3018_v39, %v12060_v38  ;;  %v12063_v56 = vpop.f32.mrb[93].mxu0 }
 0x85b   : > { %v3057_v45 = vmax.f32 %v3055_v33, %v12063_v56  ;;  %v12066_v0 = vpop.f32.mrb[94].mxu0 }
 0x85c   : > { %v3021_v59 = vmax.f32 %v3019_v44, %v12066_v0  ;;  %v12069_v23 = vpop.f32.mrb[95].mxu0 }
 0x85d   : > { %v3058_v48 = vmax.f32 %v3056_v58, %v12069_v23 }
 0x861   : > { %v12072_v12 = vpop.f32.mrb[96].mxu0 }
 0x862   : > { %v3022_v49 = vmax.f32 %v3020_v3, %v12072_v12  ;;  %v12075_v47 = vpop.f32.mrb[97].mxu0 }
 0x863   : > { %v3059_v8 = vmax.f32 %v3057_v45, %v12075_v47  ;;  %v12078_v21 = vpop.f32.mrb[98].mxu0 }
 0x864   : > { %v3023_v46 = vmax.f32 %v3021_v59, %v12078_v21  ;;  %v12081_v30 = vpop.f32.mrb[99].mxu0 }
 0x865   : > { %v3060_v32 = vmax.f32 %v3058_v48, %v12081_v30 }
 0x869   : > { %v12084_v2 = vpop.f32.mrb[100].mxu0 }
 0x86a   : > { %v3024_v15 = vmax.f32 %v3022_v49, %v12084_v2  ;;  %v12087_v9 = vpop.f32.mrb[101].mxu0 }
 0x86b   : > { %v3061_v17 = vmax.f32 %v3059_v8, %v12087_v9  ;;  %v12090_v26 = vpop.f32.mrb[102].mxu0 }
 0x86c   : > { %v3025_v5 = vmax.f32 %v3023_v46, %v12090_v26  ;;  %v12093_v61 = vpop.f32.mrb[103].mxu0 }
 0x86d   : > { %18895 = vst [vmem:[#allocation35_spill] sm:$0xff] %v12093_v61  ;;  %v3062_v4 = vmax.f32 %v3060_v32, %v12093_v61 }
 0x871   : > { %v12096_v1 = vpop.f32.mrb[104].mxu0 }
 0x872   : > { %v3026_v43 = vmax.f32 %v3024_v15, %v12096_v1  ;;  %v12099_v20 = vpop.f32.mrb[105].mxu0 }
 0x873   : > { %18896 = vst [vmem:[#allocation62_spill] sm:$0xff] %v12099_v20  ;;  %v3063_v35 = vmax.f32 %v3061_v17, %v12099_v20  ;;  %v12102_v50 = vpop.f32.mrb[106].mxu0 }
 0x874   : > { %v3027_v52 = vmax.f32 %v3025_v5, %v12102_v50  ;;  %v12105_v63 = vpop.f32.mrb[107].mxu0 }
 0x875   : > { %18897 = vst [vmem:[#allocation23_spill] sm:$0xff] %v12105_v63  ;;  %v3064_v13 = vmax.f32 %v3062_v4, %v12105_v63 }
 0x879   : > { %v12108_v60 = vpop.f32.mrb[108].mxu0 }
 0x87a   : > { %v3028_v25 = vmax.f32 %v3026_v43, %v12108_v60  ;;  %v12111_v36 = vpop.f32.mrb[109].mxu0 }
 0x87b   : > { %18898 = vst [vmem:[#allocation29_spill] sm:$0xff] %v12111_v36  ;;  %v3065_v29 = vmax.f32 %v3063_v35, %v12111_v36  ;;  %v12114_v53 = vpop.f32.mrb[110].mxu0 }
 0x87c   : > { %v3029_v54 = vmax.f32 %v3027_v52, %v12114_v53  ;;  %v12117_v11 = vpop.f32.mrb[111].mxu0 }
 0x87d   : > { %18899 = vst [vmem:[#allocation37_spill] sm:$0xff] %v12117_v11  ;;  %v3066_v55 = vmax.f32 %v3064_v13, %v12117_v11 }
 0x881   : > { %v12120_v57 = vpop.f32.mrb[112].mxu0 }
 0x882   : > { %v3030_v39 = vmax.f32 %v3028_v25, %v12120_v57  ;;  %v12123_v33 = vpop.f32.mrb[113].mxu0 }
 0x883   : > { %18900 = vst [vmem:[#allocation70_spill] sm:$0xff] %v12123_v33  ;;  %v3067_v44 = vmax.f32 %v3065_v29, %v12123_v33  ;;  %v12126_v58 = vpop.f32.mrb[114].mxu0 }
 0x884   : > { %v3031_v3 = vmax.f32 %v3029_v54, %v12126_v58  ;;  %v12129_v45 = vpop.f32.mrb[115].mxu0 }
 0x885   : > { %18901 = vst [vmem:[#allocation71_spill] sm:$0xff] %v12129_v45  ;;  %v3068_v59 = vmax.f32 %v3066_v55, %v12129_v45 }
 0x889   : > { %v12132_v48 = vpop.f32.mrb[116].mxu0 }
 0x88a   : > { %v3032_v49 = vmax.f32 %v3030_v39, %v12132_v48  ;;  %v12135_v8 = vpop.f32.mrb[117].mxu0 }
 0x88b   : > { %18902 = vst [vmem:[#allocation20_spill] sm:$0xff] %v12135_v8  ;;  %v3069_v46 = vmax.f32 %v3067_v44, %v12135_v8  ;;  %v12138_v32 = vpop.f32.mrb[118].mxu0 }
 0x88c   : > { %v3033_v15 = vmax.f32 %v3031_v3, %v12138_v32  ;;  %v12141_v17 = vpop.f32.mrb[119].mxu0 }
 0x88d   : > { %18903 = vst [vmem:[#allocation17_spill] sm:$0xff] %v12141_v17  ;;  %v3070_v5 = vmax.f32 %v3068_v59, %v12141_v17 }
 0x891   : > { %v12144_v4 = vpop.f32.mrb[120].mxu0 }
 0x892   : > { %v3034_v43 = vmax.f32 %v3032_v49, %v12144_v4  ;;  %v12147_v35 = vpop.f32.mrb[121].mxu0 }
 0x893   : > { %18904 = vst [vmem:[#allocation60_spill] sm:$0xff] %v12147_v35  ;;  %v3071_v52 = vmax.f32 %v3069_v46, %v12147_v35  ;;  %v12150_v13 = vpop.f32.mrb[122].mxu0 }
 0x894   : > { %v3035_v25 = vmax.f32 %v3033_v15, %v12150_v13  ;;  %v12153_v29 = vpop.f32.mrb[123].mxu0 }
 0x895   : > { %18905 = vst [vmem:[#allocation26_spill] sm:$0xff] %v12153_v29  ;;  %v3072_v54 = vmax.f32 %v3070_v5, %v12153_v29 }
 0x899   : > { %v12156_v55 = vpop.f32.mrb[124].mxu0 }
 0x89a   : > { %v3036_v39 = vmax.f32 %v3034_v43, %v12156_v55  ;;  %v12159_v44 = vpop.f32.mrb[125].mxu0 }
 0x89b   : > { %18906 = vst [vmem:[#allocation28_spill] sm:$0xff] %v12159_v44  ;;  %v3073_v3 = vmax.f32 %v3071_v52, %v12159_v44  ;;  %v12162_v59 = vpop.f32.mrb[126].mxu0 }
 0x89c   : > { %v3037_v49 = vmax.f32 %v3035_v25, %v12162_v59  ;;  %v12165_v46 = vpop.f32.mrb[127].mxu0 }
 0x89d   : > { %18907 = vst [vmem:[#allocation24_spill] sm:$0xff] %v12165_v46  ;;  %v3074_v15 = vmax.f32 %v3072_v54, %v12165_v46 }
 0x8a1   : > { %v12168_v19 = vpop.f32.mrb[128].mxu0 }
 0x8a2   : > { %v3038_v5 = vmax.f32 %v3036_v39, %v12168_v19  ;;  %v12171_v6 = vpop.f32.mrb[129].mxu0 }
 0x8a3   : > { %18908 = vst [vmem:[#allocation18_spill] sm:$0xff] %v12171_v6  ;;  %v3075_v43 = vmax.f32 %v3073_v3, %v12171_v6  ;;  %v12174_v31 = vpop.f32.mrb[130].mxu0 }
 0x8a4   : > { %v3039_v52 = vmax.f32 %v3037_v49, %v12174_v31  ;;  %v12177_v41 = vpop.f32.mrb[131].mxu0 }
 0x8a5   : > { %18909 = vst [vmem:[#allocation30_spill] sm:$0xff] %v12177_v41  ;;  %v3076_v25 = vmax.f32 %v3074_v15, %v12177_v41 }
 0x8a9   : > { %v12180_v34 = vpop.f32.mrb[132].mxu0 }
 0x8aa   : > { %v3040_v54 = vmax.f32 %v3038_v5, %v12180_v34  ;;  %v12183_v14 = vpop.f32.mrb[133].mxu0 }
 0x8ab   : > { %18910 = vst [vmem:[#allocation34_spill] sm:$0xff] %v12183_v14  ;;  %v3077_v39 = vmax.f32 %v3075_v43, %v12183_v14  ;;  %v12186_v18 = vpop.f32.mrb[134].mxu0 }
 0x8ac   : > { %v3041_v3 = vmax.f32 %v3039_v52, %v12186_v18  ;;  %v12189_v6 = vpop.f32.mrb[135].mxu0 }
 0x8ad   : > { %18911 = vst [vmem:[#allocation32_spill] sm:$0xff] %v12189_v6  ;;  %v3078_v49 = vmax.f32 %v3076_v25, %v12189_v6 }
 0x8b1   : > { %v12192_v46 = vpop.f32.mrb[136].mxu0 }
 0x8b2   : > { %v3042_v15 = vmax.f32 %v3040_v54, %v12192_v46  ;;  %v12195_v41 = vpop.f32.mrb[137].mxu0 }
 0x8b3   : > { %18912 = vst [vmem:[#allocation38_spill] sm:$0xff] %v12195_v41  ;;  %v3079_v5 = vmax.f32 %v3077_v39, %v12195_v41  ;;  %v12198_v44 = vpop.f32.mrb[138].mxu0 }
 0x8b4   : > { %v3043_v43 = vmax.f32 %v3041_v3, %v12198_v44  ;;  %v12201_v14 = vpop.f32.mrb[139].mxu0 }
 0x8b5   : > { %18913 = vst [vmem:[#allocation36_spill] sm:$0xff] %v12201_v14  ;;  %v3080_v52 = vmax.f32 %v3078_v49, %v12201_v14 }
 0x8b9   : > { %v12204_v29 = vpop.f32.mrb[140].mxu0 }
 0x8ba   : > { %v3044_v25 = vmax.f32 %v3042_v15, %v12204_v29  ;;  %v12207_v6 = vpop.f32.mrb[141].mxu0 }
 0x8bb   : > { %18914 = vst [vmem:[#allocation63_spill] sm:$0xff] %v12207_v6  ;;  %v3081_v54 = vmax.f32 %v3079_v5, %v12207_v6  ;;  %v12210_v35 = vpop.f32.mrb[142].mxu0 }
 0x8bc   : > { %v3045_v39 = vmax.f32 %v3043_v43, %v12210_v35  ;;  %v12213_v41 = vpop.f32.mrb[143].mxu0 }
 0x8bd   : > { %18915 = vst [vmem:[#allocation13_spill] sm:$0xff] %v12213_v41  ;;  %v3082_v3 = vmax.f32 %v3080_v52, %v12213_v41 }
 0x8be   : > { %v3046_v17 = vmax.f32 %v3044_v25, %v3045_v39 }
 0x8bf   : > { %v3083_v8 = vmax.f32 %v3081_v54, %v3082_v3 }
 0x8c0   : > { %v3047_v45 = vrot.slane %v3046_v17, 4 }
 0x8c1   : > { %v3084_v49 = vrot.slane %v3083_v8, 4 }
 0x8c2   : > { %v3048_v14 = vmax.f32 %v3046_v17, %v3047_v45 }
 0x8c3   : > { %v3085_v33 = vmax.f32 %v3083_v8, %v3084_v49 }
 0x8c4   : > { %v3049_v11 = vrot.slane %v3048_v14, 2 }
 0x8c5   : > { %v3086_v15 = vrot.slane %v3085_v33, 2 }
 0x8c6   : > { %v3050_v36 = vmax.f32 %v3048_v14, %v3049_v11 }
 0x8c7   : > { %v3087_v63 = vmax.f32 %v3085_v33, %v3086_v15 }
 0x8c8   : > { %v3051_v20 = vrot.slane %v3050_v36, 1 }
 0x8c9   : > { %v3088_v5 = vrot.slane %v3087_v63, 1 }
 0x8ca   : > { %v12216_v6 = vmax.f32 %v3050_v36, %v3051_v20 }
 0x8cb   : > { %v12218_v61 = vmax.f32 %v3087_v63, %v3088_v5 }
 0x8cc   : > { %v3090_v43 = vsub.f32 %v12024_v28, %v12216_v6  ;;  %v3092_v52 = vsub.f32 %v12028_v16, %v12216_v6  ;;  %v3094_v45 = vsub.f32 %v12032_v7, %v12216_v6  ;;  %v3096_v8 = vsub.f32 %v12040_v62, %v12216_v6 }
 0x8cd   : > { %v3098_v14 = vsub.f32 %v12048_v10, %v12216_v6  ;;  %v3100_v20 = vsub.f32 %v12054_v24, %v12216_v6  ;;  %v3102_v63 = vsub.f32 %v12060_v38, %v12216_v6  ;;  %v3104_v28 = vsub.f32 %v12066_v0, %v12216_v6  ;;  %v18938_v38 = vld [vmem:[#allocation32_spill] sm:$0xff] }
 0x8ce   : > { %v3106_v16 = vsub.f32 %v12072_v12, %v12216_v6  ;;  %v3108_v7 = vsub.f32 %v12078_v21, %v12216_v6  ;;  %v3110_v62 = vsub.f32 %v12084_v2, %v12216_v6  ;;  %v3112_v10 = vsub.f32 %v12090_v26, %v12216_v6  ;;  %v18931_v2 = vld [vmem:[#allocation28_spill] sm:$0xff]  ;;  %v18934_v12 = vld [vmem:[#allocation18_spill] sm:$0xff] }
 0x8cf   : > { %v3154_v17 = vmul.f32 1.442695, %v3090_v43  ;;  %v3158_v3 = vmul.f32 1.442695, %v3092_v52  ;;  %v3162_v33 = vmul.f32 1.442695, %v3094_v45  ;;  %v18943_v26 = vsub.f32 %v12108_v60, %v12216_v6 }
 0x8d0   : > { %v3166_v5 = vmul.f32 1.442695, %v3096_v8  ;;  %v3170_v25 = vmul.f32 1.442695, %v3098_v14  ;;  %v3174_v11 = vmul.f32 1.442695, %v3100_v20  ;;  %v18946_v60 = vsub.f32 %v12126_v58, %v12216_v6 }
 0x8d1   : > { %8837 = vpow2.f32 %v3154_v17  ;;  %v3178_v54 = vmul.f32 1.442695, %v3102_v63  ;;  %v3182_v36 = vmul.f32 1.442695, %v3104_v28  ;;  %v3186_v14 = vmul.f32 1.442695, %v3106_v16 }
 0x8d2   : > { %8839 = vpow2.f32 %v3158_v3  ;;  %v18918_v16 = vld [vmem:[#allocation35_spill] sm:$0xff]  ;;  %v18919_v63 = vld [vmem:[#allocation62_spill] sm:$0xff]  ;;  %v18922_v17 = vld [vmem:[#allocation29_spill] sm:$0xff]  ;;  %v3194_v43 = vmul.f32 1.442695, %v3110_v62 }
 0x8d3   : > { %8841 = vpow2.f32 %v3162_v33  ;;  %v18920_v28 = vld [vmem:[#allocation23_spill] sm:$0xff]  ;;  %v18926_v8 = vld [vmem:[#allocation20_spill] sm:$0xff]  ;;  %v18930_v3 = vld [vmem:[#allocation26_spill] sm:$0xff]  ;;  %v3210_v45 = vmul.f32 1.442695, %v18943_v26 }
 0x8d4   : > { %8843 = vpow2.f32 %v3166_v5  ;;  %v3190_v5 = vmul.f32 1.442695, %v3108_v7  ;;  %v18924_v7 = vld [vmem:[#allocation70_spill] sm:$0xff]  ;;  %v18925_v20 = vld [vmem:[#allocation71_spill] sm:$0xff]  ;;  %v18929_v52 = vld [vmem:[#allocation60_spill] sm:$0xff] }
 0x8d5   : > { %8845 = vpow2.f32 %v3170_v25  ;;  %v18923_v25 = vld [vmem:[#allocation37_spill] sm:$0xff]  ;;  %v18935_v62 = vld [vmem:[#allocation30_spill] sm:$0xff]  ;;  %v3222_v26 = vmul.f32 1.442695, %v18946_v60 }
 0x8d6   : > { %8847 = vpow2.f32 %v3174_v11 }
 0x8d7   : > { %8849 = vpow2.f32 %v3178_v54 }
 0x8d8   : > { %8851 = vpow2.f32 %v3182_v36  ;;  %v18928_v36 = vld [vmem:[#allocation17_spill] sm:$0xff] }
 0x8d9   : > { %8853 = vpow2.f32 %v3186_v14 }
 0x8da   : > { %8855 = vpow2.f32 %v3190_v5  ;;  %v18939_v5 = vld [vmem:[#allocation38_spill] sm:$0xff] }
 0x8db   : > { %v12296_v33 = vpop.eup %8837  ;;  %8857 = vpow2.f32 %v3194_v43 }
 0x8dc   : > { %18916 = vst [vmem:[#allocation14_spill] sm:$0xff] %v12296_v33  ;;  %v12304_v11 = vpop.eup %8839 }
 0x8dd   : > { %18917 = vst [vmem:[#allocation27_spill] sm:$0xff] %v12304_v11  ;;  %v3282_v39 = vadd.f32 %v12304_v11, %v12296_v33  ;;  %v12318_v54 = vpop.eup %8841  ;;  %v18942_v33 = vsub.f32 %v12102_v50, %v12216_v6  ;;  %v18945_v50 = vsub.f32 %v12120_v57, %v12216_v6  ;;  %v18948_v57 = vsub.f32 %v12030_v51, %v12218_v61 }
 0x8de   : > { %18921 = vst [vmem:[#allocation25_spill] sm:$0xff] %v12318_v54  ;;  %v12331_v21 = vpop.eup %8843 }
 0x8df   : > { %v3283_v15 = vadd.f32 %v12318_v54, %v3282_v39  ;;  %18927 = vst [vmem:[#allocation39_spill] sm:$0xff] %v12331_v21  ;;  %v3198_v39 = vmul.f32 1.442695, %v3112_v10  ;;  %v12347_v24 = vpop.eup %8845  ;;  %v18940_v54 = vld [vmem:[#allocation36_spill] sm:$0xff]  ;;  %v18941_v10 = vld [vmem:[#allocation63_spill] sm:$0xff] }
 0x8e0   : > { %18933 = vst [vmem:[#allocation21_spill] sm:$0xff] %v12347_v24  ;;  %v12363_v14 = vpop.eup %8847  ;;  %v3206_v11 = vmul.f32 1.442695, %v18942_v33  ;;  %v3218_v33 = vmul.f32 1.442695, %v18945_v50 }
 0x8e1   : > { %v3284_v49 = vadd.f32 %v12331_v21, %v3283_v15  ;;  %v18937_v15 = vsub.f32 %v12096_v1, %v12216_v6  ;;  %8859 = vpow2.f32 %v3198_v39 }
 0x8e3   : > { %v3202_v21 = vmul.f32 1.442695, %v18937_v15  ;;  %v3285_v0 = vadd.f32 %v12347_v24, %v3284_v49  ;;  %v12372_v15 = vpop.eup %8849 }
 0x8e4   : > { %v12378_v24 = vpop.eup %8851 }
 0x8e5   : > { %v3286_v49 = vadd.f32 %v12363_v14, %v3285_v0  ;;  %8861 = vpow2.f32 %v3202_v21  ;;  %v12384_v41 = vpop.eup %8853  ;;  %v18944_v0 = vsub.f32 %v12114_v53, %v12216_v6 }
 0x8e6   : > { %8863 = vpow2.f32 %v3206_v11  ;;  %v12393_v21 = vpop.eup %8855  ;;  %v18947_v11 = vsub.f32 %v12026_v37, %v12218_v61  ;;  %v18950_v37 = vsub.f32 %v12036_v40, %v12218_v61 }
 0x8e7   : > { %v3287_v43 = vadd.f32 %v12372_v15, %v3286_v49  ;;  %v3214_v39 = vmul.f32 1.442695, %v18944_v0  ;;  %8865 = vpow2.f32 %v3210_v45  ;;  %v12402_v0 = vpop.eup %8857  ;;  %v18949_v45 = vsub.f32 %v12132_v48, %v12216_v6 }
 0x8e8   : > { %v3156_v53 = vmul.f32 1.442695, %v18947_v11  ;;  %v18953_v48 = vsub.f32 %v12044_v42, %v12218_v61 }
 0x8e9   : > { %v3288_v1 = vadd.f32 %v12378_v24, %v3287_v43  ;;  %8867 = vpow2.f32 %v3214_v39  ;;  %v3226_v50 = vmul.f32 1.442695, %v18949_v45  ;;  %v18951_v39 = vsub.f32 %v12138_v32, %v12216_v6 }
 0x8ea   : > { %8869 = vpow2.f32 %v3218_v33  ;;  %v18956_v32 = vsub.f32 %v12051_v27, %v12218_v61 }
 0x8eb   : > { %v3289_v49 = vadd.f32 %v12384_v41, %v3288_v1  ;;  %v3160_v1 = vmul.f32 1.442695, %v18948_v57  ;;  %v12411_v60 = vpop.eup %8859  ;;  %8871 = vpow2.f32 %v3222_v26  ;;  %v3230_v11 = vmul.f32 1.442695, %v18951_v39 }
 0x8ec   : > { %8873 = vpow2.f32 %v3156_v53  ;;  %v18954_v26 = vsub.f32 %v12144_v4, %v12216_v6  ;;  %v3172_v53 = vmul.f32 1.442695, %v18956_v32  ;;  %v18958_v4 = vsub.f32 %v12057_v22, %v12218_v61 }
 0x8ed   : > { %v3290_v43 = vadd.f32 %v12393_v21, %v3289_v49  ;;  %v3164_v49 = vmul.f32 1.442695, %v18950_v37  ;;  %8875 = vpow2.f32 %v3160_v1  ;;  %v18957_v1 = vsub.f32 %v12150_v13, %v12216_v6 }
 0x8ee   : > { %8877 = vpow2.f32 %v3226_v50  ;;  %v3234_v40 = vmul.f32 1.442695, %v18954_v26  ;;  %v3176_v37 = vmul.f32 1.442695, %v18958_v4  ;;  %v18960_v13 = vsub.f32 %v12063_v56, %v12218_v61 }
 0x8ef   : > { %v3291_v58 = vadd.f32 %v12402_v0, %v3290_v43  ;;  %v12420_v33 = vpop.eup %8861  ;;  %v3168_v43 = vmul.f32 1.442695, %v18953_v48  ;;  %8879 = vpow2.f32 %v3164_v49  ;;  %v3238_v42 = vmul.f32 1.442695, %v18957_v1 }
 0x8f0   : > { %18952 = vst [vmem:[#allocation48_spill] sm:$0xff] %v12420_v33  ;;  %v12429_v45 = vpop.eup %8863  ;;  %8881 = vpow2.f32 %v3230_v11  ;;  %v18959_v49 = vsub.f32 %v12156_v55, %v12216_v6  ;;  %v18961_v22 = vsub.f32 %v12162_v59, %v12216_v6  ;;  %v18963_v56 = vsub.f32 %v12168_v19, %v12216_v6 }
 0x8f1   : > { %v3292_v51 = vadd.f32 %v12411_v60, %v3291_v58  ;;  %18955 = vst [vmem:[#allocation50_spill] sm:$0xff] %v12429_v45  ;;  %v12438_v58 = vpop.eup %8865  ;;  %8883 = vpow2.f32 %v3168_v43 }
 0x8f2   : > { %8885 = vpow2.f32 %v3234_v40  ;;  %v3242_v27 = vmul.f32 1.442695, %v18959_v49  ;;  %v3246_v43 = vmul.f32 1.442695, %v18961_v22  ;;  %v18962_v40 = vsub.f32 %v12069_v23, %v12218_v61 }
 0x8f3   : > { %v3293_v57 = vadd.f32 %v12420_v33, %v3292_v51  ;;  %v12447_v11 = vpop.eup %8867  ;;  %8887 = vpow2.f32 %v3172_v53  ;;  %v3180_v51 = vmul.f32 1.442695, %v18960_v13  ;;  %v3250_v53 = vmul.f32 1.442695, %v18963_v56 }
 0x8f4   : > { %v12452_v48 = vpop.eup %8869  ;;  %8889 = vpow2.f32 %v3238_v42  ;;  %v18964_v42 = vsub.f32 %v12075_v47, %v12218_v61  ;;  %v18965_v23 = vsub.f32 %v12174_v31, %v12216_v6  ;;  %v18969_v56 = vsub.f32 %v12186_v18, %v12216_v6 }
 0x8f5   : > { %v3294_v50 = vadd.f32 %v12429_v45, %v3293_v57  ;;  %v12458_v55 = vpop.eup %8871  ;;  %8891 = vpow2.f32 %v3176_v37  ;;  %v3184_v57 = vmul.f32 1.442695, %v18962_v40  ;;  %v18968_v40 = vsub.f32 %v12087_v9, %v12218_v61 }
 0x8f6   : > { %v12463_v32 = vpop.eup %8873  ;;  %8893 = vpow2.f32 %v3242_v27  ;;  %v3254_v37 = vmul.f32 1.442695, %v18965_v23 }
 0x8f7   : > { %v3295_v39 = vadd.f32 %v12438_v58, %v3294_v50  ;;  %v12469_v59 = vpop.eup %8875  ;;  %8895 = vpow2.f32 %v3180_v51  ;;  %v3188_v50 = vmul.f32 1.442695, %v18964_v42  ;;  %v18967_v51 = vsub.f32 %v12180_v34, %v12216_v6 }
 0x8f8   : > { %v12474_v4 = vpop.eup %8877  ;;  %8897 = vpow2.f32 %v3246_v43  ;;  %v3319_v19 = vadd.f32 %v12469_v59, %v12463_v32 }
 0x8f9   : > { %v3296_v26 = vadd.f32 %v12447_v11, %v3295_v39  ;;  %v12482_v27 = vpop.eup %8879  ;;  %8899 = vpow2.f32 %v3184_v57  ;;  %v18966_v39 = vsub.f32 %v12081_v30, %v12218_v61  ;;  %v3258_v31 = vmul.f32 1.442695, %v18967_v51 }
 0x8fa   : > { %v12487_v13 = vpop.eup %8881  ;;  %8901 = vpow2.f32 %v3250_v53  ;;  %v3320_v43 = vadd.f32 %v12482_v27, %v3319_v19  ;;  %v3196_v57 = vmul.f32 1.442695, %v18968_v40  ;;  %v3262_v53 = vmul.f32 1.442695, %v18969_v56 }
 0x8fb   : > { %v3297_v1 = vadd.f32 %v12452_v48, %v3296_v26  ;;  %v3192_v47 = vmul.f32 1.442695, %v18966_v39  ;;  %v12494_v26 = vpop.eup %8883  ;;  %8903 = vpow2.f32 %v3188_v50  ;;  %v18970_v50 = vsub.f32 %v18918_v16, %v12218_v61 }
 0x8fc   : > { %v12499_v30 = vpop.eup %8885  ;;  %8905 = vpow2.f32 %v3254_v37  ;;  %v18971_v37 = vsub.f32 %v12192_v46, %v12216_v6 }
 0x8fd   : > { %v3298_v49 = vadd.f32 %v12458_v55, %v3297_v1  ;;  %v3321_v1 = vadd.f32 %v12494_v26, %v3320_v43  ;;  %v12506_v42 = vpop.eup %8887  ;;  %8907 = vpow2.f32 %v3192_v47  ;;  %v3200_v23 = vmul.f32 1.442695, %v18970_v50 }
 0x8fe   : > { %v12511_v9 = vpop.eup %8889  ;;  %8909 = vpow2.f32 %v3258_v31  ;;  %v18972_v47 = vsub.f32 %v18919_v63, %v12218_v61  ;;  %v18973_v31 = vsub.f32 %v12198_v44, %v12216_v6 }
 0x8ff   : > { %v3299_v22 = vadd.f32 %v12474_v4, %v3298_v49  ;;  %v3266_v49 = vmul.f32 1.442695, %v18971_v37  ;;  %v3322_v19 = vadd.f32 %v12506_v42, %v3321_v1  ;;  %v12518_v39 = vpop.eup %8891  ;;  %8911 = vpow2.f32 %v3196_v57 }
 0x900   : > { %v3204_v51 = vmul.f32 1.442695, %v18972_v47  ;;  %v12523_v16 = vpop.eup %8893  ;;  %8913 = vpow2.f32 %v3262_v53  ;;  %v18974_v57 = vsub.f32 %v18920_v28, %v12218_v61  ;;  %v18975_v53 = vsub.f32 %v12204_v29, %v12216_v6 }
 0x901   : > { %v3300_v34 = vadd.f32 %v12487_v13, %v3299_v22  ;;  %v3270_v22 = vmul.f32 1.442695, %v18973_v31  ;;  %v3323_v43 = vadd.f32 %v12518_v39, %v3322_v19  ;;  %v12530_v40 = vpop.eup %8895  ;;  %8915 = vpow2.f32 %v3200_v23 }
 0x902   : > { %v3208_v56 = vmul.f32 1.442695, %v18974_v57  ;;  %v12535_v63 = vpop.eup %8897  ;;  %8917 = vpow2.f32 %v3266_v49  ;;  %v18976_v23 = vsub.f32 %v18922_v17, %v12218_v61  ;;  %v18977_v49 = vsub.f32 %v12210_v35, %v12216_v6 }
 0x903   : > { %v3301_v18 = vadd.f32 %v12499_v30, %v3300_v34  ;;  %v3274_v34 = vmul.f32 1.442695, %v18975_v53  ;;  %v3324_v1 = vadd.f32 %v12530_v40, %v3323_v43  ;;  %v12542_v50 = vpop.eup %8899  ;;  %8919 = vpow2.f32 %v3204_v51 }
 0x904   : > { %v3212_v37 = vmul.f32 1.442695, %v18976_v23  ;;  %v12547_v28 = vpop.eup %8901  ;;  %8921 = vpow2.f32 %v3270_v22  ;;  %v18978_v51 = vsub.f32 %v18923_v25, %v12218_v61  ;;  %v18979_v35 = vsub.f32 %v18924_v7, %v12218_v61 }
 0x905   : > { %v3302_v46 = vadd.f32 %v12511_v9, %v3301_v18  ;;  %v3278_v18 = vmul.f32 1.442695, %v18977_v49  ;;  %v3325_v19 = vadd.f32 %v12542_v50, %v3324_v1  ;;  %v12554_v47 = vpop.eup %8903  ;;  %8923 = vpow2.f32 %v3208_v56 }
 0x906   : > { %v3216_v31 = vmul.f32 1.442695, %v18978_v51  ;;  %v12559_v17 = vpop.eup %8905  ;;  %8925 = vpow2.f32 %v3274_v34  ;;  %v3220_v43 = vmul.f32 1.442695, %v18979_v35  ;;  %v18980_v34 = vsub.f32 %v18925_v20, %v12218_v61 }
 0x907   : > { %v3303_v44 = vadd.f32 %v12523_v16, %v3302_v46  ;;  %v3326_v46 = vadd.f32 %v12554_v47, %v3325_v19  ;;  %v12563_v6 = vpop.eup %8907  ;;  %8927 = vpow2.f32 %v3212_v37  ;;  %v18981_v49 = vsub.f32 %v18926_v8, %v12218_v61 }
 0x908   : > { %v12568_v57 = vpop.eup %8909  ;;  %8929 = vpow2.f32 %v3278_v18 }
 0x909   : > { %v3304_v29 = vadd.f32 %v12535_v63, %v3303_v44  ;;  %v3327_v56 = vadd.f32 %v12563_v6, %v3326_v46  ;;  %v12572_v53 = vpop.eup %8911  ;;  %8931 = vpow2.f32 %v3216_v31  ;;  %v3224_v44 = vmul.f32 1.442695, %v18980_v34 }
 0x90a   : > { %v12577_v1 = vpop.eup %8913  ;;  %8933 = vpow2.f32 %v3220_v43  ;;  %v3228_v18 = vmul.f32 1.442695, %v18981_v49  ;;  %v18983_v31 = vsub.f32 %v18928_v36, %v12218_v61 }
 0x90b   : > { %v3305_v22 = vadd.f32 %v12547_v28, %v3304_v29  ;;  %v3328_v7 = vadd.f32 %v12572_v53, %v3327_v56  ;;  %v12581_v37 = vpop.eup %8915  ;;  %8935 = vpow2.f32 %v3224_v44 }
 0x90c   : > { %v12586_v29 = vpop.eup %8917  ;;  %8937 = vpow2.f32 %v3228_v18 }
 0x90d   : > { %v3306_v25 = vadd.f32 %v12559_v17, %v3305_v22  ;;  %v3329_v20 = vadd.f32 %v12581_v37, %v3328_v7  ;;  %v12590_v51 = vpop.eup %8919  ;;  %v3232_v22 = vmul.f32 1.442695, %v18983_v31  ;;  %v18986_v7 = vsub.f32 %v18930_v3, %v12218_v61  ;;  %v18988_v3 = vld [vmem:[#allocation24_spill] sm:$0xff] }
 0x90e   : > { %18982 = vst [vmem:[#allocation52_spill] sm:$0xff] %v12590_v51  ;;  %v12595_v46 = vpop.eup %8921  ;;  %v18987_v31 = vsub.f32 %v18931_v2, %v12218_v61  ;;  %v18990_v2 = vsub.f32 %v18934_v12, %v12218_v61 }
 0x90f   : > { %v3307_v23 = vadd.f32 %v12568_v57, %v3306_v25  ;;  %v3330_v8 = vadd.f32 %v12590_v51, %v3329_v20  ;;  %v12599_v43 = vpop.eup %8923  ;;  %v18985_v25 = vsub.f32 %v18929_v52, %v12218_v61  ;;  %8939 = vpow2.f32 %v3232_v22 }
 0x910   : > { %18984 = vst [vmem:[#allocation55_spill] sm:$0xff] %v12599_v43  ;;  %v12604_v34 = vpop.eup %8925  ;;  %v3240_v49 = vmul.f32 1.442695, %v18986_v7  ;;  %v18989_v7 = vsub.f32 %v18988_v3, %v12218_v61 }
 0x911   : > { %v3308_v19 = vadd.f32 %v12577_v1, %v3307_v23  ;;  %v3236_v56 = vmul.f32 1.442695, %v18985_v25  ;;  %v3331_v36 = vadd.f32 %v12599_v43, %v3330_v8  ;;  %v12608_v23 = vpop.eup %8927 }
 0x913   : > { %v3309_v35 = vadd.f32 %v12586_v29, %v3308_v19  ;;  %v12613_v19 = vpop.eup %8929  ;;  %v3332_v52 = vadd.f32 %v12608_v23, %v3331_v36  ;;  %8941 = vpow2.f32 %v3236_v56  ;;  %v3252_v56 = vmul.f32 1.442695, %v18990_v2 }
 0x914   : > { %v12617_v20 = vpop.eup %8931  ;;  %8943 = vpow2.f32 %v3240_v49  ;;  %v18991_v49 = vsub.f32 %v18935_v62, %v12218_v61  ;;  %v18994_v62 = vsub.f32 %v18938_v38, %v12218_v61 }
 0x915   : > { %v3310_v44 = vadd.f32 %v12595_v46, %v3309_v35  ;;  %v3244_v35 = vmul.f32 1.442695, %v18987_v31  ;;  %v3333_v22 = vadd.f32 %v12617_v20, %v3332_v52  ;;  %v12624_v25 = vpop.eup %8933 }
 0x916   : > { %v12630_v33 = vpop.eup %8935  ;;  %v3256_v3 = vmul.f32 1.442695, %v18991_v49 }
 0x917   : > { %v3311_v18 = vadd.f32 %v12604_v34, %v3310_v44  ;;  %v3248_v44 = vmul.f32 1.442695, %v18989_v7  ;;  %v3334_v36 = vadd.f32 %v12624_v25, %v3333_v22  ;;  %8945 = vpow2.f32 %v3244_v35  ;;  %v12636_v31 = vpop.eup %8937  ;;  %v18992_v35 = vld [vmem:[#allocation34_spill] sm:$0xff] }
 0x918   : > { %v18993_v12 = vsub.f32 %v18992_v35, %v12218_v61 }
 0x919   : > { %v3312_v8 = vadd.f32 %v12613_v19, %v3311_v18  ;;  %v3335_v52 = vadd.f32 %v12630_v33, %v3334_v36  ;;  %8947 = vpow2.f32 %v3248_v44  ;;  %v12642_v43 = vpop.eup %8939  ;;  %v3264_v44 = vmul.f32 1.442695, %v18994_v62 }
 0x91a   : > { %8949 = vpow2.f32 %v3252_v56  ;;  %v3260_v2 = vmul.f32 1.442695, %v18993_v12  ;;  %v18995_v56 = vsub.f32 %v18939_v5, %v12218_v61 }
 0x91b   : > { %v3313_v45 = vrot.slane %v3312_v8, 4  ;;  %v3336_v22 = vadd.f32 %v12636_v31, %v3335_v52  ;;  %8951 = vpow2.f32 %v3256_v3 }
 0x91c   : > { %8953 = vpow2.f32 %v3260_v2  ;;  %v3268_v35 = vmul.f32 1.442695, %v18995_v56  ;;  %v18997_v2 = vsub.f32 %v18941_v10, %v12218_v61 }
 0x91d   : > { %v3314_v18 = vadd.f32 %v3313_v45, %v3312_v8  ;;  %v3337_v8 = vadd.f32 %v12642_v43, %v3336_v22  ;;  %v12648_v36 = vpop.eup %8941  ;;  %8955 = vpow2.f32 %v3264_v44 }
 0x91e   : > { %v12654_v51 = vpop.eup %8943  ;;  %8957 = vpow2.f32 %v3268_v35  ;;  %v3276_v5 = vmul.f32 1.442695, %v18997_v2 }
 0x91f   : > { %v3315_v7 = vrot.slane %v3314_v18, 2  ;;  %v3338_v52 = vadd.f32 %v12648_v36, %v3337_v8 }
 0x921   : > { %v3316_v45 = vadd.f32 %v3315_v7, %v3314_v18  ;;  %v18996_v18 = vsub.f32 %v18940_v54, %v12218_v61  ;;  %v3339_v3 = vadd.f32 %v12654_v51, %v3338_v52  ;;  %v12663_v22 = vpop.eup %8945  ;;  %v18998_v52 = vld [vmem:[#allocation13_spill] sm:$0xff] }
 0x922   : > { %v18999_v56 = vsub.f32 %v18998_v52, %v12218_v61 }
 0x923   : > { %v3317_v49 = vrot.slane %v3316_v45, 1  ;;  %v3272_v7 = vmul.f32 1.442695, %v18996_v18  ;;  %v3340_v12 = vadd.f32 %v12663_v22, %v3339_v3  ;;  %v12666_v8 = vpop.eup %8947 }
 0x924   : > { %v12672_v54 = vpop.eup %8949 }
 0x925   : > { %v3318_v38 = vadd.f32 %v3317_v49, %v3316_v45  ;;  %8959 = vpow2.f32 %v3272_v7  ;;  %v3341_v62 = vadd.f32 %v12666_v8, %v3340_v12  ;;  %v3280_v45 = vmul.f32 1.442695, %v18999_v56  ;;  %v12678_v49 = vpop.eup %8951 }
 0x926   : > { %v12681_v18 = vpop.eup %8953 }
 0x927   : > { %8961 = vrcp.f32 %v3318_v38  ;;  %v3342_v44 = vadd.f32 %v12672_v54, %v3341_v62  ;;  %v12684_v7 = vpop.eup %8955 }
 0x928   : > { %8963 = vpow2.f32 %v3276_v5  ;;  %v12687_v38 = vpop.eup %8957 }
 0x929   : > { %v3343_v35 = vadd.f32 %v12678_v49, %v3342_v44  ;;  %8965 = vpow2.f32 %v3280_v45 }
 0x92b   : > { %v3344_v10 = vadd.f32 %v12681_v18, %v3343_v35 }
 0x92d   : > { %v3345_v3 = vadd.f32 %v12684_v7, %v3344_v10 }
 0x92f   : > { %v12689_v61 = vpop.eup %8959  ;;  %v3346_v12 = vadd.f32 %v12687_v38, %v3345_v3 }
 0x931   : > { %v12692_v2 = vpop.eup %8961  ;;  %v3347_v5 = vadd.f32 %v12689_v61, %v3346_v12 }
 0x932   : > { %v12695_v62 = vpop.eup %8963  ;;  %v12700_v56 = vmul.f32 %v12692_v2, %v12438_v58  ;;  %v12704_v45 = vmul.f32 %v12692_v2, %v12447_v11  ;;  %v12710_v35 = vmul.f32 %v12692_v2, %v12452_v48  ;;  %v12714_v10 = vmul.f32 %v12692_v2, %v12458_v55 }
 0x933   : > { %v3348_v52 = vadd.f32 %v12695_v62, %v3347_v5  ;;  %v12706_v44 = vpop.eup %8965  ;;  %v12721_v12 = vmul.f32 %v12692_v2, %v12474_v4  ;;  %v12725_v11 = vmul.f32 %v12692_v2, %v12487_v13  ;;  %v12731_v55 = vmul.f32 %v12692_v2, %v12499_v30 }
 0x934   : > { %v12735_v5 = vmul.f32 %v12692_v2, %v12511_v9  ;;  %v12745_v58 = vmul.f32 %v12692_v2, %v12535_v63  ;;  %v12749_v30 = vmul.f32 %v12692_v2, %v12547_v28  ;;  %v12755_v48 = vmul.f32 %v12692_v2, %v12559_v17 }
 0x935   : > { %v3349_v3 = vadd.f32 %v12706_v44, %v3348_v52  ;;  %19000 = vst [vmem:[#allocation54_spill] sm:$0xff] %v12721_v12  ;;  %v12739_v52 = vmul.f32 %v12692_v2, %v12523_v16  ;;  %v12759_v16 = vmul.f32 %v12692_v2, %v12568_v57  ;;  %v12763_v13 = vmul.f32 %v12692_v2, %v12577_v1 }
 0x936   : > { %19002 = vst [vmem:[#allocation11_spill] sm:$0xff] %v12745_v58  ;;  %19003 = vst [vmem:[#allocation12_spill] sm:$0xff] %v12749_v30  ;;  %v12769_v12 = vmul.f32 %v12692_v2, %v12586_v29  ;;  %v12773_v17 = vmul.f32 %v12692_v2, %v12595_v46  ;;  %v12781_v1 = vmul.f32 %v12692_v2, %v12604_v34  ;;  %v19010_v58 = vld [vmem:[#allocation39_spill] sm:$0xff] }
 0x937   : > { %19001 = vst [vmem:[#allocation22_spill] sm:$0xff] %v12739_v52  ;;  %v3350_v4 = vrot.slane %v3349_v3, 4  ;;  %19004 = vst [vmem:[#allocation64_spill] sm:$0xff] %v12755_v48  ;;  %v19009_v48 = vld [vmem:[#allocation25_spill] sm:$0xff] }
 0x938   : > { %19005 = vst [vmem:[#allocation65_spill] sm:$0xff] %v12759_v16  ;;  %19006 = vst [vmem:[#allocation66_spill] sm:$0xff] %v12763_v13  ;;  %v19007_v16 = vld [vmem:[#allocation14_spill] sm:$0xff]  ;;  %v19008_v13 = vld [vmem:[#allocation27_spill] sm:$0xff]  ;;  %v3362_v52 = vmul.f32 %v12692_v2, %v19009_v48 }
 0x939   : > { %v3351_v63 = vadd.f32 %v3350_v4, %v3349_v3  ;;  %v12785_v3 = vmul.f32 %v12692_v2, %v12613_v19  ;;  %v3358_v34 = vmul.f32 %v12692_v2, %v19007_v16  ;;  %v3360_v19 = vmul.f32 %v12692_v2, %v19008_v13 }
 0x93a   : > { %v3364_v4 = vmul.f32 %v12692_v2, %v19010_v58 }
 0x93b   : > { %v3352_v29 = vrot.slane %v3351_v63, 2  ;;  %v3422_v58 = vpack.c.bf16 %v3360_v19, %v3358_v34 }
 0x93d   : > { %v3353_v28 = vadd.f32 %v3352_v29, %v3351_v63  ;;  %v19011_v29 = vld [vmem:[#allocation21_spill] sm:$0xff] }
 0x93f   : > { %v3354_v57 = vrot.slane %v3353_v28, 1 }
 0x941   : > { %v3355_v30 = vadd.f32 %v3354_v57, %v3353_v28 }
 0x943   : > { %8967 = vrcp.f32 %v3355_v30 }
 0x94d   : > { %v12791_v9 = vpop.eup %8967 }
 0x94e   : > { %v3359_v63 = vmul.f32 %v12791_v9, %v12463_v32  ;;  %v3361_v30 = vmul.f32 %v12791_v9, %v12469_v59  ;;  %v3363_v28 = vmul.f32 %v12791_v9, %v12482_v27  ;;  %v3365_v16 = vmul.f32 %v12791_v9, %v12494_v26 }
 0x94f   : > { %v3367_v13 = vmul.f32 %v12791_v9, %v12506_v42  ;;  %v3369_v48 = vmul.f32 %v12791_v9, %v12518_v39  ;;  %v3366_v32 = vmul.f32 %v12692_v2, %v19011_v29  ;;  %v3368_v59 = vmul.f32 %v12692_v2, %v12363_v14 }
 0x950   : > { %v3423_v57 = vpack.c.bf16 %v3361_v30, %v3359_v63  ;;  %v3370_v27 = vmul.f32 %v12692_v2, %v12372_v15  ;;  %v3425_v46 = vpack.c.bf16 %v3365_v16, %v3363_v28  ;;  %v3424_v26 = vpack.c.bf16 %v3364_v4, %v3362_v52 }
 0x951   : > { %v3371_v63 = vmul.f32 %v12791_v9, %v12530_v40  ;;  %v12823_v42 = vmul.f32 %v12791_v9, %v12608_v23  ;;  %v3373_v39 = vmul.f32 %v12791_v9, %v12542_v50  ;;  %v3389_v14 = vmul.f32 %v12791_v9, %v12617_v20 }
 0x952   : > { %3454 = vmatprep.subr.bf16.mxu1 %v3423_v57  ;;  %v3391_v15 = vmul.f32 %v12791_v9, %v12624_v25  ;;  %v3393_v52 = vmul.f32 %v12791_v9, %v12630_v33  ;;  %v3427_v4 = vpack.c.bf16 %v3369_v48, %v3367_v13  ;;  %v3395_v40 = vmul.f32 %v12791_v9, %v12636_v31 }
 0x953   : > { %3455 = vmatpush1.bf16.msra.mxu1 %v3422_v58  ;;  %v3397_v23 = vmul.f32 %v12791_v9, %v12642_v43  ;;  %v3399_v50 = vmul.f32 %v12791_v9, %v12648_v36  ;;  %v3437_v34 = vpack.c.bf16 %v3389_v14, %v12823_v42  ;;  %v3401_v25 = vmul.f32 %v12791_v9, %v12654_v51  ;;  %v19015_v14 = vld [vmem:[#allocation50_spill] sm:$0xff] }
 0x954   : > { %3456 = vmatprep.subr.bf16.mxu1 %v3425_v46  ;;  %v3439_v20 = vpack.c.bf16 %v3393_v52, %v3391_v15  ;;  %v3403_v33 = vmul.f32 %v12791_v9, %v12663_v22  ;;  %v3405_v19 = vmul.f32 %v12791_v9, %v12666_v8  ;;  %v3407_v31 = vmul.f32 %v12791_v9, %v12672_v54 }
 0x955   : > { %v3441_v46 = vpack.c.bf16 %v3397_v23, %v3395_v40  ;;  %v3409_v43 = vmul.f32 %v12791_v9, %v12678_v49  ;;  %v3443_v36 = vpack.c.bf16 %v3401_v25, %v3399_v50  ;;  %v3411_v30 = vmul.f32 %v12791_v9, %v12681_v18  ;;  %v19021_v23 = vld [vmem:[#allocation11_spill] sm:$0xff]  ;;  %v19022_v50 = vld [vmem:[#allocation22_spill] sm:$0xff]  ;;  %v19028_v25 = vld [vmem:[#allocation16_spill] sm:$0xff] }
 0x956   : > { %v3413_v51 = vmul.f32 %v12791_v9, %v12684_v7  ;;  %v3415_v22 = vmul.f32 %v12791_v9, %v12687_v38  ;;  %v3445_v28 = vpack.c.bf16 %v3405_v19, %v3403_v33  ;;  %v3417_v54 = vmul.f32 %v12791_v9, %v12689_v61  ;;  %v19030_v19 = vld [vmem:[#allocation65_spill] sm:$0xff] }
 0x957   : > { %3457 = vmatpush1.bf16.msra.mxu1 %v3424_v26  ;;  %v3447_v8 = vpack.c.bf16 %v3409_v43, %v3407_v31  ;;  %v3419_v49 = vmul.f32 %v12791_v9, %v12695_v62  ;;  %v3426_v16 = vpack.c.bf16 %v3368_v59, %v3366_v32  ;;  %v3372_v57 = vmul.f32 %v12692_v2, %v12378_v24  ;;  %v19012_v26 = vld [vmem:[#allocation52_spill] sm:$0xff] }
 0x958   : > { %3458 = vmatprep.subr.bf16.mxu1 %v3427_v4  ;;  %v3449_v18 = vpack.c.bf16 %v3413_v51, %v3411_v30  ;;  %v3421_v7 = vmul.f32 %v12791_v9, %v12706_v44  ;;  %v3429_v13 = vpack.c.bf16 %v3373_v39, %v3371_v63  ;;  %v3375_v38 = vmul.f32 %v12791_v9, %v12554_v47  ;;  %v19013_v63 = vld [vmem:[#allocation55_spill] sm:$0xff]  ;;  %v19018_v4 = vld [vmem:[#allocation54_spill] sm:$0xff]  ;;  %v19034_v30 = vld [vmem:[#allocation61_spill] sm:$0xff] }
 0x959   : > { %v3377_v48 = vmul.f32 %v12791_v9, %v12563_v6  ;;  %v3451_v58 = vpack.c.bf16 %v3417_v54, %v3415_v22  ;;  %v3428_v62 = vpack.c.bf16 %v3372_v57, %v3370_v27  ;;  %v3374_v29 = vmul.f32 %v12692_v2, %v12384_v41  ;;  %v19041_v57 = vld [vmem:[#allocation40_spill] sm:$0xff] }
 0x95a   : > { %v3453_v61 = vpack.c.bf16 %v3421_v7, %v3419_v49  ;;  %v3376_v24 = vmul.f32 %v12692_v2, %v12393_v21  ;;  %v3379_v44 = vmul.f32 %v12791_v9, %v12572_v53  ;;  %v3381_v47 = vmul.f32 %v12791_v9, %v12581_v37  ;;  %v19014_v37 = vld [vmem:[#allocation48_spill] sm:$0xff]  ;;  %v19043_v7 = vld [vmem:[#allocation43_spill] sm:$0xff] }
 0x95b   : > { %3459 = vmatpush1.bf16.msra.mxu1 %v3426_v16  ;;  %v3431_v32 = vpack.c.bf16 %v3377_v48, %v3375_v38  ;;  %v3378_v59 = vmul.f32 %v12692_v2, %v12402_v0  ;;  %v3380_v27 = vmul.f32 %v12692_v2, %v12411_v60  ;;  %v3383_v21 = vmul.f32 %v12791_v9, %v19012_v26 }
 0x95c   : > { %3460 = vmatprep.subr.bf16.mxu1 %v3429_v13  ;;  %v3430_v6 = vpack.c.bf16 %v3376_v24, %v3374_v29  ;;  %v3433_v41 = vpack.c.bf16 %v3381_v47, %v3379_v44  ;;  %v3385_v42 = vmul.f32 %v12791_v9, %v19013_v63  ;;  %v3382_v39 = vmul.f32 %v12692_v2, %v19014_v37  ;;  %v19044_v13 = vld [vmem:[#allocation44_spill] sm:$0xff] }
 0x95d   : > { %v3432_v53 = vpack.c.bf16 %v3380_v27, %v3378_v59  ;;  %v3384_v15 = vmul.f32 %v12692_v2, %v19015_v14  ;;  %v19016_v52 = vpack.c.bf16 %v12704_v45, %v12700_v56  ;;  %v19017_v9 = vpack.c.bf16 %v12714_v10, %v12710_v35  ;;  %v926_v45 = vpop.permute.xlu1 %925  ;;  %v19025_v35 = vld [vmem:[#allocation12_spill] sm:$0xff] }
 0x95e   : > { %v3435_v0 = vpack.c.bf16 %v3385_v42, %v3383_v21  ;;  %v19019_v40 = vpack.c.bf16 %v12725_v11, %v19018_v4  ;;  %v19020_v2 = vpack.c.bf16 %v12735_v5, %v12731_v55  ;;  %v19023_v56 = vpack.c.bf16 %v19021_v23, %v19022_v50 }
 0x95f   : > { %3461 = vmatpush1.bf16.msra.mxu1 %v3428_v62  ;;  %v3434_v60 = vpack.c.bf16 %v3384_v15, %v3382_v39  ;;  %v995_v33 = vadd.f32 %v19028_v25, %v926_v45  ;;  %v19032_v43 = vpack.c.bf16 %v12773_v17, %v12769_v12  ;;  %v19036_v16 = vmov 0   ;;  %v19037_v12 = vld [vmem:[#allocation53_spill] sm:$0xff]  ;;  %v19038_v17 = vld [vmem:[#allocation56_spill] sm:$0xff] }
 0x960   : > { %3462 = vmatprep.subr.bf16.mxu1 %v3431_v32 }
 0x961   : > { %v3498_v31 = vmul.f32 0.35355338, %v995_v33  ;;  %v3529_v38 = vpop.trf.xlu1 }
 0x963   : > { %3463 = vmatpush1.bf16.msra.mxu1 %v3430_v6 }
 0x964   : > { %3464 = vmatprep.subr.bf16.mxu1 %v3433_v41 }
 0x965   : > { %v3530_v48 = vpop.trf.xlu1 }
 0x967   : > { %3465 = vmatpush1.bf16.msra.mxu1 %v3432_v53 }
 0x968   : > { %3466 = vmatprep.subr.bf16.mxu1 %v3435_v0 }
 0x96b   : > { %3467 = vmatpush1.bf16.msra.mxu1 %v3434_v60 }
 0x96c   : > { %3468 = vmatprep.subr.bf16.mxu1 %v3437_v34  ;;  %v19024_v34 = vld [vmem:[#allocation64_spill] sm:$0xff] }
 0x96d   : > { %v19026_v10 = vpack.c.bf16 %v19024_v34, %v19025_v35 }
 0x96f   : > { %3469 = vmatpush1.bf16.msra.mxu1 %v19016_v52 }
 0x970   : > { %3470 = vmatprep.subr.bf16.mxu1 %v3439_v20  ;;  %v19027_v20 = vld [vmem:[#allocation15_spill] sm:$0xff] }
 0x971   : > { %v993_v11 = vadd.f32 %v19027_v20, %v926_v45 }
 0x973   : > { %3471 = vmatpush1.bf16.msra.mxu1 %v19017_v9  ;;  %v3497_v5 = vmul.f32 0.35355338, %v993_v11 }
 0x974   : > { %3472 = vmatprep.subr.bf16.mxu1 %v3441_v46  ;;  %v19029_v46 = vld [vmem:[#allocation66_spill] sm:$0xff] }
 0x975   : > { %v19031_v55 = vpack.c.bf16 %v19029_v46, %v19030_v19  ;;  %v3499_v22 = vpack.c.bf16 %v3497_v5, %v3497_v5 }
 0x977   : > { %3473 = vmatpush1.bf16.msra.mxu1 %v19019_v40  ;;  %v3586_v49 = vsel %vm1280_vm1, %v3499_v22, 0 }
 0x978   : > { %3474 = vmatprep.subr.bf16.mxu1 %v3443_v36  ;;  %v19033_v36 = vld [vmem:[#allocation58_spill] sm:$0xff] }
 0x979   : > { %v1183_v51 = vadd.f32 %v19034_v30, %v19033_v36 }
 0x97b   : > { %3475 = vmatpush1.bf16.msra.mxu1 %v19020_v2  ;;  %v2735_v54 = vpack.c.bf16 %v1183_v51, %v1183_v51 }
 0x97c   : > { %3476 = vmatprep.subr.bf16.mxu1 %v3445_v28  ;;  %v3500_v28 = vpack.c.bf16 %v3498_v31, %v3498_v31 }
 0x97f   : > { %3477 = vmatpush1.bf16.msra.mxu1 %v19023_v56 }
 0x980   : > { %3478 = vmatprep.subr.bf16.mxu1 %v3447_v8  ;;  %v19035_v8 = vpack.c.bf16 %v12785_v3, %v12781_v1  ;;  %v19039_v1 = vld [vmem:[#allocation67_spill] sm:$0xff]  ;;  %v19040_v3 = vld [vmem:[#allocation69_spill] sm:$0xff] }
 0x983   : > { %3479 = vmatpush1.bf16.msra.mxu1 %v19026_v10 }
 0x984   : > { %3480 = vmatprep.subr.bf16.mxu1 %v3449_v18  ;;  %v19042_v18 = vld [vmem:[#allocation41_spill] sm:$0xff] }
 0x987   : > { %3481 = vmatpush1.bf16.msra.mxu1 %v19031_v55 }
 0x988   : > { %3482 = vmatprep.subr.bf16.mxu1 %v3451_v58  ;;  %v3531_v58 = vpop.trf.xlu1 }
 0x98b   : > { %3483 = vmatpush1.bf16.msra.mxu1 %v19032_v43 }
 0x98c   : > { %3484 = vmatprep.subr.bf16.mxu1 %v3453_v61  ;;  %v3532_v61 = vpop.trf.xlu1 }
 0x98f   : > { %3485 = vmatpush1.bf16.msra.mxu1 %v19035_v8 }
 0x990   : > { %8323 = vmatprep.subr.msk.bf16.mxu1 %vm1280_vm1, %v3500_v28  ;;  %v3533_v62 = vpop.trf.xlu1 }
 0x992   : > { %3487 = vmatmul.mubr.bf16.vlgmr.msra.gmra.mrb[88].mxu1 %v2735_v54 }
 0x993   : > { %3592 = vmatpush1.bf16.msra.mxu1 %v3586_v49  ;;  %3623 = vmatprep.mubr.bf16.mxu1 %v19036_v16 }
 0x994   : > { %v3534_v29 = vpop.trf.xlu1 }
 0x998   : > { %v3535_v24 = vpop.trf.xlu1 }
 0x99a   : > { %8324 = vmatmul.mubr.msk.bf16.vlgmr.msra.gmra.mrb[92].mxu1 %vm1231_vm2, %v19037_v12 }
 0x99b   : > { %3633 = vmatprep.mubr.bf16.mxu1 %v19036_v16 }
 0x99c   : > { %v3536_v32 = vpop.trf.xlu1 }
 0x9a2   : > { %8325 = vmatmul.mubr.msk.bf16.gmra.mrb[96].mxu1 %vm1231_vm2, %v19038_v17 }
 0x9a3   : > { %3643 = vmatprep.mubr.bf16.mxu1 %v19036_v16 }
 0x9aa   : > { %8326 = vmatmul.mubr.msk.bf16.gmra.mrb[100].mxu1 %vm1231_vm2, %v19039_v1 }
 0x9ab   : > { %3653 = vmatprep.mubr.bf16.mxu1 %v19036_v16 }
 0x9b2   : > { %8327 = vmatmul.mubr.msk.bf16.gmra.mrb[104].mxu1 %vm1231_vm2, %v19040_v3 }
 0x9b3   : > { %3663 = vmatprep.mubr.bf16.mxu1 %v19036_v16 }
 0x9ba   : > { %8328 = vmatmul.mubr.msk.bf16.gmra.mrb[108].mxu1 %vm1231_vm2, %v19041_v57 }
 0x9bb   : > { %3673 = vmatprep.mubr.bf16.mxu1 %v19036_v16 }
 0x9c2   : > { %8329 = vmatmul.mubr.msk.bf16.gmra.mrb[112].mxu1 %vm1231_vm2, %v19042_v18 }
 0x9c3   : > { %3683 = vmatprep.mubr.bf16.mxu1 %v19036_v16 }
 0x9ca   : > { %8330 = vmatmul.mubr.msk.bf16.gmra.mrb[116].mxu1 %vm1231_vm2, %v19043_v7 }
 0x9cb   : > { %3693 = vmatprep.mubr.bf16.mxu1 %v19036_v16 }
 0x9d2   : > { %8331 = vmatmul.mubr.msk.bf16.gmra.mrb[120].mxu1 %vm1231_vm2, %v19044_v13 }
 0x9d3   : > { %3703 = vmatprep.mubr.bf16.mxu1 %v19036_v16 }
 0x9da   : > { %8332 = vmatmul.mubr.msk.bf16.gmra.mrb[124].mxu1 %vm1231_vm2, %v3529_v38 }
 0x9db   : > { %3713 = vmatprep.mubr.bf16.mxu1 %v19036_v16 }
 0x9e2   : > { %8333 = vmatmul.mubr.msk.bf16.gmra.mrb[128].mxu1 %vm1231_vm2, %v3530_v48 }
 0x9e3   : > { %3723 = vmatprep.mubr.bf16.mxu1 %v19036_v16 }
 0x9ea   : > { %8334 = vmatmul.mubr.msk.bf16.gmra.mrb[132].mxu1 %vm1231_vm2, %v3531_v58 }
 0x9eb   : > { %3733 = vmatprep.mubr.bf16.mxu1 %v19036_v16 }
 0x9f2   : > { %8335 = vmatmul.mubr.msk.bf16.gmra.mrb[136].mxu1 %vm1231_vm2, %v3532_v61 }
 0x9f3   : > { %3743 = vmatprep.mubr.bf16.mxu1 %v19036_v16 }
 0x9fa   : > { %8336 = vmatmul.mubr.msk.bf16.gmra.mrb[140].mxu1 %vm1231_vm2, %v3533_v62 }
 0x9fb   : > { %3753 = vmatprep.mubr.bf16.mxu1 %v19036_v16 }
 0xa02   : > { %8337 = vmatmul.mubr.msk.bf16.gmra.mrb[144].mxu1 %vm1231_vm2, %v3534_v29 }
 0xa03   : > { %3763 = vmatprep.mubr.bf16.mxu1 %v19036_v16 }
 0xa0a   : > { %8338 = vmatmul.mubr.msk.bf16.gmra.mrb[148].mxu1 %vm1231_vm2, %v3535_v24 }
 0xa0b   : > { %3773 = vmatprep.mubr.bf16.mxu1 %v19036_v16 }
 0xa12   : > { %8339 = vmatmul.mubr.msk.bf16.gmra.mrb[152].mxu1 %vm1231_vm2, %v3536_v32 }
 0xa13   : > { %4717 = vmatprep.mubr.bf16.mxu1 %v19036_v16 }
 0xa65   : > { %v12962_v44 = vpop.f32.mrb[88].mxu1 }
 0xa66   : > { %19045 = vst [vmem:[#allocation68_spill] sm:$0xff] %v12962_v44  ;;  %v12964_v47 = vpop.f32.mrb[89].mxu1 }
 0xa67   : > { %19046 = vst [vmem:[#allocation42_spill] sm:$0xff] %v12964_v47  ;;  %v3492_v6 = vpop.f32.mrb[90].mxu1 }
 0xa68   : > { %v3493_v59 = vpop.f32.mrb[91].mxu1 }
 0xa6d   : > { %v12966_v27 = vpop.f32.mrb[92].mxu1 }
 0xa6e   : > { %v12968_v41 = vpop.f32.mrb[93].mxu1 }
 0xa6f   : > { %v12970_v26 = vpop.f32.mrb[94].mxu1 }
 0xa70   : > { %v12972_v21 = vpop.f32.mrb[95].mxu1 }
 0xa75   : > { %v12974_v63 = vpop.f32.mrb[96].mxu1 }
 0xa76   : > { %v3784_v42 = vmax.f32 %v12966_v27, %v12974_v63  ;;  %v12978_v53 = vpop.f32.mrb[97].mxu1 }
 0xa77   : > { %v3821_v37 = vmax.f32 %v12968_v41, %v12978_v53  ;;  %v12982_v39 = vpop.f32.mrb[98].mxu1 }
 0xa78   : > { %v3785_v14 = vmax.f32 %v12970_v26, %v12982_v39  ;;  %v12986_v15 = vpop.f32.mrb[99].mxu1 }
 0xa79   : > { %v3822_v0 = vmax.f32 %v12972_v21, %v12986_v15 }
 0xa7d   : > { %v12990_v60 = vpop.f32.mrb[100].mxu1 }
 0xa7e   : > { %v3786_v52 = vmax.f32 %v3784_v42, %v12990_v60  ;;  %v12993_v9 = vpop.f32.mrb[101].mxu1 }
 0xa7f   : > { %v3823_v4 = vmax.f32 %v3821_v37, %v12993_v9  ;;  %v12996_v40 = vpop.f32.mrb[102].mxu1 }
 0xa80   : > { %v3787_v2 = vmax.f32 %v3785_v14, %v12996_v40  ;;  %v12999_v23 = vpop.f32.mrb[103].mxu1 }
 0xa81   : > { %v3824_v50 = vmax.f32 %v3822_v0, %v12999_v23 }
 0xa85   : > { %v13002_v56 = vpop.f32.mrb[104].mxu1 }
 0xa86   : > { %v3788_v45 = vmax.f32 %v3786_v52, %v13002_v56  ;;  %v13005_v34 = vpop.f32.mrb[105].mxu1 }
 0xa87   : > { %v3825_v35 = vmax.f32 %v3823_v4, %v13005_v34  ;;  %v13008_v10 = vpop.f32.mrb[106].mxu1 }
 0xa88   : > { %v3789_v20 = vmax.f32 %v3787_v2, %v13008_v10  ;;  %v13011_v11 = vpop.f32.mrb[107].mxu1 }
 0xa89   : > { %v3826_v25 = vmax.f32 %v3824_v50, %v13011_v11 }
 0xa8d   : > { %v13014_v33 = vpop.f32.mrb[108].mxu1 }
 0xa8e   : > { %v3790_v46 = vmax.f32 %v3788_v45, %v13014_v33  ;;  %v13017_v19 = vpop.f32.mrb[109].mxu1 }
 0xa8f   : > { %v3827_v55 = vmax.f32 %v3825_v35, %v13017_v19  ;;  %v13020_v5 = vpop.f32.mrb[110].mxu1 }
 0xa90   : > { %v3791_v31 = vmax.f32 %v3789_v20, %v13020_v5  ;;  %v13023_v43 = vpop.f32.mrb[111].mxu1 }
 0xa91   : > { %v3828_v36 = vmax.f32 %v3826_v25, %v13023_v43 }
 0xa95   : > { %v13026_v30 = vpop.f32.mrb[112].mxu1 }
 0xa96   : > { %v3792_v51 = vmax.f32 %v3790_v46, %v13026_v30  ;;  %v13029_v22 = vpop.f32.mrb[113].mxu1 }
 0xa97   : > { %v3829_v28 = vmax.f32 %v3827_v55, %v13029_v22  ;;  %v13032_v8 = vpop.f32.mrb[114].mxu1 }
 0xa98   : > { %v3793_v54 = vmax.f32 %v3791_v31, %v13032_v8  ;;  %v13035_v49 = vpop.f32.mrb[115].mxu1 }
 0xa99   : > { %19047 = vst [vmem:[#allocation45_spill] sm:$0xff] %v13035_v49  ;;  %v3830_v12 = vmax.f32 %v3828_v36, %v13035_v49 }
 0xa9d   : > { %v13038_v17 = vpop.f32.mrb[116].mxu1 }
 0xa9e   : > { %v3794_v1 = vmax.f32 %v3792_v51, %v13038_v17  ;;  %v13041_v3 = vpop.f32.mrb[117].mxu1 }
 0xa9f   : > { %19048 = vst [vmem:[#allocation47_spill] sm:$0xff] %v13041_v3  ;;  %v3831_v57 = vmax.f32 %v3829_v28, %v13041_v3  ;;  %v13044_v18 = vpop.f32.mrb[118].mxu1 }
 0xaa0   : > { %v3795_v7 = vmax.f32 %v3793_v54, %v13044_v18  ;;  %v13047_v13 = vpop.f32.mrb[119].mxu1 }
 0xaa1   : > { %19049 = vst [vmem:[#allocation46_spill] sm:$0xff] %v13047_v13  ;;  %v3832_v38 = vmax.f32 %v3830_v12, %v13047_v13 }
 0xaa5   : > { %v13050_v48 = vpop.f32.mrb[120].mxu1 }
 0xaa6   : > { %v3796_v58 = vmax.f32 %v3794_v1, %v13050_v48  ;;  %v13053_v61 = vpop.f32.mrb[121].mxu1 }
 0xaa7   : > { %19050 = vst [vmem:[#allocation19_spill] sm:$0xff] %v13053_v61  ;;  %v3833_v62 = vmax.f32 %v3831_v57, %v13053_v61  ;;  %v13056_v29 = vpop.f32.mrb[122].mxu1 }
 0xaa8   : > { %v3797_v24 = vmax.f32 %v3795_v7, %v13056_v29  ;;  %v13059_v32 = vpop.f32.mrb[123].mxu1 }
 0xaa9   : > { %19051 = vst [vmem:[#allocation49_spill] sm:$0xff] %v13059_v32  ;;  %v3834_v6 = vmax.f32 %v3832_v38, %v13059_v32 }
 0xaad   : > { %v13062_v59 = vpop.f32.mrb[124].mxu1 }
 0xaae   : > { %v3798_v42 = vmax.f32 %v3796_v58, %v13062_v59  ;;  %v13065_v37 = vpop.f32.mrb[125].mxu1 }
 0xaaf   : > { %19052 = vst [vmem:[#allocation35_spill] sm:$0xff] %v13065_v37  ;;  %v3835_v14 = vmax.f32 %v3833_v62, %v13065_v37  ;;  %v13068_v0 = vpop.f32.mrb[126].mxu1 }
 0xab0   : > { %v3799_v52 = vmax.f32 %v3797_v24, %v13068_v0  ;;  %v13071_v4 = vpop.f32.mrb[127].mxu1 }
 0xab1   : > { %19053 = vst [vmem:[#allocation62_spill] sm:$0xff] %v13071_v4  ;;  %v3836_v2 = vmax.f32 %v3834_v6, %v13071_v4 }
 0xab5   : > { %v13074_v50 = vpop.f32.mrb[128].mxu1 }
 0xab6   : > { %v3800_v45 = vmax.f32 %v3798_v42, %v13074_v50  ;;  %v13077_v35 = vpop.f32.mrb[129].mxu1 }
 0xab7   : > { %19054 = vst [vmem:[#allocation23_spill] sm:$0xff] %v13077_v35  ;;  %v3837_v20 = vmax.f32 %v3835_v14, %v13077_v35  ;;  %v13080_v25 = vpop.f32.mrb[130].mxu1 }
 0xab8   : > { %v3801_v46 = vmax.f32 %v3799_v52, %v13080_v25  ;;  %v13083_v55 = vpop.f32.mrb[131].mxu1 }
 0xab9   : > { %19055 = vst [vmem:[#allocation29_spill] sm:$0xff] %v13083_v55  ;;  %v3838_v31 = vmax.f32 %v3836_v2, %v13083_v55 }
 0xabd   : > { %v13086_v36 = vpop.f32.mrb[132].mxu1 }
 0xabe   : > { %v3802_v51 = vmax.f32 %v3800_v45, %v13086_v36  ;;  %v13089_v28 = vpop.f32.mrb[133].mxu1 }
 0xabf   : > { %19056 = vst [vmem:[#allocation37_spill] sm:$0xff] %v13089_v28  ;;  %v3839_v54 = vmax.f32 %v3837_v20, %v13089_v28  ;;  %v13092_v12 = vpop.f32.mrb[134].mxu1 }
 0xac0   : > { %v3803_v1 = vmax.f32 %v3801_v46, %v13092_v12  ;;  %v13095_v57 = vpop.f32.mrb[135].mxu1 }
 0xac1   : > { %19057 = vst [vmem:[#allocation70_spill] sm:$0xff] %v13095_v57  ;;  %v3840_v7 = vmax.f32 %v3838_v31, %v13095_v57 }
 0xac5   : > { %v13098_v38 = vpop.f32.mrb[136].mxu1 }
 0xac6   : > { %v3804_v58 = vmax.f32 %v3802_v51, %v13098_v38  ;;  %v13101_v62 = vpop.f32.mrb[137].mxu1 }
 0xac7   : > { %19058 = vst [vmem:[#allocation71_spill] sm:$0xff] %v13101_v62  ;;  %v3841_v24 = vmax.f32 %v3839_v54, %v13101_v62  ;;  %v13104_v6 = vpop.f32.mrb[138].mxu1 }
 0xac8   : > { %v3805_v42 = vmax.f32 %v3803_v1, %v13104_v6  ;;  %v13107_v14 = vpop.f32.mrb[139].mxu1 }
 0xac9   : > { %19059 = vst [vmem:[#allocation20_spill] sm:$0xff] %v13107_v14  ;;  %v3842_v52 = vmax.f32 %v3840_v7, %v13107_v14 }
 0xacd   : > { %v13110_v2 = vpop.f32.mrb[140].mxu1 }
 0xace   : > { %v3806_v45 = vmax.f32 %v3804_v58, %v13110_v2  ;;  %v13113_v20 = vpop.f32.mrb[141].mxu1 }
 0xacf   : > { %19060 = vst [vmem:[#allocation17_spill] sm:$0xff] %v13113_v20  ;;  %v3843_v46 = vmax.f32 %v3841_v24, %v13113_v20  ;;  %v13116_v31 = vpop.f32.mrb[142].mxu1 }
 0xad0   : > { %v3807_v51 = vmax.f32 %v3805_v42, %v13116_v31  ;;  %v13119_v54 = vpop.f32.mrb[143].mxu1 }
 0xad1   : > { %19061 = vst [vmem:[#allocation60_spill] sm:$0xff] %v13119_v54  ;;  %v3844_v1 = vmax.f32 %v3842_v52, %v13119_v54 }
 0xad5   : > { %v13122_v47 = vpop.f32.mrb[144].mxu1 }
 0xad6   : > { %v3808_v7 = vmax.f32 %v3806_v45, %v13122_v47  ;;  %v13125_v44 = vpop.f32.mrb[145].mxu1 }
 0xad7   : > { %19062 = vst [vmem:[#allocation26_spill] sm:$0xff] %v13125_v44  ;;  %v3845_v58 = vmax.f32 %v3843_v46, %v13125_v44  ;;  %v13128_v16 = vpop.f32.mrb[146].mxu1 }
 0xad8   : > { %v3809_v24 = vmax.f32 %v3807_v51, %v13128_v16  ;;  %v13131_v20 = vpop.f32.mrb[147].mxu1 }
 0xad9   : > { %19063 = vst [vmem:[#allocation28_spill] sm:$0xff] %v13131_v20  ;;  %v3846_v42 = vmax.f32 %v3844_v1, %v13131_v20 }
 0xadd   : > { %v13134_v14 = vpop.f32.mrb[148].mxu1 }
 0xade   : > { %v3810_v52 = vmax.f32 %v3808_v7, %v13134_v14  ;;  %v13137_v54 = vpop.f32.mrb[149].mxu1 }
 0xadf   : > { %19064 = vst [vmem:[#allocation18_spill] sm:$0xff] %v13137_v54  ;;  %v3847_v45 = vmax.f32 %v3845_v58, %v13137_v54  ;;  %v13140_v62 = vpop.f32.mrb[150].mxu1 }
 0xae0   : > { %v3811_v46 = vmax.f32 %v3809_v24, %v13140_v62  ;;  %v13143_v44 = vpop.f32.mrb[151].mxu1 }
 0xae1   : > { %19065 = vst [vmem:[#allocation30_spill] sm:$0xff] %v13143_v44  ;;  %v3848_v51 = vmax.f32 %v3846_v42, %v13143_v44 }
 0xae5   : > { %v13146_v57 = vpop.f32.mrb[152].mxu1 }
 0xae6   : > { %v3812_v1 = vmax.f32 %v3810_v52, %v13146_v57  ;;  %v13149_v20 = vpop.f32.mrb[153].mxu1 }
 0xae7   : > { %19066 = vst [vmem:[#allocation32_spill] sm:$0xff] %v13149_v20  ;;  %v3849_v7 = vmax.f32 %v3847_v45, %v13149_v20  ;;  %v13152_v28 = vpop.f32.mrb[154].mxu1 }
 0xae8   : > { %v3813_v58 = vmax.f32 %v3811_v46, %v13152_v28  ;;  %v13155_v54 = vpop.f32.mrb[155].mxu1 }
 0xae9   : > { %19067 = vst [vmem:[#allocation38_spill] sm:$0xff] %v13155_v54  ;;  %v3850_v24 = vmax.f32 %v3848_v51, %v13155_v54 }
 0xaea   : > { %v3814_v55 = vmax.f32 %v3812_v1, %v3813_v58 }
 0xaeb   : > { %v3851_v35 = vmax.f32 %v3849_v7, %v3850_v24 }
 0xaec   : > { %v3815_v4 = vrot.slane %v3814_v55, 4 }
 0xaed   : > { %v3852_v42 = vrot.slane %v3851_v35, 4 }
 0xaee   : > { %v3816_v44 = vmax.f32 %v3814_v55, %v3815_v4 }
 0xaef   : > { %v3853_v37 = vmax.f32 %v3851_v35, %v3852_v42 }
 0xaf0   : > { %v3817_v32 = vrot.slane %v3816_v44, 2 }
 0xaf1   : > { %v3854_v52 = vrot.slane %v3853_v37, 2 }
 0xaf2   : > { %v3818_v61 = vmax.f32 %v3816_v44, %v3817_v32 }
 0xaf3   : > { %v3855_v13 = vmax.f32 %v3853_v37, %v3854_v52 }
 0xaf4   : > { %v3819_v3 = vrot.slane %v3818_v61, 1 }
 0xaf5   : > { %v3856_v45 = vrot.slane %v3855_v13, 1 }
 0xaf6   : > { %v13158_v20 = vmax.f32 %v3818_v61, %v3819_v3 }
 0xaf7   : > { %v13160_v49 = vmax.f32 %v3855_v13, %v3856_v45 }
 0xaf8   : > { %v3858_v46 = vsub.f32 %v12966_v27, %v13158_v20  ;;  %v3860_v51 = vsub.f32 %v12970_v26, %v13158_v20  ;;  %v3862_v4 = vsub.f32 %v12974_v63, %v13158_v20  ;;  %v3864_v35 = vsub.f32 %v12982_v39, %v13158_v20 }
 0xaf9   : > { %v3866_v44 = vsub.f32 %v12990_v60, %v13158_v20  ;;  %v3868_v3 = vsub.f32 %v12996_v40, %v13158_v20  ;;  %v3870_v13 = vsub.f32 %v13002_v56, %v13158_v20  ;;  %v3872_v27 = vsub.f32 %v13008_v10, %v13158_v20  ;;  %v19090_v56 = vld [vmem:[#allocation28_spill] sm:$0xff] }
 0xafa   : > { %v3874_v26 = vsub.f32 %v13014_v33, %v13158_v20  ;;  %v3876_v63 = vsub.f32 %v13020_v5, %v13158_v20  ;;  %v3878_v39 = vsub.f32 %v13026_v30, %v13158_v20  ;;  %v3880_v60 = vsub.f32 %v13032_v8, %v13158_v20  ;;  %v19083_v30 = vld [vmem:[#allocation71_spill] sm:$0xff]  ;;  %v19086_v33 = vld [vmem:[#allocation17_spill] sm:$0xff] }
 0xafb   : > { %v3922_v55 = vmul.f32 1.442695, %v3858_v46  ;;  %v3926_v24 = vmul.f32 1.442695, %v3860_v51  ;;  %v3930_v37 = vmul.f32 1.442695, %v3862_v4  ;;  %v19095_v8 = vsub.f32 %v13050_v48, %v13158_v20 }
 0xafc   : > { %v3934_v45 = vmul.f32 1.442695, %v3864_v35  ;;  %v3938_v1 = vmul.f32 1.442695, %v3866_v44  ;;  %v3942_v32 = vmul.f32 1.442695, %v3868_v3  ;;  %v19098_v48 = vsub.f32 %v13068_v0, %v13158_v20 }
 0xafd   : > { %8969 = vpow2.f32 %v3922_v55  ;;  %v3946_v7 = vmul.f32 1.442695, %v3870_v13  ;;  %v3950_v61 = vmul.f32 1.442695, %v3872_v27  ;;  %v3954_v44 = vmul.f32 1.442695, %v3874_v26 }
 0xafe   : > { %8971 = vpow2.f32 %v3926_v24  ;;  %v19070_v26 = vld [vmem:[#allocation45_spill] sm:$0xff]  ;;  %v19071_v13 = vld [vmem:[#allocation47_spill] sm:$0xff]  ;;  %v19072_v27 = vld [vmem:[#allocation46_spill] sm:$0xff]  ;;  %v3962_v46 = vmul.f32 1.442695, %v3878_v39 }
 0xaff   : > { %8973 = vpow2.f32 %v3930_v37  ;;  %v19074_v55 = vld [vmem:[#allocation19_spill] sm:$0xff]  ;;  %v19077_v3 = vld [vmem:[#allocation62_spill] sm:$0xff]  ;;  %v19081_v51 = vld [vmem:[#allocation37_spill] sm:$0xff]  ;;  %v3978_v4 = vmul.f32 1.442695, %v19095_v8 }
 0xb00   : > { %8975 = vpow2.f32 %v3934_v45  ;;  %v3958_v45 = vmul.f32 1.442695, %v3876_v63  ;;  %v19076_v63 = vld [vmem:[#allocation35_spill] sm:$0xff]  ;;  %v19082_v24 = vld [vmem:[#allocation70_spill] sm:$0xff]  ;;  %v19087_v39 = vld [vmem:[#allocation60_spill] sm:$0xff] }
 0xb01   : > { %8977 = vpow2.f32 %v3938_v1  ;;  %v19075_v1 = vld [vmem:[#allocation49_spill] sm:$0xff]  ;;  %v19078_v35 = vld [vmem:[#allocation23_spill] sm:$0xff]  ;;  %v3990_v8 = vmul.f32 1.442695, %v19098_v48 }
 0xb02   : > { %8979 = vpow2.f32 %v3942_v32 }
 0xb03   : > { %8981 = vpow2.f32 %v3946_v7 }
 0xb04   : > { %8983 = vpow2.f32 %v3950_v61  ;;  %v19080_v61 = vld [vmem:[#allocation29_spill] sm:$0xff] }
 0xb05   : > { %8985 = vpow2.f32 %v3954_v44 }
 0xb06   : > { %8987 = vpow2.f32 %v3958_v45  ;;  %v19091_v45 = vld [vmem:[#allocation18_spill] sm:$0xff] }
 0xb07   : > { %v13238_v37 = vpop.eup %8969  ;;  %8989 = vpow2.f32 %v3962_v46 }
 0xb08   : > { %19068 = vst [vmem:[#allocation36_spill] sm:$0xff] %v13238_v37  ;;  %v13246_v32 = vpop.eup %8971 }
 0xb09   : > { %19069 = vst [vmem:[#allocation63_spill] sm:$0xff] %v13246_v32  ;;  %v4050_v58 = vadd.f32 %v13246_v32, %v13238_v37  ;;  %v13260_v7 = vpop.eup %8973  ;;  %v19094_v37 = vsub.f32 %v13044_v18, %v13158_v20  ;;  %v19097_v18 = vsub.f32 %v13062_v59, %v13158_v20  ;;  %v19100_v59 = vsub.f32 %v12972_v21, %v13160_v49 }
 0xb0a   : > { %19073 = vst [vmem:[#allocation24_spill] sm:$0xff] %v13260_v7  ;;  %v13273_v5 = vpop.eup %8975 }
 0xb0b   : > { %v4051_v52 = vadd.f32 %v13260_v7, %v4050_v58  ;;  %19079 = vst [vmem:[#allocation34_spill] sm:$0xff] %v13273_v5  ;;  %v3966_v58 = vmul.f32 1.442695, %v3880_v60  ;;  %v13289_v40 = vpop.eup %8977  ;;  %v19092_v7 = vld [vmem:[#allocation30_spill] sm:$0xff]  ;;  %v19093_v60 = vld [vmem:[#allocation32_spill] sm:$0xff] }
 0xb0c   : > { %19085 = vst [vmem:[#allocation13_spill] sm:$0xff] %v13289_v40  ;;  %v13305_v44 = vpop.eup %8979  ;;  %v3974_v32 = vmul.f32 1.442695, %v19094_v37  ;;  %v3986_v37 = vmul.f32 1.442695, %v19097_v18 }
 0xb0d   : > { %v4052_v42 = vadd.f32 %v13273_v5, %v4051_v52  ;;  %v19089_v52 = vsub.f32 %v13038_v17, %v13158_v20  ;;  %8991 = vpow2.f32 %v3966_v58 }
 0xb0f   : > { %v3970_v5 = vmul.f32 1.442695, %v19089_v52  ;;  %v4053_v10 = vadd.f32 %v13289_v40, %v4052_v42  ;;  %v13314_v52 = vpop.eup %8981 }
 0xb10   : > { %v13320_v40 = vpop.eup %8983 }
 0xb11   : > { %v4054_v42 = vadd.f32 %v13305_v44, %v4053_v10  ;;  %8993 = vpow2.f32 %v3970_v5  ;;  %v13326_v54 = vpop.eup %8985  ;;  %v19096_v10 = vsub.f32 %v13056_v29, %v13158_v20 }
 0xb12   : > { %8995 = vpow2.f32 %v3974_v32  ;;  %v13335_v5 = vpop.eup %8987  ;;  %v19099_v32 = vsub.f32 %v12968_v41, %v13160_v49  ;;  %v19102_v41 = vsub.f32 %v12978_v53, %v13160_v49 }
 0xb13   : > { %v4055_v46 = vadd.f32 %v13314_v52, %v4054_v42  ;;  %v3982_v58 = vmul.f32 1.442695, %v19096_v10  ;;  %8997 = vpow2.f32 %v3978_v4  ;;  %v13344_v10 = vpop.eup %8989  ;;  %v19101_v4 = vsub.f32 %v13074_v50, %v13158_v20 }
 0xb14   : > { %v3924_v29 = vmul.f32 1.442695, %v19099_v32  ;;  %v19105_v50 = vsub.f32 %v12986_v15, %v13160_v49 }
 0xb15   : > { %v4056_v17 = vadd.f32 %v13320_v40, %v4055_v46  ;;  %8999 = vpow2.f32 %v3982_v58  ;;  %v3994_v18 = vmul.f32 1.442695, %v19101_v4  ;;  %v19103_v58 = vsub.f32 %v13080_v25, %v13158_v20 }
 0xb16   : > { %9001 = vpow2.f32 %v3986_v37  ;;  %v19108_v25 = vsub.f32 %v12993_v9, %v13160_v49 }
 0xb17   : > { %v4057_v42 = vadd.f32 %v13326_v54, %v4056_v17  ;;  %v3928_v17 = vmul.f32 1.442695, %v19100_v59  ;;  %v13353_v48 = vpop.eup %8991  ;;  %9003 = vpow2.f32 %v3990_v8  ;;  %v3998_v32 = vmul.f32 1.442695, %v19103_v58 }
 0xb18   : > { %9005 = vpow2.f32 %v3924_v29  ;;  %v19106_v8 = vsub.f32 %v13086_v36, %v13158_v20  ;;  %v3940_v29 = vmul.f32 1.442695, %v19108_v25  ;;  %v19110_v36 = vsub.f32 %v12999_v23, %v13160_v49 }
 0xb19   : > { %v4058_v46 = vadd.f32 %v13335_v5, %v4057_v42  ;;  %v3932_v42 = vmul.f32 1.442695, %v19102_v41  ;;  %9007 = vpow2.f32 %v3928_v17  ;;  %v19109_v17 = vsub.f32 %v13092_v12, %v13158_v20 }
 0xb1a   : > { %9009 = vpow2.f32 %v3994_v18  ;;  %v4002_v53 = vmul.f32 1.442695, %v19106_v8  ;;  %v3944_v41 = vmul.f32 1.442695, %v19110_v36  ;;  %v19112_v12 = vsub.f32 %v13005_v34, %v13160_v49 }
 0xb1b   : > { %v4059_v0 = vadd.f32 %v13344_v10, %v4058_v46  ;;  %v13362_v37 = vpop.eup %8993  ;;  %v3936_v46 = vmul.f32 1.442695, %v19105_v50  ;;  %9011 = vpow2.f32 %v3932_v42  ;;  %v4006_v15 = vmul.f32 1.442695, %v19109_v17 }
 0xb1c   : > { %19104 = vst [vmem:[#allocation14_spill] sm:$0xff] %v13362_v37  ;;  %v13371_v4 = vpop.eup %8995  ;;  %9013 = vpow2.f32 %v3998_v32  ;;  %v19111_v42 = vsub.f32 %v13098_v38, %v13158_v20  ;;  %v19113_v23 = vsub.f32 %v13104_v6, %v13158_v20  ;;  %v19115_v34 = vsub.f32 %v13110_v2, %v13158_v20 }
 0xb1d   : > { %v4060_v21 = vadd.f32 %v13353_v48, %v4059_v0  ;;  %19107 = vst [vmem:[#allocation27_spill] sm:$0xff] %v13371_v4  ;;  %v13380_v0 = vpop.eup %8997  ;;  %9015 = vpow2.f32 %v3936_v46 }
 0xb1e   : > { %9017 = vpow2.f32 %v4002_v53  ;;  %v4010_v9 = vmul.f32 1.442695, %v19111_v42  ;;  %v4014_v46 = vmul.f32 1.442695, %v19113_v23  ;;  %v19114_v53 = vsub.f32 %v13011_v11, %v13160_v49 }
 0xb1f   : > { %v4061_v59 = vadd.f32 %v13362_v37, %v4060_v21  ;;  %v13389_v32 = vpop.eup %8999  ;;  %9019 = vpow2.f32 %v3940_v29  ;;  %v3948_v21 = vmul.f32 1.442695, %v19112_v12  ;;  %v4018_v29 = vmul.f32 1.442695, %v19115_v34 }
 0xb20   : > { %v13394_v50 = vpop.eup %9001  ;;  %9021 = vpow2.f32 %v4006_v15  ;;  %v19116_v15 = vsub.f32 %v13017_v19, %v13160_v49  ;;  %v19117_v11 = vsub.f32 %v13116_v31, %v13158_v20  ;;  %v19121_v34 = vsub.f32 %v13128_v16, %v13158_v20 }
 0xb21   : > { %v4062_v18 = vadd.f32 %v13371_v4, %v4061_v59  ;;  %v13400_v38 = vpop.eup %9003  ;;  %9023 = vpow2.f32 %v3944_v41  ;;  %v3952_v59 = vmul.f32 1.442695, %v19114_v53  ;;  %v19120_v53 = vsub.f32 %v13029_v22, %v13160_v49 }
 0xb22   : > { %v13405_v25 = vpop.eup %9005  ;;  %9025 = vpow2.f32 %v4010_v9  ;;  %v4022_v41 = vmul.f32 1.442695, %v19117_v11 }
 0xb23   : > { %v4063_v58 = vadd.f32 %v13380_v0, %v4062_v18  ;;  %v13411_v6 = vpop.eup %9007  ;;  %9027 = vpow2.f32 %v3948_v21  ;;  %v3956_v18 = vmul.f32 1.442695, %v19116_v15  ;;  %v19119_v21 = vsub.f32 %v13122_v47, %v13158_v20 }
 0xb24   : > { %v13416_v36 = vpop.eup %9009  ;;  %9029 = vpow2.f32 %v4014_v46  ;;  %v4087_v2 = vadd.f32 %v13411_v6, %v13405_v25 }
 0xb25   : > { %v4064_v8 = vadd.f32 %v13389_v32, %v4063_v58  ;;  %v13424_v9 = vpop.eup %9011  ;;  %9031 = vpow2.f32 %v3952_v59  ;;  %v19118_v58 = vsub.f32 %v13023_v43, %v13160_v49  ;;  %v4026_v31 = vmul.f32 1.442695, %v19119_v21 }
 0xb26   : > { %v13429_v12 = vpop.eup %9013  ;;  %9033 = vpow2.f32 %v4018_v29  ;;  %v4088_v46 = vadd.f32 %v13424_v9, %v4087_v2  ;;  %v3964_v59 = vmul.f32 1.442695, %v19120_v53  ;;  %v4030_v29 = vmul.f32 1.442695, %v19121_v34 }
 0xb27   : > { %v4065_v17 = vadd.f32 %v13394_v50, %v4064_v8  ;;  %v3960_v19 = vmul.f32 1.442695, %v19118_v58  ;;  %v13436_v8 = vpop.eup %9015  ;;  %9035 = vpow2.f32 %v3956_v18  ;;  %v19122_v18 = vsub.f32 %v19070_v26, %v13160_v49 }
 0xb28   : > { %v13441_v43 = vpop.eup %9017  ;;  %9037 = vpow2.f32 %v4022_v41  ;;  %v19123_v41 = vsub.f32 %v13134_v14, %v13158_v20 }
 0xb29   : > { %v4066_v42 = vadd.f32 %v13400_v38, %v4065_v17  ;;  %v4089_v17 = vadd.f32 %v13436_v8, %v4088_v46  ;;  %v13448_v15 = vpop.eup %9019  ;;  %9039 = vpow2.f32 %v3960_v19  ;;  %v3968_v11 = vmul.f32 1.442695, %v19122_v18 }
 0xb2a   : > { %v13453_v22 = vpop.eup %9021  ;;  %9041 = vpow2.f32 %v4026_v31  ;;  %v19124_v19 = vsub.f32 %v19071_v13, %v13160_v49  ;;  %v19125_v31 = vsub.f32 %v13140_v62, %v13158_v20 }
 0xb2b   : > { %v4067_v23 = vadd.f32 %v13416_v36, %v4066_v42  ;;  %v4034_v42 = vmul.f32 1.442695, %v19123_v41  ;;  %v4090_v2 = vadd.f32 %v13448_v15, %v4089_v17  ;;  %v13460_v58 = vpop.eup %9023  ;;  %9043 = vpow2.f32 %v3964_v59 }
 0xb2c   : > { %v3972_v21 = vmul.f32 1.442695, %v19124_v19  ;;  %v13465_v26 = vpop.eup %9025  ;;  %9045 = vpow2.f32 %v4030_v29  ;;  %v19126_v59 = vsub.f32 %v19072_v27, %v13160_v49  ;;  %v19127_v29 = vsub.f32 %v13146_v57, %v13158_v20 }
 0xb2d   : > { %v4068_v47 = vadd.f32 %v13429_v12, %v4067_v23  ;;  %v4038_v23 = vmul.f32 1.442695, %v19125_v31  ;;  %v4091_v46 = vadd.f32 %v13460_v58, %v4090_v2  ;;  %v13472_v53 = vpop.eup %9027  ;;  %9047 = vpow2.f32 %v3968_v11 }
 0xb2e   : > { %v3976_v34 = vmul.f32 1.442695, %v19126_v59  ;;  %v13477_v13 = vpop.eup %9029  ;;  %9049 = vpow2.f32 %v4034_v42  ;;  %v19128_v11 = vsub.f32 %v19074_v55, %v13160_v49  ;;  %v19129_v42 = vsub.f32 %v13152_v28, %v13158_v20 }
 0xb2f   : > { %v4069_v16 = vadd.f32 %v13441_v43, %v4068_v47  ;;  %v4042_v47 = vmul.f32 1.442695, %v19127_v29  ;;  %v4092_v17 = vadd.f32 %v13472_v53, %v4091_v46  ;;  %v13484_v18 = vpop.eup %9031  ;;  %9051 = vpow2.f32 %v3972_v21 }
 0xb30   : > { %v3980_v41 = vmul.f32 1.442695, %v19128_v11  ;;  %v13489_v27 = vpop.eup %9033  ;;  %9053 = vpow2.f32 %v4038_v23  ;;  %v19130_v21 = vsub.f32 %v19075_v1, %v13160_v49  ;;  %v19131_v20 = vsub.f32 %v19076_v63, %v13160_v49 }
 0xb31   : > { %v4070_v14 = vadd.f32 %v13453_v22, %v4069_v16  ;;  %v4046_v16 = vmul.f32 1.442695, %v19129_v42  ;;  %v4093_v2 = vadd.f32 %v13484_v18, %v4092_v17  ;;  %v13496_v19 = vpop.eup %9035  ;;  %9055 = vpow2.f32 %v3976_v34 }
 0xb32   : > { %v3984_v31 = vmul.f32 1.442695, %v19130_v21  ;;  %v13501_v55 = vpop.eup %9037  ;;  %9057 = vpow2.f32 %v4042_v47  ;;  %v3988_v46 = vmul.f32 1.442695, %v19131_v20  ;;  %v19132_v47 = vsub.f32 %v19077_v3, %v13160_v49 }
 0xb33   : > { %v4071_v62 = vadd.f32 %v13465_v26, %v4070_v14  ;;  %v4094_v14 = vadd.f32 %v13496_v19, %v4093_v2  ;;  %v13505_v28 = vpop.eup %9039  ;;  %9059 = vpow2.f32 %v3980_v41  ;;  %v19133_v42 = vsub.f32 %v19078_v35, %v13160_v49 }
 0xb34   : > { %v13510_v59 = vpop.eup %9041  ;;  %9061 = vpow2.f32 %v4046_v16 }
 0xb35   : > { %v4072_v57 = vadd.f32 %v13477_v13, %v4071_v62  ;;  %v4095_v34 = vadd.f32 %v13505_v28, %v4094_v14  ;;  %v13514_v29 = vpop.eup %9043  ;;  %9063 = vpow2.f32 %v3984_v31  ;;  %v3992_v62 = vmul.f32 1.442695, %v19132_v47 }
 0xb36   : > { %v13519_v17 = vpop.eup %9045  ;;  %9065 = vpow2.f32 %v3988_v46  ;;  %v3996_v16 = vmul.f32 1.442695, %v19133_v42  ;;  %v19135_v31 = vsub.f32 %v19080_v61, %v13160_v49 }
 0xb37   : > { %v4073_v23 = vadd.f32 %v13489_v27, %v4072_v57  ;;  %v4096_v63 = vadd.f32 %v13514_v29, %v4095_v34  ;;  %v13523_v41 = vpop.eup %9047  ;;  %9067 = vpow2.f32 %v3992_v62 }
 0xb38   : > { %v13528_v57 = vpop.eup %9049  ;;  %9069 = vpow2.f32 %v3996_v16 }
 0xb39   : > { %v4074_v1 = vadd.f32 %v13501_v55, %v4073_v23  ;;  %v4097_v3 = vadd.f32 %v13523_v41, %v4096_v63  ;;  %v13532_v21 = vpop.eup %9051  ;;  %v4000_v23 = vmul.f32 1.442695, %v19135_v31  ;;  %v19138_v63 = vsub.f32 %v19082_v24, %v13160_v49  ;;  %v19140_v24 = vld [vmem:[#allocation20_spill] sm:$0xff] }
 0xb3a   : > { %19134 = vst [vmem:[#allocation25_spill] sm:$0xff] %v13532_v21  ;;  %v13537_v14 = vpop.eup %9053  ;;  %v19139_v31 = vsub.f32 %v19083_v30, %v13160_v49  ;;  %v19142_v30 = vsub.f32 %v19086_v33, %v13160_v49 }
 0xb3b   : > { %v4075_v11 = vadd.f32 %v13510_v59, %v4074_v1  ;;  %v4098_v35 = vadd.f32 %v13532_v21, %v4097_v3  ;;  %v13541_v46 = vpop.eup %9055  ;;  %v19137_v1 = vsub.f32 %v19081_v51, %v13160_v49  ;;  %9071 = vpow2.f32 %v4000_v23 }
 0xb3c   : > { %19136 = vst [vmem:[#allocation39_spill] sm:$0xff] %v13541_v46  ;;  %v13546_v47 = vpop.eup %9057  ;;  %v4008_v42 = vmul.f32 1.442695, %v19138_v63  ;;  %v19141_v63 = vsub.f32 %v19140_v24, %v13160_v49 }
 0xb3d   : > { %v4076_v2 = vadd.f32 %v13519_v17, %v4075_v11  ;;  %v4004_v34 = vmul.f32 1.442695, %v19137_v1  ;;  %v4099_v61 = vadd.f32 %v13541_v46, %v4098_v35  ;;  %v13550_v11 = vpop.eup %9059 }
 0xb3f   : > { %v4077_v20 = vadd.f32 %v13528_v57, %v4076_v2  ;;  %v13555_v2 = vpop.eup %9061  ;;  %v4100_v51 = vadd.f32 %v13550_v11, %v4099_v61  ;;  %9073 = vpow2.f32 %v4004_v34  ;;  %v4020_v34 = vmul.f32 1.442695, %v19142_v30 }
 0xb40   : > { %v13559_v3 = vpop.eup %9063  ;;  %9075 = vpow2.f32 %v4008_v42  ;;  %v19143_v42 = vsub.f32 %v19087_v39, %v13160_v49  ;;  %v19146_v39 = vsub.f32 %v19090_v56, %v13160_v49 }
 0xb41   : > { %v4078_v62 = vadd.f32 %v13537_v14, %v4077_v20  ;;  %v4012_v20 = vmul.f32 1.442695, %v19139_v31  ;;  %v4101_v23 = vadd.f32 %v13559_v3, %v4100_v51  ;;  %v13566_v1 = vpop.eup %9065 }
 0xb42   : > { %v13572_v37 = vpop.eup %9067  ;;  %v4024_v24 = vmul.f32 1.442695, %v19143_v42 }
 0xb43   : > { %v4079_v16 = vadd.f32 %v13546_v47, %v4078_v62  ;;  %v4016_v62 = vmul.f32 1.442695, %v19141_v63  ;;  %v4102_v61 = vadd.f32 %v13566_v1, %v4101_v23  ;;  %9077 = vpow2.f32 %v4012_v20  ;;  %v13578_v31 = vpop.eup %9069  ;;  %v19144_v20 = vld [vmem:[#allocation26_spill] sm:$0xff] }
 0xb44   : > { %v19145_v33 = vsub.f32 %v19144_v20, %v13160_v49 }
 0xb45   : > { %v4080_v35 = vadd.f32 %v13555_v2, %v4079_v16  ;;  %v4103_v51 = vadd.f32 %v13572_v37, %v4102_v61  ;;  %9079 = vpow2.f32 %v4016_v62  ;;  %v13584_v46 = vpop.eup %9071  ;;  %v4032_v62 = vmul.f32 1.442695, %v19146_v39 }
 0xb46   : > { %9081 = vpow2.f32 %v4020_v34  ;;  %v4028_v30 = vmul.f32 1.442695, %v19145_v33  ;;  %v19147_v34 = vsub.f32 %v19091_v45, %v13160_v49 }
 0xb47   : > { %v4081_v4 = vrot.slane %v4080_v35, 4  ;;  %v4104_v23 = vadd.f32 %v13578_v31, %v4103_v51  ;;  %9083 = vpow2.f32 %v4024_v24 }
 0xb48   : > { %9085 = vpow2.f32 %v4028_v30  ;;  %v4036_v20 = vmul.f32 1.442695, %v19147_v34  ;;  %v19149_v30 = vsub.f32 %v19093_v60, %v13160_v49 }
 0xb49   : > { %v4082_v16 = vadd.f32 %v4081_v4, %v4080_v35  ;;  %v4105_v35 = vadd.f32 %v13584_v46, %v4104_v23  ;;  %v13590_v61 = vpop.eup %9073  ;;  %9087 = vpow2.f32 %v4032_v62 }
 0xb4a   : > { %v13596_v21 = vpop.eup %9075  ;;  %9089 = vpow2.f32 %v4036_v20  ;;  %v4044_v45 = vmul.f32 1.442695, %v19149_v30 }
 0xb4b   : > { %v4083_v63 = vrot.slane %v4082_v16, 2  ;;  %v4106_v51 = vadd.f32 %v13590_v61, %v4105_v35 }
 0xb4d   : > { %v4084_v4 = vadd.f32 %v4083_v63, %v4082_v16  ;;  %v19148_v16 = vsub.f32 %v19092_v7, %v13160_v49  ;;  %v4107_v24 = vadd.f32 %v13596_v21, %v4106_v51  ;;  %v13605_v23 = vpop.eup %9077  ;;  %v19150_v51 = vld [vmem:[#allocation38_spill] sm:$0xff] }
 0xb4e   : > { %v19151_v34 = vsub.f32 %v19150_v51, %v13160_v49 }
 0xb4f   : > { %v4085_v42 = vrot.slane %v4084_v4, 1  ;;  %v4040_v63 = vmul.f32 1.442695, %v19148_v16  ;;  %v4108_v33 = vadd.f32 %v13605_v23, %v4107_v24  ;;  %v13608_v35 = vpop.eup %9079 }
 0xb50   : > { %v13614_v7 = vpop.eup %9081 }
 0xb51   : > { %v4086_v56 = vadd.f32 %v4085_v42, %v4084_v4  ;;  %9091 = vpow2.f32 %v4040_v63  ;;  %v4109_v39 = vadd.f32 %v13608_v35, %v4108_v33  ;;  %v4048_v4 = vmul.f32 1.442695, %v19151_v34  ;;  %v13620_v42 = vpop.eup %9083 }
 0xb52   : > { %v13623_v16 = vpop.eup %9085 }
 0xb53   : > { %9093 = vrcp.f32 %v4086_v56  ;;  %v4110_v62 = vadd.f32 %v13614_v7, %v4109_v39  ;;  %v13626_v63 = vpop.eup %9087 }
 0xb54   : > { %9095 = vpow2.f32 %v4044_v45  ;;  %v13629_v56 = vpop.eup %9089 }
 0xb55   : > { %v4111_v20 = vadd.f32 %v13620_v42, %v4110_v62  ;;  %9097 = vpow2.f32 %v4048_v4 }
 0xb57   : > { %v4112_v60 = vadd.f32 %v13623_v16, %v4111_v20 }
 0xb59   : > { %v4113_v24 = vadd.f32 %v13626_v63, %v4112_v60 }
 0xb5b   : > { %v13631_v49 = vpop.eup %9091  ;;  %v4114_v33 = vadd.f32 %v13629_v56, %v4113_v24 }
 0xb5d   : > { %v13634_v30 = vpop.eup %9093  ;;  %v4115_v45 = vadd.f32 %v13631_v49, %v4114_v33 }
 0xb5e   : > { %v13637_v39 = vpop.eup %9095  ;;  %v13642_v34 = vmul.f32 %v13634_v30, %v13380_v0  ;;  %v13646_v4 = vmul.f32 %v13634_v30, %v13389_v32  ;;  %v13652_v20 = vmul.f32 %v13634_v30, %v13394_v50  ;;  %v13656_v60 = vmul.f32 %v13634_v30, %v13400_v38 }
 0xb5f   : > { %v4116_v51 = vadd.f32 %v13637_v39, %v4115_v45  ;;  %v13648_v62 = vpop.eup %9097  ;;  %v13663_v33 = vmul.f32 %v13634_v30, %v13416_v36  ;;  %v13667_v32 = vmul.f32 %v13634_v30, %v13429_v12  ;;  %v13673_v38 = vmul.f32 %v13634_v30, %v13441_v43 }
 0xb60   : > { %v13677_v45 = vmul.f32 %v13634_v30, %v13453_v22  ;;  %v13687_v0 = vmul.f32 %v13634_v30, %v13477_v13  ;;  %v13691_v43 = vmul.f32 %v13634_v30, %v13489_v27  ;;  %v13697_v50 = vmul.f32 %v13634_v30, %v13501_v55 }
 0xb61   : > { %v4117_v24 = vadd.f32 %v13648_v62, %v4116_v51  ;;  %19152 = vst [vmem:[#allocation21_spill] sm:$0xff] %v13663_v33  ;;  %v13681_v51 = vmul.f32 %v13634_v30, %v13465_v26  ;;  %v13701_v26 = vmul.f32 %v13634_v30, %v13510_v59  ;;  %v13705_v12 = vmul.f32 %v13634_v30, %v13519_v17 }
 0xb62   : > { %19154 = vst [vmem:[#allocation55_spill] sm:$0xff] %v13687_v0  ;;  %19155 = vst [vmem:[#allocation48_spill] sm:$0xff] %v13691_v43  ;;  %v13711_v33 = vmul.f32 %v13634_v30, %v13528_v57  ;;  %v13715_v55 = vmul.f32 %v13634_v30, %v13537_v14  ;;  %v13723_v17 = vmul.f32 %v13634_v30, %v13546_v47  ;;  %v19162_v0 = vld [vmem:[#allocation34_spill] sm:$0xff] }
 0xb63   : > { %19153 = vst [vmem:[#allocation52_spill] sm:$0xff] %v13681_v51  ;;  %v4118_v36 = vrot.slane %v4117_v24, 4  ;;  %19156 = vst [vmem:[#allocation50_spill] sm:$0xff] %v13697_v50  ;;  %v19161_v50 = vld [vmem:[#allocation24_spill] sm:$0xff] }
 0xb64   : > { %19157 = vst [vmem:[#allocation54_spill] sm:$0xff] %v13701_v26  ;;  %19158 = vst [vmem:[#allocation11_spill] sm:$0xff] %v13705_v12  ;;  %v19159_v26 = vld [vmem:[#allocation36_spill] sm:$0xff]  ;;  %v19160_v12 = vld [vmem:[#allocation63_spill] sm:$0xff]  ;;  %v4130_v51 = vmul.f32 %v13634_v30, %v19161_v50 }
 0xb65   : > { %v4119_v13 = vadd.f32 %v4118_v36, %v4117_v24  ;;  %v13727_v24 = vmul.f32 %v13634_v30, %v13555_v2  ;;  %v4126_v47 = vmul.f32 %v13634_v30, %v19159_v26  ;;  %v4128_v2 = vmul.f32 %v13634_v30, %v19160_v12 }
 0xb66   : > { %v4132_v36 = vmul.f32 %v13634_v30, %v19162_v0 }
 0xb67   : > { %v4120_v57 = vrot.slane %v4119_v13, 2  ;;  %v4190_v0 = vpack.c.bf16 %v4128_v2, %v4126_v47 }
 0xb69   : > { %v4121_v27 = vadd.f32 %v4120_v57, %v4119_v13  ;;  %v19163_v57 = vld [vmem:[#allocation13_spill] sm:$0xff] }
 0xb6b   : > { %v4122_v59 = vrot.slane %v4121_v27, 1 }
 0xb6d   : > { %v4123_v43 = vadd.f32 %v4122_v59, %v4121_v27 }
 0xb6f   : > { %9099 = vrcp.f32 %v4123_v43 }
 0xb79   : > { %v13733_v22 = vpop.eup %9099 }
 0xb7a   : > { %v4127_v13 = vmul.f32 %v13733_v22, %v13405_v25  ;;  %v4129_v43 = vmul.f32 %v13733_v22, %v13411_v6  ;;  %v4131_v27 = vmul.f32 %v13733_v22, %v13424_v9  ;;  %v4133_v26 = vmul.f32 %v13733_v22, %v13436_v8 }
 0xb7b   : > { %v4135_v12 = vmul.f32 %v13733_v22, %v13448_v15  ;;  %v4137_v50 = vmul.f32 %v13733_v22, %v13460_v58  ;;  %v4134_v25 = vmul.f32 %v13634_v30, %v19163_v57  ;;  %v4136_v6 = vmul.f32 %v13634_v30, %v13305_v44 }
 0xb7c   : > { %v4191_v59 = vpack.c.bf16 %v4129_v43, %v4127_v13  ;;  %v4138_v9 = vmul.f32 %v13634_v30, %v13314_v52  ;;  %v4193_v14 = vpack.c.bf16 %v4133_v26, %v4131_v27  ;;  %v4192_v8 = vpack.c.bf16 %v4132_v36, %v4130_v51 }
 0xb7d   : > { %v4139_v13 = vmul.f32 %v13733_v22, %v13472_v53  ;;  %v13765_v15 = vmul.f32 %v13733_v22, %v13550_v11  ;;  %v4141_v58 = vmul.f32 %v13733_v22, %v13484_v18  ;;  %v4157_v44 = vmul.f32 %v13733_v22, %v13559_v3 }
 0xb7e   : > { %4222 = vmatprep.subr.bf16.mxu0 %v4191_v59  ;;  %v4159_v52 = vmul.f32 %v13733_v22, %v13566_v1  ;;  %v4161_v51 = vmul.f32 %v13733_v22, %v13572_v37  ;;  %v4195_v36 = vpack.c.bf16 %v4137_v50, %v4135_v12  ;;  %v4163_v53 = vmul.f32 %v13733_v22, %v13578_v31 }
 0xb7f   : > { %4223 = vmatpush1.bf16.msra.mxu0 %v4190_v0  ;;  %v4165_v11 = vmul.f32 %v13733_v22, %v13584_v46  ;;  %v4167_v18 = vmul.f32 %v13733_v22, %v13590_v61  ;;  %v4205_v47 = vpack.c.bf16 %v4157_v44, %v13765_v15  ;;  %v4169_v1 = vmul.f32 %v13733_v22, %v13596_v21  ;;  %v19167_v44 = vld [vmem:[#allocation27_spill] sm:$0xff] }
 0xb80   : > { %4224 = vmatprep.subr.bf16.mxu0 %v4193_v14  ;;  %v4207_v3 = vpack.c.bf16 %v4161_v51, %v4159_v52  ;;  %v4171_v37 = vmul.f32 %v13733_v22, %v13605_v23  ;;  %v4173_v2 = vmul.f32 %v13733_v22, %v13608_v35  ;;  %v4175_v31 = vmul.f32 %v13733_v22, %v13614_v7 }
 0xb81   : > { %v4209_v14 = vpack.c.bf16 %v4165_v11, %v4163_v53  ;;  %v4177_v46 = vmul.f32 %v13733_v22, %v13620_v42  ;;  %v4211_v61 = vpack.c.bf16 %v4169_v1, %v4167_v18  ;;  %v4179_v43 = vmul.f32 %v13733_v22, %v13623_v16  ;;  %v19173_v11 = vld [vmem:[#allocation55_spill] sm:$0xff]  ;;  %v19174_v18 = vld [vmem:[#allocation52_spill] sm:$0xff] }
 0xb82   : > { %v4181_v21 = vmul.f32 %v13733_v22, %v13626_v63  ;;  %v4183_v23 = vmul.f32 %v13733_v22, %v13629_v56  ;;  %v4213_v27 = vpack.c.bf16 %v4173_v2, %v4171_v37  ;;  %v4185_v7 = vmul.f32 %v13733_v22, %v13631_v49  ;;  %v19184_v1 = vld [vmem:[#allocation51_spill] sm:$0xff] }
 0xb83   : > { %4225 = vmatpush1.bf16.msra.mxu0 %v4192_v8  ;;  %v4215_v35 = vpack.c.bf16 %v4177_v46, %v4175_v31  ;;  %v4187_v42 = vmul.f32 %v13733_v22, %v13637_v39  ;;  %v4194_v26 = vpack.c.bf16 %v4136_v6, %v4134_v25  ;;  %v4140_v59 = vmul.f32 %v13634_v30, %v13320_v40  ;;  %v19164_v8 = vld [vmem:[#allocation25_spill] sm:$0xff]  ;;  %v19186_v2 = vld [vmem:[#allocation59_spill] sm:$0xff] }
 0xb84   : > { %4226 = vmatprep.subr.bf16.mxu0 %v4195_v36  ;;  %v4217_v16 = vpack.c.bf16 %v4181_v21, %v4179_v43  ;;  %v4189_v63 = vmul.f32 %v13733_v22, %v13648_v62  ;;  %v4197_v12 = vpack.c.bf16 %v4141_v58, %v4139_v13  ;;  %v4143_v56 = vmul.f32 %v13733_v22, %v13496_v19  ;;  %v19165_v13 = vld [vmem:[#allocation39_spill] sm:$0xff]  ;;  %v19170_v36 = vld [vmem:[#allocation21_spill] sm:$0xff] }
 0xb85   : > { %v4145_v50 = vmul.f32 %v13733_v22, %v13505_v28  ;;  %v4219_v0 = vpack.c.bf16 %v4185_v7, %v4183_v23  ;;  %v4196_v39 = vpack.c.bf16 %v4140_v59, %v4138_v9  ;;  %v4142_v57 = vmul.f32 %v13634_v30, %v13326_v54  ;;  %v19188_v46 = vld [vmem:[#allocation31_spill] sm:$0xff] }
 0xb86   : > { %v4221_v49 = vpack.c.bf16 %v4189_v63, %v4187_v42  ;;  %v4144_v40 = vmul.f32 %v13634_v30, %v13335_v5  ;;  %v4147_v62 = vmul.f32 %v13733_v22, %v13514_v29  ;;  %v4149_v19 = vmul.f32 %v13733_v22, %v13523_v41  ;;  %v19166_v41 = vld [vmem:[#allocation14_spill] sm:$0xff]  ;;  %v8523_v42 = vld [vmem:[%s17983_s11] sm:$0xff]  }
 0xb87   : > { %4227 = vmatpush1.bf16.msra.mxu0 %v4194_v26  ;;  %v4199_v25 = vpack.c.bf16 %v4145_v50, %v4143_v56  ;;  %v4146_v6 = vmul.f32 %v13634_v30, %v13344_v10  ;;  %v4148_v9 = vmul.f32 %v13634_v30, %v13353_v48  ;;  %v4151_v5 = vmul.f32 %v13733_v22, %v19164_v8  ;;  %v8524_v26 = vld [vmem:[%s17983_s11 + $0x8] sm:$0xff]  }
 0xb88   : > { %4228 = vmatprep.subr.bf16.mxu0 %v4197_v12  ;;  %v4198_v28 = vpack.c.bf16 %v4144_v40, %v4142_v57  ;;  %v4201_v54 = vpack.c.bf16 %v4149_v19, %v4147_v62  ;;  %v4153_v15 = vmul.f32 %v13733_v22, %v19165_v13  ;;  %v4150_v58 = vmul.f32 %v13634_v30, %v19166_v41  ;;  %v4293_v12 = vpop.permute.xlu0 %4292  ;;  %v19194_v40 = vld [vmem:[#allocation3_spill] sm:$0xff]  ;;  %v19195_v62 = vld [vmem:[#allocation4_spill] sm:$0xff] }
 0xb89   : > { %v4200_v29 = vpack.c.bf16 %v4148_v9, %v4146_v6  ;;  %v4152_v52 = vmul.f32 %v13634_v30, %v19167_v44  ;;  %v19168_v51 = vpack.c.bf16 %v13646_v4, %v13642_v34  ;;  %v19169_v22 = vpack.c.bf16 %v13656_v60, %v13652_v20  ;;  %v19176_v4 = vld [vmem:[#allocation50_spill] sm:$0xff]  ;;  %v19179_v60 = vld [vmem:[#allocation11_spill] sm:$0xff] }
 0xb8a   : > { %v4203_v10 = vpack.c.bf16 %v4153_v15, %v4151_v5  ;;  %v19171_v53 = vpack.c.bf16 %v13667_v32, %v19170_v36  ;;  %v19172_v30 = vpack.c.bf16 %v13677_v45, %v13673_v38  ;;  %v19175_v34 = vpack.c.bf16 %v19173_v11, %v19174_v18  ;;  %v19197_v9 = vld [vmem:[#allocation7_spill] sm:$0xff]  ;;  %v19200_v11 = vld [vmem:[#allocation6_spill] sm:$0xff] }
 0xb8b   : > { %4229 = vmatpush1.bf16.msra.mxu0 %v4196_v39  ;;  %v4202_v48 = vpack.c.bf16 %v4152_v52, %v4150_v58  ;;  %v19182_v38 = vpack.c.bf16 %v13715_v55, %v13711_v33  ;;  %v19183_v45 = vpack.c.bf16 %v13727_v24, %v13723_v17  ;;  %v3503_v37 = vpack.c.bf16 %v19184_v1, %v19184_v1  ;;  %v19192_v55 = vld [vmem:[#allocation68_spill] sm:$0xff]  ;;  %v19193_v17 = vld [vmem:[#allocation42_spill] sm:$0xff] }
 0xb8c   : > { %4230 = vmatprep.subr.bf16.mxu0 %v4199_v25  ;;  %v19191_v21 = vmov 0   ;;  %v4303_v41 = vpop.permute.xlu0 %4302 }
 0xb8f   : > { %4231 = vmatpush1.bf16.msra.mxu0 %v4198_v28  ;;  %v19196_v28 = vld [vmem:[#allocation5_spill] sm:$0xff] }
 0xb90   : > { %4232 = vmatprep.subr.bf16.mxu0 %v4201_v54 }
 0xb93   : > { %4233 = vmatpush1.bf16.msra.mxu0 %v4200_v29 }
 0xb94   : > { %4234 = vmatprep.subr.bf16.mxu0 %v4203_v10 }
 0xb97   : > { %4235 = vmatpush1.bf16.msra.mxu0 %v4202_v48 }
 0xb98   : > { %4236 = vmatprep.subr.bf16.mxu0 %v4205_v47  ;;  %v19177_v47 = vld [vmem:[#allocation48_spill] sm:$0xff] }
 0xb99   : > { %v19178_v20 = vpack.c.bf16 %v19176_v4, %v19177_v47 }
 0xb9b   : > { %4237 = vmatpush1.bf16.msra.mxu0 %v19168_v51 }
 0xb9c   : > { %4238 = vmatprep.subr.bf16.mxu0 %v4207_v3  ;;  %v19180_v3 = vld [vmem:[#allocation54_spill] sm:$0xff] }
 0xb9d   : > { %v19181_v32 = vpack.c.bf16 %v19179_v60, %v19180_v3  ;;  %v8525_v60 = vld [vmem:[%s17985_s13] sm:$0xff]   ;;  %v8526_v3 = vld [vmem:[%s17985_s13 + $0x8] sm:$0xff]  }
 0xb9f   : > { %4239 = vmatpush1.bf16.msra.mxu0 %v19169_v22  ;;  %v19198_v22 = vld [vmem:[#allocation9_spill] sm:$0xff] }
 0xba0   : > { %4240 = vmatprep.subr.bf16.mxu0 %v4209_v14  ;;  %v19185_v14 = vld [vmem:[#allocation33_spill] sm:$0xff] }
 0xba1   : > { %v19187_v31 = vpack.c.bf16 %v19185_v14, %v19186_v2 }
 0xba3   : > { %4241 = vmatpush1.bf16.msra.mxu0 %v19171_v53  ;;  %v19199_v53 = vld [vmem:[#allocation8_spill] sm:$0xff] }
 0xba4   : > { %4242 = vmatprep.subr.bf16.mxu0 %v4211_v61  ;;  %v19189_v61 = vld [vmem:[#allocation57_spill] sm:$0xff] }
 0xba5   : > { %v19190_v43 = vpack.c.bf16 %v19188_v46, %v19189_v61 }
 0xba7   : > { %4243 = vmatpush1.bf16.msra.mxu0 %v19172_v30 }
 0xba8   : > { %4244 = vmatprep.subr.bf16.mxu0 %v4213_v27 }
 0xbab   : > { %4245 = vmatpush1.bf16.msra.mxu0 %v19175_v34  ;;  %v19201_v34 = vld [vmem:[#allocation10_spill] sm:$0xff] }
 0xbac   : > { %4246 = vmatprep.subr.bf16.mxu0 %v4215_v35 }
 0xbaf   : > { %4247 = vmatpush1.bf16.msra.mxu0 %v19178_v20 }
 0xbb0   : > { %4248 = vmatprep.subr.bf16.mxu0 %v4217_v16  ;;  %v4288_v16 = vpop.permute.xlu1 %4287 }
 0xbb3   : > { %4249 = vmatpush1.bf16.msra.mxu0 %v19181_v32 }
 0xbb4   : > { %4250 = vmatprep.subr.bf16.mxu0 %v4219_v0  ;;  %v4298_v13 = vpop.permute.xlu1 %4297 }
 0xbb7   : > { %4251 = vmatpush1.bf16.msra.mxu0 %v19182_v38 }
 0xbb8   : > { %4252 = vmatprep.subr.bf16.mxu0 %v4221_v49 }
 0xbbb   : > { %4253 = vmatpush1.bf16.msra.mxu0 %v19183_v45 }
 0xbbc   : > { %4321 = vmatprep.subr.bf16.mxu0 %v19187_v31 }
 0xbbe   : > { %4255 = vmatmul.mubr.bf16.vlgmr.msra.gmra.mrb[144].mxu0 %v3503_v37 }
 0xbbf   : > { %4322 = vmatpush1.bf16.msra.mxu0 %v19190_v43  ;;  %4353 = vmatprep.mubr.bf16.mxu0 %v19191_v21 }
 0xc91   : > { %v4256_v33 = vpop.f32.mrb[144].mxu0 }
 0xc92   : > { %v4279_v23 = vpack.c.bf16 %v4256_v33, %v19192_v55  ;;  %v4258_v27 = vpop.f32.mrb[145].mxu0  ;;  %v8527_v55 = vld [vmem:[%s17986_s14] sm:$0xff]  }
 0xc93   : > { %v4280_v24 = vpack.c.bf16 %v4258_v27, %v19193_v17  ;;  %v4260_v35 = vpop.f32.mrb[146].mxu0 }
 0xc94   : > { %v4261_v7 = vpop.f32.mrb[147].mxu0 }
 0xc95   : > { %4323 = vmatprep.subr.bf16.mxu0 %v4280_v24 }
 0xc96   : > { %4324 = vmatpush1.bf16.msra.mxu0 %v4279_v23  ;;  %v8528_v23 = vld [vmem:[%s17986_s14 + $0x8] sm:$0xff]  }
 0xc99   : > { %8342 = vmatmul.mubr.msk.bf16.vlgmr.msra.gmra.mrb[148].mxu0 %vm828_vm0, %v8523_v42 }
 0xc9a   : > { %4363 = vmatprep.mubr.bf16.mxu0 %v19191_v21 }
 0xca1   : > { %8343 = vmatmul.mubr.msk.bf16.gmra.mrb[152].mxu0 %vm828_vm0, %v8524_v26 }
 0xca2   : > { %4438 = vmatprep.mubr.bf16.mxu0 %v19191_v21 }
 0xd6c   : > { %v4355_v59 = vpop.f32.mrb[148].mxu0 }
 0xd6d   : > { %v4357_v63 = vpop.f32.mrb[149].mxu0  ;;  %v4356_v0 = vadd.f32 %v4355_v59, %v4288_v16 }
 0xd6e   : > { %v4358_v56 = vadd.f32 %v4357_v63, %v4288_v16  ;;  %v4359_v50 = vpop.f32.mrb[150].mxu0 }
 0xd6f   : > { %v4360_v49 = vadd.f32 %v4359_v50, %v4293_v12  ;;  %v4361_v39 = vpop.f32.mrb[151].mxu0  ;;  %v4374_v54 = vadd.f32 %v4356_v0, %v19197_v9  ;;  %v8532_v9 = vld [vmem:[%s17979_s7 + $0x10] sm:$0xff]  }
 0xd70   : > { %v4362_v57 = vadd.f32 %v4361_v39, %v4293_v12  ;;  %v4375_v19 = vadd.f32 %v4358_v56, %v19195_v62 }
 0xd71   : > { %v4376_v25 = vadd.f32 %v4360_v49, %v19194_v40 }
 0xd72   : > { %v4377_v6 = vadd.f32 %v4362_v57, %v19196_v28  ;;  %v8530_v28 = vld [vmem:[%s17978_s6 + $0x10] sm:$0xff]  }
 0xd73   : > { %v4386_v15 = vpack.c.bf16 %v4376_v25, %v4374_v54 }
 0xd74   : > { %v4365_v8 = vpop.f32.mrb[152].mxu0  ;;  %v4387_v5 = vpack.c.bf16 %v4377_v6, %v4375_v19 }
 0xd75   : > { %v4367_v29 = vpop.f32.mrb[153].mxu0  ;;  %v4366_v52 = vadd.f32 %v4365_v8, %v4298_v13  ;;  %v4652_v8 = vpop.permute.xlu1 %4651 }
 0xd76   : > { %v4368_v58 = vadd.f32 %v4367_v29, %v4298_v13  ;;  %v4369_v44 = vpop.f32.mrb[154].mxu0  ;;  %4406 = vmatprep.subr.bf16.mxu0 %v4387_v5  ;;  %v4553_v5 = vpop.permute.xlu0 %4552 }
 0xd77   : > { %v4370_v10 = vadd.f32 %v4369_v44, %v4303_v41  ;;  %v4371_v48 = vpop.f32.mrb[155].mxu0  ;;  %4407 = vmatpush1.bf16.msra.mxu0 %v4386_v15  ;;  %v4378_v4 = vadd.f32 %v4366_v52, %v19201_v34 }
 0xd78   : > { %v4372_v51 = vadd.f32 %v4371_v48, %v4303_v41  ;;  %v4379_v30 = vadd.f32 %v4368_v58, %v19199_v53 }
 0xd79   : > { %v4380_v36 = vadd.f32 %v4370_v10, %v19198_v22 }
 0xd7a   : > { %v4381_v18 = vadd.f32 %v4372_v51, %v19200_v11 }
 0xd7b   : > { %v4388_v20 = vpack.c.bf16 %v4380_v36, %v4378_v4 }
 0xd7c   : > { %v4389_v47 = vpack.c.bf16 %v4381_v18, %v4379_v30 }
 0xd7e   : > { %4408 = vmatprep.subr.bf16.mxu0 %v4389_v47 }
 0xd7f   : > { %4409 = vmatpush1.bf16.msra.mxu0 %v4388_v20 }
 0xd82   : > { %8346 = vmatmul.mubr.msk.bf16.vlgmr.msra.gmra.mrb[156].mxu0 %vm828_vm0, %v8525_v60 }
 0xd83   : > { %4448 = vmatprep.mubr.bf16.mxu0 %v19191_v21 }
 0xd8a   : > { %8347 = vmatmul.mubr.msk.bf16.gmra.mrb[160].mxu0 %vm828_vm0, %v8526_v3 }
 0xd8b   : > { %4515 = vmatprep.mubr.bf16.mxu0 %v19191_v21 }
 0xe55   : > { %v4440_v32 = vpop.f32.mrb[156].mxu0 }
 0xe56   : > { %v4442_v38 = vpop.f32.mrb[157].mxu0 }
 0xe57   : > { %v4444_v45 = vpop.f32.mrb[158].mxu0 }
 0xe58   : > { %v4463_v1 = vpack.c.bf16 %v4444_v45, %v4440_v32  ;;  %v4446_v37 = vpop.f32.mrb[159].mxu0  ;;  %v8380_v45 = vld [vmem:[%s17982_s10 + $0x20] sm:$0xff] }
 0xe59   : > { %v4464_v14 = vpack.c.bf16 %v4446_v37, %v4442_v38 }
 0xe5b   : > { %4483 = vmatprep.subr.bf16.mxu0 %v4464_v14  ;;  %v8369_v14 = vld [vmem:[%s17981_s9 + $0x28] sm:$0xff] }
 0xe5c   : > { %4484 = vmatpush1.bf16.msra.mxu0 %v4463_v1  ;;  %v8357_v1 = vld [vmem:[%s17980_s8 + $0x28] sm:$0xff] }
 0xe5d   : > { %v4450_v2 = vpop.f32.mrb[160].mxu0 }
 0xe5e   : > { %v4452_v31 = vpop.f32.mrb[161].mxu0 }
 0xe5f   : > { %v4454_v46 = vpop.f32.mrb[162].mxu0 }
 0xe60   : > { %v4465_v61 = vpack.c.bf16 %v4454_v46, %v4450_v2  ;;  %v4456_v43 = vpop.f32.mrb[163].mxu0  ;;  %v8534_v2 = vld [vmem:[%s17979_s7 + $0x18] sm:$0xff]  }
 0xe61   : > { %v4466_v33 = vpack.c.bf16 %v4456_v43, %v4452_v31 }
 0xe63   : > { %4485 = vmatprep.subr.bf16.mxu0 %v4466_v33 }
 0xe64   : > { %4486 = vmatpush1.bf16.msra.mxu0 %v4465_v61 }
 0xe67   : > { %8350 = vmatmul.mubr.msk.bf16.vlgmr.msra.gmra.mrb[164].mxu0 %vm828_vm0, %v8527_v55 }
 0xe68   : > { %4525 = vmatprep.mubr.bf16.mxu0 %v19191_v21 }
 0xe6f   : > { %8351 = vmatmul.mubr.msk.bf16.gmra.mrb[168].mxu0 %vm828_vm0, %v8528_v23 }
 0xe70   : > { %4618 = vmatprep.mubr.bf16.mxu0 %v19191_v21 }
 0xf3a   : > { %v4517_v27 = vpop.f32.mrb[164].mxu0 }
 0xf3b   : > { %v4519_v17 = vpop.f32.mrb[165].mxu0  ;;  %v13912_v59 = vadd.f32 %v4517_v27, %v4374_v54  ;;  %v8533_v54 = vld [vmem:[%s17978_s6 + $0x18] sm:$0xff]  }
 0xf3c   : > { %v4521_v24 = vpop.f32.mrb[166].mxu0  ;;  %v13908_v42 = vadd.f32 %v4519_v17, %v4375_v19  ;;  %v8529_v19 = vld [vmem:[%s17977_s5 + $0x10] sm:$0xff]  }
 0xf3d   : > { %v13906_v35 = vadd.f32 %v4521_v24, %v4376_v25  ;;  %v4523_v7 = vpop.f32.mrb[167].mxu0  ;;  %19205 = vst [vmem:[#allocation15_spill] sm:$0xff] %v13912_v59 }
 0xf3e   : > { %19203 = vst [vmem:[#allocation64_spill] sm:$0xff] %v13908_v42  ;;  %v13910_v26 = vadd.f32 %v4523_v7, %v4377_v6  ;;  %v8531_v6 = vld [vmem:[%s17977_s5 + $0x18] sm:$0xff]  }
 0xf3f   : > { %19202 = vst [vmem:[#allocation22_spill] sm:$0xff] %v13906_v35  ;;  %v4536_v63 = vpack.c.bf16 %v13906_v35, %v13912_v59 }
 0xf40   : > { %19204 = vst [vmem:[#allocation12_spill] sm:$0xff] %v13910_v26  ;;  %v4537_v16 = vpack.c.bf16 %v13910_v26, %v13908_v42 }
 0xf42   : > { %v4527_v12 = vpop.f32.mrb[168].mxu0  ;;  %4586 = vmatprep.subr.bf16.mxu0 %v4537_v16  ;;  %4685 = vmatprep.subr.bf16.mxu1 %v4537_v16 }
 0xf43   : > { %v4529_v56 = vpop.f32.mrb[169].mxu0  ;;  %4587 = vmatpush1.bf16.msra.mxu0 %v4536_v63  ;;  %4686 = vmatpush1.bf16.msra.mxu1 %v4536_v63  ;;  %v13924_v40 = vadd.f32 %v4527_v12, %v4378_v4 }
 0xf44   : > { %v4531_v50 = vpop.f32.mrb[170].mxu0  ;;  %v13920_v39 = vadd.f32 %v4529_v56, %v4379_v30 }
 0xf45   : > { %v13918_v0 = vadd.f32 %v4531_v50, %v4380_v36  ;;  %v4533_v49 = vpop.f32.mrb[171].mxu0  ;;  %19209 = vst [vmem:[#allocation58_spill] sm:$0xff] %v13924_v40 }
 0xf46   : > { %19207 = vst [vmem:[#allocation66_spill] sm:$0xff] %v13920_v39  ;;  %v13922_v57 = vadd.f32 %v4533_v49, %v4381_v18 }
 0xf47   : > { %19206 = vst [vmem:[#allocation16_spill] sm:$0xff] %v13918_v0  ;;  %v4538_v62 = vpack.c.bf16 %v13918_v0, %v13924_v40 }
 0xf48   : > { %19208 = vst [vmem:[#allocation65_spill] sm:$0xff] %v13922_v57  ;;  %v4539_v25 = vpack.c.bf16 %v13922_v57, %v13920_v39 }
 0xf4a   : > { %4588 = vmatprep.subr.bf16.mxu0 %v4539_v25  ;;  %4687 = vmatprep.subr.bf16.mxu1 %v4539_v25 }
 0xf4b   : > { %4589 = vmatpush1.bf16.msra.mxu0 %v4538_v62  ;;  %4688 = vmatpush1.bf16.msra.mxu1 %v4538_v62 }
 0xf4c   : > { %4784 = vmatprep.subr.bf16.mxu0 %v4537_v16 }
 0xf4e   : > { %8362 = vmatmul.mubr.msk.bf16.vlgmr.msra.gmra.mrb[172].mxu0 %vm828_vm0, %v8529_v19  ;;  %8374 = vmatmul.mubr.msk.bf16.vlgmr.msra.gmra.mrb[156].mxu1 %vm828_vm0, %v8530_v28 }
 0xf4f   : > { %4785 = vmatpush1.bf16.msra.mxu0 %v4536_v63  ;;  %4628 = vmatprep.mubr.bf16.mxu0 %v19191_v21 }
 0xf50   : > { %4786 = vmatprep.subr.bf16.mxu0 %v4539_v25  ;;  %4727 = vmatprep.mubr.bf16.mxu1 %v19191_v21 }
 0xf53   : > { %4787 = vmatpush1.bf16.msra.mxu0 %v4538_v62 }
 0xf56   : > { %8363 = vmatmul.mubr.msk.bf16.gmra.mrb[176].mxu0 %vm828_vm0, %v8531_v6  ;;  %8375 = vmatmul.mubr.msk.bf16.gmra.mrb[160].mxu1 %vm828_vm0, %v8533_v54 }
 0xf57   : > { %4816 = vmatprep.mubr.bf16.mxu0 %v19191_v21  ;;  %4963 = vmatprep.mubr.bf16.mxu1 %v19191_v21 }
 0xf5e   : > { %8386 = vmatmul.mubr.msk.bf16.vlgmr.msra.gmra.mrb[180].mxu0 %vm828_vm0, %v8532_v9 }
 0xf5f   : > { %4826 = vmatprep.mubr.bf16.mxu0 %v19191_v21 }
 0xf66   : > { %8387 = vmatmul.mubr.msk.bf16.gmra.mrb[184].mxu0 %vm828_vm0, %v8534_v2 }
0x1021   : > { %v4620_v13 = vpop.f32.mrb[172].mxu0  ;;  %v4719_v15 = vpop.f32.mrb[156].mxu1 }
0x1022   : > { %v4621_v29 = vadd.f32 %v4620_v13, %v4553_v5  ;;  %v4720_v41 = vadd.f32 %v4719_v15, %v4652_v8  ;;  %v4622_v58 = vpop.f32.mrb[173].mxu0  ;;  %v4721_v44 = vpop.f32.mrb[157].mxu1  ;;  %v8381_v13 = vld [vmem:[%s17982_s10 + $0x28] sm:$0xff]  ;;  %v8370_v15 = vld [vmem:[%s17981_s9 + $0x30] sm:$0xff] }
0x1023   : > { %v4623_v52 = vadd.f32 %v4622_v58, %v4553_v5  ;;  %v4722_v10 = vadd.f32 %v4721_v44, %v4652_v8  ;;  %v13955_v48 = vpop.f32.mrb[158].mxu1  ;;  %v13957_v51 = vpop.f32.mrb[174].mxu0 }
0x1024   : > { %19210 = vst [vmem:[#allocation61_spill] sm:$0xff] %v13957_v51  ;;  %v4837_v22 = vmul.f32 0.35355338, %v4621_v29  ;;  %v4841_v36 = vpack.c.bf16 %v4720_v41, %v4720_v41  ;;  %v13959_v53 = vpop.f32.mrb[159].mxu1  ;;  %v13961_v30 = vpop.f32.mrb[175].mxu0 }
0x1025   : > { %19211 = vst [vmem:[#allocation53_spill] sm:$0xff] %v13961_v30  ;;  %v4838_v11 = vmul.f32 0.35355338, %v4623_v52  ;;  %v4842_v18 = vpack.c.bf16 %v4722_v10, %v4722_v10  ;;  %v8358_v52 = vld [vmem:[%s17980_s8 + $0x30] sm:$0xff] }
0x1026   : > { %v4839_v34 = vpack.c.bf16 %v4837_v22, %v4837_v22  ;;  %4845 = vxpose.xlu1.c.b16.start.end [1/1] (short) %v4841_v36, 128 }
0x1027   : > { %v4840_v4 = vpack.c.bf16 %v4838_v11, %v4838_v11  ;;  %4861 = vxpose.xlu0.c.b16.start.end [1/1] (short) %v4842_v18, 128 }
0x1028   : > { %v4926_v47 = vsel %vm1280_vm1, %v4839_v34, 0 }
0x1029   : > { %8388 = vmatprep.subr.msk.bf16.mxu1 %vm1280_vm1, %v4840_v4  ;;  %v13965_v20 = vpop.f32.mrb[176].mxu0  ;;  %v4729_v41 = vpop.f32.mrb[160].mxu1 }
0x102a   : > { %4932 = vmatpush1.bf16.msra.mxu1 %v4926_v47  ;;  %19212 = vst [vmem:[#allocation56_spill] sm:$0xff] %v13965_v20  ;;  %v13967_v60 = vpop.f32.mrb[177].mxu0  ;;  %v4731_v58 = vpop.f32.mrb[161].mxu1 }
0x102b   : > { %19213 = vst [vmem:[#allocation67_spill] sm:$0xff] %v13967_v60  ;;  %v13969_v3 = vpop.f32.mrb[178].mxu0  ;;  %v14025_v44 = vpop.f32.mrb[162].mxu1 }
0x102c   : > { %19214 = vst [vmem:[#allocation69_spill] sm:$0xff] %v13969_v3  ;;  %v13971_v32 = vpop.f32.mrb[179].mxu0  ;;  %19218 = vst [vmem:[#allocation44_spill] sm:$0xff] %v14025_v44  ;;  %v14031_v10 = vpop.f32.mrb[163].mxu1 }
0x102d   : > { %19215 = vst [vmem:[#allocation40_spill] sm:$0xff] %v13971_v32  ;;  %19219 = vst [vmem:[#allocation45_spill] sm:$0xff] %v14031_v10 }
0x1031   : > { %v4818_v38 = vpop.f32.mrb[180].mxu0 }
0x1032   : > { %v4820_v37 = vpop.f32.mrb[181].mxu0 }
0x1033   : > { %v14008_v5 = vpop.f32.mrb[182].mxu0 }
0x1034   : > { %19217 = vst [vmem:[#allocation43_spill] sm:$0xff] %v14008_v5  ;;  %v4824_v29 = vpop.f32.mrb[183].mxu0 }
0x1046   : > { %4750 = vperm.xlu1 %8514, %v8380_v45  }
0x104a   : > { %4557 = vperm.xlu1 %8514, %v8357_v1  }
0x104c   : > { %4656 = vperm.xlu0 %8512, %v8369_v14  }
0x108c   : > { %v4853_v31 = vpop.trf.xlu1 }
0x108d   : > { %8389 = vmatmul.mubr.msk.bf16.vlgmr.msra.gmra.mrb[164].mxu1 %vm1231_vm2, %v4853_v31  ;;  %v4869_v43 = vpop.trf.xlu0 }
0x108e   : > { %4973 = vmatprep.mubr.bf16.mxu1 %v19191_v21 }
0x1090   : > { %v4854_v46 = vpop.trf.xlu1 }
0x1091   : > { %v4870_v33 = vpop.trf.xlu0 }
0x1094   : > { %v4855_v61 = vpop.trf.xlu1 }
0x1095   : > { %8390 = vmatmul.mubr.msk.bf16.gmra.mrb[168].mxu1 %vm1231_vm2, %v4854_v46  ;;  %v4871_v23 = vpop.trf.xlu0 }
0x1096   : > { %4983 = vmatprep.mubr.bf16.mxu1 %v19191_v21 }
0x1098   : > { %v4856_v55 = vpop.trf.xlu1 }
0x1099   : > { %v4872_v17 = vpop.trf.xlu0 }
0x109c   : > { %v4857_v27 = vpop.trf.xlu1 }
0x109d   : > { %8391 = vmatmul.mubr.msk.bf16.gmra.mrb[172].mxu1 %vm1231_vm2, %v4855_v61  ;;  %v4873_v7 = vpop.trf.xlu0 }
0x109e   : > { %4993 = vmatprep.mubr.bf16.mxu1 %v19191_v21 }
0x10a0   : > { %v4858_v24 = vpop.trf.xlu1 }
0x10a1   : > { %v4874_v63 = vpop.trf.xlu0 }
0x10a4   : > { %v4859_v16 = vpop.trf.xlu1 }
0x10a5   : > { %8392 = vmatmul.mubr.msk.bf16.gmra.mrb[176].mxu1 %vm1231_vm2, %v4856_v55  ;;  %v4875_v56 = vpop.trf.xlu0 }
0x10a6   : > { %5003 = vmatprep.mubr.bf16.mxu1 %v19191_v21 }
0x10a8   : > { %v4860_v12 = vpop.trf.xlu1 }
0x10a9   : > { %v4876_v49 = vpop.trf.xlu0 }
0x10ad   : > { %8393 = vmatmul.mubr.msk.bf16.gmra.mrb[180].mxu1 %vm1231_vm2, %v4857_v27 }
0x10ae   : > { %5013 = vmatprep.mubr.bf16.mxu1 %v19191_v21 }
0x10b5   : > { %8394 = vmatmul.mubr.msk.bf16.gmra.mrb[184].mxu1 %vm1231_vm2, %v4858_v24 }
0x10b6   : > { %5023 = vmatprep.mubr.bf16.mxu1 %v19191_v21 }
0x10bd   : > { %8395 = vmatmul.mubr.msk.bf16.gmra.mrb[188].mxu1 %vm1231_vm2, %v4859_v16 }
0x10be   : > { %5033 = vmatprep.mubr.bf16.mxu1 %v19191_v21 }
0x10c5   : > { %v4751_v50 = vpop.permute.xlu1 %4750  ;;  %8396 = vmatmul.mubr.msk.bf16.gmra.mrb[192].mxu1 %vm1231_vm2, %v4860_v12 }
0x10c6   : > { %v14001_v25 = vadd.f32 %v4818_v38, %v4751_v50  ;;  %v4821_v62 = vadd.f32 %v4820_v37, %v4751_v50  ;;  %5043 = vmatprep.mubr.bf16.mxu1 %v19191_v21 }
0x10c8   : > { %19216 = vst [vmem:[#allocation41_spill] sm:$0xff] %v14001_v25  ;;  %v4844_v19 = vpack.c.bf16 %v4821_v62, %v4821_v62 }
0x10ca   : > { %5594 = vmatprep.mubr.bf16.mxu0 %v4844_v19 }
0x10cb   : > { %v4657_v28 = vpop.permute.xlu0 %4656 }
0x10cc   : > { %v4724_v6 = vadd.f32 %v13955_v48, %v4657_v28  ;;  %v4726_v9 = vadd.f32 %v13959_v53, %v4657_v28  ;;  %v14036_v48 = vpop.permute.xlu1 %4557 }
0x10cd   : > { %8397 = vmatmul.mubr.msk.bf16.gmra.mrb[196].mxu1 %vm1231_vm2, %v4869_v43  ;;  %19220 = vst [vmem:[#allocation47_spill] sm:$0xff] %v14036_v48 }
0x10ce   : > { %v5609_v54 = vpack.c.bf16 %v4724_v6, %v4724_v6  ;;  %v5610_v8 = vpack.c.bf16 %v4726_v9, %v4726_v9  ;;  %5053 = vmatprep.mubr.bf16.mxu1 %v19191_v21 }
0x10d0   : > { %5613 = vxpose.xlu0.c.b16.start.end [1/1] (short) %v5609_v54, 128  ;;  %5629 = vxpose.xlu1.c.b16.start.end [1/1] (short) %v5610_v8, 128 }
0x10d5   : > { %8398 = vmatmul.mubr.msk.bf16.gmra.mrb[200].mxu1 %vm1231_vm2, %v4870_v33 }
0x10d6   : > { %5063 = vmatprep.mubr.bf16.mxu1 %v19191_v21 }
0x10dd   : > { %8399 = vmatmul.mubr.msk.bf16.gmra.mrb[204].mxu1 %vm1231_vm2, %v4871_v23 }
0x10de   : > { %5073 = vmatprep.mubr.bf16.mxu1 %v19191_v21 }
0x10e5   : > { %8400 = vmatmul.mubr.msk.bf16.gmra.mrb[208].mxu1 %vm1231_vm2, %v4872_v17 }
0x10e6   : > { %5083 = vmatprep.mubr.bf16.mxu1 %v19191_v21 }
0x10ed   : > { %8401 = vmatmul.mubr.msk.bf16.gmra.mrb[212].mxu1 %vm1231_vm2, %v4873_v7 }
0x10ee   : > { %5093 = vmatprep.mubr.bf16.mxu1 %v19191_v21 }
0x10f0   : > { %4755 = vperm.xlu1 %8514, %v8381_v13  }
0x10f5   : > { %4661 = vperm.xlu0 %8512, %v8370_v15   ;;  %8402 = vmatmul.mubr.msk.bf16.gmra.mrb[216].mxu1 %vm1231_vm2, %v4874_v63 }
0x10f6   : > { %5103 = vmatprep.mubr.bf16.mxu1 %v19191_v21 }
0x10f9   : > { %4562 = vperm.xlu0 %8512, %v8358_v52  }
0x10fd   : > { %8403 = vmatmul.mubr.msk.bf16.gmra.mrb[220].mxu1 %vm1231_vm2, %v4875_v56 }
0x10fe   : > { %5113 = vmatprep.mubr.bf16.mxu1 %v19191_v21 }
0x1105   : > { %8404 = vmatmul.mubr.msk.bf16.gmra.mrb[224].mxu1 %vm1231_vm2, %v4876_v49 }
0x1136   : > { %v14038_v22 = vpop.trf.xlu1  ;;  %v14040_v36 = vpop.trf.xlu0 }
0x1137   : > { %19221 = vst [vmem:[#allocation46_spill] sm:$0xff] %v14038_v22  ;;  %19222 = vst [vmem:[#allocation19_spill] sm:$0xff] %v14040_v36 }
0x113a   : > { %v14042_v53 = vpop.trf.xlu1  ;;  %v14044_v11 = vpop.trf.xlu0 }
0x113b   : > { %19223 = vst [vmem:[#allocation49_spill] sm:$0xff] %v14042_v53  ;;  %19224 = vst [vmem:[#allocation35_spill] sm:$0xff] %v14044_v11 }
0x113e   : > { %v14046_v18 = vpop.trf.xlu1  ;;  %v14048_v34 = vpop.trf.xlu0 }
0x113f   : > { %19225 = vst [vmem:[#allocation62_spill] sm:$0xff] %v14046_v18  ;;  %19226 = vst [vmem:[#allocation23_spill] sm:$0xff] %v14048_v34 }
0x1142   : > { %v14050_v4 = vpop.trf.xlu1  ;;  %v14052_v47 = vpop.trf.xlu0 }
0x1143   : > { %19227 = vst [vmem:[#allocation29_spill] sm:$0xff] %v14050_v4  ;;  %19228 = vst [vmem:[#allocation37_spill] sm:$0xff] %v14052_v47 }
0x1146   : > { %v14054_v38 = vpop.trf.xlu1  ;;  %v14056_v45 = vpop.trf.xlu0 }
0x1147   : > { %19229 = vst [vmem:[#allocation70_spill] sm:$0xff] %v14054_v38  ;;  %19230 = vst [vmem:[#allocation71_spill] sm:$0xff] %v14056_v45 }
0x114a   : > { %v14058_v1 = vpop.trf.xlu1  ;;  %v14064_v2 = vpop.trf.xlu0 }
0x114b   : > { %19231 = vst [vmem:[#allocation17_spill] sm:$0xff] %v14058_v1  ;;  %19232 = vst [vmem:[#allocation60_spill] sm:$0xff] %v14064_v2 }
0x114e   : > { %v14068_v46 = vpop.trf.xlu1  ;;  %v14072_v43 = vpop.trf.xlu0 }
0x114f   : > { %19233 = vst [vmem:[#allocation28_spill] sm:$0xff] %v14068_v46  ;;  %19234 = vst [vmem:[#allocation18_spill] sm:$0xff] %v14072_v43 }
0x1152   : > { %v14076_v55 = vpop.trf.xlu1  ;;  %v14092_v12 = vpop.trf.xlu0 }
0x1153   : > { %19235 = vst [vmem:[#allocation30_spill] sm:$0xff] %v14076_v55  ;;  %19236 = vst [vmem:[#allocation32_spill] sm:$0xff] %v14092_v12 }
0x1160   : > { %v14060_v37 = vpop.f32.mrb[164].mxu1 }
0x1161   : > { %v14062_v14 = vpop.f32.mrb[165].mxu1 }
0x1162   : > { %v14066_v31 = vpop.f32.mrb[166].mxu1 }
0x1163   : > { %v14070_v61 = vpop.f32.mrb[167].mxu1 }
0x1168   : > { %v14074_v33 = vpop.f32.mrb[168].mxu1 }
0x1169   : > { %v5124_v23 = vmax.f32 %v14060_v37, %v14074_v33  ;;  %v14080_v27 = vpop.f32.mrb[169].mxu1 }
0x116a   : > { %v5161_v17 = vmax.f32 %v14062_v14, %v14080_v27  ;;  %v14084_v24 = vpop.f32.mrb[170].mxu1 }
0x116b   : > { %v5125_v7 = vmax.f32 %v14066_v31, %v14084_v24  ;;  %v14088_v16 = vpop.f32.mrb[171].mxu1 }
0x116c   : > { %v5162_v63 = vmax.f32 %v14070_v61, %v14088_v16 }
0x116f   : > { %v14094_v56 = vpop.permute.xlu1 %4755 }
0x1170   : > { %19237 = vst [vmem:[#allocation20_spill] sm:$0xff] %v14094_v56  ;;  %v4825_v50 = vadd.f32 %v4824_v29, %v14094_v56  ;;  %v14097_v49 = vpop.f32.mrb[172].mxu1 }
0x1171   : > { %v5126_v62 = vmax.f32 %v5124_v23, %v14097_v49  ;;  %v14100_v19 = vpop.f32.mrb[173].mxu1 }
0x1172   : > { %v5612_v28 = vpack.c.bf16 %v4825_v50, %v4825_v50  ;;  %v5163_v6 = vmax.f32 %v5161_v17, %v14100_v19  ;;  %v14103_v9 = vpop.f32.mrb[174].mxu1 }
0x1173   : > { %v5127_v54 = vmax.f32 %v5125_v7, %v14103_v9  ;;  %v14106_v8 = vpop.f32.mrb[175].mxu1 }
0x1174   : > { %v4662_v13 = vpop.permute.xlu0 %4661  ;;  %6362 = vmatprep.mubr.bf16.mxu1 %v5612_v28  ;;  %v5164_v15 = vmax.f32 %v5162_v63, %v14106_v8 }
0x1175   : > { %v4730_v29 = vadd.f32 %v4729_v41, %v4662_v13  ;;  %v4732_v52 = vadd.f32 %v4731_v58, %v4662_v13 }
0x1177   : > { %v6377_v40 = vpack.c.bf16 %v4730_v29, %v4730_v29  ;;  %v6378_v57 = vpack.c.bf16 %v4732_v52, %v4732_v52 }
0x1178   : > { %v14109_v23 = vpop.f32.mrb[176].mxu1 }
0x1179   : > { %6397 = vxpose.xlu0.c.b16.start.end [1/1] (short) %v6378_v57, 128  ;;  %6381 = vxpose.xlu1.c.b16.start.end [1/1] (short) %v6377_v40, 128  ;;  %v5128_v17 = vmax.f32 %v5126_v62, %v14109_v23  ;;  %v14112_v50 = vpop.f32.mrb[177].mxu1 }
0x117a   : > { %v5165_v7 = vmax.f32 %v5163_v6, %v14112_v50  ;;  %v14115_v39 = vpop.f32.mrb[178].mxu1 }
0x117b   : > { %v5129_v28 = vmax.f32 %v5127_v54, %v14115_v39  ;;  %v14118_v0 = vpop.f32.mrb[179].mxu1 }
0x117c   : > { %v5166_v41 = vmax.f32 %v5164_v15, %v14118_v0 }
0x1180   : > { %v14121_v58 = vpop.f32.mrb[180].mxu1 }
0x1181   : > { %v5130_v63 = vmax.f32 %v5128_v17, %v14121_v58  ;;  %v14124_v57 = vpop.f32.mrb[181].mxu1 }
0x1182   : > { %v5167_v40 = vmax.f32 %v5165_v7, %v14124_v57  ;;  %v14127_v62 = vpop.f32.mrb[182].mxu1 }
0x1183   : > { %v5131_v6 = vmax.f32 %v5129_v28, %v14127_v62  ;;  %v14130_v13 = vpop.f32.mrb[183].mxu1 }
0x1184   : > { %v5168_v54 = vmax.f32 %v5166_v41, %v14130_v13 }
0x1188   : > { %v14133_v29 = vpop.f32.mrb[184].mxu1 }
0x1189   : > { %v5132_v15 = vmax.f32 %v5130_v63, %v14133_v29  ;;  %v14136_v52 = vpop.f32.mrb[185].mxu1 }
0x118a   : > { %19238 = vst [vmem:[#allocation26_spill] sm:$0xff] %v14136_v52  ;;  %v5169_v17 = vmax.f32 %v5167_v40, %v14136_v52  ;;  %v14139_v59 = vpop.f32.mrb[186].mxu1  ;;  %v14280_v52 = vpop.permute.xlu0 %4562 }
0x118b   : > { %v5133_v7 = vmax.f32 %v5131_v6, %v14139_v59  ;;  %v14142_v26 = vpop.f32.mrb[187].mxu1  ;;  %19263 = vst [vmem:[#allocation3_spill] sm:$0xff] %v14280_v52 }
0x118c   : > { %19239 = vst [vmem:[#allocation38_spill] sm:$0xff] %v14142_v26  ;;  %v5170_v28 = vmax.f32 %v5168_v54, %v14142_v26  ;;  %v8382_v54 = vld [vmem:[%s17982_s10 + $0x30] sm:$0xff] }
0x1190   : > { %v14145_v42 = vpop.f32.mrb[188].mxu1 }
0x1191   : > { %v5134_v41 = vmax.f32 %v5132_v15, %v14145_v42  ;;  %v14148_v35 = vpop.f32.mrb[189].mxu1 }
0x1192   : > { %19240 = vst [vmem:[#allocation36_spill] sm:$0xff] %v14148_v35  ;;  %v5171_v63 = vmax.f32 %v5169_v17, %v14148_v35  ;;  %v14151_v32 = vpop.f32.mrb[190].mxu1  ;;  %v8359_v17 = vld [vmem:[%s17980_s8 + $0x38] sm:$0xff] }
0x1193   : > { %v5135_v40 = vmax.f32 %v5133_v7, %v14151_v32  ;;  %v14154_v3 = vpop.f32.mrb[191].mxu1 }
0x1194   : > { %19241 = vst [vmem:[#allocation63_spill] sm:$0xff] %v14154_v3  ;;  %v5172_v6 = vmax.f32 %v5170_v28, %v14154_v3  ;;  %v8371_v28 = vld [vmem:[%s17981_s9 + $0x38] sm:$0xff] }
0x1198   : > { %v14160_v5 = vpop.f32.mrb[192].mxu1 }
0x1199   : > { %4760 = vperm.xlu1 %8514, %v8382_v54   ;;  %v5136_v15 = vmax.f32 %v5134_v41, %v14160_v5  ;;  %v14163_v56 = vpop.f32.mrb[193].mxu1 }
0x119a   : > { %19242 = vst [vmem:[#allocation24_spill] sm:$0xff] %v14163_v56  ;;  %v5173_v7 = vmax.f32 %v5171_v63, %v14163_v56  ;;  %v14169_v60 = vpop.f32.mrb[194].mxu1 }
0x119b   : > { %v5137_v20 = vmax.f32 %v5135_v40, %v14169_v60  ;;  %v14175_v55 = vpop.f32.mrb[195].mxu1 }
0x119c   : > { %19243 = vst [vmem:[#allocation34_spill] sm:$0xff] %v14175_v55  ;;  %v5174_v41 = vmax.f32 %v5172_v6, %v14175_v55 }
0x119d   : > { %4567 = vperm.xlu1 %8514, %v8359_v17  }
0x119e   : > { %4666 = vperm.xlu0 %8512, %v8371_v28  }
0x11a0   : > { %v14178_v54 = vpop.f32.mrb[196].mxu1 }
0x11a1   : > { %v5138_v46 = vmax.f32 %v5136_v15, %v14178_v54  ;;  %v14181_v1 = vpop.f32.mrb[197].mxu1 }
0x11a2   : > { %19244 = vst [vmem:[#allocation13_spill] sm:$0xff] %v14181_v1  ;;  %v5175_v63 = vmax.f32 %v5173_v7, %v14181_v1  ;;  %v14184_v38 = vpop.f32.mrb[198].mxu1 }
0x11a3   : > { %v5139_v4 = vmax.f32 %v5137_v20, %v14184_v38  ;;  %v14187_v18 = vpop.f32.mrb[199].mxu1 }
0x11a4   : > { %19245 = vst [vmem:[#allocation25_spill] sm:$0xff] %v14187_v18  ;;  %v5176_v40 = vmax.f32 %v5174_v41, %v14187_v18 }
0x11a8   : > { %v14190_v53 = vpop.f32.mrb[200].mxu1 }
0x11a9   : > { %v5140_v6 = vmax.f32 %v5138_v46, %v14190_v53  ;;  %v14193_v17 = vpop.f32.mrb[201].mxu1 }
0x11aa   : > { %19246 = vst [vmem:[#allocation39_spill] sm:$0xff] %v14193_v17  ;;  %v5177_v15 = vmax.f32 %v5175_v63, %v14193_v17  ;;  %v14196_v28 = vpop.f32.mrb[202].mxu1 }
0x11ab   : > { %v5141_v7 = vmax.f32 %v5139_v4, %v14196_v28  ;;  %v14199_v22 = vpop.f32.mrb[203].mxu1 }
0x11ac   : > { %19247 = vst [vmem:[#allocation14_spill] sm:$0xff] %v14199_v22  ;;  %v5178_v20 = vmax.f32 %v5176_v40, %v14199_v22  ;;  %v14273_v22 = vpop.f32.mrb[184].mxu0 }
0x11ad   : > { %19260 = vst [vmem:[#allocation57_spill] sm:$0xff] %v14273_v22  ;;  %v14276_v17 = vpop.f32.mrb[185].mxu0 }
0x11ae   : > { %19261 = vst [vmem:[#allocation68_spill] sm:$0xff] %v14276_v17 }
0x11b0   : > { %v14202_v12 = vpop.f32.mrb[204].mxu1 }
0x11b1   : > { %v5142_v41 = vmax.f32 %v5140_v6, %v14202_v12  ;;  %v14205_v43 = vpop.f32.mrb[205].mxu1 }
0x11b2   : > { %19248 = vst [vmem:[#allocation27_spill] sm:$0xff] %v14205_v43  ;;  %v5179_v46 = vmax.f32 %v5177_v15, %v14205_v43  ;;  %v14208_v2 = vpop.f32.mrb[206].mxu1 }
0x11b3   : > { %v5143_v63 = vmax.f32 %v5141_v7, %v14208_v2  ;;  %v14211_v45 = vpop.f32.mrb[207].mxu1 }
0x11b4   : > { %19249 = vst [vmem:[#allocation21_spill] sm:$0xff] %v14211_v45  ;;  %v5180_v4 = vmax.f32 %v5178_v20, %v14211_v45 }
0x11b8   : > { %v14214_v47 = vpop.f32.mrb[208].mxu1 }
0x11b9   : > { %v5144_v40 = vmax.f32 %v5142_v41, %v14214_v47  ;;  %v14217_v34 = vpop.f32.mrb[209].mxu1 }
0x11ba   : > { %19250 = vst [vmem:[#allocation55_spill] sm:$0xff] %v14217_v34  ;;  %v5181_v6 = vmax.f32 %v5179_v46, %v14217_v34  ;;  %v14220_v11 = vpop.f32.mrb[210].mxu1 }
0x11bb   : > { %v5145_v15 = vmax.f32 %v5143_v63, %v14220_v11  ;;  %v14223_v36 = vpop.f32.mrb[211].mxu1 }
0x11bc   : > { %19251 = vst [vmem:[#allocation52_spill] sm:$0xff] %v14223_v36  ;;  %v5182_v7 = vmax.f32 %v5180_v4, %v14223_v36 }
0x11c0   : > { %v14226_v21 = vpop.f32.mrb[212].mxu1 }
0x11c1   : > { %v5146_v20 = vmax.f32 %v5144_v40, %v14226_v21  ;;  %v14229_v25 = vpop.f32.mrb[213].mxu1 }
0x11c2   : > { %19252 = vst [vmem:[#allocation50_spill] sm:$0xff] %v14229_v25  ;;  %v5183_v41 = vmax.f32 %v5181_v6, %v14229_v25  ;;  %v14232_v30 = vpop.f32.mrb[214].mxu1 }
0x11c3   : > { %v5147_v46 = vmax.f32 %v5145_v15, %v14232_v30  ;;  %v14235_v51 = vpop.f32.mrb[215].mxu1 }
0x11c4   : > { %19253 = vst [vmem:[#allocation48_spill] sm:$0xff] %v14235_v51  ;;  %v5184_v63 = vmax.f32 %v5182_v7, %v14235_v51 }
0x11c8   : > { %v14238_v48 = vpop.f32.mrb[216].mxu1 }
0x11c9   : > { %v5148_v4 = vmax.f32 %v5146_v20, %v14238_v48  ;;  %v14241_v10 = vpop.f32.mrb[217].mxu1 }
0x11ca   : > { %19254 = vst [vmem:[#allocation11_spill] sm:$0xff] %v14241_v10  ;;  %v5185_v40 = vmax.f32 %v5183_v41, %v14241_v10  ;;  %v14244_v44 = vpop.f32.mrb[218].mxu1 }
0x11cb   : > { %v5149_v6 = vmax.f32 %v5147_v46, %v14244_v44  ;;  %v14247_v25 = vpop.f32.mrb[219].mxu1 }
0x11cc   : > { %19255 = vst [vmem:[#allocation54_spill] sm:$0xff] %v14247_v25  ;;  %v5186_v15 = vmax.f32 %v5184_v63, %v14247_v25 }
0x11d0   : > { %v14250_v36 = vpop.f32.mrb[220].mxu1 }
0x11d1   : > { %v5150_v7 = vmax.f32 %v5148_v4, %v14250_v36  ;;  %v14253_v51 = vpop.f32.mrb[221].mxu1 }
0x11d2   : > { %19256 = vst [vmem:[#allocation51_spill] sm:$0xff] %v14253_v51  ;;  %v5187_v20 = vmax.f32 %v5185_v40, %v14253_v51  ;;  %v14256_v34 = vpop.f32.mrb[222].mxu1 }
0x11d3   : > { %v5151_v41 = vmax.f32 %v5149_v6, %v14256_v34  ;;  %v14259_v10 = vpop.f32.mrb[223].mxu1 }
0x11d4   : > { %19257 = vst [vmem:[#allocation33_spill] sm:$0xff] %v14259_v10  ;;  %v5188_v46 = vmax.f32 %v5186_v15, %v14259_v10 }
0x11d8   : > { %v14262_v45 = vpop.f32.mrb[224].mxu1 }
0x11d9   : > { %v5152_v63 = vmax.f32 %v5150_v7, %v14262_v45  ;;  %v14265_v25 = vpop.f32.mrb[225].mxu1 }
0x11da   : > { %19258 = vst [vmem:[#allocation59_spill] sm:$0xff] %v14265_v25  ;;  %v5189_v4 = vmax.f32 %v5187_v20, %v14265_v25  ;;  %v14268_v43 = vpop.f32.mrb[226].mxu1 }
0x11db   : > { %v5153_v40 = vmax.f32 %v5151_v41, %v14268_v43  ;;  %v14271_v51 = vpop.f32.mrb[227].mxu1 }
0x11dc   : > { %19259 = vst [vmem:[#allocation31_spill] sm:$0xff] %v14271_v51  ;;  %v5190_v6 = vmax.f32 %v5188_v46, %v14271_v51 }
0x11dd   : > { %v5154_v15 = vmax.f32 %v5152_v63, %v5153_v40 }
0x11de   : > { %v5191_v10 = vmax.f32 %v5189_v4, %v5190_v6 }
0x11df   : > { %v5155_v18 = vrot.slane %v5154_v15, 4  ;;  %v14278_v26 = vpop.trf.xlu1 }
0x11e0   : > { %v5192_v7 = vrot.slane %v5191_v10, 4  ;;  %19262 = vst [vmem:[#allocation42_spill] sm:$0xff] %v14278_v26 }
0x11e1   : > { %v5156_v1 = vmax.f32 %v5154_v15, %v5155_v18 }
0x11e2   : > { %v5193_v55 = vmax.f32 %v5191_v10, %v5192_v7 }
0x11e3   : > { %v5157_v56 = vrot.slane %v5156_v1, 2 }
0x11e4   : > { %v5194_v20 = vrot.slane %v5193_v55, 2 }
0x11e5   : > { %v5158_v25 = vmax.f32 %v5156_v1, %v5157_v56  ;;  %v14310_v56 = vpop.trf.xlu0 }
0x11e6   : > { %v5195_v3 = vmax.f32 %v5193_v55, %v5194_v20  ;;  %19264 = vst [vmem:[#allocation4_spill] sm:$0xff] %v14310_v56 }
0x11e7   : > { %v5159_v35 = vrot.slane %v5158_v25, 1 }
0x11e8   : > { %v5196_v41 = vrot.slane %v5195_v3, 1 }
0x11e9   : > { %v14282_v22 = vmax.f32 %v5158_v25, %v5159_v35 }
0x11ea   : > { %v14284_v46 = vmax.f32 %v5195_v3, %v5196_v41 }
0x11eb   : > { %v5198_v63 = vsub.f32 %v14060_v37, %v14282_v22  ;;  %v5200_v10 = vsub.f32 %v14066_v31, %v14282_v22  ;;  %v5202_v18 = vsub.f32 %v14074_v33, %v14282_v22  ;;  %v5204_v1 = vsub.f32 %v14084_v24, %v14282_v22  ;;  %v19286_v33 = vld [vmem:[#allocation14_spill] sm:$0xff] }
0x11ec   : > { %v5206_v55 = vsub.f32 %v14097_v49, %v14282_v22  ;;  %v5208_v35 = vsub.f32 %v14103_v9, %v14282_v22  ;;  %v5210_v3 = vsub.f32 %v14109_v23, %v14282_v22  ;;  %v5212_v25 = vsub.f32 %v14115_v39, %v14282_v22  ;;  %v14356_v23 = vpop.trf.xlu0  ;;  %v19283_v49 = vld [vmem:[#allocation25_spill] sm:$0xff] }
0x11ed   : > { %v5214_v37 = vsub.f32 %v14121_v58, %v14282_v22  ;;  %v5216_v31 = vsub.f32 %v14127_v62, %v14282_v22  ;;  %v14320_v58 = vpop.trf.xlu1  ;;  %v5262_v62 = vmul.f32 1.442695, %v5198_v63  ;;  %v5266_v40 = vmul.f32 1.442695, %v5200_v10  ;;  %19266 = vst [vmem:[#allocation7_spill] sm:$0xff] %v14356_v23 }
0x11ee   : > { %19265 = vst [vmem:[#allocation5_spill] sm:$0xff] %v14320_v58  ;;  %v5270_v15 = vmul.f32 1.442695, %v5202_v18  ;;  %v5274_v20 = vmul.f32 1.442695, %v5204_v1  ;;  %v19274_v1 = vld [vmem:[#allocation38_spill] sm:$0xff]  ;;  %v19298_v26 = vsub.f32 %v14145_v42, %v14282_v22 }
0x11ef   : > { %9101 = vpow2.f32 %v5262_v62  ;;  %v5278_v41 = vmul.f32 1.442695, %v5206_v55  ;;  %v5282_v63 = vmul.f32 1.442695, %v5208_v35  ;;  %v5286_v4 = vmul.f32 1.442695, %v5210_v3 }
0x11f0   : > { %9103 = vpow2.f32 %v5266_v40  ;;  %v14362_v39 = vpop.trf.xlu0  ;;  %v5290_v6 = vmul.f32 1.442695, %v5212_v25  ;;  %v5294_v35 = vmul.f32 1.442695, %v5214_v37  ;;  %v19273_v55 = vld [vmem:[#allocation26_spill] sm:$0xff]  ;;  %v19276_v18 = vld [vmem:[#allocation36_spill] sm:$0xff] }
0x11f1   : > { %v14360_v9 = vpop.trf.xlu1  ;;  %9105 = vpow2.f32 %v5270_v15  ;;  %19268 = vst [vmem:[#allocation8_spill] sm:$0xff] %v14362_v39  ;;  %v5298_v25 = vmul.f32 1.442695, %v5216_v31  ;;  %v19279_v37 = vld [vmem:[#allocation24_spill] sm:$0xff]  ;;  %v19280_v3 = vld [vmem:[#allocation34_spill] sm:$0xff]  ;;  %v19281_v31 = vld [vmem:[#allocation13_spill] sm:$0xff]  ;;  %v19282_v39 = vsub.f32 %v14133_v29, %v14282_v22 }
0x11f2   : > { %19267 = vst [vmem:[#allocation9_spill] sm:$0xff] %v14360_v9  ;;  %9107 = vpow2.f32 %v5274_v20  ;;  %v19288_v29 = vld [vmem:[#allocation21_spill] sm:$0xff]  ;;  %v5310_v52 = vmul.f32 1.442695, %v19298_v26 }
0x11f3   : > { %9109 = vpow2.f32 %v5278_v41  ;;  %v5302_v23 = vmul.f32 1.442695, %v19282_v39  ;;  %v19304_v39 = vsub.f32 %v14151_v32, %v14282_v22  ;;  %v19308_v32 = vsub.f32 %v14169_v60, %v14282_v22 }
0x11f4   : > { %9111 = vpow2.f32 %v5282_v63  ;;  %v14382_v20 = vpop.trf.xlu0 }
0x11f5   : > { %v14364_v10 = vpop.trf.xlu1  ;;  %19271 = vst [vmem:[#allocation72_spill] sm:$0xff] %v14382_v20  ;;  %9113 = vpow2.f32 %v5286_v4  ;;  %v19277_v4 = vld [vmem:[#allocation63_spill] sm:$0xff] }
0x11f6   : > { %19269 = vst [vmem:[#allocation6_spill] sm:$0xff] %v14364_v10  ;;  %9115 = vpow2.f32 %v5290_v6  ;;  %v19284_v6 = vld [vmem:[#allocation39_spill] sm:$0xff] }
0x11f7   : > { %9117 = vpow2.f32 %v5294_v35  ;;  %v19287_v20 = vld [vmem:[#allocation27_spill] sm:$0xff]  ;;  %v19291_v35 = vld [vmem:[#allocation52_spill] sm:$0xff] }
0x11f8   : > { %v14432_v17 = vpop.trf.xlu0  ;;  %9119 = vpow2.f32 %v5298_v25  ;;  %v5314_v25 = vmul.f32 1.442695, %v19304_v39  ;;  %v5322_v39 = vmul.f32 1.442695, %v19308_v32 }
0x11f9   : > { %v14374_v40 = vpop.eup %9101  ;;  %v14392_v62 = vpop.trf.xlu1  ;;  %19292 = vst [vmem:[#allocation63_spill] sm:$0xff] %v14432_v17  ;;  %9121 = vpow2.f32 %v5302_v23 }
0x11fa   : > { %19270 = vst [vmem:[#allocation10_spill] sm:$0xff] %v14374_v40  ;;  %v14384_v41 = vpop.eup %9103  ;;  %19275 = vst [vmem:[#allocation26_spill] sm:$0xff] %v14392_v62  ;;  %v19290_v62 = vld [vmem:[#allocation55_spill] sm:$0xff] }
0x11fb   : > { %19272 = vst [vmem:[#allocation73_spill] sm:$0xff] %v14384_v41  ;;  %v5390_v15 = vadd.f32 %v14384_v41, %v14374_v40  ;;  %v14400_v24 = vpop.eup %9105  ;;  %v19299_v41 = vld [vmem:[#allocation54_spill] sm:$0xff]  ;;  %v19300_v40 = vld [vmem:[#allocation51_spill] sm:$0xff] }
0x11fc   : > { %19278 = vst [vmem:[#allocation38_spill] sm:$0xff] %v14400_v24  ;;  %v14416_v10 = vpop.eup %9107 }
0x11fd   : > { %v5391_v7 = vadd.f32 %v14400_v24, %v5390_v15  ;;  %19285 = vst [vmem:[#allocation36_spill] sm:$0xff] %v14416_v10  ;;  %v19289_v15 = vsub.f32 %v14139_v59, %v14282_v22  ;;  %v14434_v63 = vpop.eup %9109  ;;  %v19295_v24 = vld [vmem:[#allocation48_spill] sm:$0xff]  ;;  %v19301_v59 = vld [vmem:[#allocation33_spill] sm:$0xff] }
0x11fe   : > { %19293 = vst [vmem:[#allocation24_spill] sm:$0xff] %v14434_v63  ;;  %v14452_v9 = vpop.eup %9111 }
0x11ff   : > { %v5306_v58 = vmul.f32 1.442695, %v19289_v15  ;;  %v5392_v56 = vadd.f32 %v14416_v10, %v5391_v7  ;;  %v14442_v10 = vpop.trf.xlu1  ;;  %v19306_v15 = vsub.f32 %v14160_v5, %v14282_v22  ;;  %v19310_v5 = vsub.f32 %v14184_v38, %v14282_v22 }
0x1200   : > { %19297 = vst [vmem:[#allocation34_spill] sm:$0xff] %v14442_v10  ;;  %v19302_v10 = vld [vmem:[#allocation59_spill] sm:$0xff]  ;;  %v19315_v38 = vsub.f32 %v14190_v53, %v14282_v22  ;;  %v19319_v53 = vsub.f32 %v14088_v16, %v14284_v46  ;;  %v19325_v16 = vsub.f32 %v14208_v2, %v14282_v22 }
0x1201   : > { %v5393_v17 = vadd.f32 %v14434_v63, %v5392_v56  ;;  %v14461_v56 = vpop.eup %9113  ;;  %9123 = vpow2.f32 %v5306_v58  ;;  %v14467_v63 = vpop.trf.xlu0  ;;  %v5318_v42 = vmul.f32 1.442695, %v19306_v15  ;;  %v5330_v15 = vmul.f32 1.442695, %v19310_v5 }
0x1202   : > { %19303 = vst [vmem:[#allocation13_spill] sm:$0xff] %v14461_v56  ;;  %19305 = vst [vmem:[#allocation25_spill] sm:$0xff] %v14467_v63  ;;  %v14469_v7 = vpop.eup %9115  ;;  %9125 = vpow2.f32 %v5310_v52  ;;  %v19316_v5 = vsub.f32 %v14080_v27, %v14284_v46 }
0x1203   : > { %v5394_v26 = vadd.f32 %v14452_v9, %v5393_v17  ;;  %v14474_v51 = vpop.trf.xlu1  ;;  %v14477_v58 = vpop.eup %9117  ;;  %9127 = vpow2.f32 %v5314_v25  ;;  %v19311_v25 = vsub.f32 %v14062_v14, %v14284_v46 }
0x1204   : > { %19307 = vst [vmem:[#allocation39_spill] sm:$0xff] %v14474_v51  ;;  %9129 = vpow2.f32 %v5318_v42 }
0x1205   : > { %v5395_v23 = vadd.f32 %v14461_v56, %v5394_v26  ;;  %v19309_v26 = vsub.f32 %v14178_v54, %v14282_v22  ;;  %v14486_v56 = vpop.eup %9119  ;;  %v5264_v60 = vmul.f32 1.442695, %v19311_v25  ;;  %v14495_v32 = vpop.trf.xlu0  ;;  %9131 = vpow2.f32 %v5322_v39 }
0x1206   : > { %19312 = vst [vmem:[#allocation14_spill] sm:$0xff] %v14495_v32  ;;  %v14497_v51 = vpop.eup %9121  ;;  %v19313_v54 = vsub.f32 %v14070_v61, %v14284_v46  ;;  %v5272_v39 = vmul.f32 1.442695, %v19316_v5  ;;  %v19317_v61 = vsub.f32 %v14196_v28, %v14282_v22 }
0x1207   : > { %v5396_v17 = vadd.f32 %v14469_v7, %v5395_v23  ;;  %v5326_v63 = vmul.f32 1.442695, %v19309_v26  ;;  %v14502_v42 = vpop.trf.xlu1  ;;  %v5334_v26 = vmul.f32 1.442695, %v19315_v38 }
0x1208   : > { %19314 = vst [vmem:[#allocation27_spill] sm:$0xff] %v14502_v42  ;;  %v5338_v25 = vmul.f32 1.442695, %v19317_v61  ;;  %v19326_v61 = vld [vmem:[#allocation57_spill] sm:$0xff] }
0x1209   : > { %v5397_v52 = vadd.f32 %v14477_v58, %v5396_v17  ;;  %v5268_v17 = vmul.f32 1.442695, %v19313_v54  ;;  %9133 = vpow2.f32 %v5326_v63  ;;  %v14526_v5 = vpop.trf.xlu0 }
0x120a   : > { %9135 = vpow2.f32 %v5330_v15  ;;  %v19320_v15 = vsub.f32 %v14202_v12, %v14282_v22  ;;  %19321 = vst [vmem:[#allocation55_spill] sm:$0xff] %v14526_v5 }
0x120b   : > { %v5398_v23 = vadd.f32 %v14486_v56, %v5397_v52  ;;  %v14508_v14 = vpop.eup %9123  ;;  %9137 = vpow2.f32 %v5264_v60  ;;  %v19323_v60 = vsub.f32 %v14100_v19, %v14284_v46  ;;  %v19328_v19 = vsub.f32 %v14106_v8, %v14284_v46 }
0x120c   : > { %v14517_v63 = vpop.eup %9125  ;;  %9139 = vpow2.f32 %v5268_v17  ;;  %v5342_v27 = vmul.f32 1.442695, %v19320_v15  ;;  %v19331_v8 = vsub.f32 %v14220_v11, %v14282_v22  ;;  %v19335_v11 = vsub.f32 %v14226_v21, %v14282_v22 }
0x120d   : > { %v5399_v52 = vadd.f32 %v14497_v51, %v5398_v23  ;;  %19318 = vst [vmem:[#allocation21_spill] sm:$0xff] %v14517_v63  ;;  %v5276_v23 = vmul.f32 1.442695, %v19319_v53  ;;  %9141 = vpow2.f32 %v5334_v26  ;;  %v14528_v28 = vpop.eup %9127  ;;  %v5280_v17 = vmul.f32 1.442695, %v19323_v60 }
0x120e   : > { %19322 = vst [vmem:[#allocation52_spill] sm:$0xff] %v14528_v28  ;;  %9143 = vpow2.f32 %v5272_v39  ;;  %v5346_v26 = vmul.f32 1.442695, %v19325_v16  ;;  %v14543_v53 = vpop.eup %9129  ;;  %v5284_v39 = vmul.f32 1.442695, %v19328_v19 }
0x120f   : > { %v5400_v54 = vadd.f32 %v14508_v14, %v5399_v52  ;;  %9145 = vpow2.f32 %v5338_v25  ;;  %v19329_v25 = vsub.f32 %v14214_v47, %v14282_v22  ;;  %v14552_v60 = vpop.eup %9131 }
0x1210   : > { %9147 = vpow2.f32 %v5276_v23  ;;  %v5354_v23 = vmul.f32 1.442695, %v19331_v8 }
0x1211   : > { %v5401_v38 = vadd.f32 %v14517_v63, %v5400_v54  ;;  %9149 = vpow2.f32 %v5342_v27  ;;  %v5350_v15 = vmul.f32 1.442695, %v19329_v25  ;;  %v19333_v25 = vld [vmem:[#allocation44_spill] sm:$0xff] }
0x1212   : > { %9151 = vpow2.f32 %v5280_v17  ;;  %v19332_v17 = vsub.f32 %v14118_v0, %v14284_v46  ;;  %v19336_v0 = vsub.f32 %v14124_v57, %v14284_v46  ;;  %v19338_v57 = vsub.f32 %v14130_v13, %v14284_v46 }
0x1213   : > { %v5402_v12 = vadd.f32 %v14528_v28, %v5401_v38  ;;  %v19330_v38 = vsub.f32 %v14112_v50, %v14284_v46  ;;  %9153 = vpow2.f32 %v5346_v26  ;;  %v5358_v26 = vmul.f32 1.442695, %v19335_v11 }
0x1214   : > { %9155 = vpow2.f32 %v5284_v39  ;;  %v5296_v39 = vmul.f32 1.442695, %v19336_v0  ;;  %v19340_v13 = vsub.f32 %v19273_v55, %v14284_v46 }
0x1215   : > { %v5403_v2 = vadd.f32 %v14543_v53, %v5402_v12  ;;  %v5288_v16 = vmul.f32 1.442695, %v19330_v38  ;;  %v5292_v12 = vmul.f32 1.442695, %v19332_v17  ;;  %v19334_v38 = vld [vmem:[#allocation45_spill] sm:$0xff]  ;;  %9157 = vpow2.f32 %v5350_v15 }
0x1216   : > { %v19337_v15 = vsub.f32 %v14232_v30, %v14282_v22  ;;  %v19339_v30 = vsub.f32 %v14238_v48, %v14282_v22 }
0x1217   : > { %v5404_v27 = vadd.f32 %v14552_v60, %v5403_v2  ;;  %9159 = vpow2.f32 %v5288_v16  ;;  %v5300_v16 = vmul.f32 1.442695, %v19338_v57 }
0x1218   : > { %v14533_v52 = vpop.permute.xlu1 %4760  ;;  %9161 = vpow2.f32 %v5354_v23  ;;  %v5366_v23 = vmul.f32 1.442695, %v19339_v30 }
0x1219   : > { %19324 = vst [vmem:[#allocation48_spill] sm:$0xff] %v14533_v52  ;;  %v14541_v54 = vadd.f32 %v19326_v61, %v14533_v52  ;;  %v14557_v61 = vpop.eup %9133  ;;  %9163 = vpow2.f32 %v5292_v12  ;;  %v5304_v12 = vmul.f32 1.442695, %v19340_v13 }
0x121a   : > { %v14563_v19 = vpop.eup %9135  ;;  %v5405_v2 = vadd.f32 %v14557_v61, %v5404_v27  ;;  %9165 = vpow2.f32 %v5358_v26  ;;  %v19341_v26 = vsub.f32 %v14244_v44, %v14282_v22 }
0x121b   : > { %19327 = vst [vmem:[#allocation54_spill] sm:$0xff] %v14541_v54  ;;  %v14570_v5 = vpop.eup %9137  ;;  %9167 = vpow2.f32 %v5296_v39  ;;  %v19342_v39 = vsub.f32 %v19274_v1, %v14284_v46 }
0x121c   : > { %v14576_v8 = vpop.eup %9139  ;;  %v5406_v21 = vadd.f32 %v14563_v19, %v5405_v2 }
0x121d   : > { %v4667_v47 = vpop.permute.xlu0 %4666  ;;  %v14581_v32 = vpop.eup %9141  ;;  %v5427_v27 = vadd.f32 %v14576_v8, %v14570_v5 }
0x121e   : > { %v4734_v50 = vadd.f32 %v19333_v25, %v4667_v47  ;;  %v4736_v54 = vadd.f32 %v19334_v38, %v4667_v47  ;;  %v5362_v47 = vmul.f32 1.442695, %v19337_v15  ;;  %v14589_v38 = vpop.eup %9143 }
0x121f   : > { %v5428_v11 = vadd.f32 %v14589_v38, %v5427_v27 }
0x1220   : > { %v7145_v17 = vpack.c.bf16 %v4734_v50, %v4734_v50  ;;  %v7146_v25 = vpack.c.bf16 %v4736_v54, %v4736_v54  ;;  %v14594_v54 = vpop.eup %9145  ;;  %v5407_v50 = vadd.f32 %v14581_v32, %v5406_v21  ;;  %9169 = vpow2.f32 %v5362_v47 }
0x1221   : > { %v14601_v2 = vpop.eup %9147  ;;  %9171 = vpow2.f32 %v5300_v16  ;;  %v5308_v21 = vmul.f32 1.442695, %v19342_v39  ;;  %v19343_v47 = vsub.f32 %v14250_v36, %v14282_v22  ;;  %v19344_v16 = vsub.f32 %v19276_v18, %v14284_v46 }
0x1222   : > { %7149 = vxpose.xlu0.c.b16.start.end [1/1] (short) %v7145_v17, 128  ;;  %7165 = vxpose.xlu1.c.b16.start.end [1/1] (short) %v7146_v25, 128  ;;  %v14606_v0 = vpop.eup %9149  ;;  %v5370_v17 = vmul.f32 1.442695, %v19341_v26  ;;  %v5408_v48 = vadd.f32 %v14594_v54, %v5407_v50  ;;  %v5429_v25 = vadd.f32 %v14601_v2, %v5428_v11  ;;  %9173 = vpow2.f32 %v5366_v23 }
0x1223   : > { %v14613_v15 = vpop.eup %9151  ;;  %v5374_v27 = vmul.f32 1.442695, %v19343_v47  ;;  %9175 = vpow2.f32 %v5304_v12  ;;  %v5312_v50 = vmul.f32 1.442695, %v19344_v16  ;;  %v19345_v23 = vsub.f32 %v14256_v34, %v14282_v22 }
0x1224   : > { %v14618_v55 = vpop.eup %9153  ;;  %v5409_v44 = vadd.f32 %v14606_v0, %v5408_v48  ;;  %v5430_v57 = vadd.f32 %v14613_v15, %v5429_v25  ;;  %9177 = vpow2.f32 %v5370_v17  ;;  %v19346_v12 = vsub.f32 %v19277_v4, %v14284_v46 }
0x1225   : > { %v14625_v30 = vpop.eup %9155  ;;  %v5378_v11 = vmul.f32 1.442695, %v19345_v23  ;;  %9179 = vpow2.f32 %v5308_v21  ;;  %v19347_v17 = vsub.f32 %v14262_v45, %v14282_v22  ;;  %v19348_v21 = vsub.f32 %v19279_v37, %v14284_v46 }
0x1226   : > { %v14630_v1 = vpop.eup %9157  ;;  %v5410_v36 = vadd.f32 %v14618_v55, %v5409_v44  ;;  %v5431_v13 = vadd.f32 %v14625_v30, %v5430_v57  ;;  %v5316_v48 = vmul.f32 1.442695, %v19346_v12  ;;  %9181 = vpow2.f32 %v5374_v27 }
0x1227   : > { %v14637_v26 = vpop.eup %9159  ;;  %v5382_v25 = vmul.f32 1.442695, %v19347_v17  ;;  %9183 = vpow2.f32 %v5312_v50  ;;  %v5320_v44 = vmul.f32 1.442695, %v19348_v21  ;;  %v19349_v27 = vsub.f32 %v14268_v43, %v14282_v22 }
0x1228   : > { %v14642_v18 = vpop.eup %9161  ;;  %v5411_v34 = vadd.f32 %v14630_v1, %v5410_v36  ;;  %v5432_v39 = vadd.f32 %v14637_v26, %v5431_v13  ;;  %9185 = vpow2.f32 %v5378_v11  ;;  %v19350_v50 = vsub.f32 %v19280_v3, %v14284_v46 }
0x1229   : > { %v14649_v47 = vpop.eup %9163  ;;  %v5386_v57 = vmul.f32 1.442695, %v19349_v27  ;;  %9187 = vpow2.f32 %v5316_v48  ;;  %v19351_v43 = vsub.f32 %v19281_v31, %v14284_v46 }
0x122a   : > { %v14654_v4 = vpop.eup %9165  ;;  %v5412_v45 = vadd.f32 %v14642_v18, %v5411_v34  ;;  %v5433_v16 = vadd.f32 %v14649_v47, %v5432_v39  ;;  %v5324_v36 = vmul.f32 1.442695, %v19350_v50  ;;  %9189 = vpow2.f32 %v5382_v25 }
0x122b   : > { %v14661_v23 = vpop.eup %9167  ;;  %9191 = vpow2.f32 %v5320_v44  ;;  %v5328_v12 = vmul.f32 1.442695, %v19351_v43  ;;  %v19352_v25 = vsub.f32 %v19283_v49, %v14284_v46 }
0x122c   : > { %v14666_v37 = vpop.eup %9169  ;;  %v5413_v11 = vadd.f32 %v14654_v4, %v5412_v45  ;;  %v5434_v13 = vadd.f32 %v14661_v23, %v5433_v16  ;;  %9193 = vpow2.f32 %v5386_v57  ;;  %v19353_v57 = vsub.f32 %v19284_v6, %v14284_v46 }
0x122d   : > { %v14670_v22 = vpop.eup %9171  ;;  %9195 = vpow2.f32 %v5324_v36  ;;  %v5332_v39 = vmul.f32 1.442695, %v19352_v25 }
0x122e   : > { %v14675_v17 = vpop.eup %9173  ;;  %v5414_v3 = vadd.f32 %v14666_v37, %v5413_v11  ;;  %v5435_v48 = vadd.f32 %v14670_v22, %v5434_v13  ;;  %9197 = vpow2.f32 %v5328_v12  ;;  %v5336_v45 = vmul.f32 1.442695, %v19353_v57 }
0x122f   : > { %v14679_v34 = vpop.eup %9175  ;;  %9199 = vpow2.f32 %v5332_v39  ;;  %v19354_v11 = vsub.f32 %v19286_v33, %v14284_v46  ;;  %v19357_v57 = vsub.f32 %v19288_v29, %v14284_v46  ;;  %v19359_v29 = vsub.f32 %v19291_v35, %v14284_v46 }
0x1230   : > { %v14684_v21 = vpop.eup %9177  ;;  %v5415_v44 = vadd.f32 %v14675_v17, %v5414_v3  ;;  %v5436_v31 = vadd.f32 %v14679_v34, %v5435_v48  ;;  %9201 = vpow2.f32 %v5336_v45  ;;  %v19356_v48 = vsub.f32 %v19287_v20, %v14284_v46 }
0x1231   : > { %v14688_v27 = vpop.eup %9179  ;;  %v5340_v13 = vmul.f32 1.442695, %v19354_v11  ;;  %v19362_v35 = vsub.f32 %v19295_v24, %v14284_v46  ;;  %v8383_v24 = vld [vmem:[%s17982_s10 + $0x38] sm:$0xff] }
0x1232   : > { %v14693_v16 = vpop.eup %9181  ;;  %v5416_v50 = vadd.f32 %v14684_v21, %v5415_v44  ;;  %v5437_v49 = vadd.f32 %v14688_v27, %v5436_v31  ;;  %v5344_v25 = vmul.f32 1.442695, %v19356_v48 }
0x1233   : > { %v14697_v36 = vpop.eup %9183  ;;  %9203 = vpow2.f32 %v5340_v13 }
0x1234   : > { %v14702_v43 = vpop.eup %9185  ;;  %v5417_v12 = vadd.f32 %v14693_v16, %v5416_v50  ;;  %v5438_v6 = vadd.f32 %v14697_v36, %v5437_v49  ;;  %v5348_v50 = vmul.f32 1.442695, %v19357_v57  ;;  %9205 = vpow2.f32 %v5344_v25  ;;  %v8460_v25 = vld [vmem:[%s17984_s12 + $0x20] sm:$0xff] }
0x1235   : > { %v14706_v3 = vpop.eup %9187 }
0x1236   : > { %19355 = vst [vmem:[#allocation51_spill] sm:$0xff] %v14706_v3  ;;  %v14711_v44 = vpop.eup %9189  ;;  %v5418_v39 = vadd.f32 %v14702_v43, %v5417_v12  ;;  %v5439_v33 = vadd.f32 %v14706_v3, %v5438_v6  ;;  %v19358_v12 = vsub.f32 %v19290_v62, %v14284_v46  ;;  %9207 = vpow2.f32 %v5348_v50 }
0x1237   : > { %v14715_v31 = vpop.eup %9191 }
0x1238   : > { %v14720_v49 = vpop.eup %9193  ;;  %v5419_v45 = vadd.f32 %v14711_v44, %v5418_v39  ;;  %v5440_v20 = vadd.f32 %v14715_v31, %v5439_v33  ;;  %v5352_v6 = vmul.f32 1.442695, %v19358_v12  ;;  %v5356_v39 = vmul.f32 1.442695, %v19359_v29 }
0x1239   : > { %v14724_v11 = vpop.eup %9195 }
0x123a   : > { %v5420_v48 = vadd.f32 %v14720_v49, %v5419_v45  ;;  %v5441_v13 = vadd.f32 %v14724_v11, %v5440_v20  ;;  %v14731_v42 = vpop.eup %9197  ;;  %9209 = vpow2.f32 %v5352_v6  ;;  %v19360_v45 = vld [vmem:[#allocation50_spill] sm:$0xff]  ;;  %v8462_v6 = vld [vmem:[%s17984_s12 + $0x30] sm:$0xff] }
0x123b   : > { %v14740_v62 = vpop.eup %9199  ;;  %v19361_v20 = vsub.f32 %v19360_v45, %v14284_v46  ;;  %9211 = vpow2.f32 %v5356_v39 }
0x123c   : > { %v5421_v57 = vrot.slane %v5420_v48, 4  ;;  %v5442_v33 = vadd.f32 %v14731_v42, %v5441_v13  ;;  %v14746_v28 = vpop.eup %9201  ;;  %v5364_v13 = vmul.f32 1.442695, %v19362_v35 }
0x123d   : > { %v5360_v12 = vmul.f32 1.442695, %v19361_v20  ;;  %v14755_v45 = vpop.eup %9203 }
0x123e   : > { %v5422_v52 = vadd.f32 %v5421_v57, %v5420_v48  ;;  %v5443_v50 = vadd.f32 %v14740_v62, %v5442_v33  ;;  %v19363_v48 = vld [vmem:[#allocation11_spill] sm:$0xff]  ;;  %v14764_v20 = vpop.eup %9205 }
0x123f   : > { %9213 = vpow2.f32 %v5360_v12  ;;  %v19364_v57 = vsub.f32 %v19363_v48, %v14284_v46 }
0x1240   : > { %v5423_v29 = vrot.slane %v5422_v52, 2  ;;  %v5444_v63 = vadd.f32 %v14746_v28, %v5443_v50  ;;  %9215 = vpow2.f32 %v5364_v13  ;;  %v19365_v50 = vsub.f32 %v19299_v41, %v14284_v46  ;;  %v14770_v48 = vpop.eup %9207 }
0x1241   : > { %v5368_v33 = vmul.f32 1.442695, %v19364_v57  ;;  %v19367_v41 = vsub.f32 %v19301_v59, %v14284_v46  ;;  %v8463_v59 = vld [vmem:[%s17984_s12 + $0x38] sm:$0xff] }
0x1242   : > { %7933 = vperm.xlu1 %8514, %v8460_v25   ;;  %v5424_v39 = vadd.f32 %v5423_v29, %v5422_v52  ;;  %v5445_v25 = vadd.f32 %v14755_v45, %v5444_v63  ;;  %v5372_v35 = vmul.f32 1.442695, %v19365_v50  ;;  %v19366_v52 = vsub.f32 %v19300_v40, %v14284_v46  ;;  %v8461_v63 = vld [vmem:[%s17984_s12 + $0x28] sm:$0xff] }
0x1243   : > { %9217 = vpow2.f32 %v5368_v33  ;;  %v5380_v13 = vmul.f32 1.442695, %v19367_v41  ;;  %v19368_v40 = vsub.f32 %v19302_v10, %v14284_v46 }
0x1244   : > { %v5425_v12 = vrot.slane %v5424_v39, 1  ;;  %v5446_v3 = vadd.f32 %v14764_v20, %v5445_v25  ;;  %v5376_v29 = vmul.f32 1.442695, %v19366_v52  ;;  %v14782_v57 = vpop.eup %9209  ;;  %9219 = vpow2.f32 %v5372_v35 }
0x1245   : > { %v14785_v25 = vpop.eup %9211  ;;  %v5384_v50 = vmul.f32 1.442695, %v19368_v40 }
0x1246   : > { %7943 = vperm.xlu1 %8514, %v8462_v6   ;;  %v5447_v6 = vadd.f32 %v14770_v48, %v5446_v3  ;;  %9221 = vpow2.f32 %v5376_v29 }
0x1247   : > { %4765 = vperm.xlu0 %8512, %v8383_v24   ;;  %v5426_v24 = vadd.f32 %v5425_v12, %v5424_v39  ;;  %9223 = vpow2.f32 %v5380_v13  ;;  %v19369_v39 = vld [vmem:[#allocation31_spill] sm:$0xff] }
0x1248   : > { %v5448_v33 = vadd.f32 %v14782_v57, %v5447_v6  ;;  %v19370_v35 = vsub.f32 %v19369_v39, %v14284_v46 }
0x1249   : > { %v14794_v52 = vpop.eup %9213  ;;  %9225 = vrcp.f32 %v5426_v24 }
0x124a   : > { %v5449_v3 = vadd.f32 %v14785_v25, %v5448_v33  ;;  %v5388_v12 = vmul.f32 1.442695, %v19370_v35  ;;  %9227 = vpow2.f32 %v5384_v50 }
0x124b   : > { %7938 = vperm.xlu0 %8512, %v8461_v63   ;;  %v14800_v63 = vpop.eup %9215 }
0x124c   : > { %v5450_v29 = vadd.f32 %v14794_v52, %v5449_v3  ;;  %9229 = vpow2.f32 %v5388_v12 }
0x124d   : > { %v14803_v41 = vpop.eup %9217 }
0x124e   : > { %v5451_v10 = vadd.f32 %v14800_v63, %v5450_v29  ;;  %v14806_v6 = vpop.eup %9219 }
0x124f   : > { %7948 = vperm.xlu0 %8512, %v8463_v59  }
0x1250   : > { %v5452_v13 = vadd.f32 %v14803_v41, %v5451_v10  ;;  %v14809_v33 = vpop.eup %9221 }
0x1251   : > { %v14811_v46 = vpop.eup %9223 }
0x1252   : > { %v5453_v24 = vadd.f32 %v14806_v6, %v5452_v13 }
0x1253   : > { %v14814_v59 = vpop.eup %9225 }
0x1254   : > { %v5454_v40 = vadd.f32 %v14809_v33, %v5453_v24  ;;  %v14817_v3 = vpop.eup %9227  ;;  %v14822_v35 = vmul.f32 %v14814_v59, %v14543_v53  ;;  %v14826_v12 = vmul.f32 %v14814_v59, %v14552_v60  ;;  %v14832_v10 = vmul.f32 %v14814_v59, %v14557_v61 }
0x1255   : > { %v14836_v13 = vmul.f32 %v14814_v59, %v14563_v19  ;;  %v14847_v60 = vmul.f32 %v14814_v59, %v14594_v54  ;;  %v14853_v19 = vmul.f32 %v14814_v59, %v14606_v0  ;;  %v14867_v53 = vmul.f32 %v14814_v59, %v14642_v18 }
0x1256   : > { %v5455_v50 = vadd.f32 %v14811_v46, %v5454_v40  ;;  %v14828_v29 = vpop.eup %9229  ;;  %v14843_v40 = vmul.f32 %v14814_v59, %v14581_v32  ;;  %v14871_v0 = vmul.f32 %v14814_v59, %v14654_v4  ;;  %v14877_v61 = vmul.f32 %v14814_v59, %v14666_v37 }
0x1257   : > { %v14885_v54 = vmul.f32 %v14814_v59, %v14684_v21  ;;  %v14895_v37 = vmul.f32 %v14814_v59, %v14702_v43  ;;  %v14903_v21 = vmul.f32 %v14814_v59, %v14711_v44  ;;  %v19384_v43 = vld [vmem:[#allocation36_spill] sm:$0xff] }
0x1258   : > { %v5456_v39 = vadd.f32 %v14817_v3, %v5455_v50  ;;  %19371 = vst [vmem:[#allocation33_spill] sm:$0xff] %v14843_v40  ;;  %v14857_v50 = vmul.f32 %v14814_v59, %v14618_v55  ;;  %19373 = vst [vmem:[#allocation57_spill] sm:$0xff] %v14871_v0  ;;  %v14891_v40 = vmul.f32 %v14814_v59, %v14693_v16 }
0x1259   : > { %19374 = vst [vmem:[#allocation44_spill] sm:$0xff] %v14877_v61  ;;  %19376 = vst [vmem:[#allocation50_spill] sm:$0xff] %v14885_v54  ;;  %v14913_v61 = vpop.f32.mrb[186].mxu0  ;;  %v19382_v54 = vld [vmem:[#allocation73_spill] sm:$0xff] }
0x125a   : > { %v5457_v24 = vadd.f32 %v14828_v29, %v5456_v39  ;;  %v14861_v39 = vmul.f32 %v14814_v59, %v14630_v1  ;;  %v14881_v1 = vmul.f32 %v14814_v59, %v14675_v17  ;;  %19377 = vst [vmem:[#allocation11_spill] sm:$0xff] %v14891_v40  ;;  %19378 = vst [vmem:[#allocation31_spill] sm:$0xff] %v14903_v21  ;;  %v14915_v55 = vpop.f32.mrb[187].mxu0 }
0x125b   : > { %19379 = vst [vmem:[#allocation74_spill] sm:$0xff] %v14913_v61  ;;  %19380 = vst [vmem:[#allocation75_spill] sm:$0xff] %v14915_v55  ;;  %v19385_v55 = vld [vmem:[#allocation24_spill] sm:$0xff]  ;;  %v19386_v61 = vld [vmem:[#allocation13_spill] sm:$0xff] }
0x125c   : > { %19372 = vst [vmem:[#allocation59_spill] sm:$0xff] %v14861_v39  ;;  %v5458_v32 = vrot.slane %v5457_v24, 4  ;;  %19375 = vst [vmem:[#allocation45_spill] sm:$0xff] %v14881_v1  ;;  %v19381_v1 = vld [vmem:[#allocation10_spill] sm:$0xff]  ;;  %v5468_v39 = vmul.f32 %v14814_v59, %v19382_v54 }
0x125e   : > { %v5459_v18 = vadd.f32 %v5458_v32, %v5457_v24  ;;  %v14907_v24 = vmul.f32 %v14814_v59, %v14720_v49  ;;  %v5466_v49 = vmul.f32 %v14814_v59, %v19381_v1  ;;  %v19383_v32 = vld [vmem:[#allocation38_spill] sm:$0xff] }
0x125f   : > { %v5470_v40 = vmul.f32 %v14814_v59, %v19383_v32 }
0x1260   : > { %v5460_v16 = vrot.slane %v5459_v18, 2 }
0x1262   : > { %v5461_v4 = vadd.f32 %v5460_v16, %v5459_v18  ;;  %v5472_v18 = vmul.f32 %v14814_v59, %v19384_v43  ;;  %v5530_v43 = vpack.c.bf16 %v5468_v39, %v5466_v49 }
0x1264   : > { %v5462_v17 = vrot.slane %v5461_v4, 1 }
0x1266   : > { %v5463_v0 = vadd.f32 %v5462_v17, %v5461_v4 }
0x1268   : > { %9231 = vrcp.f32 %v5463_v0 }
0x1272   : > { %v14917_v44 = vpop.eup %9231 }
0x1273   : > { %v5467_v4 = vmul.f32 %v14917_v44, %v14570_v5  ;;  %v5469_v0 = vmul.f32 %v14917_v44, %v14576_v8  ;;  %v5471_v17 = vmul.f32 %v14917_v44, %v14589_v38  ;;  %v5473_v1 = vmul.f32 %v14917_v44, %v14601_v2 }
0x1274   : > { %v5475_v54 = vmul.f32 %v14917_v44, %v14613_v15  ;;  %v5477_v32 = vmul.f32 %v14917_v44, %v14625_v30  ;;  %v5474_v5 = vmul.f32 %v14814_v59, %v19385_v55  ;;  %v5476_v8 = vmul.f32 %v14814_v59, %v14452_v9 }
0x1275   : > { %v5531_v16 = vpack.c.bf16 %v5469_v0, %v5467_v4  ;;  %v5478_v38 = vmul.f32 %v14814_v59, %v19386_v61  ;;  %v5533_v21 = vpack.c.bf16 %v5473_v1, %v5471_v17  ;;  %v5532_v2 = vpack.c.bf16 %v5472_v18, %v5470_v40 }
0x1276   : > { %v5479_v4 = vmul.f32 %v14917_v44, %v14637_v26  ;;  %v14949_v15 = vmul.f32 %v14917_v44, %v14715_v31  ;;  %v5481_v30 = vmul.f32 %v14917_v44, %v14649_v47  ;;  %v5497_v9 = vmul.f32 %v14917_v44, %v14724_v11 }
0x1277   : > { %5562 = vmatprep.subr.bf16.mxu0 %v5531_v16  ;;  %v14957_v61 = vmul.f32 %v14917_v44, %v14731_v42  ;;  %v5501_v40 = vmul.f32 %v14917_v44, %v14740_v62  ;;  %v5535_v26 = vpack.c.bf16 %v5477_v32, %v5475_v54  ;;  %v5503_v31 = vmul.f32 %v14917_v44, %v14746_v28 }
0x1278   : > { %5563 = vmatpush1.bf16.msra.mxu0 %v5530_v43  ;;  %v5505_v39 = vmul.f32 %v14917_v44, %v14755_v45  ;;  %v5507_v47 = vmul.f32 %v14917_v44, %v14764_v20  ;;  %v5545_v11 = vpack.c.bf16 %v5497_v9, %v14949_v15  ;;  %v5509_v42 = vmul.f32 %v14917_v44, %v14770_v48 }
0x1279   : > { %5564 = vmatprep.subr.bf16.mxu0 %v5533_v21  ;;  %v5547_v55 = vpack.c.bf16 %v5501_v40, %v14957_v61  ;;  %v5511_v62 = vmul.f32 %v14917_v44, %v14782_v57  ;;  %v5513_v28 = vmul.f32 %v14917_v44, %v14785_v25  ;;  %v5515_v45 = vmul.f32 %v14917_v44, %v14794_v52 }
0x127a   : > { %v5549_v21 = vpack.c.bf16 %v5505_v39, %v5503_v31  ;;  %v5517_v20 = vmul.f32 %v14917_v44, %v14800_v63  ;;  %v5551_v49 = vpack.c.bf16 %v5509_v42, %v5507_v47  ;;  %v5519_v18 = vmul.f32 %v14917_v44, %v14803_v41  ;;  %v19402_v47 = vld [vmem:[#allocation57_spill] sm:$0xff] }
0x127b   : > { %v5521_v48 = vmul.f32 %v14917_v44, %v14806_v6  ;;  %v5523_v57 = vmul.f32 %v14917_v44, %v14809_v33  ;;  %v5553_v0 = vpack.c.bf16 %v5513_v28, %v5511_v62  ;;  %v5525_v52 = vmul.f32 %v14917_v44, %v14811_v46  ;;  %v19406_v62 = vld [vmem:[#allocation53_spill] sm:$0xff] }
0x127c   : > { %5565 = vmatpush1.bf16.msra.mxu0 %v5532_v2  ;;  %v5555_v25 = vpack.c.bf16 %v5517_v20, %v5515_v45  ;;  %v5527_v63 = vmul.f32 %v14917_v44, %v14817_v3  ;;  %v5534_v17 = vpack.c.bf16 %v5476_v8, %v5474_v5  ;;  %v5480_v1 = vmul.f32 %v14814_v59, %v14469_v7  ;;  %v19387_v2 = vld [vmem:[#allocation51_spill] sm:$0xff]  ;;  %v19409_v28 = vld [vmem:[#allocation45_spill] sm:$0xff] }
0x127d   : > { %5566 = vmatprep.subr.bf16.mxu0 %v5535_v26  ;;  %v5557_v41 = vpack.c.bf16 %v5521_v48, %v5519_v18  ;;  %v5529_v6 = vmul.f32 %v14917_v44, %v14828_v29  ;;  %v5537_v16 = vpack.c.bf16 %v5481_v30, %v5479_v4  ;;  %v5483_v33 = vmul.f32 %v14917_v44, %v14661_v23  ;;  %v19389_v30 = vld [vmem:[#allocation52_spill] sm:$0xff] }
0x127e   : > { %v5485_v54 = vmul.f32 %v14917_v44, %v14670_v22  ;;  %v5559_v32 = vpack.c.bf16 %v5525_v52, %v5523_v57  ;;  %v5536_v3 = vpack.c.bf16 %v5480_v1, %v5478_v38  ;;  %v5482_v43 = vmul.f32 %v14814_v59, %v14477_v58 }
0x127f   : > { %v5561_v46 = vpack.c.bf16 %v5529_v6, %v5527_v63  ;;  %v5484_v7 = vmul.f32 %v14814_v59, %v14486_v56  ;;  %v5487_v29 = vmul.f32 %v14917_v44, %v14679_v34  ;;  %v5489_v23 = vmul.f32 %v14917_v44, %v14688_v27  ;;  %v19388_v27 = vld [vmem:[#allocation21_spill] sm:$0xff] }
0x1280   : > { %5567 = vmatpush1.bf16.msra.mxu0 %v5534_v17  ;;  %v5539_v5 = vpack.c.bf16 %v5485_v54, %v5483_v33  ;;  %v5486_v8 = vmul.f32 %v14814_v59, %v14497_v51  ;;  %v5488_v38 = vmul.f32 %v14814_v59, %v14508_v14  ;;  %v5491_v56 = vmul.f32 %v14917_v44, %v14697_v36  ;;  %v19416_v63 = vld [vmem:[#allocation41_spill] sm:$0xff]  ;;  %v19422_v33 = vld [vmem:[#allocation74_spill] sm:$0xff] }
0x1281   : > { %5568 = vmatprep.subr.bf16.mxu0 %v5537_v16  ;;  %v5538_v22 = vpack.c.bf16 %v5484_v7, %v5482_v43  ;;  %v5541_v58 = vpack.c.bf16 %v5489_v23, %v5487_v29  ;;  %v5493_v4 = vmul.f32 %v14917_v44, %v19387_v2  ;;  %v5490_v15 = vmul.f32 %v14814_v59, %v19388_v27  ;;  %v19420_v16 = vld [vmem:[#allocation19_spill] sm:$0xff]  ;;  %v19428_v7 = vld [vmem:[#allocation60_spill] sm:$0xff]  ;;  %v19431_v23 = vld [vmem:[#allocation46_spill] sm:$0xff] }
0x1282   : > { %v5540_v34 = vpack.c.bf16 %v5488_v38, %v5486_v8  ;;  %v5492_v9 = vmul.f32 %v14814_v59, %v19389_v30  ;;  %v19391_v36 = vpack.c.bf16 %v14826_v12, %v14822_v35  ;;  %v19392_v44 = vpack.c.bf16 %v14836_v13, %v14832_v10  ;;  %v19394_v59 = vld [vmem:[#allocation33_spill] sm:$0xff]  ;;  %v19398_v35 = vld [vmem:[#allocation59_spill] sm:$0xff]  ;;  %v19401_v13 = vld [vmem:[#allocation44_spill] sm:$0xff] }
0x1283   : > { %v5543_v51 = vpack.c.bf16 %v5493_v4, %v5491_v56  ;;  %v19395_v26 = vpack.c.bf16 %v14847_v60, %v19394_v59  ;;  %v19397_v39 = vpack.c.bf16 %v14857_v50, %v14853_v19  ;;  %v19399_v12 = vpack.c.bf16 %v14867_v53, %v19398_v35  ;;  %v19404_v60 = vld [vmem:[#allocation47_spill] sm:$0xff]  ;;  %v19430_v29 = vld [vmem:[#allocation32_spill] sm:$0xff]  ;;  %v19433_v8 = vld [vmem:[#allocation62_spill] sm:$0xff] }
0x1284   : > { %5569 = vmatpush1.bf16.msra.mxu0 %v5536_v3  ;;  %v5542_v14 = vpack.c.bf16 %v5492_v9, %v5490_v15  ;;  %v4627_v19 = vadd.f32 %v19406_v62, %v19404_v60  ;;  %v4843_v17 = vpack.c.bf16 %v19416_v63, %v19416_v63  ;;  %v19426_v3 = vld [vmem:[#allocation37_spill] sm:$0xff]  ;;  %v19427_v43 = vld [vmem:[#allocation71_spill] sm:$0xff]  ;;  %v19437_v2 = vld [vmem:[#allocation28_spill] sm:$0xff] }
0x1285   : > { %5570 = vmatprep.subr.bf16.mxu0 %v5539_v5  ;;  %v19429_v5 = vld [vmem:[#allocation18_spill] sm:$0xff]  ;;  %v19434_v38 = vld [vmem:[#allocation29_spill] sm:$0xff]  ;;  %v19438_v4 = vld [vmem:[#allocation48_spill] sm:$0xff] }
0x1286   : > { %v5606_v20 = vmul.f32 0.35355338, %v4627_v19  ;;  %v19436_v56 = vld [vmem:[#allocation17_spill] sm:$0xff]  ;;  %v19440_v30 = vld [vmem:[#allocation30_spill] sm:$0xff] }
0x1288   : > { %5571 = vmatpush1.bf16.msra.mxu0 %v5538_v22  ;;  %v15017_v61 = vpop.trf.xlu0  ;;  %v19432_v22 = vld [vmem:[#allocation49_spill] sm:$0xff] }
0x1289   : > { %5572 = vmatprep.subr.bf16.mxu0 %v5541_v58  ;;  %19390 = vst [vmem:[#allocation10_spill] sm:$0xff] %v15017_v61  ;;  %v19435_v58 = vld [vmem:[#allocation70_spill] sm:$0xff] }
0x128c   : > { %5573 = vmatpush1.bf16.msra.mxu0 %v5540_v34  ;;  %v15025_v40 = vpop.trf.xlu0  ;;  %v19439_v34 = vld [vmem:[#allocation68_spill] sm:$0xff] }
0x128d   : > { %5574 = vmatprep.subr.bf16.mxu0 %v5543_v51  ;;  %19393 = vst [vmem:[#allocation73_spill] sm:$0xff] %v15025_v40  ;;  %v4831_v27 = vadd.f32 %v19439_v34, %v19438_v4 }
0x128f   : > { %v6380_v15 = vpack.c.bf16 %v4831_v27, %v4831_v27 }
0x1290   : > { %5575 = vmatpush1.bf16.msra.mxu0 %v5542_v14  ;;  %v15030_v31 = vpop.trf.xlu0 }
0x1291   : > { %5576 = vmatprep.subr.bf16.mxu0 %v5545_v11  ;;  %19396 = vst [vmem:[#allocation38_spill] sm:$0xff] %v15030_v31  ;;  %v19403_v11 = vpack.c.bf16 %v19401_v13, %v19402_v47 }
0x1294   : > { %5577 = vmatpush1.bf16.msra.mxu0 %v19391_v36  ;;  %v15038_v10 = vpop.trf.xlu0 }
0x1295   : > { %5578 = vmatprep.subr.bf16.mxu0 %v5547_v55  ;;  %19400 = vst [vmem:[#allocation36_spill] sm:$0xff] %v15038_v10  ;;  %v19405_v55 = vld [vmem:[#allocation61_spill] sm:$0xff] }
0x1296   : > { %v4625_v42 = vadd.f32 %v19405_v55, %v19404_v60 }
0x1298   : > { %5579 = vmatpush1.bf16.msra.mxu0 %v19392_v44  ;;  %v15047_v50 = vpop.trf.xlu0  ;;  %v5605_v45 = vmul.f32 0.35355338, %v4625_v42 }
0x1299   : > { %5580 = vmatprep.subr.bf16.mxu0 %v5549_v21  ;;  %19407 = vst [vmem:[#allocation24_spill] sm:$0xff] %v15047_v50  ;;  %v19408_v21 = vld [vmem:[#allocation50_spill] sm:$0xff] }
0x129a   : > { %v19410_v53 = vpack.c.bf16 %v19408_v21, %v19409_v28  ;;  %v5607_v57 = vpack.c.bf16 %v5605_v45, %v5605_v45 }
0x129c   : > { %5581 = vmatpush1.bf16.msra.mxu0 %v19395_v26  ;;  %v15055_v48 = vpop.trf.xlu0  ;;  %v5694_v1 = vsel %vm1280_vm1, %v5607_v57, 0 }
0x129d   : > { %5582 = vmatprep.subr.bf16.mxu0 %v5551_v49  ;;  %v19411_v49 = vld [vmem:[#allocation11_spill] sm:$0xff]  ;;  %19413 = vst [vmem:[#allocation13_spill] sm:$0xff] %v15055_v48 }
0x129e   : > { %v19412_v18 = vpack.c.bf16 %v14895_v37, %v19411_v49  ;;  %v19418_v37 = vmov 0  }
0x12a0   : > { %5583 = vmatpush1.bf16.msra.mxu0 %v19397_v39 }
0x12a1   : > { %5584 = vmatprep.subr.bf16.mxu0 %v5553_v0  ;;  %v5608_v0 = vpack.c.bf16 %v5606_v20, %v5606_v20 }
0x12a4   : > { %5585 = vmatpush1.bf16.msra.mxu0 %v19399_v12 }
0x12a5   : > { %5586 = vmatprep.subr.bf16.mxu0 %v5555_v25  ;;  %v19414_v25 = vld [vmem:[#allocation31_spill] sm:$0xff] }
0x12a6   : > { %v19415_v52 = vpack.c.bf16 %v14907_v24, %v19414_v25 }
0x12a8   : > { %5587 = vmatpush1.bf16.msra.mxu0 %v19403_v11 }
0x12a9   : > { %5588 = vmatprep.subr.bf16.mxu0 %v5557_v41  ;;  %v15064_v41 = vpop.trf.xlu0 }
0x12aa   : > { %19417 = vst [vmem:[#allocation51_spill] sm:$0xff] %v15064_v41 }
0x12ac   : > { %5589 = vmatpush1.bf16.msra.mxu0 %v19410_v53 }
0x12ad   : > { %5590 = vmatprep.subr.bf16.mxu0 %v5559_v32  ;;  %v15067_v6 = vpop.trf.xlu0  ;;  %v19424_v32 = vld [vmem:[#allocation35_spill] sm:$0xff] }
0x12ae   : > { %19419 = vst [vmem:[#allocation21_spill] sm:$0xff] %v15067_v6 }
0x12b0   : > { %5591 = vmatpush1.bf16.msra.mxu0 %v19412_v18 }
0x12b1   : > { %5592 = vmatprep.subr.bf16.mxu0 %v5561_v46  ;;  %v19425_v46 = vld [vmem:[#allocation23_spill] sm:$0xff] }
0x12b4   : > { %5593 = vmatpush1.bf16.msra.mxu0 %v19415_v52 }
0x12b5   : > { %8405 = vmatprep.subr.msk.bf16.mxu0 %vm1280_vm1, %v5608_v0 }
0x12b7   : > { %5595 = vmatmul.mubr.bf16.vlgmr.msra.gmra.mrb[188].mxu0 %v4843_v17 }
0x12b8   : > { %5700 = vmatpush1.bf16.msra.mxu0 %v5694_v1  ;;  %5731 = vmatprep.mubr.bf16.mxu0 %v19418_v37 }
0x12bf   : > { %8406 = vmatmul.mubr.msk.bf16.vlgmr.msra.gmra.mrb[192].mxu0 %vm1231_vm2, %v19420_v16 }
0x12c0   : > { %5741 = vmatprep.mubr.bf16.mxu0 %v19418_v37 }
0x12c6   : > { %v15072_v24 = vpop.permute.xlu0 %4765 }
0x12c7   : > { %19421 = vst [vmem:[#allocation52_spill] sm:$0xff] %v15072_v24  ;;  %v15076_v54 = vadd.f32 %v19422_v33, %v15072_v24  ;;  %8407 = vmatmul.mubr.msk.bf16.gmra.mrb[196].mxu0 %vm1231_vm2, %v19424_v32 }
0x12c8   : > { %5751 = vmatprep.mubr.bf16.mxu0 %v19418_v37 }
0x12c9   : > { %19423 = vst [vmem:[#allocation33_spill] sm:$0xff] %v15076_v54 }
0x12cf   : > { %8408 = vmatmul.mubr.msk.bf16.gmra.mrb[200].mxu0 %vm1231_vm2, %v19425_v46 }
0x12d0   : > { %5761 = vmatprep.mubr.bf16.mxu0 %v19418_v37 }
0x12d7   : > { %8409 = vmatmul.mubr.msk.bf16.gmra.mrb[204].mxu0 %vm1231_vm2, %v19426_v3 }
0x12d8   : > { %5771 = vmatprep.mubr.bf16.mxu0 %v19418_v37 }
0x12df   : > { %8410 = vmatmul.mubr.msk.bf16.gmra.mrb[208].mxu0 %vm1231_vm2, %v19427_v43 }
0x12e0   : > { %5781 = vmatprep.mubr.bf16.mxu0 %v19418_v37 }
0x12e7   : > { %8411 = vmatmul.mubr.msk.bf16.gmra.mrb[212].mxu0 %vm1231_vm2, %v19428_v7 }
0x12e8   : > { %5791 = vmatprep.mubr.bf16.mxu0 %v19418_v37 }
0x12ef   : > { %8412 = vmatmul.mubr.msk.bf16.gmra.mrb[216].mxu0 %vm1231_vm2, %v19429_v5 }
0x12f0   : > { %5801 = vmatprep.mubr.bf16.mxu0 %v19418_v37 }
0x12f7   : > { %8413 = vmatmul.mubr.msk.bf16.gmra.mrb[220].mxu0 %vm1231_vm2, %v19430_v29 }
0x12f8   : > { %5811 = vmatprep.mubr.bf16.mxu0 %v19418_v37 }
0x12ff   : > { %8414 = vmatmul.mubr.msk.bf16.gmra.mrb[224].mxu0 %vm1231_vm2, %v19431_v23 }
0x1300   : > { %5821 = vmatprep.mubr.bf16.mxu0 %v19418_v37 }
0x1307   : > { %8415 = vmatmul.mubr.msk.bf16.gmra.mrb[228].mxu0 %vm1231_vm2, %v19432_v22 }
0x1308   : > { %5831 = vmatprep.mubr.bf16.mxu0 %v19418_v37 }
0x130f   : > { %8416 = vmatmul.mubr.msk.bf16.gmra.mrb[232].mxu0 %vm1231_vm2, %v19433_v8 }
0x1310   : > { %5841 = vmatprep.mubr.bf16.mxu0 %v19418_v37 }
0x1317   : > { %8417 = vmatmul.mubr.msk.bf16.gmra.mrb[236].mxu0 %vm1231_vm2, %v19434_v38 }
0x1318   : > { %5851 = vmatprep.mubr.bf16.mxu0 %v19418_v37 }
0x131f   : > { %8418 = vmatmul.mubr.msk.bf16.gmra.mrb[240].mxu0 %vm1231_vm2, %v19435_v58 }
0x1320   : > { %5861 = vmatprep.mubr.bf16.mxu0 %v19418_v37 }
0x1327   : > { %8419 = vmatmul.mubr.msk.bf16.gmra.mrb[244].mxu0 %vm1231_vm2, %v19436_v56 }
0x1328   : > { %5871 = vmatprep.mubr.bf16.mxu0 %v19418_v37 }
0x132f   : > { %8420 = vmatmul.mubr.msk.bf16.gmra.mrb[248].mxu0 %vm1231_vm2, %v19437_v2 }
0x1330   : > { %5881 = vmatprep.mubr.bf16.mxu0 %v19418_v37 }
0x1337   : > { %8421 = vmatmul.mubr.msk.bf16.gmra.mrb[252].mxu0 %vm1231_vm2, %v19440_v30 }
0x1338   : > { %7130 = vmatprep.mubr.bf16.mxu0 %v6380_v15 }
0x138a   : > { %v15124_v9 = vpop.f32.mrb[188].mxu0 }
0x138b   : > { %19441 = vst [vmem:[#allocation59_spill] sm:$0xff] %v15124_v9  ;;  %v15126_v51 = vpop.f32.mrb[189].mxu0 }
0x138c   : > { %19442 = vst [vmem:[#allocation44_spill] sm:$0xff] %v15126_v51  ;;  %v5600_v14 = vpop.f32.mrb[190].mxu0 }
0x138d   : > { %v5601_v36 = vpop.f32.mrb[191].mxu0 }
0x1392   : > { %v15128_v44 = vpop.f32.mrb[192].mxu0 }
0x1393   : > { %v15130_v59 = vpop.f32.mrb[193].mxu0 }
0x1394   : > { %v15132_v26 = vpop.f32.mrb[194].mxu0 }
0x1395   : > { %v15134_v39 = vpop.f32.mrb[195].mxu0 }
0x139a   : > { %v15136_v35 = vpop.f32.mrb[196].mxu0 }
0x139b   : > { %v5892_v12 = vmax.f32 %v15128_v44, %v15136_v35  ;;  %v15140_v13 = vpop.f32.mrb[197].mxu0 }
0x139c   : > { %v5929_v47 = vmax.f32 %v15130_v59, %v15140_v13  ;;  %v15144_v11 = vpop.f32.mrb[198].mxu0 }
0x139d   : > { %v5893_v60 = vmax.f32 %v15132_v26, %v15144_v11  ;;  %v15148_v55 = vpop.f32.mrb[199].mxu0 }
0x139e   : > { %v5930_v42 = vmax.f32 %v15134_v39, %v15148_v55 }
0x13a2   : > { %v15152_v62 = vpop.f32.mrb[200].mxu0 }
0x13a3   : > { %v5894_v19 = vmax.f32 %v5892_v12, %v15152_v62  ;;  %v15155_v21 = vpop.f32.mrb[201].mxu0 }
0x13a4   : > { %v5931_v28 = vmax.f32 %v5929_v47, %v15155_v21  ;;  %v15158_v53 = vpop.f32.mrb[202].mxu0 }
0x13a5   : > { %v5895_v45 = vmax.f32 %v5893_v60, %v15158_v53  ;;  %v15161_v20 = vpop.f32.mrb[203].mxu0 }
0x13a6   : > { %v5932_v49 = vmax.f32 %v5930_v42, %v15161_v20 }
0x13aa   : > { %v15164_v18 = vpop.f32.mrb[204].mxu0 }
0x13ab   : > { %v5896_v57 = vmax.f32 %v5894_v19, %v15164_v18  ;;  %v15167_v0 = vpop.f32.mrb[205].mxu0 }
0x13ac   : > { %v5933_v25 = vmax.f32 %v5931_v28, %v15167_v0  ;;  %v15170_v52 = vpop.f32.mrb[206].mxu0 }
0x13ad   : > { %v5897_v63 = vmax.f32 %v5895_v45, %v15170_v52  ;;  %v15173_v17 = vpop.f32.mrb[207].mxu0 }
0x13ae   : > { %v5934_v1 = vmax.f32 %v5932_v49, %v15173_v17 }
0x13b2   : > { %v15176_v16 = vpop.f32.mrb[208].mxu0 }
0x13b3   : > { %v5898_v33 = vmax.f32 %v5896_v57, %v15176_v16  ;;  %v15179_v32 = vpop.f32.mrb[209].mxu0 }
0x13b4   : > { %v5935_v46 = vmax.f32 %v5933_v25, %v15179_v32  ;;  %v15182_v3 = vpop.f32.mrb[210].mxu0 }
0x13b5   : > { %v5899_v43 = vmax.f32 %v5897_v63, %v15182_v3  ;;  %v15185_v7 = vpop.f32.mrb[211].mxu0 }
0x13b6   : > { %v5936_v5 = vmax.f32 %v5934_v1, %v15185_v7 }
0x13ba   : > { %v15188_v29 = vpop.f32.mrb[212].mxu0 }
0x13bb   : > { %v5900_v23 = vmax.f32 %v5898_v33, %v15188_v29  ;;  %v15191_v22 = vpop.f32.mrb[213].mxu0 }
0x13bc   : > { %v5937_v8 = vmax.f32 %v5935_v46, %v15191_v22  ;;  %v15194_v38 = vpop.f32.mrb[214].mxu0 }
0x13bd   : > { %v5901_v58 = vmax.f32 %v5899_v43, %v15194_v38  ;;  %v15197_v56 = vpop.f32.mrb[215].mxu0 }
0x13be   : > { %19443 = vst [vmem:[#allocation57_spill] sm:$0xff] %v15197_v56  ;;  %v5938_v2 = vmax.f32 %v5936_v5, %v15197_v56 }
0x13c2   : > { %v15200_v4 = vpop.f32.mrb[216].mxu0 }
0x13c3   : > { %v5902_v34 = vmax.f32 %v5900_v23, %v15200_v4  ;;  %v15203_v27 = vpop.f32.mrb[217].mxu0 }
0x13c4   : > { %19444 = vst [vmem:[#allocation47_spill] sm:$0xff] %v15203_v27  ;;  %v5939_v15 = vmax.f32 %v5937_v8, %v15203_v27  ;;  %v15206_v30 = vpop.f32.mrb[218].mxu0 }
0x13c5   : > { %v5903_v14 = vmax.f32 %v5901_v58, %v15206_v30  ;;  %v15209_v36 = vpop.f32.mrb[219].mxu0 }
0x13c6   : > { %19445 = vst [vmem:[#allocation61_spill] sm:$0xff] %v15209_v36  ;;  %v5940_v12 = vmax.f32 %v5938_v2, %v15209_v36 }
0x13ca   : > { %v15212_v47 = vpop.f32.mrb[220].mxu0 }
0x13cb   : > { %v5904_v60 = vmax.f32 %v5902_v34, %v15212_v47  ;;  %v15215_v42 = vpop.f32.mrb[221].mxu0 }
0x13cc   : > { %19446 = vst [vmem:[#allocation53_spill] sm:$0xff] %v15215_v42  ;;  %v5941_v19 = vmax.f32 %v5939_v15, %v15215_v42  ;;  %v15218_v28 = vpop.f32.mrb[222].mxu0 }
0x13cd   : > { %v5905_v45 = vmax.f32 %v5903_v14, %v15218_v28  ;;  %v15221_v49 = vpop.f32.mrb[223].mxu0 }
0x13ce   : > { %19447 = vst [vmem:[#allocation50_spill] sm:$0xff] %v15221_v49  ;;  %v5942_v57 = vmax.f32 %v5940_v12, %v15221_v49 }
0x13d2   : > { %v15224_v25 = vpop.f32.mrb[224].mxu0 }
0x13d3   : > { %v5906_v63 = vmax.f32 %v5904_v60, %v15224_v25  ;;  %v15227_v1 = vpop.f32.mrb[225].mxu0 }
0x13d4   : > { %19448 = vst [vmem:[#allocation45_spill] sm:$0xff] %v15227_v1  ;;  %v5943_v33 = vmax.f32 %v5941_v19, %v15227_v1  ;;  %v15230_v46 = vpop.f32.mrb[226].mxu0 }
0x13d5   : > { %v5907_v43 = vmax.f32 %v5905_v45, %v15230_v46  ;;  %v15233_v5 = vpop.f32.mrb[227].mxu0 }
0x13d6   : > { %19449 = vst [vmem:[#allocation11_spill] sm:$0xff] %v15233_v5  ;;  %v5944_v23 = vmax.f32 %v5942_v57, %v15233_v5 }
0x13da   : > { %v15236_v8 = vpop.f32.mrb[228].mxu0 }
0x13db   : > { %v5908_v58 = vmax.f32 %v5906_v63, %v15236_v8  ;;  %v15239_v2 = vpop.f32.mrb[229].mxu0 }
0x13dc   : > { %19450 = vst [vmem:[#allocation31_spill] sm:$0xff] %v15239_v2  ;;  %v5945_v34 = vmax.f32 %v5943_v33, %v15239_v2  ;;  %v15242_v15 = vpop.f32.mrb[230].mxu0 }
0x13dd   : > { %v5909_v14 = vmax.f32 %v5907_v43, %v15242_v15  ;;  %v15245_v12 = vpop.f32.mrb[231].mxu0 }
0x13de   : > { %19451 = vst [vmem:[#allocation41_spill] sm:$0xff] %v15245_v12  ;;  %v5946_v60 = vmax.f32 %v5944_v23, %v15245_v12 }
0x13e2   : > { %v15248_v19 = vpop.f32.mrb[232].mxu0 }
0x13e3   : > { %v5910_v45 = vmax.f32 %v5908_v58, %v15248_v19  ;;  %v15251_v57 = vpop.f32.mrb[233].mxu0 }
0x13e4   : > { %19452 = vst [vmem:[#allocation19_spill] sm:$0xff] %v15251_v57  ;;  %v5947_v63 = vmax.f32 %v5945_v34, %v15251_v57  ;;  %v15254_v54 = vpop.f32.mrb[234].mxu0 }
0x13e5   : > { %v5911_v33 = vmax.f32 %v5909_v14, %v15254_v54  ;;  %v15257_v6 = vpop.f32.mrb[235].mxu0 }
0x13e6   : > { %19453 = vst [vmem:[#allocation74_spill] sm:$0xff] %v15257_v6  ;;  %v5948_v43 = vmax.f32 %v5946_v60, %v15257_v6 }
0x13ea   : > { %v15260_v41 = vpop.f32.mrb[236].mxu0 }
0x13eb   : > { %v5912_v23 = vmax.f32 %v5910_v45, %v15260_v41  ;;  %v15263_v48 = vpop.f32.mrb[237].mxu0 }
0x13ec   : > { %19454 = vst [vmem:[#allocation35_spill] sm:$0xff] %v15263_v48  ;;  %v5949_v58 = vmax.f32 %v5947_v63, %v15263_v48  ;;  %v15266_v50 = vpop.f32.mrb[238].mxu0 }
0x13ed   : > { %v5913_v34 = vmax.f32 %v5911_v33, %v15266_v50  ;;  %v15269_v10 = vpop.f32.mrb[239].mxu0 }
0x13ee   : > { %19455 = vst [vmem:[#allocation23_spill] sm:$0xff] %v15269_v10  ;;  %v5950_v14 = vmax.f32 %v5948_v43, %v15269_v10 }
0x13f2   : > { %v15272_v31 = vpop.f32.mrb[240].mxu0 }
0x13f3   : > { %v5914_v60 = vmax.f32 %v5912_v23, %v15272_v31  ;;  %v15275_v40 = vpop.f32.mrb[241].mxu0 }
0x13f4   : > { %19456 = vst [vmem:[#allocation37_spill] sm:$0xff] %v15275_v40  ;;  %v5951_v45 = vmax.f32 %v5949_v58, %v15275_v40  ;;  %v15278_v61 = vpop.f32.mrb[242].mxu0 }
0x13f5   : > { %v5915_v63 = vmax.f32 %v5913_v34, %v15278_v61  ;;  %v15281_v51 = vpop.f32.mrb[243].mxu0 }
0x13f6   : > { %19457 = vst [vmem:[#allocation71_spill] sm:$0xff] %v15281_v51  ;;  %v5952_v33 = vmax.f32 %v5950_v14, %v15281_v51 }
0x13fa   : > { %v15284_v9 = vpop.f32.mrb[244].mxu0 }
0x13fb   : > { %v5916_v43 = vmax.f32 %v5914_v60, %v15284_v9  ;;  %v15287_v24 = vpop.f32.mrb[245].mxu0 }
0x13fc   : > { %19458 = vst [vmem:[#allocation60_spill] sm:$0xff] %v15287_v24  ;;  %v5953_v23 = vmax.f32 %v5951_v45, %v15287_v24  ;;  %v15290_v37 = vpop.f32.mrb[246].mxu0 }
0x13fd   : > { %v5917_v58 = vmax.f32 %v5915_v63, %v15290_v37  ;;  %v15293_v40 = vpop.f32.mrb[247].mxu0 }
0x13fe   : > { %19459 = vst [vmem:[#allocation18_spill] sm:$0xff] %v15293_v40  ;;  %v5954_v34 = vmax.f32 %v5952_v33, %v15293_v40 }
0x1402   : > { %v15296_v10 = vpop.f32.mrb[248].mxu0 }
0x1403   : > { %v5918_v14 = vmax.f32 %v5916_v43, %v15296_v10  ;;  %v15299_v51 = vpop.f32.mrb[249].mxu0 }
0x1404   : > { %19460 = vst [vmem:[#allocation32_spill] sm:$0xff] %v15299_v51  ;;  %v5955_v60 = vmax.f32 %v5953_v23, %v15299_v51  ;;  %v15302_v48 = vpop.f32.mrb[250].mxu0 }
0x1405   : > { %v5919_v45 = vmax.f32 %v5917_v58, %v15302_v48  ;;  %v15305_v24 = vpop.f32.mrb[251].mxu0 }
0x1406   : > { %19461 = vst [vmem:[#allocation46_spill] sm:$0xff] %v15305_v24  ;;  %v5956_v63 = vmax.f32 %v5954_v34, %v15305_v24 }
0x140a   : > { %v15308_v6 = vpop.f32.mrb[252].mxu0 }
0x140b   : > { %v5920_v33 = vmax.f32 %v5918_v14, %v15308_v6  ;;  %v15311_v40 = vpop.f32.mrb[253].mxu0 }
0x140c   : > { %19462 = vst [vmem:[#allocation49_spill] sm:$0xff] %v15311_v40  ;;  %v5957_v43 = vmax.f32 %v5955_v60, %v15311_v40  ;;  %v15314_v57 = vpop.f32.mrb[254].mxu0 }
0x140d   : > { %v5921_v23 = vmax.f32 %v5919_v45, %v15314_v57  ;;  %v15317_v51 = vpop.f32.mrb[255].mxu0 }
0x140e   : > { %19463 = vst [vmem:[#allocation62_spill] sm:$0xff] %v15317_v51  ;;  %v5958_v58 = vmax.f32 %v5956_v63, %v15317_v51 }
0x140f   : > { %v5922_v12 = vmax.f32 %v5920_v33, %v5921_v23 }
0x1410   : > { %v5959_v2 = vmax.f32 %v5957_v43, %v5958_v58 }
0x1411   : > { %v5923_v5 = vrot.slane %v5922_v12, 4 }
0x1412   : > { %v5960_v34 = vrot.slane %v5959_v2, 4 }
0x1413   : > { %v5924_v24 = vmax.f32 %v5922_v12, %v5923_v5 }
0x1414   : > { %v5961_v1 = vmax.f32 %v5959_v2, %v5960_v34 }
0x1415   : > { %v5925_v49 = vrot.slane %v5924_v24, 2 }
0x1416   : > { %v5962_v14 = vrot.slane %v5961_v1, 2 }
0x1417   : > { %v5926_v42 = vmax.f32 %v5924_v24, %v5925_v49 }
0x1418   : > { %v5963_v36 = vmax.f32 %v5961_v1, %v5962_v14 }
0x1419   : > { %v5927_v27 = vrot.slane %v5926_v42, 1 }
0x141a   : > { %v5964_v60 = vrot.slane %v5963_v36, 1 }
0x141b   : > { %v15320_v40 = vmax.f32 %v5926_v42, %v5927_v27 }
0x141c   : > { %v15322_v56 = vmax.f32 %v5963_v36, %v5964_v60 }
0x141d   : > { %v5966_v45 = vsub.f32 %v15128_v44, %v15320_v40  ;;  %v5968_v63 = vsub.f32 %v15132_v26, %v15320_v40  ;;  %v5970_v5 = vsub.f32 %v15136_v35, %v15320_v40  ;;  %v5972_v2 = vsub.f32 %v15144_v11, %v15320_v40 }
0x141e   : > { %v5974_v24 = vsub.f32 %v15152_v62, %v15320_v40  ;;  %v5976_v27 = vsub.f32 %v15158_v53, %v15320_v40  ;;  %v5978_v36 = vsub.f32 %v15164_v18, %v15320_v40  ;;  %v5980_v44 = vsub.f32 %v15170_v52, %v15320_v40  ;;  %v19486_v18 = vld [vmem:[#allocation18_spill] sm:$0xff] }
0x141f   : > { %v5982_v26 = vsub.f32 %v15176_v16, %v15320_v40  ;;  %v5984_v35 = vsub.f32 %v15182_v3, %v15320_v40  ;;  %v5986_v11 = vsub.f32 %v15188_v29, %v15320_v40  ;;  %v5988_v62 = vsub.f32 %v15194_v38, %v15320_v40  ;;  %v19479_v29 = vld [vmem:[#allocation35_spill] sm:$0xff]  ;;  %v19482_v16 = vld [vmem:[#allocation37_spill] sm:$0xff] }
0x1420   : > { %v6030_v12 = vmul.f32 1.442695, %v5966_v45  ;;  %v6034_v58 = vmul.f32 1.442695, %v5968_v63  ;;  %v6038_v1 = vmul.f32 1.442695, %v5970_v5  ;;  %v19491_v38 = vsub.f32 %v15212_v47, %v15320_v40 }
0x1421   : > { %v6042_v60 = vmul.f32 1.442695, %v5972_v2  ;;  %v6046_v33 = vmul.f32 1.442695, %v5974_v24  ;;  %v6050_v49 = vmul.f32 1.442695, %v5976_v27  ;;  %v19494_v47 = vsub.f32 %v15230_v46, %v15320_v40 }
0x1422   : > { %9233 = vpow2.f32 %v6030_v12  ;;  %v6054_v43 = vmul.f32 1.442695, %v5978_v36  ;;  %v6058_v42 = vmul.f32 1.442695, %v5980_v44  ;;  %v6062_v24 = vmul.f32 1.442695, %v5982_v26 }
0x1423   : > { %9235 = vpow2.f32 %v6034_v58  ;;  %v19466_v26 = vld [vmem:[#allocation57_spill] sm:$0xff]  ;;  %v19467_v36 = vld [vmem:[#allocation47_spill] sm:$0xff]  ;;  %v6070_v45 = vmul.f32 1.442695, %v5986_v11  ;;  %v19478_v58 = vld [vmem:[#allocation74_spill] sm:$0xff] }
0x1424   : > { %9237 = vpow2.f32 %v6038_v1  ;;  %v19468_v44 = vld [vmem:[#allocation61_spill] sm:$0xff]  ;;  %v19473_v27 = vld [vmem:[#allocation11_spill] sm:$0xff]  ;;  %v6086_v5 = vmul.f32 1.442695, %v19491_v38  ;;  %v6098_v38 = vmul.f32 1.442695, %v19494_v47 }
0x1425   : > { %9239 = vpow2.f32 %v6042_v60  ;;  %v6066_v60 = vmul.f32 1.442695, %v5984_v35  ;;  %v19470_v12 = vld [vmem:[#allocation53_spill] sm:$0xff]  ;;  %v19474_v2 = vld [vmem:[#allocation31_spill] sm:$0xff] }
0x1426   : > { %9241 = vpow2.f32 %v6046_v33  ;;  %v19471_v33 = vld [vmem:[#allocation50_spill] sm:$0xff]  ;;  %v19472_v35 = vld [vmem:[#allocation45_spill] sm:$0xff]  ;;  %v19477_v63 = vld [vmem:[#allocation19_spill] sm:$0xff] }
0x1427   : > { %9243 = vpow2.f32 %v6050_v49  ;;  %v19483_v11 = vld [vmem:[#allocation71_spill] sm:$0xff] }
0x1428   : > { %9245 = vpow2.f32 %v6054_v43 }
0x1429   : > { %9247 = vpow2.f32 %v6058_v42  ;;  %v19476_v42 = vld [vmem:[#allocation41_spill] sm:$0xff] }
0x142a   : > { %9249 = vpow2.f32 %v6062_v24 }
0x142b   : > { %9251 = vpow2.f32 %v6066_v60  ;;  %v19487_v60 = vld [vmem:[#allocation32_spill] sm:$0xff] }
0x142c   : > { %v15400_v1 = vpop.eup %9233  ;;  %9253 = vpow2.f32 %v6070_v45 }
0x142d   : > { %19464 = vst [vmem:[#allocation29_spill] sm:$0xff] %v15400_v1  ;;  %v15408_v49 = vpop.eup %9235 }
0x142e   : > { %19465 = vst [vmem:[#allocation70_spill] sm:$0xff] %v15408_v49  ;;  %v6158_v23 = vadd.f32 %v15408_v49, %v15400_v1  ;;  %v15422_v43 = vpop.eup %9237  ;;  %v19490_v1 = vsub.f32 %v15206_v30, %v15320_v40  ;;  %v19493_v30 = vsub.f32 %v15224_v25, %v15320_v40  ;;  %v19496_v25 = vsub.f32 %v15134_v39, %v15322_v56 }
0x142f   : > { %19469 = vst [vmem:[#allocation17_spill] sm:$0xff] %v15422_v43  ;;  %v15435_v3 = vpop.eup %9239 }
0x1430   : > { %v6159_v14 = vadd.f32 %v15422_v43, %v6158_v23  ;;  %19475 = vst [vmem:[#allocation28_spill] sm:$0xff] %v15435_v3  ;;  %v6074_v23 = vmul.f32 1.442695, %v5988_v62  ;;  %v15451_v53 = vpop.eup %9241  ;;  %v19488_v43 = vld [vmem:[#allocation46_spill] sm:$0xff]  ;;  %v19489_v62 = vld [vmem:[#allocation49_spill] sm:$0xff] }
0x1431   : > { %19481 = vst [vmem:[#allocation48_spill] sm:$0xff] %v15451_v53  ;;  %v15467_v24 = vpop.eup %9243  ;;  %v6082_v49 = vmul.f32 1.442695, %v19490_v1  ;;  %v6094_v1 = vmul.f32 1.442695, %v19493_v30 }
0x1432   : > { %v6160_v34 = vadd.f32 %v15435_v3, %v6159_v14  ;;  %v19485_v14 = vsub.f32 %v15200_v4, %v15320_v40  ;;  %9255 = vpow2.f32 %v6074_v23 }
0x1434   : > { %v6078_v3 = vmul.f32 1.442695, %v19485_v14  ;;  %v6161_v52 = vadd.f32 %v15451_v53, %v6160_v34  ;;  %v15476_v14 = vpop.eup %9245 }
0x1435   : > { %v15482_v53 = vpop.eup %9247 }
0x1436   : > { %v6162_v34 = vadd.f32 %v15467_v24, %v6161_v52  ;;  %9257 = vpow2.f32 %v6078_v3  ;;  %v15488_v51 = vpop.eup %9249  ;;  %v19492_v52 = vsub.f32 %v15218_v28, %v15320_v40 }
0x1437   : > { %9259 = vpow2.f32 %v6082_v49  ;;  %v15497_v3 = vpop.eup %9251  ;;  %v19495_v49 = vsub.f32 %v15130_v59, %v15322_v56  ;;  %v19498_v59 = vsub.f32 %v15140_v13, %v15322_v56 }
0x1438   : > { %v6163_v45 = vadd.f32 %v15476_v14, %v6162_v34  ;;  %v6090_v23 = vmul.f32 1.442695, %v19492_v52  ;;  %9261 = vpow2.f32 %v6086_v5  ;;  %v15506_v52 = vpop.eup %9253  ;;  %v19497_v5 = vsub.f32 %v15236_v8, %v15320_v40 }
0x1439   : > { %v6032_v28 = vmul.f32 1.442695, %v19495_v49  ;;  %v19501_v8 = vsub.f32 %v15148_v55, %v15322_v56 }
0x143a   : > { %v6164_v4 = vadd.f32 %v15482_v53, %v6163_v45  ;;  %9263 = vpow2.f32 %v6090_v23  ;;  %v6102_v30 = vmul.f32 1.442695, %v19497_v5  ;;  %v19499_v23 = vsub.f32 %v15242_v15, %v15320_v40 }
0x143b   : > { %9265 = vpow2.f32 %v6094_v1  ;;  %v19504_v15 = vsub.f32 %v15155_v21, %v15322_v56 }
0x143c   : > { %v6165_v34 = vadd.f32 %v15488_v51, %v6164_v4  ;;  %v6036_v4 = vmul.f32 1.442695, %v19496_v25  ;;  %v15515_v47 = vpop.eup %9255  ;;  %9267 = vpow2.f32 %v6098_v38  ;;  %v6106_v49 = vmul.f32 1.442695, %v19499_v23 }
0x143d   : > { %9269 = vpow2.f32 %v6032_v28  ;;  %v19502_v38 = vsub.f32 %v15248_v19, %v15320_v40  ;;  %v6048_v28 = vmul.f32 1.442695, %v19504_v15  ;;  %v19506_v19 = vsub.f32 %v15161_v20, %v15322_v56 }
0x143e   : > { %v6166_v45 = vadd.f32 %v15497_v3, %v6165_v34  ;;  %v6040_v34 = vmul.f32 1.442695, %v19498_v59  ;;  %9271 = vpow2.f32 %v6036_v4  ;;  %v19505_v4 = vsub.f32 %v15254_v54, %v15320_v40 }
0x143f   : > { %9273 = vpow2.f32 %v6102_v30  ;;  %v6110_v13 = vmul.f32 1.442695, %v19502_v38  ;;  %v6052_v59 = vmul.f32 1.442695, %v19506_v19  ;;  %v19508_v54 = vsub.f32 %v15167_v0, %v15322_v56 }
0x1440   : > { %v6167_v46 = vadd.f32 %v15506_v52, %v6166_v45  ;;  %v15524_v1 = vpop.eup %9257  ;;  %v6044_v45 = vmul.f32 1.442695, %v19501_v8  ;;  %9275 = vpow2.f32 %v6040_v34  ;;  %v6114_v55 = vmul.f32 1.442695, %v19505_v4 }
0x1441   : > { %19500 = vst [vmem:[#allocation68_spill] sm:$0xff] %v15524_v1  ;;  %v15533_v5 = vpop.eup %9259  ;;  %9277 = vpow2.f32 %v6106_v49  ;;  %v19507_v34 = vsub.f32 %v15260_v41, %v15320_v40  ;;  %v19509_v20 = vsub.f32 %v15266_v50, %v15320_v40  ;;  %v19511_v0 = vsub.f32 %v15272_v31, %v15320_v40 }
0x1442   : > { %v6168_v39 = vadd.f32 %v15515_v47, %v6167_v46  ;;  %19503 = vst [vmem:[#allocation30_spill] sm:$0xff] %v15533_v5  ;;  %v15542_v46 = vpop.eup %9261  ;;  %9279 = vpow2.f32 %v6044_v45 }
0x1443   : > { %9281 = vpow2.f32 %v6110_v13  ;;  %v6118_v21 = vmul.f32 1.442695, %v19507_v34  ;;  %v6122_v45 = vmul.f32 1.442695, %v19509_v20  ;;  %v19510_v13 = vsub.f32 %v15173_v17, %v15322_v56 }
0x1444   : > { %v6169_v25 = vadd.f32 %v15524_v1, %v6168_v39  ;;  %v15551_v49 = vpop.eup %9263  ;;  %9283 = vpow2.f32 %v6048_v28  ;;  %v6056_v39 = vmul.f32 1.442695, %v19508_v54  ;;  %v6126_v28 = vmul.f32 1.442695, %v19511_v0 }
0x1445   : > { %v15556_v8 = vpop.eup %9265  ;;  %9285 = vpow2.f32 %v6114_v55  ;;  %v19512_v55 = vsub.f32 %v15179_v32, %v15322_v56  ;;  %v19513_v17 = vsub.f32 %v15278_v61, %v15320_v40  ;;  %v19517_v0 = vsub.f32 %v15290_v37, %v15320_v40 }
0x1446   : > { %v6170_v30 = vadd.f32 %v15533_v5, %v6169_v25  ;;  %v15562_v41 = vpop.eup %9267  ;;  %9287 = vpow2.f32 %v6052_v59  ;;  %v6060_v25 = vmul.f32 1.442695, %v19510_v13  ;;  %v19516_v13 = vsub.f32 %v15191_v22, %v15322_v56 }
0x1447   : > { %v15567_v15 = vpop.eup %9269  ;;  %9289 = vpow2.f32 %v6118_v21  ;;  %v6130_v59 = vmul.f32 1.442695, %v19513_v17 }
0x1448   : > { %v6171_v23 = vadd.f32 %v15542_v46, %v6170_v30  ;;  %v15573_v50 = vpop.eup %9271  ;;  %9291 = vpow2.f32 %v6056_v39  ;;  %v6064_v30 = vmul.f32 1.442695, %v19512_v55  ;;  %v19515_v39 = vsub.f32 %v15284_v9, %v15320_v40 }
0x1449   : > { %v15578_v19 = vpop.eup %9273  ;;  %9293 = vpow2.f32 %v6122_v45  ;;  %v6195_v31 = vadd.f32 %v15573_v50, %v15567_v15 }
0x144a   : > { %v6172_v38 = vadd.f32 %v15551_v49, %v6171_v23  ;;  %v15586_v21 = vpop.eup %9275  ;;  %9295 = vpow2.f32 %v6060_v25  ;;  %v19514_v23 = vsub.f32 %v15185_v7, %v15322_v56  ;;  %v6134_v61 = vmul.f32 1.442695, %v19515_v39 }
0x144b   : > { %v15591_v54 = vpop.eup %9277  ;;  %9297 = vpow2.f32 %v6126_v28  ;;  %v6196_v45 = vadd.f32 %v15586_v21, %v6195_v31  ;;  %v6072_v25 = vmul.f32 1.442695, %v19516_v13  ;;  %v6138_v28 = vmul.f32 1.442695, %v19517_v0 }
0x144c   : > { %v6173_v4 = vadd.f32 %v15556_v8, %v6172_v38  ;;  %v6068_v32 = vmul.f32 1.442695, %v19514_v23  ;;  %v15598_v38 = vpop.eup %9279  ;;  %9299 = vpow2.f32 %v6064_v30  ;;  %v19518_v30 = vsub.f32 %v19466_v26, %v15322_v56 }
0x144d   : > { %v15603_v7 = vpop.eup %9281  ;;  %9301 = vpow2.f32 %v6130_v59  ;;  %v19519_v59 = vsub.f32 %v15296_v10, %v15320_v40 }
0x144e   : > { %v6174_v34 = vadd.f32 %v15562_v41, %v6173_v4  ;;  %v6197_v4 = vadd.f32 %v15598_v38, %v6196_v45  ;;  %v15610_v55 = vpop.eup %9283  ;;  %9303 = vpow2.f32 %v6068_v32  ;;  %v6076_v17 = vmul.f32 1.442695, %v19518_v30 }
0x144f   : > { %v15615_v22 = vpop.eup %9285  ;;  %9305 = vpow2.f32 %v6134_v61  ;;  %v19520_v32 = vsub.f32 %v19467_v36, %v15322_v56  ;;  %v19521_v61 = vsub.f32 %v15302_v48, %v15320_v40 }
0x1450   : > { %v6175_v20 = vadd.f32 %v15578_v19, %v6174_v34  ;;  %v6142_v34 = vmul.f32 1.442695, %v19519_v59  ;;  %v6198_v31 = vadd.f32 %v15610_v55, %v6197_v4  ;;  %v15622_v23 = vpop.eup %9287  ;;  %9307 = vpow2.f32 %v6072_v25 }
0x1451   : > { %v6080_v39 = vmul.f32 1.442695, %v19520_v32  ;;  %v15627_v26 = vpop.eup %9289  ;;  %9309 = vpow2.f32 %v6138_v28  ;;  %v19522_v25 = vsub.f32 %v19468_v44, %v15322_v56  ;;  %v19523_v28 = vsub.f32 %v15308_v6, %v15320_v40 }
0x1452   : > { %v6176_v9 = vadd.f32 %v15591_v54, %v6175_v20  ;;  %v6146_v20 = vmul.f32 1.442695, %v19521_v61  ;;  %v6199_v45 = vadd.f32 %v15622_v23, %v6198_v31  ;;  %v15634_v13 = vpop.eup %9291  ;;  %9311 = vpow2.f32 %v6076_v17 }
0x1453   : > { %v6084_v0 = vmul.f32 1.442695, %v19522_v25  ;;  %v15639_v36 = vpop.eup %9293  ;;  %9313 = vpow2.f32 %v6142_v34  ;;  %v19524_v17 = vsub.f32 %v19470_v12, %v15322_v56  ;;  %v19525_v34 = vsub.f32 %v15314_v57, %v15320_v40 }
0x1454   : > { %v6177_v37 = vadd.f32 %v15603_v7, %v6176_v9  ;;  %v6150_v9 = vmul.f32 1.442695, %v19523_v28  ;;  %v6200_v4 = vadd.f32 %v15634_v13, %v6199_v45  ;;  %v15646_v30 = vpop.eup %9295  ;;  %9315 = vpow2.f32 %v6080_v39 }
0x1455   : > { %v6088_v59 = vmul.f32 1.442695, %v19524_v17  ;;  %v15651_v44 = vpop.eup %9297  ;;  %9317 = vpow2.f32 %v6146_v20  ;;  %v19526_v39 = vsub.f32 %v19471_v33, %v15322_v56  ;;  %v19527_v57 = vsub.f32 %v19472_v35, %v15322_v56 }
0x1456   : > { %v6178_v10 = vadd.f32 %v15615_v22, %v6177_v37  ;;  %v6154_v37 = vmul.f32 1.442695, %v19525_v34  ;;  %v6201_v31 = vadd.f32 %v15646_v30, %v6200_v4  ;;  %v15658_v32 = vpop.eup %9299  ;;  %9319 = vpow2.f32 %v6084_v0 }
0x1457   : > { %v6092_v61 = vmul.f32 1.442695, %v19526_v39  ;;  %v15663_v12 = vpop.eup %9301  ;;  %9321 = vpow2.f32 %v6150_v9  ;;  %v6096_v45 = vmul.f32 1.442695, %v19527_v57  ;;  %v19528_v9 = vsub.f32 %v19473_v27, %v15322_v56 }
0x1458   : > { %v6179_v48 = vadd.f32 %v15627_v26, %v6178_v10  ;;  %v6202_v10 = vadd.f32 %v15658_v32, %v6201_v31  ;;  %v15667_v40 = vpop.eup %9303  ;;  %9323 = vpow2.f32 %v6088_v59  ;;  %v19529_v34 = vsub.f32 %v19474_v2, %v15322_v56 }
0x1459   : > { %v15672_v25 = vpop.eup %9305  ;;  %9325 = vpow2.f32 %v6154_v37 }
0x145a   : > { %v6180_v6 = vadd.f32 %v15639_v36, %v6179_v48  ;;  %v6203_v0 = vadd.f32 %v15667_v40, %v6202_v10  ;;  %v15676_v28 = vpop.eup %9307  ;;  %9327 = vpow2.f32 %v6092_v61  ;;  %v6100_v48 = vmul.f32 1.442695, %v19528_v9 }
0x145b   : > { %v15681_v4 = vpop.eup %9309  ;;  %9329 = vpow2.f32 %v6096_v45  ;;  %v6104_v37 = vmul.f32 1.442695, %v19529_v34  ;;  %v19531_v61 = vsub.f32 %v19476_v42, %v15322_v56 }
0x145c   : > { %v6181_v20 = vadd.f32 %v15651_v44, %v6180_v6  ;;  %v6204_v35 = vadd.f32 %v15676_v28, %v6203_v0  ;;  %v15685_v59 = vpop.eup %9311  ;;  %9331 = vpow2.f32 %v6100_v48 }
0x145d   : > { %v15690_v6 = vpop.eup %9313  ;;  %9333 = vpow2.f32 %v6104_v37 }
0x145e   : > { %v6182_v33 = vadd.f32 %v15663_v12, %v6181_v20  ;;  %v6205_v27 = vadd.f32 %v15685_v59, %v6204_v35  ;;  %v15694_v39 = vpop.eup %9315  ;;  %v6108_v20 = vmul.f32 1.442695, %v19531_v61  ;;  %v19534_v35 = vsub.f32 %v19478_v58, %v15322_v56  ;;  %v19536_v58 = vld [vmem:[#allocation23_spill] sm:$0xff] }
0x145f   : > { %19530 = vst [vmem:[#allocation57_spill] sm:$0xff] %v15694_v39  ;;  %v15699_v10 = vpop.eup %9317  ;;  %v19535_v61 = vsub.f32 %v19479_v29, %v15322_v56  ;;  %v19538_v29 = vsub.f32 %v19482_v16, %v15322_v56 }
0x1460   : > { %v6183_v17 = vadd.f32 %v15672_v25, %v6182_v33  ;;  %v6206_v2 = vadd.f32 %v15694_v39, %v6205_v27  ;;  %v15703_v45 = vpop.eup %9319  ;;  %v19533_v33 = vsub.f32 %v19477_v63, %v15322_v56  ;;  %9335 = vpow2.f32 %v6108_v20 }
0x1461   : > { %19532 = vst [vmem:[#allocation47_spill] sm:$0xff] %v15703_v45  ;;  %v15708_v9 = vpop.eup %9321  ;;  %v6116_v34 = vmul.f32 1.442695, %v19534_v35  ;;  %v19537_v35 = vsub.f32 %v19536_v58, %v15322_v56 }
0x1462   : > { %v6184_v31 = vadd.f32 %v15681_v4, %v6183_v17  ;;  %v6112_v0 = vmul.f32 1.442695, %v19533_v33  ;;  %v6207_v42 = vadd.f32 %v15703_v45, %v6206_v2  ;;  %v15712_v17 = vpop.eup %9323 }
0x1464   : > { %v6185_v57 = vadd.f32 %v15690_v6, %v6184_v31  ;;  %v15717_v31 = vpop.eup %9325  ;;  %v6208_v63 = vadd.f32 %v15712_v17, %v6207_v42  ;;  %9337 = vpow2.f32 %v6112_v0  ;;  %v6128_v0 = vmul.f32 1.442695, %v19538_v29 }
0x1465   : > { %v15721_v27 = vpop.eup %9327  ;;  %9339 = vpow2.f32 %v6116_v34  ;;  %v19539_v34 = vsub.f32 %v19483_v11, %v15322_v56  ;;  %v19542_v11 = vsub.f32 %v19486_v18, %v15322_v56 }
0x1466   : > { %v6186_v48 = vadd.f32 %v15699_v10, %v6185_v57  ;;  %v6120_v57 = vmul.f32 1.442695, %v19535_v61  ;;  %v6209_v20 = vadd.f32 %v15721_v27, %v6208_v63  ;;  %v15728_v33 = vpop.eup %9329 }
0x1467   : > { %v15734_v1 = vpop.eup %9331  ;;  %v6132_v58 = vmul.f32 1.442695, %v19539_v34 }
0x1468   : > { %v6187_v37 = vadd.f32 %v15708_v9, %v6186_v48  ;;  %v6124_v48 = vmul.f32 1.442695, %v19537_v35  ;;  %v6210_v42 = vadd.f32 %v15728_v33, %v6209_v20  ;;  %9341 = vpow2.f32 %v6120_v57  ;;  %v15740_v61 = vpop.eup %9333  ;;  %v19540_v57 = vld [vmem:[#allocation60_spill] sm:$0xff] }
0x1469   : > { %v19541_v16 = vsub.f32 %v19540_v57, %v15322_v56 }
0x146a   : > { %v6188_v2 = vadd.f32 %v15717_v31, %v6187_v37  ;;  %v6211_v63 = vadd.f32 %v15734_v1, %v6210_v42  ;;  %9343 = vpow2.f32 %v6124_v48  ;;  %v15746_v45 = vpop.eup %9335  ;;  %v6140_v48 = vmul.f32 1.442695, %v19542_v11 }
0x146b   : > { %9345 = vpow2.f32 %v6128_v0  ;;  %v6136_v29 = vmul.f32 1.442695, %v19541_v16  ;;  %v19543_v0 = vsub.f32 %v19487_v60, %v15322_v56 }
0x146c   : > { %v6189_v5 = vrot.slane %v6188_v2, 4  ;;  %v6212_v20 = vadd.f32 %v15740_v61, %v6211_v63  ;;  %9347 = vpow2.f32 %v6132_v58 }
0x146d   : > { %9349 = vpow2.f32 %v6136_v29  ;;  %v6144_v57 = vmul.f32 1.442695, %v19543_v0  ;;  %v19545_v29 = vsub.f32 %v19489_v62, %v15322_v56 }
0x146e   : > { %v6190_v37 = vadd.f32 %v6189_v5, %v6188_v2  ;;  %v6213_v2 = vadd.f32 %v15746_v45, %v6212_v20  ;;  %v15752_v42 = vpop.eup %9337  ;;  %9351 = vpow2.f32 %v6140_v48 }
0x146f   : > { %v15758_v39 = vpop.eup %9339  ;;  %9353 = vpow2.f32 %v6144_v57  ;;  %v6152_v60 = vmul.f32 1.442695, %v19545_v29 }
0x1470   : > { %v6191_v35 = vrot.slane %v6190_v37, 2  ;;  %v6214_v63 = vadd.f32 %v15752_v42, %v6213_v2 }
0x1472   : > { %v6192_v5 = vadd.f32 %v6191_v35, %v6190_v37  ;;  %v19544_v37 = vsub.f32 %v19488_v43, %v15322_v56  ;;  %v6215_v58 = vadd.f32 %v15758_v39, %v6214_v63  ;;  %v15767_v20 = vpop.eup %9341  ;;  %v19546_v63 = vld [vmem:[#allocation62_spill] sm:$0xff] }
0x1473   : > { %v19547_v0 = vsub.f32 %v19546_v63, %v15322_v56 }
0x1474   : > { %v6193_v34 = vrot.slane %v6192_v5, 1  ;;  %v6148_v35 = vmul.f32 1.442695, %v19544_v37  ;;  %v6216_v16 = vadd.f32 %v15767_v20, %v6215_v58  ;;  %v15770_v2 = vpop.eup %9343 }
0x1475   : > { %v15776_v43 = vpop.eup %9345 }
0x1476   : > { %v6194_v18 = vadd.f32 %v6193_v34, %v6192_v5  ;;  %9355 = vpow2.f32 %v6148_v35  ;;  %v6217_v11 = vadd.f32 %v15770_v2, %v6216_v16  ;;  %v6156_v5 = vmul.f32 1.442695, %v19547_v0  ;;  %v15782_v34 = vpop.eup %9347 }
0x1477   : > { %v15785_v37 = vpop.eup %9349 }
0x1478   : > { %9357 = vrcp.f32 %v6194_v18  ;;  %v6218_v48 = vadd.f32 %v15776_v43, %v6217_v11  ;;  %v15788_v35 = vpop.eup %9351 }
0x1479   : > { %9359 = vpow2.f32 %v6152_v60  ;;  %v15791_v18 = vpop.eup %9353 }
0x147a   : > { %v6219_v57 = vadd.f32 %v15782_v34, %v6218_v48  ;;  %9361 = vpow2.f32 %v6156_v5 }
0x147c   : > { %v6220_v62 = vadd.f32 %v15785_v37, %v6219_v57 }
0x147e   : > { %v6221_v58 = vadd.f32 %v15788_v35, %v6220_v62 }
0x1480   : > { %v15793_v56 = vpop.eup %9355  ;;  %v6222_v16 = vadd.f32 %v15791_v18, %v6221_v58 }
0x1482   : > { %v15796_v29 = vpop.eup %9357  ;;  %v6223_v60 = vadd.f32 %v15793_v56, %v6222_v16 }
0x1483   : > { %v15799_v11 = vpop.eup %9359  ;;  %v15804_v0 = vmul.f32 %v15796_v29, %v15542_v46  ;;  %v15808_v5 = vmul.f32 %v15796_v29, %v15551_v49  ;;  %v15814_v57 = vmul.f32 %v15796_v29, %v15556_v8  ;;  %v15818_v62 = vmul.f32 %v15796_v29, %v15562_v41 }
0x1484   : > { %v6224_v63 = vadd.f32 %v15799_v11, %v6223_v60  ;;  %v15810_v48 = vpop.eup %9361  ;;  %v15825_v16 = vmul.f32 %v15796_v29, %v15578_v19  ;;  %v15829_v49 = vmul.f32 %v15796_v29, %v15591_v54  ;;  %v15835_v41 = vmul.f32 %v15796_v29, %v15603_v7 }
0x1485   : > { %v15839_v60 = vmul.f32 %v15796_v29, %v15615_v22  ;;  %v15849_v46 = vmul.f32 %v15796_v29, %v15639_v36  ;;  %v15853_v7 = vmul.f32 %v15796_v29, %v15651_v44  ;;  %v15859_v8 = vmul.f32 %v15796_v29, %v15663_v12 }
0x1486   : > { %v6225_v58 = vadd.f32 %v15810_v48, %v6224_v63  ;;  %19548 = vst [vmem:[#allocation61_spill] sm:$0xff] %v15825_v16  ;;  %v15843_v63 = vmul.f32 %v15796_v29, %v15627_v26  ;;  %v15863_v26 = vmul.f32 %v15796_v29, %v15672_v25  ;;  %v15867_v54 = vmul.f32 %v15796_v29, %v15681_v4 }
0x1487   : > { %19550 = vst [vmem:[#allocation50_spill] sm:$0xff] %v15849_v46  ;;  %19551 = vst [vmem:[#allocation45_spill] sm:$0xff] %v15853_v7  ;;  %v15873_v16 = vmul.f32 %v15796_v29, %v15690_v6  ;;  %v15877_v12 = vmul.f32 %v15796_v29, %v15699_v10  ;;  %v15885_v4 = vmul.f32 %v15796_v29, %v15708_v9  ;;  %v19558_v46 = vld [vmem:[#allocation28_spill] sm:$0xff] }
0x1488   : > { %19549 = vst [vmem:[#allocation53_spill] sm:$0xff] %v15843_v63  ;;  %v6226_v19 = vrot.slane %v6225_v58, 4  ;;  %19552 = vst [vmem:[#allocation11_spill] sm:$0xff] %v15859_v8  ;;  %v19557_v8 = vld [vmem:[#allocation17_spill] sm:$0xff] }
0x1489   : > { %19553 = vst [vmem:[#allocation31_spill] sm:$0xff] %v15863_v26  ;;  %19554 = vst [vmem:[#allocation41_spill] sm:$0xff] %v15867_v54  ;;  %v19555_v26 = vld [vmem:[#allocation29_spill] sm:$0xff]  ;;  %v19556_v54 = vld [vmem:[#allocation70_spill] sm:$0xff]  ;;  %v6238_v63 = vmul.f32 %v15796_v29, %v19557_v8 }
0x148a   : > { %v6227_v36 = vadd.f32 %v6226_v19, %v6225_v58  ;;  %v15889_v58 = vmul.f32 %v15796_v29, %v15717_v31  ;;  %v6234_v9 = vmul.f32 %v15796_v29, %v19555_v26  ;;  %v6236_v31 = vmul.f32 %v15796_v29, %v19556_v54 }
0x148b   : > { %v6240_v19 = vmul.f32 %v15796_v29, %v19558_v46 }
0x148c   : > { %v6228_v6 = vrot.slane %v6227_v36, 2  ;;  %v6298_v46 = vpack.c.bf16 %v6236_v31, %v6234_v9 }
0x148e   : > { %v6229_v44 = vadd.f32 %v6228_v6, %v6227_v36  ;;  %v19559_v6 = vld [vmem:[#allocation48_spill] sm:$0xff] }
0x1490   : > { %v6230_v25 = vrot.slane %v6229_v44, 1 }
0x1492   : > { %v6231_v7 = vadd.f32 %v6230_v25, %v6229_v44 }
0x1494   : > { %9363 = vrcp.f32 %v6231_v7 }
0x149e   : > { %v15895_v22 = vpop.eup %9363 }
0x149f   : > { %v6235_v36 = vmul.f32 %v15895_v22, %v15567_v15  ;;  %v6237_v7 = vmul.f32 %v15895_v22, %v15573_v50  ;;  %v6239_v44 = vmul.f32 %v15895_v22, %v15586_v21  ;;  %v6241_v26 = vmul.f32 %v15895_v22, %v15598_v38 }
0x14a0   : > { %v6243_v54 = vmul.f32 %v15895_v22, %v15610_v55  ;;  %v6245_v8 = vmul.f32 %v15895_v22, %v15622_v23  ;;  %v6242_v15 = vmul.f32 %v15796_v29, %v19559_v6  ;;  %v6244_v50 = vmul.f32 %v15796_v29, %v15467_v24 }
0x14a1   : > { %v6299_v25 = vpack.c.bf16 %v6237_v7, %v6235_v36  ;;  %v6246_v21 = vmul.f32 %v15796_v29, %v15476_v14  ;;  %v6301_v10 = vpack.c.bf16 %v6241_v26, %v6239_v44  ;;  %v6300_v38 = vpack.c.bf16 %v6240_v19, %v6238_v63 }
0x14a2   : > { %v6247_v36 = vmul.f32 %v15895_v22, %v15634_v13  ;;  %v15927_v55 = vmul.f32 %v15895_v22, %v15712_v17  ;;  %v6249_v23 = vmul.f32 %v15895_v22, %v15646_v30  ;;  %v6265_v24 = vmul.f32 %v15895_v22, %v15721_v27 }
0x14a3   : > { %6330 = vmatprep.subr.bf16.mxu1 %v6299_v25  ;;  %v6267_v14 = vmul.f32 %v15895_v22, %v15728_v33  ;;  %v6269_v63 = vmul.f32 %v15895_v22, %v15734_v1  ;;  %v6303_v19 = vpack.c.bf16 %v6245_v8, %v6243_v54  ;;  %v6271_v13 = vmul.f32 %v15895_v22, %v15740_v61 }
0x14a4   : > { %6331 = vmatpush1.bf16.msra.mxu1 %v6298_v46  ;;  %v6273_v17 = vmul.f32 %v15895_v22, %v15746_v45  ;;  %v6275_v30 = vmul.f32 %v15895_v22, %v15752_v42  ;;  %v6313_v9 = vpack.c.bf16 %v6265_v24, %v15927_v55  ;;  %v6277_v33 = vmul.f32 %v15895_v22, %v15758_v39  ;;  %v19563_v24 = vld [vmem:[#allocation30_spill] sm:$0xff] }
0x14a5   : > { %6332 = vmatprep.subr.bf16.mxu1 %v6301_v10  ;;  %v6315_v27 = vpack.c.bf16 %v6269_v63, %v6267_v14  ;;  %v6279_v1 = vmul.f32 %v15895_v22, %v15767_v20  ;;  %v6281_v31 = vmul.f32 %v15895_v22, %v15770_v2  ;;  %v6283_v61 = vmul.f32 %v15895_v22, %v15776_v43 }
0x14a6   : > { %v6317_v10 = vpack.c.bf16 %v6273_v17, %v6271_v13  ;;  %v6285_v45 = vmul.f32 %v15895_v22, %v15782_v34  ;;  %v6319_v42 = vpack.c.bf16 %v6277_v33, %v6275_v30  ;;  %v6287_v7 = vmul.f32 %v15895_v22, %v15785_v37  ;;  %v19569_v17 = vld [vmem:[#allocation50_spill] sm:$0xff]  ;;  %v19570_v30 = vld [vmem:[#allocation53_spill] sm:$0xff]  ;;  %v19577_v33 = vld [vmem:[#allocation67_spill] sm:$0xff] }
0x14a7   : > { %v6289_v39 = vmul.f32 %v15895_v22, %v15788_v35  ;;  %v6291_v20 = vmul.f32 %v15895_v22, %v15791_v18  ;;  %v6321_v44 = vpack.c.bf16 %v6281_v31, %v6279_v1  ;;  %v6293_v43 = vmul.f32 %v15895_v22, %v15793_v56 }
0x14a8   : > { %6333 = vmatpush1.bf16.msra.mxu1 %v6300_v38  ;;  %v6323_v2 = vpack.c.bf16 %v6285_v45, %v6283_v61  ;;  %v6295_v34 = vmul.f32 %v15895_v22, %v15799_v11  ;;  %v6302_v26 = vpack.c.bf16 %v6244_v50, %v6242_v15  ;;  %v6248_v25 = vmul.f32 %v15796_v29, %v15482_v53  ;;  %v19560_v38 = vld [vmem:[#allocation57_spill] sm:$0xff] }
0x14a9   : > { %6334 = vmatprep.subr.bf16.mxu1 %v6303_v19  ;;  %v6325_v37 = vpack.c.bf16 %v6289_v39, %v6287_v7  ;;  %v6297_v35 = vmul.f32 %v15895_v22, %v15810_v48  ;;  %v6305_v54 = vpack.c.bf16 %v6249_v23, %v6247_v36  ;;  %v6251_v18 = vmul.f32 %v15895_v22, %v15658_v32  ;;  %v19561_v36 = vld [vmem:[#allocation47_spill] sm:$0xff]  ;;  %v19566_v19 = vld [vmem:[#allocation61_spill] sm:$0xff] }
0x14aa   : > { %v6253_v8 = vmul.f32 %v15895_v22, %v15667_v40  ;;  %v6327_v46 = vpack.c.bf16 %v6293_v43, %v6291_v20  ;;  %v6304_v11 = vpack.c.bf16 %v6248_v25, %v6246_v21  ;;  %v6250_v6 = vmul.f32 %v15796_v29, %v15488_v51  ;;  %v19583_v7 = vld [vmem:[#allocation43_spill] sm:$0xff]  ;;  %v19590_v25 = vld [vmem:[#allocation26_spill] sm:$0xff] }
0x14ab   : > { %v6329_v56 = vpack.c.bf16 %v6297_v35, %v6295_v34  ;;  %v6252_v53 = vmul.f32 %v15796_v29, %v15497_v3  ;;  %v6255_v48 = vmul.f32 %v15895_v22, %v15676_v28  ;;  %v6257_v32 = vmul.f32 %v15895_v22, %v15685_v59  ;;  %v19562_v59 = vld [vmem:[#allocation68_spill] sm:$0xff]  ;;  %v19592_v35 = vld [vmem:[#allocation39_spill] sm:$0xff] }
0x14ac   : > { %6335 = vmatpush1.bf16.msra.mxu1 %v6302_v26  ;;  %v6307_v15 = vpack.c.bf16 %v6253_v8, %v6251_v18  ;;  %v6254_v50 = vmul.f32 %v15796_v29, %v15506_v52  ;;  %v6256_v21 = vmul.f32 %v15796_v29, %v15515_v47  ;;  %v6259_v3 = vmul.f32 %v15895_v22, %v19560_v38  ;;  %v19594_v18 = vld [vmem:[#allocation4_spill] sm:$0xff]  ;;  %v19595_v8 = vld [vmem:[#allocation7_spill] sm:$0xff] }
0x14ad   : > { %6336 = vmatprep.subr.bf16.mxu1 %v6305_v54  ;;  %v6306_v40 = vpack.c.bf16 %v6252_v53, %v6250_v6  ;;  %v6309_v51 = vpack.c.bf16 %v6257_v32, %v6255_v48  ;;  %v6261_v55 = vmul.f32 %v15895_v22, %v19561_v36  ;;  %v6258_v23 = vmul.f32 %v15796_v29, %v19562_v59  ;;  %v19593_v54 = vld [vmem:[#allocation27_spill] sm:$0xff]  ;;  %v19599_v6 = vld [vmem:[#allocation25_spill] sm:$0xff]  ;;  %v19600_v53 = vld [vmem:[#allocation14_spill] sm:$0xff] }
0x14ae   : > { %v6308_v28 = vpack.c.bf16 %v6256_v21, %v6254_v50  ;;  %v6260_v14 = vmul.f32 %v15796_v29, %v19563_v24  ;;  %v19564_v63 = vpack.c.bf16 %v15808_v5, %v15804_v0  ;;  %v19565_v22 = vpack.c.bf16 %v15818_v62, %v15814_v57  ;;  %v19572_v5 = vld [vmem:[#allocation11_spill] sm:$0xff] }
0x14af   : > { %v6311_v52 = vpack.c.bf16 %v6261_v55, %v6259_v3  ;;  %v19567_v13 = vpack.c.bf16 %v15829_v49, %v19566_v19  ;;  %v19568_v29 = vpack.c.bf16 %v15839_v60, %v15835_v41  ;;  %v19571_v0 = vpack.c.bf16 %v19569_v17, %v19570_v30  ;;  %v19575_v62 = vld [vmem:[#allocation3_spill] sm:$0xff] }
0x14b0   : > { %6337 = vmatpush1.bf16.msra.mxu1 %v6304_v11  ;;  %v6310_v47 = vpack.c.bf16 %v6260_v14, %v6258_v23  ;;  %v4633_v1 = vadd.f32 %v19577_v33, %v19575_v62  ;;  %v19579_v41 = vld [vmem:[#allocation31_spill] sm:$0xff]  ;;  %v19581_v45 = vpack.c.bf16 %v15877_v12, %v15873_v16  ;;  %v19585_v26 = vmov 0   ;;  %v19586_v16 = vld [vmem:[#allocation42_spill] sm:$0xff]  ;;  %v19587_v12 = vld [vmem:[#allocation5_spill] sm:$0xff] }
0x14b1   : > { %6338 = vmatprep.subr.bf16.mxu1 %v6307_v15  ;;  %v19598_v11 = vld [vmem:[#allocation63_spill] sm:$0xff]  ;;  %v19601_v15 = vld [vmem:[#allocation52_spill] sm:$0xff] }
0x14b2   : > { %v6374_v61 = vmul.f32 0.35355338, %v4633_v1  ;;  %v19602_v48 = vld [vmem:[#allocation75_spill] sm:$0xff] }
0x14b3   : > { %v4835_v32 = vadd.f32 %v19602_v48, %v19601_v15  ;;  %v19603_v50 = vld [vmem:[#allocation55_spill] sm:$0xff] }
0x14b4   : > { %6339 = vmatpush1.bf16.msra.mxu1 %v6306_v40 }
0x14b5   : > { %6340 = vmatprep.subr.bf16.mxu1 %v6309_v51  ;;  %v7148_v40 = vpack.c.bf16 %v4835_v32, %v4835_v32 }
0x14b8   : > { %6341 = vmatpush1.bf16.msra.mxu1 %v6308_v28 }
0x14b9   : > { %6342 = vmatprep.subr.bf16.mxu1 %v6311_v52 }
0x14bc   : > { %6343 = vmatpush1.bf16.msra.mxu1 %v6310_v47 }
0x14bd   : > { %6344 = vmatprep.subr.bf16.mxu1 %v6313_v9  ;;  %v19573_v9 = vld [vmem:[#allocation45_spill] sm:$0xff] }
0x14be   : > { %v19574_v57 = vpack.c.bf16 %v19572_v5, %v19573_v9 }
0x14c0   : > { %6345 = vmatpush1.bf16.msra.mxu1 %v19564_v63 }
0x14c1   : > { %6346 = vmatprep.subr.bf16.mxu1 %v6315_v27  ;;  %v19576_v27 = vld [vmem:[#allocation56_spill] sm:$0xff] }
0x14c2   : > { %v4631_v49 = vadd.f32 %v19576_v27, %v19575_v62 }
0x14c4   : > { %6347 = vmatpush1.bf16.msra.mxu1 %v19565_v22  ;;  %v6373_v31 = vmul.f32 0.35355338, %v4631_v49 }
0x14c5   : > { %6348 = vmatprep.subr.bf16.mxu1 %v6317_v10  ;;  %v19578_v10 = vld [vmem:[#allocation41_spill] sm:$0xff] }
0x14c6   : > { %v19580_v60 = vpack.c.bf16 %v19578_v10, %v19579_v41  ;;  %v6375_v20 = vpack.c.bf16 %v6373_v31, %v6373_v31 }
0x14c8   : > { %6349 = vmatpush1.bf16.msra.mxu1 %v19567_v13  ;;  %v6462_v34 = vsel %vm1280_vm1, %v6375_v20, 0 }
0x14c9   : > { %6350 = vmatprep.subr.bf16.mxu1 %v6319_v42  ;;  %v19582_v42 = vld [vmem:[#allocation20_spill] sm:$0xff] }
0x14ca   : > { %v4823_v39 = vadd.f32 %v19583_v7, %v19582_v42 }
0x14cc   : > { %6351 = vmatpush1.bf16.msra.mxu1 %v19568_v29  ;;  %v5611_v43 = vpack.c.bf16 %v4823_v39, %v4823_v39 }
0x14cd   : > { %6352 = vmatprep.subr.bf16.mxu1 %v6321_v44  ;;  %v6376_v44 = vpack.c.bf16 %v6374_v61, %v6374_v61 }
0x14d0   : > { %6353 = vmatpush1.bf16.msra.mxu1 %v19571_v0 }
0x14d1   : > { %6354 = vmatprep.subr.bf16.mxu1 %v6323_v2  ;;  %v19584_v2 = vpack.c.bf16 %v15889_v58, %v15885_v4  ;;  %v19588_v4 = vld [vmem:[#allocation9_spill] sm:$0xff]  ;;  %v19589_v58 = vld [vmem:[#allocation6_spill] sm:$0xff] }
0x14d4   : > { %6355 = vmatpush1.bf16.msra.mxu1 %v19574_v57 }
0x14d5   : > { %6356 = vmatprep.subr.bf16.mxu1 %v6325_v37  ;;  %v19591_v37 = vld [vmem:[#allocation34_spill] sm:$0xff] }
0x14d8   : > { %6357 = vmatpush1.bf16.msra.mxu1 %v19580_v60 }
0x14d9   : > { %6358 = vmatprep.subr.bf16.mxu1 %v6327_v46  ;;  %v19596_v46 = vld [vmem:[#allocation8_spill] sm:$0xff] }
0x14dc   : > { %6359 = vmatpush1.bf16.msra.mxu1 %v19581_v45 }
0x14dd   : > { %6360 = vmatprep.subr.bf16.mxu1 %v6329_v56  ;;  %v19597_v56 = vld [vmem:[#allocation72_spill] sm:$0xff] }
0x14e0   : > { %6361 = vmatpush1.bf16.msra.mxu1 %v19584_v2 }
0x14e1   : > { %8422 = vmatprep.subr.msk.bf16.mxu1 %vm1280_vm1, %v6376_v44 }
0x14e3   : > { %6363 = vmatmul.mubr.bf16.vlgmr.msra.gmra.mrb[228].mxu1 %v5611_v43 }
0x14e4   : > { %6468 = vmatpush1.bf16.msra.mxu1 %v6462_v34  ;;  %6499 = vmatprep.mubr.bf16.mxu1 %v19585_v26 }
0x14eb   : > { %8423 = vmatmul.mubr.msk.bf16.vlgmr.msra.gmra.mrb[232].mxu1 %vm1231_vm2, %v19586_v16 }
0x14ec   : > { %6509 = vmatprep.mubr.bf16.mxu1 %v19585_v26 }
0x14f3   : > { %8424 = vmatmul.mubr.msk.bf16.gmra.mrb[236].mxu1 %vm1231_vm2, %v19587_v12 }
0x14f4   : > { %6519 = vmatprep.mubr.bf16.mxu1 %v19585_v26 }
0x14fb   : > { %8425 = vmatmul.mubr.msk.bf16.gmra.mrb[240].mxu1 %vm1231_vm2, %v19588_v4 }
0x14fc   : > { %6529 = vmatprep.mubr.bf16.mxu1 %v19585_v26 }
0x1503   : > { %8426 = vmatmul.mubr.msk.bf16.gmra.mrb[244].mxu1 %vm1231_vm2, %v19589_v58 }
0x1504   : > { %6539 = vmatprep.mubr.bf16.mxu1 %v19585_v26 }
0x150b   : > { %8427 = vmatmul.mubr.msk.bf16.gmra.mrb[248].mxu1 %vm1231_vm2, %v19590_v25 }
0x150c   : > { %6549 = vmatprep.mubr.bf16.mxu1 %v19585_v26 }
0x1513   : > { %8428 = vmatmul.mubr.msk.bf16.gmra.mrb[252].mxu1 %vm1231_vm2, %v19591_v37 }
0x1514   : > { %6559 = vmatprep.mubr.bf16.mxu1 %v19585_v26 }
0x151b   : > { %8429 = vmatmul.mubr.msk.bf16.gmra.mrb[0].mxu1 %vm1231_vm2, %v19592_v35 }
0x151c   : > { %6569 = vmatprep.mubr.bf16.mxu1 %v19585_v26 }
0x1523   : > { %8430 = vmatmul.mubr.msk.bf16.gmra.mrb[4].mxu1 %vm1231_vm2, %v19593_v54 }
0x1524   : > { %6579 = vmatprep.mubr.bf16.mxu1 %v19585_v26 }
0x152b   : > { %8431 = vmatmul.mubr.msk.bf16.gmra.mrb[8].mxu1 %vm1231_vm2, %v19594_v18 }
0x152c   : > { %6589 = vmatprep.mubr.bf16.mxu1 %v19585_v26 }
0x1533   : > { %8432 = vmatmul.mubr.msk.bf16.gmra.mrb[12].mxu1 %vm1231_vm2, %v19595_v8 }
0x1534   : > { %6599 = vmatprep.mubr.bf16.mxu1 %v19585_v26 }
0x153b   : > { %8433 = vmatmul.mubr.msk.bf16.gmra.mrb[16].mxu1 %vm1231_vm2, %v19596_v46 }
0x153c   : > { %6609 = vmatprep.mubr.bf16.mxu1 %v19585_v26 }
0x1543   : > { %8434 = vmatmul.mubr.msk.bf16.gmra.mrb[20].mxu1 %vm1231_vm2, %v19597_v56 }
0x1544   : > { %6619 = vmatprep.mubr.bf16.mxu1 %v19585_v26 }
0x154b   : > { %8435 = vmatmul.mubr.msk.bf16.gmra.mrb[24].mxu1 %vm1231_vm2, %v19598_v11 }
0x154c   : > { %6629 = vmatprep.mubr.bf16.mxu1 %v19585_v26 }
0x1553   : > { %8436 = vmatmul.mubr.msk.bf16.gmra.mrb[28].mxu1 %vm1231_vm2, %v19599_v6 }
0x1554   : > { %6639 = vmatprep.mubr.bf16.mxu1 %v19585_v26 }
0x155b   : > { %8437 = vmatmul.mubr.msk.bf16.gmra.mrb[32].mxu1 %vm1231_vm2, %v19600_v53 }
0x155c   : > { %6649 = vmatprep.mubr.bf16.mxu1 %v19585_v26 }
0x1563   : > { %8438 = vmatmul.mubr.msk.bf16.gmra.mrb[36].mxu1 %vm1231_vm2, %v19603_v50 }
0x1564   : > { %7898 = vmatprep.mubr.bf16.mxu1 %v7148_v40 }
0x15b6   : > { %v16077_v21 = vpop.f32.mrb[228].mxu1 }
0x15b7   : > { %19604 = vst [vmem:[#allocation19_spill] sm:$0xff] %v16077_v21  ;;  %v16081_v3 = vpop.f32.mrb[229].mxu1 }
0x15b8   : > { %19606 = vst [vmem:[#allocation74_spill] sm:$0xff] %v16081_v3  ;;  %v6368_v28 = vpop.f32.mrb[230].mxu1 }
0x15b9   : > { %v6369_v59 = vpop.f32.mrb[231].mxu1 }
0x15be   : > { %v16085_v23 = vpop.f32.mrb[232].mxu1 }
0x15bf   : > { %v16087_v24 = vpop.f32.mrb[233].mxu1 }
0x15c0   : > { %v16089_v14 = vpop.f32.mrb[234].mxu1 }
0x15c1   : > { %v16091_v52 = vpop.f32.mrb[235].mxu1 }
0x15c6   : > { %v16093_v47 = vpop.f32.mrb[236].mxu1 }
0x15c7   : > { %v6660_v63 = vmax.f32 %v16085_v23, %v16093_v47  ;;  %v16097_v22 = vpop.f32.mrb[237].mxu1 }
0x15c8   : > { %v6697_v19 = vmax.f32 %v16087_v24, %v16097_v22  ;;  %v16101_v13 = vpop.f32.mrb[238].mxu1 }
0x15c9   : > { %v6661_v29 = vmax.f32 %v16089_v14, %v16101_v13  ;;  %v16105_v17 = vpop.f32.mrb[239].mxu1 }
0x15ca   : > { %v6698_v30 = vmax.f32 %v16091_v52, %v16105_v17 }
0x15ce   : > { %v16109_v0 = vpop.f32.mrb[240].mxu1 }
0x15cf   : > { %v6662_v5 = vmax.f32 %v6660_v63, %v16109_v0  ;;  %v16112_v9 = vpop.f32.mrb[241].mxu1 }
0x15d0   : > { %v6699_v57 = vmax.f32 %v6697_v19, %v16112_v9  ;;  %v16115_v62 = vpop.f32.mrb[242].mxu1 }
0x15d1   : > { %v6663_v27 = vmax.f32 %v6661_v29, %v16115_v62  ;;  %v16118_v49 = vpop.f32.mrb[243].mxu1 }
0x15d2   : > { %v6700_v33 = vmax.f32 %v6698_v30, %v16118_v49 }
0x15d6   : > { %v16121_v1 = vpop.f32.mrb[244].mxu1 }
0x15d7   : > { %v6664_v10 = vmax.f32 %v6662_v5, %v16121_v1  ;;  %v16124_v41 = vpop.f32.mrb[245].mxu1 }
0x15d8   : > { %v6701_v60 = vmax.f32 %v6699_v57, %v16124_v41  ;;  %v16127_v31 = vpop.f32.mrb[246].mxu1 }
0x15d9   : > { %v6665_v61 = vmax.f32 %v6663_v27, %v16127_v31  ;;  %v16130_v45 = vpop.f32.mrb[247].mxu1 }
0x15da   : > { %v6702_v42 = vmax.f32 %v6700_v33, %v16130_v45 }
0x15de   : > { %v16133_v7 = vpop.f32.mrb[248].mxu1 }
0x15df   : > { %v6666_v39 = vmax.f32 %v6664_v10, %v16133_v7  ;;  %v16136_v20 = vpop.f32.mrb[249].mxu1 }
0x15e0   : > { %v6703_v44 = vmax.f32 %v6701_v60, %v16136_v20  ;;  %v16139_v2 = vpop.f32.mrb[250].mxu1 }
0x15e1   : > { %v6667_v43 = vmax.f32 %v6665_v61, %v16139_v2  ;;  %v16142_v34 = vpop.f32.mrb[251].mxu1 }
0x15e2   : > { %v6704_v16 = vmax.f32 %v6702_v42, %v16142_v34 }
0x15e6   : > { %v16145_v12 = vpop.f32.mrb[252].mxu1 }
0x15e7   : > { %v6668_v4 = vmax.f32 %v6666_v39, %v16145_v12  ;;  %v16148_v58 = vpop.f32.mrb[253].mxu1 }
0x15e8   : > { %v6705_v25 = vmax.f32 %v6703_v44, %v16148_v58  ;;  %v16151_v37 = vpop.f32.mrb[254].mxu1 }
0x15e9   : > { %v6669_v35 = vmax.f32 %v6667_v43, %v16151_v37  ;;  %v16154_v54 = vpop.f32.mrb[255].mxu1 }
0x15ea   : > { %19608 = vst [vmem:[#allocation35_spill] sm:$0xff] %v16154_v54  ;;  %v6706_v18 = vmax.f32 %v6704_v16, %v16154_v54 }
0x15ee   : > { %v16157_v8 = vpop.f32.mrb[0].mxu1 }
0x15ef   : > { %v6670_v46 = vmax.f32 %v6668_v4, %v16157_v8  ;;  %v16160_v56 = vpop.f32.mrb[1].mxu1 }
0x15f0   : > { %19609 = vst [vmem:[#allocation37_spill] sm:$0xff] %v16160_v56  ;;  %v6707_v11 = vmax.f32 %v6705_v25, %v16160_v56  ;;  %v16163_v6 = vpop.f32.mrb[2].mxu1 }
0x15f1   : > { %v6671_v53 = vmax.f32 %v6669_v35, %v16163_v6  ;;  %v16166_v15 = vpop.f32.mrb[3].mxu1 }
0x15f2   : > { %19610 = vst [vmem:[#allocation71_spill] sm:$0xff] %v16166_v15  ;;  %v6708_v48 = vmax.f32 %v6706_v18, %v16166_v15 }
0x15f6   : > { %v16169_v32 = vpop.f32.mrb[4].mxu1 }
0x15f7   : > { %v6672_v40 = vmax.f32 %v6670_v46, %v16169_v32  ;;  %v16172_v50 = vpop.f32.mrb[5].mxu1 }
0x15f8   : > { %19611 = vst [vmem:[#allocation18_spill] sm:$0xff] %v16172_v50  ;;  %v6709_v28 = vmax.f32 %v6707_v11, %v16172_v50  ;;  %v16175_v59 = vpop.f32.mrb[6].mxu1 }
0x15f9   : > { %v6673_v63 = vmax.f32 %v6671_v53, %v16175_v59  ;;  %v16178_v19 = vpop.f32.mrb[7].mxu1 }
0x15fa   : > { %19612 = vst [vmem:[#allocation32_spill] sm:$0xff] %v16178_v19  ;;  %v6710_v29 = vmax.f32 %v6708_v48, %v16178_v19 }
0x15fe   : > { %v16181_v30 = vpop.f32.mrb[8].mxu1 }
0x15ff   : > { %v6674_v5 = vmax.f32 %v6672_v40, %v16181_v30  ;;  %v16184_v57 = vpop.f32.mrb[9].mxu1 }
0x1600   : > { %19613 = vst [vmem:[#allocation46_spill] sm:$0xff] %v16184_v57  ;;  %v6711_v27 = vmax.f32 %v6709_v28, %v16184_v57  ;;  %v16187_v33 = vpop.f32.mrb[10].mxu1 }
0x1601   : > { %v6675_v10 = vmax.f32 %v6673_v63, %v16187_v33  ;;  %v16190_v60 = vpop.f32.mrb[11].mxu1 }
0x1602   : > { %19614 = vst [vmem:[#allocation49_spill] sm:$0xff] %v16190_v60  ;;  %v6712_v61 = vmax.f32 %v6710_v29, %v16190_v60 }
0x1606   : > { %v16193_v42 = vpop.f32.mrb[12].mxu1 }
0x1607   : > { %v6676_v39 = vmax.f32 %v6674_v5, %v16193_v42  ;;  %v16196_v44 = vpop.f32.mrb[13].mxu1 }
0x1608   : > { %19615 = vst [vmem:[#allocation23_spill] sm:$0xff] %v16196_v44  ;;  %v6713_v43 = vmax.f32 %v6711_v27, %v16196_v44  ;;  %v16199_v16 = vpop.f32.mrb[14].mxu1 }
0x1609   : > { %v6677_v4 = vmax.f32 %v6675_v10, %v16199_v16  ;;  %v16202_v25 = vpop.f32.mrb[15].mxu1 }
0x160a   : > { %19616 = vst [vmem:[#allocation60_spill] sm:$0xff] %v16202_v25  ;;  %v6714_v35 = vmax.f32 %v6712_v61, %v16202_v25 }
0x160e   : > { %v16205_v18 = vpop.f32.mrb[16].mxu1 }
0x160f   : > { %v6678_v46 = vmax.f32 %v6676_v39, %v16205_v18  ;;  %v16208_v11 = vpop.f32.mrb[17].mxu1 }
0x1610   : > { %19617 = vst [vmem:[#allocation62_spill] sm:$0xff] %v16208_v11  ;;  %v6715_v53 = vmax.f32 %v6713_v43, %v16208_v11  ;;  %v16211_v48 = vpop.f32.mrb[18].mxu1 }
0x1611   : > { %v6679_v40 = vmax.f32 %v6677_v4, %v16211_v48  ;;  %v16214_v28 = vpop.f32.mrb[19].mxu1 }
0x1612   : > { %19618 = vst [vmem:[#allocation29_spill] sm:$0xff] %v16214_v28  ;;  %v6716_v63 = vmax.f32 %v6714_v35, %v16214_v28 }
0x1616   : > { %v16217_v29 = vpop.f32.mrb[20].mxu1 }
0x1617   : > { %v6680_v5 = vmax.f32 %v6678_v46, %v16217_v29  ;;  %v16220_v27 = vpop.f32.mrb[21].mxu1 }
0x1618   : > { %19619 = vst [vmem:[#allocation70_spill] sm:$0xff] %v16220_v27  ;;  %v6717_v10 = vmax.f32 %v6715_v53, %v16220_v27  ;;  %v16223_v61 = vpop.f32.mrb[22].mxu1 }
0x1619   : > { %v6681_v39 = vmax.f32 %v6679_v40, %v16223_v61  ;;  %v16226_v43 = vpop.f32.mrb[23].mxu1 }
0x161a   : > { %19620 = vst [vmem:[#allocation17_spill] sm:$0xff] %v16226_v43  ;;  %v6718_v4 = vmax.f32 %v6716_v63, %v16226_v43 }
0x161e   : > { %v16229_v38 = vpop.f32.mrb[24].mxu1 }
0x161f   : > { %v6682_v35 = vmax.f32 %v6680_v5, %v16229_v38  ;;  %v16232_v55 = vpop.f32.mrb[25].mxu1 }
0x1620   : > { %19621 = vst [vmem:[#allocation28_spill] sm:$0xff] %v16232_v55  ;;  %v6719_v46 = vmax.f32 %v6717_v10, %v16232_v55  ;;  %v16235_v51 = vpop.f32.mrb[26].mxu1 }
0x1621   : > { %v6683_v53 = vmax.f32 %v6681_v39, %v16235_v51  ;;  %v16238_v21 = vpop.f32.mrb[27].mxu1 }
0x1622   : > { %19622 = vst [vmem:[#allocation48_spill] sm:$0xff] %v16238_v21  ;;  %v6720_v40 = vmax.f32 %v6718_v4, %v16238_v21 }
0x1626   : > { %v16241_v36 = vpop.f32.mrb[28].mxu1 }
0x1627   : > { %v6684_v63 = vmax.f32 %v6682_v35, %v16241_v36  ;;  %v16244_v3 = vpop.f32.mrb[29].mxu1 }
0x1628   : > { %19623 = vst [vmem:[#allocation57_spill] sm:$0xff] %v16244_v3  ;;  %v6721_v5 = vmax.f32 %v6719_v46, %v16244_v3  ;;  %v16247_v26 = vpop.f32.mrb[30].mxu1 }
0x1629   : > { %v6685_v10 = vmax.f32 %v6683_v53, %v16247_v26  ;;  %v16250_v55 = vpop.f32.mrb[31].mxu1 }
0x162a   : > { %19624 = vst [vmem:[#allocation47_spill] sm:$0xff] %v16250_v55  ;;  %v6722_v39 = vmax.f32 %v6720_v40, %v16250_v55 }
0x162e   : > { %v16253_v43 = vpop.f32.mrb[32].mxu1 }
0x162f   : > { %v6686_v4 = vmax.f32 %v6684_v63, %v16253_v43  ;;  %v16256_v21 = vpop.f32.mrb[33].mxu1 }
0x1630   : > { %19625 = vst [vmem:[#allocation68_spill] sm:$0xff] %v16256_v21  ;;  %v6723_v35 = vmax.f32 %v6721_v5, %v16256_v21  ;;  %v16259_v27 = vpop.f32.mrb[34].mxu1 }
0x1631   : > { %v6687_v46 = vmax.f32 %v6685_v10, %v16259_v27  ;;  %v16262_v3 = vpop.f32.mrb[35].mxu1 }
0x1632   : > { %19626 = vst [vmem:[#allocation30_spill] sm:$0xff] %v16262_v3  ;;  %v6724_v53 = vmax.f32 %v6722_v39, %v16262_v3 }
0x1636   : > { %v16265_v28 = vpop.f32.mrb[36].mxu1 }
0x1637   : > { %v6688_v40 = vmax.f32 %v6686_v4, %v16265_v28  ;;  %v16268_v55 = vpop.f32.mrb[37].mxu1 }
0x1638   : > { %19627 = vst [vmem:[#allocation61_spill] sm:$0xff] %v16268_v55  ;;  %v6725_v63 = vmax.f32 %v6723_v35, %v16268_v55  ;;  %v16271_v11 = vpop.f32.mrb[38].mxu1 }
0x1639   : > { %v6689_v5 = vmax.f32 %v6687_v46, %v16271_v11  ;;  %v16274_v21 = vpop.f32.mrb[39].mxu1 }
0x163a   : > { %19628 = vst [vmem:[#allocation50_spill] sm:$0xff] %v16274_v21  ;;  %v6726_v10 = vmax.f32 %v6724_v53, %v16274_v21 }
0x163b   : > { %v6690_v25 = vmax.f32 %v6688_v40, %v6689_v5 }
0x163c   : > { %v6727_v44 = vmax.f32 %v6725_v63, %v6726_v10 }
0x163d   : > { %v6691_v60 = vrot.slane %v6690_v25, 4 }
0x163e   : > { %v6728_v39 = vrot.slane %v6727_v44, 4 }
0x163f   : > { %v6692_v3 = vmax.f32 %v6690_v25, %v6691_v60 }
0x1640   : > { %v6729_v57 = vmax.f32 %v6727_v44, %v6728_v39 }
0x1641   : > { %v6693_v19 = vrot.slane %v6692_v3, 2 }
0x1642   : > { %v6730_v4 = vrot.slane %v6729_v57, 2 }
0x1643   : > { %v6694_v50 = vmax.f32 %v6692_v3, %v6693_v19 }
0x1644   : > { %v6731_v15 = vmax.f32 %v6729_v57, %v6730_v4 }
0x1645   : > { %v6695_v56 = vrot.slane %v6694_v50, 1 }
0x1646   : > { %v6732_v35 = vrot.slane %v6731_v15, 1 }
0x1647   : > { %v16277_v55 = vmax.f32 %v6694_v50, %v6695_v56 }
0x1648   : > { %v16279_v54 = vmax.f32 %v6731_v15, %v6732_v35 }
0x1649   : > { %v6734_v46 = vsub.f32 %v16085_v23, %v16277_v55  ;;  %v6736_v53 = vsub.f32 %v16089_v14, %v16277_v55  ;;  %v6738_v60 = vsub.f32 %v16093_v47, %v16277_v55  ;;  %v6740_v44 = vsub.f32 %v16101_v13, %v16277_v55 }
0x164a   : > { %v6742_v3 = vsub.f32 %v16109_v0, %v16277_v55  ;;  %v6744_v56 = vsub.f32 %v16115_v62, %v16277_v55  ;;  %v6746_v15 = vsub.f32 %v16121_v1, %v16277_v55  ;;  %v6748_v23 = vsub.f32 %v16127_v31, %v16277_v55  ;;  %v19651_v1 = vld [vmem:[#allocation47_spill] sm:$0xff] }
0x164b   : > { %v6750_v14 = vsub.f32 %v16133_v7, %v16277_v55  ;;  %v6752_v47 = vsub.f32 %v16139_v2, %v16277_v55  ;;  %v6754_v13 = vsub.f32 %v16145_v12, %v16277_v55  ;;  %v6756_v0 = vsub.f32 %v16151_v37, %v16277_v55  ;;  %v19644_v12 = vld [vmem:[#allocation70_spill] sm:$0xff]  ;;  %v19647_v7 = vld [vmem:[#allocation28_spill] sm:$0xff] }
0x164c   : > { %v6798_v25 = vmul.f32 1.442695, %v6734_v46  ;;  %v6802_v10 = vmul.f32 1.442695, %v6736_v53  ;;  %v6806_v57 = vmul.f32 1.442695, %v6738_v60  ;;  %v19656_v37 = vsub.f32 %v16169_v32, %v16277_v55 }
0x164d   : > { %v6810_v35 = vmul.f32 1.442695, %v6740_v44  ;;  %v6814_v40 = vmul.f32 1.442695, %v6742_v3  ;;  %v6818_v19 = vmul.f32 1.442695, %v6744_v56  ;;  %v19659_v32 = vsub.f32 %v16187_v33, %v16277_v55 }
0x164e   : > { %9365 = vpow2.f32 %v6798_v25  ;;  %v6822_v63 = vmul.f32 1.442695, %v6746_v15  ;;  %v6826_v50 = vmul.f32 1.442695, %v6748_v23  ;;  %v6830_v3 = vmul.f32 1.442695, %v6750_v14 }
0x164f   : > { %9367 = vpow2.f32 %v6802_v10  ;;  %v19631_v14 = vld [vmem:[#allocation35_spill] sm:$0xff]  ;;  %v19632_v15 = vld [vmem:[#allocation37_spill] sm:$0xff]  ;;  %v19635_v25 = vld [vmem:[#allocation18_spill] sm:$0xff]  ;;  %v6838_v46 = vmul.f32 1.442695, %v6754_v13 }
0x1650   : > { %9369 = vpow2.f32 %v6806_v57  ;;  %v19633_v23 = vld [vmem:[#allocation71_spill] sm:$0xff]  ;;  %v19638_v56 = vld [vmem:[#allocation49_spill] sm:$0xff]  ;;  %v19642_v53 = vld [vmem:[#allocation62_spill] sm:$0xff]  ;;  %v6854_v60 = vmul.f32 1.442695, %v19656_v37 }
0x1651   : > { %9371 = vpow2.f32 %v6810_v35  ;;  %v6834_v35 = vmul.f32 1.442695, %v6752_v47  ;;  %v19637_v47 = vld [vmem:[#allocation46_spill] sm:$0xff]  ;;  %v19639_v44 = vld [vmem:[#allocation23_spill] sm:$0xff]  ;;  %v19643_v10 = vld [vmem:[#allocation29_spill] sm:$0xff] }
0x1652   : > { %9373 = vpow2.f32 %v6814_v40  ;;  %v19636_v40 = vld [vmem:[#allocation32_spill] sm:$0xff]  ;;  %v6866_v37 = vmul.f32 1.442695, %v19659_v32 }
0x1653   : > { %9375 = vpow2.f32 %v6818_v19  ;;  %v19648_v13 = vld [vmem:[#allocation48_spill] sm:$0xff] }
0x1654   : > { %9377 = vpow2.f32 %v6822_v63 }
0x1655   : > { %9379 = vpow2.f32 %v6826_v50  ;;  %v19641_v50 = vld [vmem:[#allocation60_spill] sm:$0xff] }
0x1656   : > { %9381 = vpow2.f32 %v6830_v3 }
0x1657   : > { %9383 = vpow2.f32 %v6834_v35  ;;  %v19652_v35 = vld [vmem:[#allocation68_spill] sm:$0xff] }
0x1658   : > { %v16357_v57 = vpop.eup %9365  ;;  %9385 = vpow2.f32 %v6838_v46 }
0x1659   : > { %19629 = vst [vmem:[#allocation53_spill] sm:$0xff] %v16357_v57  ;;  %v16365_v19 = vpop.eup %9367 }
0x165a   : > { %19630 = vst [vmem:[#allocation11_spill] sm:$0xff] %v16365_v19  ;;  %v6926_v5 = vadd.f32 %v16365_v19, %v16357_v57  ;;  %v16379_v63 = vpop.eup %9369  ;;  %v19655_v57 = vsub.f32 %v16163_v6, %v16277_v55  ;;  %v19658_v6 = vsub.f32 %v16181_v30, %v16277_v55  ;;  %v19661_v30 = vsub.f32 %v16091_v52, %v16279_v54 }
0x165b   : > { %19634 = vst [vmem:[#allocation45_spill] sm:$0xff] %v16379_v63  ;;  %v16392_v2 = vpop.eup %9371 }
0x165c   : > { %v6927_v4 = vadd.f32 %v16379_v63, %v6926_v5  ;;  %19640 = vst [vmem:[#allocation3_spill] sm:$0xff] %v16392_v2  ;;  %v6842_v5 = vmul.f32 1.442695, %v6756_v0  ;;  %v16408_v62 = vpop.eup %9373  ;;  %v19653_v63 = vld [vmem:[#allocation30_spill] sm:$0xff]  ;;  %v19654_v0 = vld [vmem:[#allocation61_spill] sm:$0xff] }
0x165d   : > { %19646 = vst [vmem:[#allocation56_spill] sm:$0xff] %v16408_v62  ;;  %v16424_v3 = vpop.eup %9375  ;;  %v6850_v19 = vmul.f32 1.442695, %v19655_v57  ;;  %v6862_v57 = vmul.f32 1.442695, %v19658_v6 }
0x165e   : > { %v6928_v39 = vadd.f32 %v16392_v2, %v6927_v4  ;;  %v19650_v4 = vsub.f32 %v16157_v8, %v16277_v55  ;;  %9387 = vpow2.f32 %v6842_v5 }
0x1660   : > { %v6846_v2 = vmul.f32 1.442695, %v19650_v4  ;;  %v6929_v31 = vadd.f32 %v16408_v62, %v6928_v39  ;;  %v16433_v4 = vpop.eup %9377 }
0x1661   : > { %v16439_v62 = vpop.eup %9379 }
0x1662   : > { %v6930_v39 = vadd.f32 %v16424_v3, %v6929_v31  ;;  %9389 = vpow2.f32 %v6846_v2  ;;  %v16445_v21 = vpop.eup %9381  ;;  %v19657_v31 = vsub.f32 %v16175_v59, %v16277_v55 }
0x1663   : > { %9391 = vpow2.f32 %v6850_v19  ;;  %v16454_v2 = vpop.eup %9383  ;;  %v19660_v19 = vsub.f32 %v16087_v24, %v16279_v54  ;;  %v19663_v24 = vsub.f32 %v16097_v22, %v16279_v54 }
0x1664   : > { %v6931_v46 = vadd.f32 %v16433_v4, %v6930_v39  ;;  %v6858_v5 = vmul.f32 1.442695, %v19657_v31  ;;  %9393 = vpow2.f32 %v6854_v60  ;;  %v16463_v31 = vpop.eup %9385  ;;  %v19662_v60 = vsub.f32 %v16193_v42, %v16277_v55 }
0x1665   : > { %v6800_v59 = vmul.f32 1.442695, %v19660_v19  ;;  %v19666_v42 = vsub.f32 %v16105_v17, %v16279_v54 }
0x1666   : > { %v6932_v8 = vadd.f32 %v16439_v62, %v6931_v46  ;;  %9395 = vpow2.f32 %v6858_v5  ;;  %v6870_v6 = vmul.f32 1.442695, %v19662_v60  ;;  %v19664_v5 = vsub.f32 %v16199_v16, %v16277_v55 }
0x1667   : > { %9397 = vpow2.f32 %v6862_v57  ;;  %v19669_v16 = vsub.f32 %v16112_v9, %v16279_v54 }
0x1668   : > { %v6933_v39 = vadd.f32 %v16445_v21, %v6932_v8  ;;  %v6804_v8 = vmul.f32 1.442695, %v19661_v30  ;;  %v16472_v32 = vpop.eup %9387  ;;  %9399 = vpow2.f32 %v6866_v37  ;;  %v6874_v19 = vmul.f32 1.442695, %v19664_v5 }
0x1669   : > { %9401 = vpow2.f32 %v6800_v59  ;;  %v19667_v37 = vsub.f32 %v16205_v18, %v16277_v55  ;;  %v6816_v59 = vmul.f32 1.442695, %v19669_v16  ;;  %v19671_v18 = vsub.f32 %v16118_v49, %v16279_v54 }
0x166a   : > { %v6934_v46 = vadd.f32 %v16454_v2, %v6933_v39  ;;  %v6808_v39 = vmul.f32 1.442695, %v19663_v24  ;;  %9403 = vpow2.f32 %v6804_v8  ;;  %v19670_v8 = vsub.f32 %v16211_v48, %v16277_v55 }
0x166b   : > { %9405 = vpow2.f32 %v6870_v6  ;;  %v6878_v22 = vmul.f32 1.442695, %v19667_v37  ;;  %v6820_v24 = vmul.f32 1.442695, %v19671_v18  ;;  %v19673_v48 = vsub.f32 %v16124_v41, %v16279_v54 }
0x166c   : > { %v6935_v33 = vadd.f32 %v16463_v31, %v6934_v46  ;;  %v16481_v57 = vpop.eup %9389  ;;  %v6812_v46 = vmul.f32 1.442695, %v19666_v42  ;;  %9407 = vpow2.f32 %v6808_v39  ;;  %v6882_v17 = vmul.f32 1.442695, %v19670_v8 }
0x166d   : > { %19665 = vst [vmem:[#allocation67_spill] sm:$0xff] %v16481_v57  ;;  %v16490_v60 = vpop.eup %9391  ;;  %9409 = vpow2.f32 %v6874_v19  ;;  %v19672_v39 = vsub.f32 %v16217_v29, %v16277_v55  ;;  %v19674_v49 = vsub.f32 %v16223_v61, %v16277_v55  ;;  %v19676_v41 = vsub.f32 %v16229_v38, %v16277_v55 }
0x166e   : > { %v6936_v52 = vadd.f32 %v16472_v32, %v6935_v33  ;;  %19668 = vst [vmem:[#allocation41_spill] sm:$0xff] %v16490_v60  ;;  %v16499_v33 = vpop.eup %9393  ;;  %9411 = vpow2.f32 %v6812_v46 }
0x166f   : > { %9413 = vpow2.f32 %v6878_v22  ;;  %v6886_v9 = vmul.f32 1.442695, %v19672_v39  ;;  %v6890_v46 = vmul.f32 1.442695, %v19674_v49  ;;  %v19675_v22 = vsub.f32 %v16130_v45, %v16279_v54 }
0x1670   : > { %v6937_v30 = vadd.f32 %v16481_v57, %v6936_v52  ;;  %v16508_v19 = vpop.eup %9395  ;;  %9415 = vpow2.f32 %v6816_v59  ;;  %v6824_v52 = vmul.f32 1.442695, %v19673_v48  ;;  %v6894_v59 = vmul.f32 1.442695, %v19676_v41 }
0x1671   : > { %v16513_v42 = vpop.eup %9397  ;;  %9417 = vpow2.f32 %v6882_v17  ;;  %v19677_v17 = vsub.f32 %v16136_v20, %v16279_v54  ;;  %v19678_v45 = vsub.f32 %v16235_v51, %v16277_v55  ;;  %v19682_v41 = vsub.f32 %v16247_v26, %v16277_v55 }
0x1672   : > { %v6938_v6 = vadd.f32 %v16490_v60, %v6937_v30  ;;  %v16519_v29 = vpop.eup %9399  ;;  %9419 = vpow2.f32 %v6820_v24  ;;  %v6828_v30 = vmul.f32 1.442695, %v19675_v22  ;;  %v19681_v22 = vsub.f32 %v16148_v58, %v16279_v54 }
0x1673   : > { %v16524_v16 = vpop.eup %9401  ;;  %9421 = vpow2.f32 %v6886_v9  ;;  %v6898_v24 = vmul.f32 1.442695, %v19678_v45 }
0x1674   : > { %v6939_v5 = vadd.f32 %v16499_v33, %v6938_v6  ;;  %v16530_v61 = vpop.eup %9403  ;;  %9423 = vpow2.f32 %v6824_v52  ;;  %v6832_v6 = vmul.f32 1.442695, %v19677_v17  ;;  %v19680_v52 = vsub.f32 %v16241_v36, %v16277_v55 }
0x1675   : > { %v16535_v18 = vpop.eup %9405  ;;  %9425 = vpow2.f32 %v6890_v46  ;;  %v6963_v38 = vadd.f32 %v16530_v61, %v16524_v16 }
0x1676   : > { %v6940_v37 = vadd.f32 %v16508_v19, %v6939_v5  ;;  %v16543_v9 = vpop.eup %9407  ;;  %9427 = vpow2.f32 %v6828_v30  ;;  %v19679_v5 = vsub.f32 %v16142_v34, %v16279_v54  ;;  %v6902_v51 = vmul.f32 1.442695, %v19680_v52 }
0x1677   : > { %v16548_v48 = vpop.eup %9409  ;;  %9429 = vpow2.f32 %v6894_v59  ;;  %v6964_v46 = vadd.f32 %v16543_v9, %v6963_v38  ;;  %v6840_v30 = vmul.f32 1.442695, %v19681_v22  ;;  %v6906_v59 = vmul.f32 1.442695, %v19682_v41 }
0x1678   : > { %v6941_v8 = vadd.f32 %v16513_v42, %v6940_v37  ;;  %v6836_v20 = vmul.f32 1.442695, %v19679_v5  ;;  %v16555_v37 = vpop.eup %9411  ;;  %9431 = vpow2.f32 %v6832_v6  ;;  %v19683_v6 = vsub.f32 %v19631_v14, %v16279_v54 }
0x1679   : > { %v16560_v34 = vpop.eup %9413  ;;  %9433 = vpow2.f32 %v6898_v24  ;;  %v19684_v24 = vsub.f32 %v16253_v43, %v16277_v55 }
0x167a   : > { %v6942_v39 = vadd.f32 %v16519_v29, %v6941_v8  ;;  %v6965_v8 = vadd.f32 %v16555_v37, %v6964_v46  ;;  %v16567_v17 = vpop.eup %9415  ;;  %9435 = vpow2.f32 %v6836_v20  ;;  %v6844_v45 = vmul.f32 1.442695, %v19683_v6 }
0x167b   : > { %v16572_v58 = vpop.eup %9417  ;;  %9437 = vpow2.f32 %v6902_v51  ;;  %v19685_v20 = vsub.f32 %v19632_v15, %v16279_v54  ;;  %v19686_v51 = vsub.f32 %v16259_v27, %v16277_v55 }
0x167c   : > { %v6943_v49 = vadd.f32 %v16535_v18, %v6942_v39  ;;  %v6910_v39 = vmul.f32 1.442695, %v19684_v24  ;;  %v6966_v38 = vadd.f32 %v16567_v17, %v6965_v8  ;;  %v16579_v5 = vpop.eup %9419  ;;  %9439 = vpow2.f32 %v6840_v30 }
0x167d   : > { %v6848_v52 = vmul.f32 1.442695, %v19685_v20  ;;  %v16584_v14 = vpop.eup %9421  ;;  %9441 = vpow2.f32 %v6906_v59  ;;  %v19687_v30 = vsub.f32 %v19633_v23, %v16279_v54  ;;  %v19688_v59 = vsub.f32 %v16265_v28, %v16277_v55 }
0x167e   : > { %v6944_v36 = vadd.f32 %v16548_v48, %v6943_v49  ;;  %v6914_v49 = vmul.f32 1.442695, %v19686_v51  ;;  %v6967_v46 = vadd.f32 %v16579_v5, %v6966_v38  ;;  %v16591_v22 = vpop.eup %9423  ;;  %9443 = vpow2.f32 %v6844_v45 }
0x167f   : > { %v6852_v41 = vmul.f32 1.442695, %v19687_v30  ;;  %v16596_v15 = vpop.eup %9425  ;;  %9445 = vpow2.f32 %v6910_v39  ;;  %v19689_v45 = vsub.f32 %v19635_v25, %v16279_v54  ;;  %v19690_v39 = vsub.f32 %v16271_v11, %v16277_v55 }
0x1680   : > { %v6945_v26 = vadd.f32 %v16560_v34, %v6944_v36  ;;  %v6918_v36 = vmul.f32 1.442695, %v19688_v59  ;;  %v6968_v8 = vadd.f32 %v16591_v22, %v6967_v46  ;;  %v16603_v6 = vpop.eup %9427  ;;  %9447 = vpow2.f32 %v6848_v52 }
0x1681   : > { %v6856_v24 = vmul.f32 1.442695, %v19689_v45  ;;  %v16608_v23 = vpop.eup %9429  ;;  %9449 = vpow2.f32 %v6914_v49  ;;  %v19691_v52 = vsub.f32 %v19636_v40, %v16279_v54  ;;  %v19692_v11 = vsub.f32 %v19637_v47, %v16279_v54 }
0x1682   : > { %v6946_v43 = vadd.f32 %v16572_v58, %v6945_v26  ;;  %v6922_v26 = vmul.f32 1.442695, %v19690_v39  ;;  %v6969_v38 = vadd.f32 %v16603_v6, %v6968_v8  ;;  %v16615_v20 = vpop.eup %9431  ;;  %9451 = vpow2.f32 %v6852_v41 }
0x1683   : > { %v6860_v51 = vmul.f32 1.442695, %v19691_v52  ;;  %v16620_v25 = vpop.eup %9433  ;;  %9453 = vpow2.f32 %v6918_v36  ;;  %v6864_v46 = vmul.f32 1.442695, %v19692_v11  ;;  %v19693_v36 = vsub.f32 %v19638_v56, %v16279_v54 }
0x1684   : > { %v6947_v27 = vadd.f32 %v16584_v14, %v6946_v43  ;;  %v6970_v43 = vadd.f32 %v16615_v20, %v6969_v38  ;;  %v16624_v55 = vpop.eup %9435  ;;  %9455 = vpow2.f32 %v6856_v24  ;;  %v19694_v39 = vsub.f32 %v19639_v44, %v16279_v54 }
0x1685   : > { %v16629_v30 = vpop.eup %9437  ;;  %9457 = vpow2.f32 %v6922_v26 }
0x1686   : > { %v6948_v28 = vadd.f32 %v16596_v15, %v6947_v27  ;;  %v6971_v41 = vadd.f32 %v16624_v55, %v6970_v43  ;;  %v16633_v59 = vpop.eup %9439  ;;  %9459 = vpow2.f32 %v6860_v51  ;;  %v6868_v27 = vmul.f32 1.442695, %v19693_v36 }
0x1687   : > { %v16638_v8 = vpop.eup %9441  ;;  %9461 = vpow2.f32 %v6864_v46  ;;  %v6872_v26 = vmul.f32 1.442695, %v19694_v39  ;;  %v19696_v51 = vsub.f32 %v19641_v50, %v16279_v54 }
0x1688   : > { %v6949_v49 = vadd.f32 %v16608_v23, %v6948_v28  ;;  %v6972_v47 = vadd.f32 %v16633_v59, %v6971_v41  ;;  %v16642_v24 = vpop.eup %9443  ;;  %9463 = vpow2.f32 %v6868_v27 }
0x1689   : > { %v16647_v28 = vpop.eup %9445  ;;  %9465 = vpow2.f32 %v6872_v26 }
0x168a   : > { %v6950_v40 = vadd.f32 %v16620_v25, %v6949_v49  ;;  %v6973_v56 = vadd.f32 %v16642_v24, %v6972_v47  ;;  %v16651_v52 = vpop.eup %9447  ;;  %v6876_v49 = vmul.f32 1.442695, %v19696_v51  ;;  %v19699_v47 = vsub.f32 %v19643_v10, %v16279_v54  ;;  %v19701_v10 = vld [vmem:[#allocation17_spill] sm:$0xff] }
0x168b   : > { %19695 = vst [vmem:[#allocation31_spill] sm:$0xff] %v16651_v52  ;;  %v16656_v43 = vpop.eup %9449  ;;  %v19700_v51 = vsub.f32 %v19644_v12, %v16279_v54  ;;  %v19703_v12 = vsub.f32 %v19647_v7, %v16279_v54 }
0x168c   : > { %v6951_v45 = vadd.f32 %v16629_v30, %v6950_v40  ;;  %v6974_v44 = vadd.f32 %v16651_v52, %v6973_v56  ;;  %v16660_v46 = vpop.eup %9451  ;;  %v19698_v40 = vsub.f32 %v19642_v53, %v16279_v54  ;;  %9467 = vpow2.f32 %v6876_v49 }
0x168d   : > { %19697 = vst [vmem:[#allocation20_spill] sm:$0xff] %v16660_v46  ;;  %v16665_v36 = vpop.eup %9453  ;;  %v6884_v39 = vmul.f32 1.442695, %v19699_v47  ;;  %v19702_v47 = vsub.f32 %v19701_v10, %v16279_v54 }
0x168e   : > { %v6952_v38 = vadd.f32 %v16638_v8, %v6951_v45  ;;  %v6880_v41 = vmul.f32 1.442695, %v19698_v40  ;;  %v6975_v50 = vadd.f32 %v16660_v46, %v6974_v44  ;;  %v16669_v45 = vpop.eup %9455 }
0x1690   : > { %v6953_v11 = vadd.f32 %v16647_v28, %v6952_v38  ;;  %v16674_v38 = vpop.eup %9457  ;;  %v6976_v53 = vadd.f32 %v16669_v45, %v6975_v50  ;;  %9469 = vpow2.f32 %v6880_v41  ;;  %v6896_v41 = vmul.f32 1.442695, %v19703_v12 }
0x1691   : > { %v16678_v56 = vpop.eup %9459  ;;  %9471 = vpow2.f32 %v6884_v39  ;;  %v19704_v39 = vsub.f32 %v19648_v13, %v16279_v54  ;;  %v19707_v13 = vsub.f32 %v19651_v1, %v16279_v54 }
0x1692   : > { %v6954_v27 = vadd.f32 %v16656_v43, %v6953_v11  ;;  %v6888_v11 = vmul.f32 1.442695, %v19700_v51  ;;  %v6977_v49 = vadd.f32 %v16678_v56, %v6976_v53  ;;  %v16685_v40 = vpop.eup %9461 }
0x1693   : > { %v16691_v57 = vpop.eup %9463  ;;  %v6900_v10 = vmul.f32 1.442695, %v19704_v39 }
0x1694   : > { %v6955_v26 = vadd.f32 %v16665_v36, %v6954_v27  ;;  %v6892_v27 = vmul.f32 1.442695, %v19702_v47  ;;  %v6978_v50 = vadd.f32 %v16685_v40, %v6977_v49  ;;  %9473 = vpow2.f32 %v6888_v11  ;;  %v16697_v51 = vpop.eup %9465  ;;  %v19705_v11 = vld [vmem:[#allocation57_spill] sm:$0xff] }
0x1695   : > { %v19706_v7 = vsub.f32 %v19705_v11, %v16279_v54 }
0x1696   : > { %v6956_v44 = vadd.f32 %v16674_v38, %v6955_v26  ;;  %v6979_v53 = vadd.f32 %v16691_v57, %v6978_v50  ;;  %9475 = vpow2.f32 %v6892_v27  ;;  %v16703_v46 = vpop.eup %9467  ;;  %v6908_v27 = vmul.f32 1.442695, %v19707_v13 }
0x1697   : > { %9477 = vpow2.f32 %v6896_v41  ;;  %v6904_v12 = vmul.f32 1.442695, %v19706_v7  ;;  %v19708_v41 = vsub.f32 %v19652_v35, %v16279_v54 }
0x1698   : > { %v6957_v60 = vrot.slane %v6956_v44, 4  ;;  %v6980_v49 = vadd.f32 %v16697_v51, %v6979_v53  ;;  %9479 = vpow2.f32 %v6900_v10 }
0x1699   : > { %9481 = vpow2.f32 %v6904_v12  ;;  %v6912_v11 = vmul.f32 1.442695, %v19708_v41  ;;  %v19710_v12 = vsub.f32 %v19654_v0, %v16279_v54 }
0x169a   : > { %v6958_v26 = vadd.f32 %v6957_v60, %v6956_v44  ;;  %v6981_v44 = vadd.f32 %v16703_v46, %v6980_v49  ;;  %v16709_v50 = vpop.eup %9469  ;;  %9483 = vpow2.f32 %v6908_v27 }
0x169b   : > { %v16715_v52 = vpop.eup %9471  ;;  %9485 = vpow2.f32 %v6912_v11  ;;  %v6920_v35 = vmul.f32 1.442695, %v19710_v12 }
0x169c   : > { %v6959_v47 = vrot.slane %v6958_v26, 2  ;;  %v6982_v53 = vadd.f32 %v16709_v50, %v6981_v44 }
0x169e   : > { %v6960_v60 = vadd.f32 %v6959_v47, %v6958_v26  ;;  %v19709_v26 = vsub.f32 %v19653_v63, %v16279_v54  ;;  %v6983_v10 = vadd.f32 %v16715_v52, %v6982_v53  ;;  %v16724_v49 = vpop.eup %9473  ;;  %v19711_v53 = vld [vmem:[#allocation50_spill] sm:$0xff] }
0x169f   : > { %v19712_v41 = vsub.f32 %v19711_v53, %v16279_v54 }
0x16a0   : > { %v6961_v39 = vrot.slane %v6960_v60, 1  ;;  %v6916_v47 = vmul.f32 1.442695, %v19709_v26  ;;  %v6984_v7 = vadd.f32 %v16724_v49, %v6983_v10  ;;  %v16727_v44 = vpop.eup %9475 }
0x16a1   : > { %v16733_v63 = vpop.eup %9477 }
0x16a2   : > { %v6962_v1 = vadd.f32 %v6961_v39, %v6960_v60  ;;  %9487 = vpow2.f32 %v6916_v47  ;;  %v6985_v13 = vadd.f32 %v16727_v44, %v6984_v7  ;;  %v6924_v60 = vmul.f32 1.442695, %v19712_v41  ;;  %v16739_v39 = vpop.eup %9479 }
0x16a3   : > { %v16742_v26 = vpop.eup %9481 }
0x16a4   : > { %9489 = vrcp.f32 %v6962_v1  ;;  %v6986_v27 = vadd.f32 %v16733_v63, %v6985_v13  ;;  %v16745_v47 = vpop.eup %9483 }
0x16a5   : > { %9491 = vpow2.f32 %v6920_v35  ;;  %v16748_v1 = vpop.eup %9485 }
0x16a6   : > { %v6987_v11 = vadd.f32 %v16739_v39, %v6986_v27  ;;  %9493 = vpow2.f32 %v6924_v60 }
0x16a8   : > { %v6988_v0 = vadd.f32 %v16742_v26, %v6987_v11 }
0x16aa   : > { %v6989_v10 = vadd.f32 %v16745_v47, %v6988_v0 }
0x16ac   : > { %v16750_v54 = vpop.eup %9487  ;;  %v6990_v7 = vadd.f32 %v16748_v1, %v6989_v10 }
0x16ae   : > { %v16753_v12 = vpop.eup %9489  ;;  %v6991_v35 = vadd.f32 %v16750_v54, %v6990_v7 }
0x16af   : > { %v16756_v13 = vpop.eup %9491  ;;  %v16761_v41 = vmul.f32 %v16753_v12, %v16499_v33  ;;  %v16765_v60 = vmul.f32 %v16753_v12, %v16508_v19  ;;  %v16771_v11 = vmul.f32 %v16753_v12, %v16513_v42  ;;  %v16775_v0 = vmul.f32 %v16753_v12, %v16519_v29 }
0x16b0   : > { %v6992_v53 = vadd.f32 %v16756_v13, %v6991_v35  ;;  %v16767_v27 = vpop.eup %9493  ;;  %v16782_v7 = vmul.f32 %v16753_v12, %v16535_v18  ;;  %v16786_v19 = vmul.f32 %v16753_v12, %v16548_v48  ;;  %v16792_v29 = vmul.f32 %v16753_v12, %v16560_v34 }
0x16b1   : > { %v16796_v35 = vmul.f32 %v16753_v12, %v16572_v58  ;;  %v16806_v33 = vmul.f32 %v16753_v12, %v16596_v15  ;;  %v16810_v34 = vmul.f32 %v16753_v12, %v16608_v23  ;;  %v16816_v42 = vmul.f32 %v16753_v12, %v16620_v25 }
0x16b2   : > { %v6993_v10 = vadd.f32 %v16767_v27, %v6992_v53  ;;  %19713 = vst [vmem:[#allocation43_spill] sm:$0xff] %v16782_v7  ;;  %v16800_v53 = vmul.f32 %v16753_v12, %v16584_v14  ;;  %v16820_v14 = vmul.f32 %v16753_v12, %v16629_v30  ;;  %v16824_v48 = vmul.f32 %v16753_v12, %v16638_v8 }
0x16b3   : > { %19715 = vst [vmem:[#allocation5_spill] sm:$0xff] %v16806_v33  ;;  %19716 = vst [vmem:[#allocation9_spill] sm:$0xff] %v16810_v34  ;;  %v16830_v7 = vmul.f32 %v16753_v12, %v16647_v28  ;;  %v16834_v25 = vmul.f32 %v16753_v12, %v16656_v43  ;;  %v16842_v8 = vmul.f32 %v16753_v12, %v16665_v36  ;;  %v19723_v33 = vld [vmem:[#allocation3_spill] sm:$0xff] }
0x16b4   : > { %19714 = vst [vmem:[#allocation42_spill] sm:$0xff] %v16800_v53  ;;  %v6994_v18 = vrot.slane %v6993_v10, 4  ;;  %19717 = vst [vmem:[#allocation6_spill] sm:$0xff] %v16816_v42  ;;  %v19722_v42 = vld [vmem:[#allocation45_spill] sm:$0xff] }
0x16b5   : > { %19718 = vst [vmem:[#allocation26_spill] sm:$0xff] %v16820_v14  ;;  %19719 = vst [vmem:[#allocation34_spill] sm:$0xff] %v16824_v48  ;;  %v19720_v14 = vld [vmem:[#allocation53_spill] sm:$0xff]  ;;  %v19721_v48 = vld [vmem:[#allocation11_spill] sm:$0xff]  ;;  %v7006_v53 = vmul.f32 %v16753_v12, %v19722_v42 }
0x16b6   : > { %v6995_v15 = vadd.f32 %v6994_v18, %v6993_v10  ;;  %v16846_v10 = vmul.f32 %v16753_v12, %v16674_v38  ;;  %v7002_v36 = vmul.f32 %v16753_v12, %v19720_v14  ;;  %v7004_v38 = vmul.f32 %v16753_v12, %v19721_v48 }
0x16b7   : > { %v7008_v18 = vmul.f32 %v16753_v12, %v19723_v33 }
0x16b8   : > { %v6996_v28 = vrot.slane %v6995_v15, 2  ;;  %v7066_v33 = vpack.c.bf16 %v7004_v38, %v7002_v36 }
0x16ba   : > { %v6997_v23 = vadd.f32 %v6996_v28, %v6995_v15  ;;  %v19724_v28 = vld [vmem:[#allocation56_spill] sm:$0xff] }
0x16bc   : > { %v6998_v30 = vrot.slane %v6997_v23, 1 }
0x16be   : > { %v6999_v34 = vadd.f32 %v6998_v30, %v6997_v23 }
0x16c0   : > { %9495 = vrcp.f32 %v6999_v34 }
0x16ca   : > { %v16852_v58 = vpop.eup %9495 }
0x16cb   : > { %v7003_v15 = vmul.f32 %v16852_v58, %v16524_v16  ;;  %v7005_v34 = vmul.f32 %v16852_v58, %v16530_v61  ;;  %v7007_v23 = vmul.f32 %v16852_v58, %v16543_v9  ;;  %v7009_v14 = vmul.f32 %v16852_v58, %v16555_v37 }
0x16cc   : > { %v7011_v48 = vmul.f32 %v16852_v58, %v16567_v17  ;;  %v7013_v42 = vmul.f32 %v16852_v58, %v16579_v5  ;;  %v7010_v16 = vmul.f32 %v16753_v12, %v19724_v28  ;;  %v7012_v61 = vmul.f32 %v16753_v12, %v16424_v3 }
0x16cd   : > { %v7067_v30 = vpack.c.bf16 %v7005_v34, %v7003_v15  ;;  %v7014_v9 = vmul.f32 %v16753_v12, %v16433_v4  ;;  %v7069_v43 = vpack.c.bf16 %v7009_v14, %v7007_v23  ;;  %v7068_v37 = vpack.c.bf16 %v7008_v18, %v7006_v53 }
0x16ce   : > { %v7015_v15 = vmul.f32 %v16852_v58, %v16591_v22  ;;  %v16884_v17 = vmul.f32 %v16852_v58, %v16669_v45  ;;  %v7017_v5 = vmul.f32 %v16852_v58, %v16603_v6  ;;  %v7033_v3 = vmul.f32 %v16852_v58, %v16678_v56 }
0x16cf   : > { %7098 = vmatprep.subr.bf16.mxu0 %v7067_v30  ;;  %v7035_v4 = vmul.f32 %v16852_v58, %v16685_v40  ;;  %v7037_v53 = vmul.f32 %v16852_v58, %v16691_v57  ;;  %v7071_v18 = vpack.c.bf16 %v7013_v42, %v7011_v48  ;;  %v7039_v22 = vmul.f32 %v16852_v58, %v16697_v51 }
0x16d0   : > { %7099 = vmatpush1.bf16.msra.mxu0 %v7066_v33  ;;  %v7041_v45 = vmul.f32 %v16852_v58, %v16703_v46  ;;  %v7043_v6 = vmul.f32 %v16852_v58, %v16709_v50  ;;  %v7081_v36 = vpack.c.bf16 %v7033_v3, %v16884_v17  ;;  %v7045_v40 = vmul.f32 %v16852_v58, %v16715_v52  ;;  %v19728_v3 = vld [vmem:[#allocation41_spill] sm:$0xff] }
0x16d1   : > { %7100 = vmatprep.subr.bf16.mxu0 %v7069_v43  ;;  %v7083_v56 = vpack.c.bf16 %v7037_v53, %v7035_v4  ;;  %v7047_v57 = vmul.f32 %v16852_v58, %v16724_v49  ;;  %v7049_v38 = vmul.f32 %v16852_v58, %v16727_v44  ;;  %v7051_v51 = vmul.f32 %v16852_v58, %v16733_v63 }
0x16d2   : > { %v7085_v43 = vpack.c.bf16 %v7041_v45, %v7039_v22  ;;  %v7053_v46 = vmul.f32 %v16852_v58, %v16739_v39  ;;  %v7087_v50 = vpack.c.bf16 %v7045_v40, %v7043_v6  ;;  %v7055_v34 = vmul.f32 %v16852_v58, %v16742_v26  ;;  %v19734_v45 = vld [vmem:[#allocation5_spill] sm:$0xff]  ;;  %v19735_v6 = vld [vmem:[#allocation42_spill] sm:$0xff]  ;;  %v19741_v40 = vld [vmem:[#allocation40_spill] sm:$0xff] }
0x16d3   : > { %v7057_v52 = vmul.f32 %v16852_v58, %v16745_v47  ;;  %v7059_v49 = vmul.f32 %v16852_v58, %v16748_v1  ;;  %v7089_v23 = vpack.c.bf16 %v7049_v38, %v7047_v57  ;;  %v7061_v63 = vmul.f32 %v16852_v58, %v16750_v54  ;;  %v19743_v38 = vld [vmem:[#allocation26_spill] sm:$0xff] }
0x16d4   : > { %7101 = vmatpush1.bf16.msra.mxu0 %v7068_v37  ;;  %v7091_v44 = vpack.c.bf16 %v7053_v46, %v7051_v51  ;;  %v7063_v39 = vmul.f32 %v16852_v58, %v16756_v13  ;;  %v7070_v14 = vpack.c.bf16 %v7012_v61, %v7010_v16  ;;  %v7016_v30 = vmul.f32 %v16753_v12, %v16439_v62  ;;  %v19725_v37 = vld [vmem:[#allocation31_spill] sm:$0xff] }
0x16d5   : > { %7102 = vmatprep.subr.bf16.mxu0 %v7071_v18  ;;  %v7093_v26 = vpack.c.bf16 %v7057_v52, %v7055_v34  ;;  %v7065_v47 = vmul.f32 %v16852_v58, %v16767_v27  ;;  %v7073_v48 = vpack.c.bf16 %v7017_v5, %v7015_v15  ;;  %v7019_v1 = vmul.f32 %v16852_v58, %v16615_v20  ;;  %v19726_v15 = vld [vmem:[#allocation20_spill] sm:$0xff]  ;;  %v19731_v18 = vld [vmem:[#allocation43_spill] sm:$0xff] }
0x16d6   : > { %v7021_v42 = vmul.f32 %v16852_v58, %v16624_v55  ;;  %v7095_v33 = vpack.c.bf16 %v7061_v63, %v7059_v49  ;;  %v7072_v13 = vpack.c.bf16 %v7016_v30, %v7014_v9  ;;  %v7018_v28 = vmul.f32 %v16753_v12, %v16445_v21  ;;  %v19747_v49 = vld [vmem:[#allocation54_spill] sm:$0xff]  ;;  %v19755_v30 = vld [vmem:[#allocation51_spill] sm:$0xff] }
0x16d7   : > { %v7097_v54 = vpack.c.bf16 %v7065_v47, %v7063_v39  ;;  %v7020_v62 = vmul.f32 %v16753_v12, %v16454_v2  ;;  %v7023_v27 = vmul.f32 %v16852_v58, %v16633_v59  ;;  %v7025_v20 = vmul.f32 %v16852_v58, %v16642_v24  ;;  %v19727_v24 = vld [vmem:[#allocation67_spill] sm:$0xff]  ;;  %v19753_v39 = vld [vmem:[#allocation24_spill] sm:$0xff] }
0x16d8   : > { %7103 = vmatpush1.bf16.msra.mxu0 %v7070_v14  ;;  %v7075_v16 = vpack.c.bf16 %v7021_v42, %v7019_v1  ;;  %v7022_v61 = vmul.f32 %v16753_v12, %v16463_v31  ;;  %v7024_v9 = vmul.f32 %v16753_v12, %v16472_v32  ;;  %v7027_v2 = vmul.f32 %v16852_v58, %v19725_v37  ;;  %v19754_v14 = vld [vmem:[#allocation13_spill] sm:$0xff] }
0x16d9   : > { %7104 = vmatprep.subr.bf16.mxu0 %v7073_v48  ;;  %v7074_v55 = vpack.c.bf16 %v7020_v62, %v7018_v28  ;;  %v7077_v21 = vpack.c.bf16 %v7025_v20, %v7023_v27  ;;  %v7029_v17 = vmul.f32 %v16852_v58, %v19726_v15  ;;  %v7026_v5 = vmul.f32 %v16753_v12, %v19727_v24 }
0x16da   : > { %v7076_v59 = vpack.c.bf16 %v7024_v9, %v7022_v61  ;;  %v7028_v4 = vmul.f32 %v16753_v12, %v19728_v3  ;;  %v19729_v53 = vpack.c.bf16 %v16765_v60, %v16761_v41  ;;  %v19730_v58 = vpack.c.bf16 %v16775_v0, %v16771_v11  ;;  %v4568_v60 = vpop.permute.xlu1 %4567  ;;  %v19738_v11 = vld [vmem:[#allocation9_spill] sm:$0xff] }
0x16db   : > { %v7079_v31 = vpack.c.bf16 %v7029_v17, %v7027_v2  ;;  %v19732_v22 = vpack.c.bf16 %v16786_v19, %v19731_v18  ;;  %v19733_v12 = vpack.c.bf16 %v16796_v35, %v16792_v29  ;;  %v19736_v41 = vpack.c.bf16 %v19734_v45, %v19735_v6 }
0x16dc   : > { %7105 = vmatpush1.bf16.msra.mxu0 %v7072_v13  ;;  %v7078_v32 = vpack.c.bf16 %v7028_v4, %v7026_v5  ;;  %v4637_v57 = vadd.f32 %v19741_v40, %v4568_v60  ;;  %v19745_v46 = vpack.c.bf16 %v16834_v25, %v16830_v7  ;;  %v19746_v52 = vpack.c.bf16 %v16846_v10, %v16842_v8  ;;  %v19749_v7 = vld [vmem:[#allocation10_spill] sm:$0xff]  ;;  %v19750_v25 = vld [vmem:[#allocation73_spill] sm:$0xff]  ;;  %v19752_v10 = vld [vmem:[#allocation36_spill] sm:$0xff] }
0x16dd   : > { %7106 = vmatprep.subr.bf16.mxu0 %v7075_v16  ;;  %v19748_v63 = vmov 0   ;;  %v19751_v8 = vld [vmem:[#allocation38_spill] sm:$0xff] }
0x16de   : > { %v7142_v51 = vmul.f32 0.35355338, %v4637_v57  ;;  %v7173_v47 = vpop.trf.xlu1 }
0x16e0   : > { %7107 = vmatpush1.bf16.msra.mxu0 %v7074_v55  ;;  %v7144_v34 = vpack.c.bf16 %v7142_v51, %v7142_v51 }
0x16e1   : > { %7108 = vmatprep.subr.bf16.mxu0 %v7077_v21 }
0x16e2   : > { %v7174_v48 = vpop.trf.xlu1 }
0x16e4   : > { %7109 = vmatpush1.bf16.msra.mxu0 %v7076_v59 }
0x16e5   : > { %7110 = vmatprep.subr.bf16.mxu0 %v7079_v31 }
0x16e6   : > { %v7175_v1 = vpop.trf.xlu1 }
0x16e8   : > { %7111 = vmatpush1.bf16.msra.mxu0 %v7078_v32 }
0x16e9   : > { %7112 = vmatprep.subr.bf16.mxu0 %v7081_v36  ;;  %v19737_v36 = vld [vmem:[#allocation6_spill] sm:$0xff] }
0x16ea   : > { %v19739_v0 = vpack.c.bf16 %v19737_v36, %v19738_v11  ;;  %v7176_v42 = vpop.trf.xlu1 }
0x16ec   : > { %7113 = vmatpush1.bf16.msra.mxu0 %v19729_v53 }
0x16ed   : > { %7114 = vmatprep.subr.bf16.mxu0 %v7083_v56  ;;  %v19740_v56 = vld [vmem:[#allocation69_spill] sm:$0xff] }
0x16ee   : > { %v4635_v19 = vadd.f32 %v19740_v56, %v4568_v60 }
0x16f0   : > { %7115 = vmatpush1.bf16.msra.mxu0 %v19730_v58  ;;  %v7141_v35 = vmul.f32 0.35355338, %v4635_v19 }
0x16f1   : > { %7116 = vmatprep.subr.bf16.mxu0 %v7085_v43  ;;  %v19742_v43 = vld [vmem:[#allocation34_spill] sm:$0xff] }
0x16f2   : > { %v19744_v29 = vpack.c.bf16 %v19742_v43, %v19743_v38 }
0x16f4   : > { %7117 = vmatpush1.bf16.msra.mxu0 %v19732_v22 }
0x16f5   : > { %7118 = vmatprep.subr.bf16.mxu0 %v7087_v50  ;;  %v7143_v50 = vpack.c.bf16 %v7141_v35, %v7141_v35 }
0x16f8   : > { %7119 = vmatpush1.bf16.msra.mxu0 %v19733_v12 }
0x16f9   : > { %7120 = vmatprep.subr.bf16.mxu0 %v7089_v23  ;;  %v6379_v23 = vpack.c.bf16 %v19747_v49, %v19747_v49 }
0x16fc   : > { %7121 = vmatpush1.bf16.msra.mxu0 %v19736_v41 }
0x16fd   : > { %7122 = vmatprep.subr.bf16.mxu0 %v7091_v44  ;;  %v7230_v44 = vsel %vm1280_vm1, %v7143_v50, 0 }
0x1700   : > { %7123 = vmatpush1.bf16.msra.mxu0 %v19739_v0 }
0x1701   : > { %7124 = vmatprep.subr.bf16.mxu0 %v7093_v26  ;;  %v19756_v26 = vld [vmem:[#allocation21_spill] sm:$0xff] }
0x1704   : > { %7125 = vmatpush1.bf16.msra.mxu0 %v19744_v29 }
0x1705   : > { %7126 = vmatprep.subr.bf16.mxu0 %v7095_v33  ;;  %v7177_v33 = vpop.trf.xlu1 }
0x1708   : > { %7127 = vmatpush1.bf16.msra.mxu0 %v19745_v46 }
0x1709   : > { %7128 = vmatprep.subr.bf16.mxu0 %v7097_v54  ;;  %v7178_v54 = vpop.trf.xlu1 }
0x170c   : > { %7129 = vmatpush1.bf16.msra.mxu0 %v19746_v52 }
0x170d   : > { %8439 = vmatprep.subr.msk.bf16.mxu0 %vm1280_vm1, %v7144_v34  ;;  %v7179_v13 = vpop.trf.xlu1 }
0x170f   : > { %7131 = vmatmul.mubr.bf16.vlgmr.msra.gmra.mrb[0].mxu0 %v6379_v23 }
0x1710   : > { %7236 = vmatpush1.bf16.msra.mxu0 %v7230_v44  ;;  %7267 = vmatprep.mubr.bf16.mxu0 %v19748_v63 }
0x1711   : > { %v7180_v28 = vpop.trf.xlu1 }
0x1717   : > { %8440 = vmatmul.mubr.msk.bf16.vlgmr.msra.gmra.mrb[4].mxu0 %vm1231_vm2, %v19749_v7 }
0x1718   : > { %7277 = vmatprep.mubr.bf16.mxu0 %v19748_v63 }
0x171f   : > { %8441 = vmatmul.mubr.msk.bf16.gmra.mrb[8].mxu0 %vm1231_vm2, %v19750_v25 }
0x1720   : > { %7287 = vmatprep.mubr.bf16.mxu0 %v19748_v63 }
0x1727   : > { %8442 = vmatmul.mubr.msk.bf16.gmra.mrb[12].mxu0 %vm1231_vm2, %v19751_v8 }
0x1728   : > { %7297 = vmatprep.mubr.bf16.mxu0 %v19748_v63 }
0x172f   : > { %8443 = vmatmul.mubr.msk.bf16.gmra.mrb[16].mxu0 %vm1231_vm2, %v19752_v10 }
0x1730   : > { %7307 = vmatprep.mubr.bf16.mxu0 %v19748_v63 }
0x1737   : > { %8444 = vmatmul.mubr.msk.bf16.gmra.mrb[20].mxu0 %vm1231_vm2, %v19753_v39 }
0x1738   : > { %7317 = vmatprep.mubr.bf16.mxu0 %v19748_v63 }
0x173f   : > { %8445 = vmatmul.mubr.msk.bf16.gmra.mrb[24].mxu0 %vm1231_vm2, %v19754_v14 }
0x1740   : > { %7327 = vmatprep.mubr.bf16.mxu0 %v19748_v63 }
0x1747   : > { %8446 = vmatmul.mubr.msk.bf16.gmra.mrb[28].mxu0 %vm1231_vm2, %v19755_v30 }
0x1748   : > { %7337 = vmatprep.mubr.bf16.mxu0 %v19748_v63 }
0x174f   : > { %8447 = vmatmul.mubr.msk.bf16.gmra.mrb[32].mxu0 %vm1231_vm2, %v19756_v26 }
0x1750   : > { %7347 = vmatprep.mubr.bf16.mxu0 %v19748_v63 }
0x1757   : > { %8448 = vmatmul.mubr.msk.bf16.gmra.mrb[36].mxu0 %vm1231_vm2, %v7173_v47 }
0x1758   : > { %7357 = vmatprep.mubr.bf16.mxu0 %v19748_v63 }
0x175f   : > { %8449 = vmatmul.mubr.msk.bf16.gmra.mrb[40].mxu0 %vm1231_vm2, %v7174_v48 }
0x1760   : > { %7367 = vmatprep.mubr.bf16.mxu0 %v19748_v63 }
0x1767   : > { %8450 = vmatmul.mubr.msk.bf16.gmra.mrb[44].mxu0 %vm1231_vm2, %v7175_v1 }
0x1768   : > { %7377 = vmatprep.mubr.bf16.mxu0 %v19748_v63 }
0x176f   : > { %8451 = vmatmul.mubr.msk.bf16.gmra.mrb[48].mxu0 %vm1231_vm2, %v7176_v42 }
0x1770   : > { %7387 = vmatprep.mubr.bf16.mxu0 %v19748_v63 }
0x1777   : > { %8452 = vmatmul.mubr.msk.bf16.gmra.mrb[52].mxu0 %vm1231_vm2, %v7177_v33 }
0x1778   : > { %7397 = vmatprep.mubr.bf16.mxu0 %v19748_v63 }
0x177f   : > { %8453 = vmatmul.mubr.msk.bf16.gmra.mrb[56].mxu0 %vm1231_vm2, %v7178_v54 }
0x1780   : > { %7407 = vmatprep.mubr.bf16.mxu0 %v19748_v63 }
0x1787   : > { %8454 = vmatmul.mubr.msk.bf16.gmra.mrb[60].mxu0 %vm1231_vm2, %v7179_v13 }
0x1788   : > { %7417 = vmatprep.mubr.bf16.mxu0 %v19748_v63 }
0x178f   : > { %8455 = vmatmul.mubr.msk.bf16.gmra.mrb[64].mxu0 %vm1231_vm2, %v7180_v28 }
0x17e2   : > { %v17022_v62 = vpop.f32.mrb[0].mxu0 }
0x17e3   : > { %19757 = vst [vmem:[#allocation39_spill] sm:$0xff] %v17022_v62  ;;  %v17024_v16 = vpop.f32.mrb[1].mxu0 }
0x17e4   : > { %19758 = vst [vmem:[#allocation27_spill] sm:$0xff] %v17024_v16  ;;  %v7136_v27 = vpop.f32.mrb[2].mxu0 }
0x17e5   : > { %v7137_v20 = vpop.f32.mrb[3].mxu0 }
0x17ea   : > { %v17026_v55 = vpop.f32.mrb[4].mxu0 }
0x17eb   : > { %v17028_v61 = vpop.f32.mrb[5].mxu0 }
0x17ec   : > { %v17030_v9 = vpop.f32.mrb[6].mxu0 }
0x17ed   : > { %v17032_v21 = vpop.f32.mrb[7].mxu0 }
0x17f2   : > { %v17034_v37 = vpop.f32.mrb[8].mxu0 }
0x17f3   : > { %v7428_v2 = vmax.f32 %v17026_v55, %v17034_v37  ;;  %v17038_v15 = vpop.f32.mrb[9].mxu0 }
0x17f4   : > { %v7465_v17 = vmax.f32 %v17028_v61, %v17038_v15  ;;  %v17042_v59 = vpop.f32.mrb[10].mxu0 }
0x17f5   : > { %v7429_v24 = vmax.f32 %v17030_v9, %v17042_v59  ;;  %v17046_v5 = vpop.f32.mrb[11].mxu0 }
0x17f6   : > { %v7466_v3 = vmax.f32 %v17032_v21, %v17046_v5 }
0x17fa   : > { %v17050_v4 = vpop.f32.mrb[12].mxu0 }
0x17fb   : > { %v7430_v31 = vmax.f32 %v7428_v2, %v17050_v4  ;;  %v17053_v32 = vpop.f32.mrb[13].mxu0 }
0x17fc   : > { %v7467_v53 = vmax.f32 %v7465_v17, %v17053_v32  ;;  %v17056_v58 = vpop.f32.mrb[14].mxu0 }
0x17fd   : > { %v7431_v18 = vmax.f32 %v7429_v24, %v17056_v58  ;;  %v17059_v22 = vpop.f32.mrb[15].mxu0 }
0x17fe   : > { %v7468_v12 = vmax.f32 %v7466_v3, %v17059_v22 }
0x1802   : > { %v17062_v45 = vpop.f32.mrb[16].mxu0 }
0x1803   : > { %v7432_v6 = vmax.f32 %v7430_v31, %v17062_v45  ;;  %v17065_v41 = vpop.f32.mrb[17].mxu0 }
0x1804   : > { %v7469_v60 = vmax.f32 %v7467_v53, %v17065_v41  ;;  %v17068_v36 = vpop.f32.mrb[18].mxu0 }
0x1805   : > { %v7433_v11 = vmax.f32 %v7431_v18, %v17068_v36  ;;  %v17071_v0 = vpop.f32.mrb[19].mxu0 }
0x1806   : > { %v7470_v56 = vmax.f32 %v7468_v12, %v17071_v0 }
0x180a   : > { %v17074_v19 = vpop.f32.mrb[20].mxu0 }
0x180b   : > { %v7434_v40 = vmax.f32 %v7432_v6, %v17074_v19  ;;  %v17077_v57 = vpop.f32.mrb[21].mxu0 }
0x180c   : > { %v7471_v43 = vmax.f32 %v7469_v60, %v17077_v57  ;;  %v17080_v38 = vpop.f32.mrb[22].mxu0 }
0x180d   : > { %v7435_v29 = vmax.f32 %v7433_v11, %v17080_v38  ;;  %v17083_v35 = vpop.f32.mrb[23].mxu0 }
0x180e   : > { %v7472_v51 = vmax.f32 %v7470_v56, %v17083_v35 }
0x1812   : > { %v17086_v46 = vpop.f32.mrb[24].mxu0 }
0x1813   : > { %v7436_v50 = vmax.f32 %v7434_v40, %v17086_v46  ;;  %v17089_v34 = vpop.f32.mrb[25].mxu0 }
0x1814   : > { %v7473_v52 = vmax.f32 %v7471_v43, %v17089_v34  ;;  %v17092_v49 = vpop.f32.mrb[26].mxu0 }
0x1815   : > { %v7437_v23 = vmax.f32 %v7435_v29, %v17092_v49  ;;  %v17095_v44 = vpop.f32.mrb[27].mxu0 }
0x1816   : > { %19759 = vst [vmem:[#allocation4_spill] sm:$0xff] %v17095_v44  ;;  %v7474_v7 = vmax.f32 %v7472_v51, %v17095_v44 }
0x181a   : > { %v17098_v25 = vpop.f32.mrb[28].mxu0 }
0x181b   : > { %v7438_v8 = vmax.f32 %v7436_v50, %v17098_v25  ;;  %v17101_v10 = vpop.f32.mrb[29].mxu0 }
0x181c   : > { %19760 = vst [vmem:[#allocation7_spill] sm:$0xff] %v17101_v10  ;;  %v7475_v39 = vmax.f32 %v7473_v52, %v17101_v10  ;;  %v17104_v14 = vpop.f32.mrb[30].mxu0 }
0x181d   : > { %v7439_v30 = vmax.f32 %v7437_v23, %v17104_v14  ;;  %v17107_v26 = vpop.f32.mrb[31].mxu0 }
0x181e   : > { %19761 = vst [vmem:[#allocation8_spill] sm:$0xff] %v17107_v26  ;;  %v7476_v47 = vmax.f32 %v7474_v7, %v17107_v26 }
0x1822   : > { %v17110_v48 = vpop.f32.mrb[32].mxu0 }
0x1823   : > { %v7440_v1 = vmax.f32 %v7438_v8, %v17110_v48  ;;  %v17113_v42 = vpop.f32.mrb[33].mxu0 }
0x1824   : > { %19762 = vst [vmem:[#allocation72_spill] sm:$0xff] %v17113_v42  ;;  %v7477_v33 = vmax.f32 %v7475_v39, %v17113_v42  ;;  %v17116_v54 = vpop.f32.mrb[34].mxu0 }
0x1825   : > { %v7441_v13 = vmax.f32 %v7439_v30, %v17116_v54  ;;  %v17119_v28 = vpop.f32.mrb[35].mxu0 }
0x1826   : > { %19763 = vst [vmem:[#allocation63_spill] sm:$0xff] %v17119_v28  ;;  %v7478_v27 = vmax.f32 %v7476_v47, %v17119_v28 }
0x182a   : > { %v17122_v20 = vpop.f32.mrb[36].mxu0 }
0x182b   : > { %v7442_v2 = vmax.f32 %v7440_v1, %v17122_v20  ;;  %v17125_v17 = vpop.f32.mrb[37].mxu0 }
0x182c   : > { %19764 = vst [vmem:[#allocation25_spill] sm:$0xff] %v17125_v17  ;;  %v7479_v24 = vmax.f32 %v7477_v33, %v17125_v17  ;;  %v17128_v3 = vpop.f32.mrb[38].mxu0 }
0x182d   : > { %v7443_v31 = vmax.f32 %v7441_v13, %v17128_v3  ;;  %v17131_v53 = vpop.f32.mrb[39].mxu0 }
0x182e   : > { %19765 = vst [vmem:[#allocation14_spill] sm:$0xff] %v17131_v53  ;;  %v7480_v18 = vmax.f32 %v7478_v27, %v17131_v53 }
0x1832   : > { %v17134_v12 = vpop.f32.mrb[40].mxu0 }
0x1833   : > { %v7444_v6 = vmax.f32 %v7442_v2, %v17134_v12  ;;  %v17137_v60 = vpop.f32.mrb[41].mxu0 }
0x1834   : > { %19766 = vst [vmem:[#allocation52_spill] sm:$0xff] %v17137_v60  ;;  %v7481_v11 = vmax.f32 %v7479_v24, %v17137_v60  ;;  %v17140_v56 = vpop.f32.mrb[42].mxu0 }
0x1835   : > { %v7445_v40 = vmax.f32 %v7443_v31, %v17140_v56  ;;  %v17143_v43 = vpop.f32.mrb[43].mxu0 }
0x1836   : > { %19767 = vst [vmem:[#allocation75_spill] sm:$0xff] %v17143_v43  ;;  %v7482_v29 = vmax.f32 %v7480_v18, %v17143_v43 }
0x183a   : > { %v17146_v51 = vpop.f32.mrb[44].mxu0 }
0x183b   : > { %v7446_v50 = vmax.f32 %v7444_v6, %v17146_v51  ;;  %v17149_v52 = vpop.f32.mrb[45].mxu0 }
0x183c   : > { %19768 = vst [vmem:[#allocation55_spill] sm:$0xff] %v17149_v52  ;;  %v7483_v23 = vmax.f32 %v7481_v11, %v17149_v52  ;;  %v17152_v7 = vpop.f32.mrb[46].mxu0 }
0x183d   : > { %v7447_v8 = vmax.f32 %v7445_v40, %v17152_v7  ;;  %v17155_v39 = vpop.f32.mrb[47].mxu0 }
0x183e   : > { %19769 = vst [vmem:[#allocation35_spill] sm:$0xff] %v17155_v39  ;;  %v7484_v30 = vmax.f32 %v7482_v29, %v17155_v39 }
0x1842   : > { %v17158_v47 = vpop.f32.mrb[48].mxu0 }
0x1843   : > { %v7448_v1 = vmax.f32 %v7446_v50, %v17158_v47  ;;  %v17161_v33 = vpop.f32.mrb[49].mxu0 }
0x1844   : > { %19770 = vst [vmem:[#allocation37_spill] sm:$0xff] %v17161_v33  ;;  %v7485_v13 = vmax.f32 %v7483_v23, %v17161_v33  ;;  %v17164_v27 = vpop.f32.mrb[50].mxu0 }
0x1845   : > { %v7449_v2 = vmax.f32 %v7447_v8, %v17164_v27  ;;  %v17167_v24 = vpop.f32.mrb[51].mxu0 }
0x1846   : > { %19771 = vst [vmem:[#allocation71_spill] sm:$0xff] %v17167_v24  ;;  %v7486_v31 = vmax.f32 %v7484_v30, %v17167_v24 }
0x184a   : > { %v17170_v18 = vpop.f32.mrb[52].mxu0 }
0x184b   : > { %v7450_v6 = vmax.f32 %v7448_v1, %v17170_v18  ;;  %v17173_v11 = vpop.f32.mrb[53].mxu0 }
0x184c   : > { %19772 = vst [vmem:[#allocation18_spill] sm:$0xff] %v17173_v11  ;;  %v7487_v40 = vmax.f32 %v7485_v13, %v17173_v11  ;;  %v17176_v29 = vpop.f32.mrb[54].mxu0 }
0x184d   : > { %v7451_v50 = vmax.f32 %v7449_v2, %v17176_v29  ;;  %v17179_v23 = vpop.f32.mrb[55].mxu0 }
0x184e   : > { %19773 = vst [vmem:[#allocation32_spill] sm:$0xff] %v17179_v23  ;;  %v7488_v8 = vmax.f32 %v7486_v31, %v17179_v23 }
0x1852   : > { %v17182_v16 = vpop.f32.mrb[56].mxu0 }
0x1853   : > { %v7452_v30 = vmax.f32 %v7450_v6, %v17182_v16  ;;  %v17185_v62 = vpop.f32.mrb[57].mxu0 }
0x1854   : > { %19774 = vst [vmem:[#allocation46_spill] sm:$0xff] %v17185_v62  ;;  %v7489_v1 = vmax.f32 %v7487_v40, %v17185_v62  ;;  %v17188_v63 = vpop.f32.mrb[58].mxu0 }
0x1855   : > { %v7453_v13 = vmax.f32 %v7451_v50, %v17188_v63  ;;  %v17191_v11 = vpop.f32.mrb[59].mxu0 }
0x1856   : > { %19775 = vst [vmem:[#allocation49_spill] sm:$0xff] %v17191_v11  ;;  %v7490_v2 = vmax.f32 %v7488_v8, %v17191_v11 }
0x185a   : > { %v17194_v24 = vpop.f32.mrb[60].mxu0 }
0x185b   : > { %v7454_v31 = vmax.f32 %v7452_v30, %v17194_v24  ;;  %v17197_v23 = vpop.f32.mrb[61].mxu0 }
0x185c   : > { %19776 = vst [vmem:[#allocation23_spill] sm:$0xff] %v17197_v23  ;;  %v7491_v6 = vmax.f32 %v7489_v1, %v17197_v23  ;;  %v17200_v33 = vpop.f32.mrb[62].mxu0 }
0x185d   : > { %v7455_v40 = vmax.f32 %v7453_v13, %v17200_v33  ;;  %v17203_v62 = vpop.f32.mrb[63].mxu0 }
0x185e   : > { %19777 = vst [vmem:[#allocation60_spill] sm:$0xff] %v17203_v62  ;;  %v7492_v50 = vmax.f32 %v7490_v2, %v17203_v62 }
0x1862   : > { %v17206_v39 = vpop.f32.mrb[64].mxu0 }
0x1863   : > { %v7456_v8 = vmax.f32 %v7454_v31, %v17206_v39  ;;  %v17209_v11 = vpop.f32.mrb[65].mxu0 }
0x1864   : > { %19778 = vst [vmem:[#allocation62_spill] sm:$0xff] %v17209_v11  ;;  %v7493_v30 = vmax.f32 %v7491_v6, %v17209_v11  ;;  %v17212_v52 = vpop.f32.mrb[66].mxu0 }
0x1865   : > { %v7457_v1 = vmax.f32 %v7455_v40, %v17212_v52  ;;  %v17215_v23 = vpop.f32.mrb[67].mxu0 }
0x1866   : > { %19779 = vst [vmem:[#allocation29_spill] sm:$0xff] %v17215_v23  ;;  %v7494_v13 = vmax.f32 %v7492_v50, %v17215_v23 }
0x1867   : > { %v7458_v43 = vmax.f32 %v7456_v8, %v7457_v1 }
0x1868   : > { %v7495_v60 = vmax.f32 %v7493_v30, %v7494_v13 }
0x1869   : > { %v7459_v53 = vrot.slane %v7458_v43, 4 }
0x186a   : > { %v7496_v2 = vrot.slane %v7495_v60, 4 }
0x186b   : > { %v7460_v62 = vmax.f32 %v7458_v43, %v7459_v53 }
0x186c   : > { %v7497_v17 = vmax.f32 %v7495_v60, %v7496_v2 }
0x186d   : > { %v7461_v28 = vrot.slane %v7460_v62, 2 }
0x186e   : > { %v7498_v31 = vrot.slane %v7497_v17, 2 }
0x186f   : > { %v7462_v42 = vmax.f32 %v7460_v62, %v7461_v28 }
0x1870   : > { %v7499_v26 = vmax.f32 %v7497_v17, %v7498_v31 }
0x1871   : > { %v7463_v10 = vrot.slane %v7462_v42, 1 }
0x1872   : > { %v7500_v6 = vrot.slane %v7499_v26, 1 }
0x1873   : > { %v17218_v11 = vmax.f32 %v7462_v42, %v7463_v10 }
0x1874   : > { %v17220_v44 = vmax.f32 %v7499_v26, %v7500_v6 }
0x1875   : > { %v7502_v40 = vsub.f32 %v17026_v55, %v17218_v11  ;;  %v7504_v50 = vsub.f32 %v17030_v9, %v17218_v11  ;;  %v7506_v53 = vsub.f32 %v17034_v37, %v17218_v11  ;;  %v7508_v60 = vsub.f32 %v17042_v59, %v17218_v11 }
0x1876   : > { %v7510_v62 = vsub.f32 %v17050_v4, %v17218_v11  ;;  %v7512_v10 = vsub.f32 %v17056_v58, %v17218_v11  ;;  %v7514_v26 = vsub.f32 %v17062_v45, %v17218_v11  ;;  %v7516_v55 = vsub.f32 %v17068_v36, %v17218_v11  ;;  %v19802_v45 = vld [vmem:[#allocation49_spill] sm:$0xff] }
0x1877   : > { %v7518_v9 = vsub.f32 %v17074_v19, %v17218_v11  ;;  %v7520_v37 = vsub.f32 %v17080_v38, %v17218_v11  ;;  %v7522_v59 = vsub.f32 %v17086_v46, %v17218_v11  ;;  %v7524_v4 = vsub.f32 %v17092_v49, %v17218_v11  ;;  %v19795_v46 = vld [vmem:[#allocation37_spill] sm:$0xff]  ;;  %v19798_v19 = vld [vmem:[#allocation18_spill] sm:$0xff] }
0x1878   : > { %v7566_v43 = vmul.f32 1.442695, %v7502_v40  ;;  %v7570_v13 = vmul.f32 1.442695, %v7504_v50  ;;  %v7574_v17 = vmul.f32 1.442695, %v7506_v53  ;;  %v19807_v49 = vsub.f32 %v17110_v48, %v17218_v11 }
0x1879   : > { %v7578_v6 = vmul.f32 1.442695, %v7508_v60  ;;  %v7582_v8 = vmul.f32 1.442695, %v7510_v62  ;;  %v7586_v28 = vmul.f32 1.442695, %v7512_v10  ;;  %v19810_v48 = vsub.f32 %v17128_v3, %v17218_v11 }
0x187a   : > { %9497 = vpow2.f32 %v7566_v43  ;;  %v7590_v30 = vmul.f32 1.442695, %v7514_v26  ;;  %v7594_v42 = vmul.f32 1.442695, %v7516_v55  ;;  %v7598_v62 = vmul.f32 1.442695, %v7518_v9 }
0x187b   : > { %9499 = vpow2.f32 %v7570_v13  ;;  %v19782_v9 = vld [vmem:[#allocation4_spill] sm:$0xff]  ;;  %v19783_v26 = vld [vmem:[#allocation7_spill] sm:$0xff]  ;;  %v7606_v40 = vmul.f32 1.442695, %v7522_v59  ;;  %v19789_v10 = vld [vmem:[#allocation14_spill] sm:$0xff] }
0x187c   : > { %9501 = vpow2.f32 %v7574_v17  ;;  %v19784_v55 = vld [vmem:[#allocation8_spill] sm:$0xff]  ;;  %v19793_v50 = vld [vmem:[#allocation55_spill] sm:$0xff]  ;;  %v7622_v53 = vmul.f32 1.442695, %v19807_v49  ;;  %v7634_v49 = vmul.f32 1.442695, %v19810_v48 }
0x187d   : > { %9503 = vpow2.f32 %v7578_v6  ;;  %v7602_v6 = vmul.f32 1.442695, %v7520_v37  ;;  %v19786_v43 = vld [vmem:[#allocation72_spill] sm:$0xff]  ;;  %v19788_v37 = vld [vmem:[#allocation25_spill] sm:$0xff]  ;;  %v19794_v13 = vld [vmem:[#allocation35_spill] sm:$0xff] }
0x187e   : > { %9505 = vpow2.f32 %v7582_v8  ;;  %v19787_v8 = vld [vmem:[#allocation63_spill] sm:$0xff]  ;;  %v19790_v60 = vld [vmem:[#allocation52_spill] sm:$0xff] }
0x187f   : > { %9507 = vpow2.f32 %v7586_v28  ;;  %v19799_v59 = vld [vmem:[#allocation32_spill] sm:$0xff] }
0x1880   : > { %9509 = vpow2.f32 %v7590_v30 }
0x1881   : > { %9511 = vpow2.f32 %v7594_v42  ;;  %v19792_v42 = vld [vmem:[#allocation75_spill] sm:$0xff] }
0x1882   : > { %9513 = vpow2.f32 %v7598_v62 }
0x1883   : > { %9515 = vpow2.f32 %v7602_v6  ;;  %v19803_v6 = vld [vmem:[#allocation23_spill] sm:$0xff] }
0x1884   : > { %v17298_v17 = vpop.eup %9497  ;;  %9517 = vpow2.f32 %v7606_v40 }
0x1885   : > { %19780 = vst [vmem:[#allocation70_spill] sm:$0xff] %v17298_v17  ;;  %v17306_v28 = vpop.eup %9499 }
0x1886   : > { %19781 = vst [vmem:[#allocation28_spill] sm:$0xff] %v17306_v28  ;;  %v7694_v1 = vadd.f32 %v17306_v28, %v17298_v17  ;;  %v17320_v30 = vpop.eup %9501  ;;  %v19806_v17 = vsub.f32 %v17104_v14, %v17218_v11  ;;  %v19809_v14 = vsub.f32 %v17122_v20, %v17218_v11  ;;  %v19812_v20 = vsub.f32 %v17032_v21, %v17220_v44 }
0x1887   : > { %19785 = vst [vmem:[#allocation48_spill] sm:$0xff] %v17320_v30  ;;  %v17333_v38 = vpop.eup %9503 }
0x1888   : > { %v7695_v31 = vadd.f32 %v17320_v30, %v7694_v1  ;;  %19791 = vst [vmem:[#allocation47_spill] sm:$0xff] %v17333_v38  ;;  %v7610_v1 = vmul.f32 1.442695, %v7524_v4  ;;  %v17349_v58 = vpop.eup %9505  ;;  %v19804_v30 = vld [vmem:[#allocation60_spill] sm:$0xff]  ;;  %v19805_v4 = vld [vmem:[#allocation62_spill] sm:$0xff] }
0x1889   : > { %19797 = vst [vmem:[#allocation68_spill] sm:$0xff] %v17349_v58  ;;  %v17365_v62 = vpop.eup %9507  ;;  %v7618_v28 = vmul.f32 1.442695, %v19806_v17  ;;  %v7630_v17 = vmul.f32 1.442695, %v19809_v14 }
0x188a   : > { %v7696_v2 = vadd.f32 %v17333_v38, %v7695_v31  ;;  %v19801_v31 = vsub.f32 %v17098_v25, %v17218_v11  ;;  %9519 = vpow2.f32 %v7610_v1 }
0x188c   : > { %v7614_v38 = vmul.f32 1.442695, %v19801_v31  ;;  %v7697_v36 = vadd.f32 %v17349_v58, %v7696_v2  ;;  %v17374_v31 = vpop.eup %9509 }
0x188d   : > { %v17380_v58 = vpop.eup %9511 }
0x188e   : > { %v7698_v2 = vadd.f32 %v17365_v62, %v7697_v36  ;;  %9521 = vpow2.f32 %v7614_v38  ;;  %v17386_v23 = vpop.eup %9513  ;;  %v19808_v36 = vsub.f32 %v17116_v54, %v17218_v11 }
0x188f   : > { %9523 = vpow2.f32 %v7618_v28  ;;  %v17395_v38 = vpop.eup %9515  ;;  %v19811_v28 = vsub.f32 %v17028_v61, %v17220_v44  ;;  %v19814_v61 = vsub.f32 %v17038_v15, %v17220_v44 }
0x1890   : > { %v7699_v40 = vadd.f32 %v17374_v31, %v7698_v2  ;;  %v7626_v1 = vmul.f32 1.442695, %v19808_v36  ;;  %9525 = vpow2.f32 %v7622_v53  ;;  %v17404_v36 = vpop.eup %9517  ;;  %v19813_v53 = vsub.f32 %v17134_v12, %v17218_v11 }
0x1891   : > { %v7568_v54 = vmul.f32 1.442695, %v19811_v28  ;;  %v19817_v12 = vsub.f32 %v17046_v5, %v17220_v44 }
0x1892   : > { %v7700_v25 = vadd.f32 %v17380_v58, %v7699_v40  ;;  %9527 = vpow2.f32 %v7626_v1  ;;  %v7638_v14 = vmul.f32 1.442695, %v19813_v53  ;;  %v19815_v1 = vsub.f32 %v17140_v56, %v17218_v11 }
0x1893   : > { %9529 = vpow2.f32 %v7630_v17  ;;  %v19820_v56 = vsub.f32 %v17053_v32, %v17220_v44 }
0x1894   : > { %v7701_v2 = vadd.f32 %v17386_v23, %v7700_v25  ;;  %v7572_v25 = vmul.f32 1.442695, %v19812_v20  ;;  %v17413_v48 = vpop.eup %9519  ;;  %9531 = vpow2.f32 %v7634_v49  ;;  %v7642_v28 = vmul.f32 1.442695, %v19815_v1 }
0x1895   : > { %9533 = vpow2.f32 %v7568_v54  ;;  %v19818_v49 = vsub.f32 %v17146_v51, %v17218_v11  ;;  %v7584_v54 = vmul.f32 1.442695, %v19820_v56  ;;  %v19822_v51 = vsub.f32 %v17059_v22, %v17220_v44 }
0x1896   : > { %v7702_v40 = vadd.f32 %v17395_v38, %v7701_v2  ;;  %v7576_v2 = vmul.f32 1.442695, %v19814_v61  ;;  %9535 = vpow2.f32 %v7572_v25  ;;  %v19821_v25 = vsub.f32 %v17152_v7, %v17218_v11 }
0x1897   : > { %9537 = vpow2.f32 %v7638_v14  ;;  %v7646_v15 = vmul.f32 1.442695, %v19818_v49  ;;  %v7588_v61 = vmul.f32 1.442695, %v19822_v51  ;;  %v19824_v7 = vsub.f32 %v17065_v41, %v17220_v44 }
0x1898   : > { %v7703_v3 = vadd.f32 %v17404_v36, %v7702_v40  ;;  %v17422_v17 = vpop.eup %9521  ;;  %v7580_v40 = vmul.f32 1.442695, %v19817_v12  ;;  %9539 = vpow2.f32 %v7576_v2  ;;  %v7650_v5 = vmul.f32 1.442695, %v19821_v25 }
0x1899   : > { %19816 = vst [vmem:[#allocation30_spill] sm:$0xff] %v17422_v17  ;;  %v17431_v53 = vpop.eup %9523  ;;  %9541 = vpow2.f32 %v7642_v28  ;;  %v19823_v2 = vsub.f32 %v17158_v47, %v17218_v11  ;;  %v19825_v22 = vsub.f32 %v17164_v27, %v17218_v11  ;;  %v19827_v41 = vsub.f32 %v17170_v18, %v17218_v11 }
0x189a   : > { %v7704_v21 = vadd.f32 %v17413_v48, %v7703_v3  ;;  %19819 = vst [vmem:[#allocation61_spill] sm:$0xff] %v17431_v53  ;;  %v17440_v3 = vpop.eup %9525  ;;  %9543 = vpow2.f32 %v7580_v40 }
0x189b   : > { %9545 = vpow2.f32 %v7646_v15  ;;  %v7654_v32 = vmul.f32 1.442695, %v19823_v2  ;;  %v7658_v40 = vmul.f32 1.442695, %v19825_v22  ;;  %v19826_v15 = vsub.f32 %v17071_v0, %v17220_v44 }
0x189c   : > { %v7705_v20 = vadd.f32 %v17422_v17, %v7704_v21  ;;  %v17449_v28 = vpop.eup %9527  ;;  %9547 = vpow2.f32 %v7584_v54  ;;  %v7592_v21 = vmul.f32 1.442695, %v19824_v7  ;;  %v7662_v54 = vmul.f32 1.442695, %v19827_v41 }
0x189d   : > { %v17454_v12 = vpop.eup %9529  ;;  %9549 = vpow2.f32 %v7650_v5  ;;  %v19828_v5 = vsub.f32 %v17077_v57, %v17220_v44  ;;  %v19829_v0 = vsub.f32 %v17176_v29, %v17218_v11  ;;  %v19833_v41 = vsub.f32 %v17188_v63, %v17218_v11 }
0x189e   : > { %v7706_v14 = vadd.f32 %v17431_v53, %v7705_v20  ;;  %v17460_v47 = vpop.eup %9531  ;;  %9551 = vpow2.f32 %v7588_v61  ;;  %v7596_v20 = vmul.f32 1.442695, %v19826_v15  ;;  %v19832_v15 = vsub.f32 %v17089_v34, %v17220_v44 }
0x189f   : > { %v17465_v56 = vpop.eup %9533  ;;  %9553 = vpow2.f32 %v7654_v32  ;;  %v7666_v61 = vmul.f32 1.442695, %v19829_v0 }
0x18a0   : > { %v7707_v1 = vadd.f32 %v17440_v3, %v7706_v14  ;;  %v17471_v27 = vpop.eup %9535  ;;  %9555 = vpow2.f32 %v7592_v21  ;;  %v7600_v14 = vmul.f32 1.442695, %v19828_v5  ;;  %v19831_v21 = vsub.f32 %v17182_v16, %v17218_v11 }
0x18a1   : > { %v17476_v51 = vpop.eup %9537  ;;  %9557 = vpow2.f32 %v7658_v40  ;;  %v7731_v18 = vadd.f32 %v17471_v27, %v17465_v56 }
0x18a2   : > { %v7708_v49 = vadd.f32 %v17449_v28, %v7707_v1  ;;  %v17484_v32 = vpop.eup %9539  ;;  %9559 = vpow2.f32 %v7596_v20  ;;  %v19830_v1 = vsub.f32 %v17083_v35, %v17220_v44  ;;  %v7670_v29 = vmul.f32 1.442695, %v19831_v21 }
0x18a3   : > { %v17489_v7 = vpop.eup %9541  ;;  %9561 = vpow2.f32 %v7662_v54  ;;  %v7732_v40 = vadd.f32 %v17484_v32, %v7731_v18  ;;  %v7608_v20 = vmul.f32 1.442695, %v19832_v15  ;;  %v7674_v54 = vmul.f32 1.442695, %v19833_v41 }
0x18a4   : > { %v7709_v25 = vadd.f32 %v17454_v12, %v7708_v49  ;;  %v7604_v57 = vmul.f32 1.442695, %v19830_v1  ;;  %v17496_v49 = vpop.eup %9543  ;;  %9563 = vpow2.f32 %v7600_v14  ;;  %v19834_v14 = vsub.f32 %v19782_v9, %v17220_v44 }
0x18a5   : > { %v17501_v35 = vpop.eup %9545  ;;  %9565 = vpow2.f32 %v7666_v61  ;;  %v19835_v61 = vsub.f32 %v17194_v24, %v17218_v11 }
0x18a6   : > { %v7710_v2 = vadd.f32 %v17460_v47, %v7709_v25  ;;  %v7733_v25 = vadd.f32 %v17496_v49, %v7732_v40  ;;  %v17508_v5 = vpop.eup %9547  ;;  %9567 = vpow2.f32 %v7604_v57  ;;  %v7612_v0 = vmul.f32 1.442695, %v19834_v14 }
0x18a7   : > { %v17513_v34 = vpop.eup %9549  ;;  %9569 = vpow2.f32 %v7670_v29  ;;  %v19836_v57 = vsub.f32 %v19783_v26, %v17220_v44  ;;  %v19837_v29 = vsub.f32 %v17200_v33, %v17218_v11 }
0x18a8   : > { %v7711_v22 = vadd.f32 %v17476_v51, %v7710_v2  ;;  %v7678_v2 = vmul.f32 1.442695, %v19835_v61  ;;  %v7734_v18 = vadd.f32 %v17508_v5, %v7733_v25  ;;  %v17520_v1 = vpop.eup %9551  ;;  %9571 = vpow2.f32 %v7608_v20 }
0x18a9   : > { %v7616_v21 = vmul.f32 1.442695, %v19836_v57  ;;  %v17525_v9 = vpop.eup %9553  ;;  %9573 = vpow2.f32 %v7674_v54  ;;  %v19838_v20 = vsub.f32 %v19784_v55, %v17220_v44  ;;  %v19839_v54 = vsub.f32 %v17206_v39, %v17218_v11 }
0x18aa   : > { %v7712_v16 = vadd.f32 %v17489_v7, %v7711_v22  ;;  %v7682_v22 = vmul.f32 1.442695, %v19837_v29  ;;  %v7735_v40 = vadd.f32 %v17520_v1, %v7734_v18  ;;  %v17532_v15 = vpop.eup %9555  ;;  %9575 = vpow2.f32 %v7612_v0 }
0x18ab   : > { %v7620_v41 = vmul.f32 1.442695, %v19838_v20  ;;  %v17537_v26 = vpop.eup %9557  ;;  %9577 = vpow2.f32 %v7678_v2  ;;  %v19840_v0 = vsub.f32 %v19786_v43, %v17220_v44  ;;  %v19841_v2 = vsub.f32 %v17212_v52, %v17218_v11 }
0x18ac   : > { %v7713_v63 = vadd.f32 %v17501_v35, %v7712_v16  ;;  %v7686_v16 = vmul.f32 1.442695, %v19839_v54  ;;  %v7736_v25 = vadd.f32 %v17532_v15, %v7735_v40  ;;  %v17544_v14 = vpop.eup %9559  ;;  %9579 = vpow2.f32 %v7616_v21 }
0x18ad   : > { %v7624_v61 = vmul.f32 1.442695, %v19840_v0  ;;  %v17549_v55 = vpop.eup %9561  ;;  %9581 = vpow2.f32 %v7682_v22  ;;  %v19842_v21 = vsub.f32 %v19787_v8, %v17220_v44  ;;  %v19843_v11 = vsub.f32 %v19788_v37, %v17220_v44 }
0x18ae   : > { %v7714_v24 = vadd.f32 %v17513_v34, %v7713_v63  ;;  %v7690_v63 = vmul.f32 1.442695, %v19841_v2  ;;  %v7737_v18 = vadd.f32 %v17544_v14, %v7736_v25  ;;  %v17556_v57 = vpop.eup %9563  ;;  %9583 = vpow2.f32 %v7620_v41 }
0x18af   : > { %v7628_v29 = vmul.f32 1.442695, %v19842_v21  ;;  %v17561_v43 = vpop.eup %9565  ;;  %9585 = vpow2.f32 %v7686_v16  ;;  %v7632_v40 = vmul.f32 1.442695, %v19843_v11  ;;  %v19844_v16 = vsub.f32 %v19789_v10, %v17220_v44 }
0x18b0   : > { %v7715_v33 = vadd.f32 %v17525_v9, %v7714_v24  ;;  %v7738_v24 = vadd.f32 %v17556_v57, %v7737_v18  ;;  %v17565_v52 = vpop.eup %9567  ;;  %9587 = vpow2.f32 %v7624_v61  ;;  %v19845_v2 = vsub.f32 %v19790_v60, %v17220_v44 }
0x18b1   : > { %v17570_v20 = vpop.eup %9569  ;;  %9589 = vpow2.f32 %v7690_v63 }
0x18b2   : > { %v7716_v39 = vadd.f32 %v17537_v26, %v7715_v33  ;;  %v7739_v41 = vadd.f32 %v17565_v52, %v7738_v24  ;;  %v17574_v54 = vpop.eup %9571  ;;  %9591 = vpow2.f32 %v7628_v29  ;;  %v7636_v33 = vmul.f32 1.442695, %v19844_v16 }
0x18b3   : > { %v17579_v25 = vpop.eup %9573  ;;  %9593 = vpow2.f32 %v7632_v40  ;;  %v7640_v63 = vmul.f32 1.442695, %v19845_v2  ;;  %v19847_v29 = vsub.f32 %v19792_v42, %v17220_v44 }
0x18b4   : > { %v7717_v22 = vadd.f32 %v17549_v55, %v7716_v39  ;;  %v7740_v37 = vadd.f32 %v17574_v54, %v7739_v41  ;;  %v17583_v61 = vpop.eup %9575  ;;  %9595 = vpow2.f32 %v7636_v33 }
0x18b5   : > { %v17588_v39 = vpop.eup %9577  ;;  %9597 = vpow2.f32 %v7640_v63 }
0x18b6   : > { %v7718_v8 = vadd.f32 %v17561_v43, %v7717_v22  ;;  %v7741_v10 = vadd.f32 %v17583_v61, %v7740_v37  ;;  %v17592_v21 = vpop.eup %9579  ;;  %v7644_v22 = vmul.f32 1.442695, %v19847_v29  ;;  %v19850_v37 = vsub.f32 %v19794_v13, %v17220_v44  ;;  %v19852_v13 = vld [vmem:[#allocation71_spill] sm:$0xff] }
0x18b7   : > { %19846 = vst [vmem:[#allocation17_spill] sm:$0xff] %v17592_v21  ;;  %v17597_v24 = vpop.eup %9581  ;;  %v19851_v29 = vsub.f32 %v19795_v46, %v17220_v44  ;;  %v19854_v46 = vsub.f32 %v19798_v19, %v17220_v44 }
0x18b8   : > { %v7719_v0 = vadd.f32 %v17570_v20, %v7718_v8  ;;  %v7742_v60 = vadd.f32 %v17592_v21, %v7741_v10  ;;  %v17601_v40 = vpop.eup %9583  ;;  %v19849_v8 = vsub.f32 %v19793_v50, %v17220_v44  ;;  %9599 = vpow2.f32 %v7644_v22 }
0x18b9   : > { %19848 = vst [vmem:[#allocation57_spill] sm:$0xff] %v17601_v40  ;;  %v17606_v16 = vpop.eup %9585  ;;  %v7652_v2 = vmul.f32 1.442695, %v19850_v37  ;;  %v19853_v37 = vsub.f32 %v19852_v13, %v17220_v44 }
0x18ba   : > { %v7720_v18 = vadd.f32 %v17579_v25, %v7719_v0  ;;  %v7648_v41 = vmul.f32 1.442695, %v19849_v8  ;;  %v7743_v42 = vadd.f32 %v17601_v40, %v7742_v60  ;;  %v17610_v0 = vpop.eup %9587 }
0x18bc   : > { %v7721_v11 = vadd.f32 %v17588_v39, %v7720_v18  ;;  %v17615_v18 = vpop.eup %9589  ;;  %v7744_v50 = vadd.f32 %v17610_v0, %v7743_v42  ;;  %9601 = vpow2.f32 %v7648_v41  ;;  %v7664_v41 = vmul.f32 1.442695, %v19854_v46 }
0x18bd   : > { %v17619_v10 = vpop.eup %9591  ;;  %9603 = vpow2.f32 %v7652_v2  ;;  %v19855_v2 = vsub.f32 %v19799_v59, %v17220_v44  ;;  %v19858_v59 = vsub.f32 %v19802_v45, %v17220_v44 }
0x18be   : > { %v7722_v33 = vadd.f32 %v17597_v24, %v7721_v11  ;;  %v7656_v11 = vmul.f32 1.442695, %v19851_v29  ;;  %v7745_v22 = vadd.f32 %v17619_v10, %v7744_v50  ;;  %v17626_v8 = vpop.eup %9593 }
0x18bf   : > { %v17632_v17 = vpop.eup %9595  ;;  %v7668_v13 = vmul.f32 1.442695, %v19855_v2 }
0x18c0   : > { %v7723_v63 = vadd.f32 %v17606_v16, %v7722_v33  ;;  %v7660_v33 = vmul.f32 1.442695, %v19853_v37  ;;  %v7746_v42 = vadd.f32 %v17626_v8, %v7745_v22  ;;  %9605 = vpow2.f32 %v7656_v11  ;;  %v17638_v29 = vpop.eup %9597  ;;  %v19856_v11 = vld [vmem:[#allocation46_spill] sm:$0xff] }
0x18c1   : > { %v19857_v19 = vsub.f32 %v19856_v11, %v17220_v44 }
0x18c2   : > { %v7724_v60 = vadd.f32 %v17615_v18, %v7723_v63  ;;  %v7747_v50 = vadd.f32 %v17632_v17, %v7746_v42  ;;  %9607 = vpow2.f32 %v7660_v33  ;;  %v17644_v40 = vpop.eup %9599  ;;  %v7676_v33 = vmul.f32 1.442695, %v19858_v59 }
0x18c3   : > { %9609 = vpow2.f32 %v7664_v41  ;;  %v7672_v46 = vmul.f32 1.442695, %v19857_v19  ;;  %v19859_v41 = vsub.f32 %v19803_v6, %v17220_v44 }
0x18c4   : > { %v7725_v53 = vrot.slane %v7724_v60, 4  ;;  %v7748_v22 = vadd.f32 %v17638_v29, %v7747_v50  ;;  %9611 = vpow2.f32 %v7668_v13 }
0x18c5   : > { %9613 = vpow2.f32 %v7672_v46  ;;  %v7680_v11 = vmul.f32 1.442695, %v19859_v41  ;;  %v19861_v46 = vsub.f32 %v19805_v4, %v17220_v44 }
0x18c6   : > { %v7726_v63 = vadd.f32 %v7725_v53, %v7724_v60  ;;  %v7749_v60 = vadd.f32 %v17644_v40, %v7748_v22  ;;  %v17650_v42 = vpop.eup %9601  ;;  %9615 = vpow2.f32 %v7676_v33 }
0x18c7   : > { %v17656_v21 = vpop.eup %9603  ;;  %9617 = vpow2.f32 %v7680_v11  ;;  %v7688_v6 = vmul.f32 1.442695, %v19861_v46 }
0x18c8   : > { %v7727_v37 = vrot.slane %v7726_v63, 2  ;;  %v7750_v50 = vadd.f32 %v17650_v42, %v7749_v60 }
0x18ca   : > { %v7728_v53 = vadd.f32 %v7727_v37, %v7726_v63  ;;  %v19860_v63 = vsub.f32 %v19804_v30, %v17220_v44  ;;  %v7751_v13 = vadd.f32 %v17656_v21, %v7750_v50  ;;  %v17665_v22 = vpop.eup %9605  ;;  %v19862_v50 = vld [vmem:[#allocation29_spill] sm:$0xff] }
0x18cb   : > { %v19863_v41 = vsub.f32 %v19862_v50, %v17220_v44 }
0x18cc   : > { %v7729_v2 = vrot.slane %v7728_v53, 1  ;;  %v7684_v37 = vmul.f32 1.442695, %v19860_v63  ;;  %v7752_v19 = vadd.f32 %v17665_v22, %v7751_v13  ;;  %v17668_v60 = vpop.eup %9607 }
0x18cd   : > { %v17674_v30 = vpop.eup %9609 }
0x18ce   : > { %v7730_v45 = vadd.f32 %v7729_v2, %v7728_v53  ;;  %9619 = vpow2.f32 %v7684_v37  ;;  %v7753_v59 = vadd.f32 %v17668_v60, %v7752_v19  ;;  %v7692_v53 = vmul.f32 1.442695, %v19863_v41  ;;  %v17680_v2 = vpop.eup %9611 }
0x18cf   : > { %v17683_v63 = vpop.eup %9613 }
0x18d0   : > { %9621 = vrcp.f32 %v7730_v45  ;;  %v7754_v33 = vadd.f32 %v17674_v30, %v7753_v59  ;;  %v17686_v37 = vpop.eup %9615 }
0x18d1   : > { %9623 = vpow2.f32 %v7688_v6  ;;  %v17689_v45 = vpop.eup %9617 }
0x18d2   : > { %v7755_v11 = vadd.f32 %v17680_v2, %v7754_v33  ;;  %9625 = vpow2.f32 %v7692_v53 }
0x18d4   : > { %v7756_v4 = vadd.f32 %v17683_v63, %v7755_v11 }
0x18d6   : > { %v7757_v13 = vadd.f32 %v17686_v37, %v7756_v4 }
0x18d8   : > { %v17691_v44 = vpop.eup %9619  ;;  %v7758_v19 = vadd.f32 %v17689_v45, %v7757_v13 }
0x18da   : > { %v17694_v46 = vpop.eup %9621  ;;  %v7759_v6 = vadd.f32 %v17691_v44, %v7758_v19 }
0x18db   : > { %v17697_v59 = vpop.eup %9623  ;;  %v17702_v41 = vmul.f32 %v17694_v46, %v17440_v3  ;;  %v17706_v53 = vmul.f32 %v17694_v46, %v17449_v28  ;;  %v17712_v11 = vmul.f32 %v17694_v46, %v17454_v12  ;;  %v17716_v4 = vmul.f32 %v17694_v46, %v17460_v47 }
0x18dc   : > { %v7760_v50 = vadd.f32 %v17697_v59, %v7759_v6  ;;  %v17708_v33 = vpop.eup %9625  ;;  %v17723_v19 = vmul.f32 %v17694_v46, %v17476_v51  ;;  %v17727_v28 = vmul.f32 %v17694_v46, %v17489_v7  ;;  %v17733_v47 = vmul.f32 %v17694_v46, %v17501_v35 }
0x18dd   : > { %v17737_v6 = vmul.f32 %v17694_v46, %v17513_v34  ;;  %v17747_v3 = vmul.f32 %v17694_v46, %v17537_v26  ;;  %v17751_v35 = vmul.f32 %v17694_v46, %v17549_v55  ;;  %v17757_v12 = vmul.f32 %v17694_v46, %v17561_v43 }
0x18de   : > { %v7761_v13 = vadd.f32 %v17708_v33, %v7760_v50  ;;  %19864 = vst [vmem:[#allocation50_spill] sm:$0xff] %v17723_v19  ;;  %v17741_v50 = vmul.f32 %v17694_v46, %v17525_v9  ;;  %v17761_v9 = vmul.f32 %v17694_v46, %v17570_v20  ;;  %v17765_v7 = vmul.f32 %v17694_v46, %v17579_v25 }
0x18df   : > { %19866 = vst [vmem:[#allocation11_spill] sm:$0xff] %v17747_v3  ;;  %19867 = vst [vmem:[#allocation45_spill] sm:$0xff] %v17751_v35  ;;  %v17771_v19 = vmul.f32 %v17694_v46, %v17588_v39  ;;  %v17775_v43 = vmul.f32 %v17694_v46, %v17597_v24  ;;  %v17783_v25 = vmul.f32 %v17694_v46, %v17606_v16  ;;  %v19874_v3 = vld [vmem:[#allocation47_spill] sm:$0xff] }
0x18e0   : > { %19865 = vst [vmem:[#allocation53_spill] sm:$0xff] %v17741_v50  ;;  %v7762_v51 = vrot.slane %v7761_v13, 4  ;;  %19868 = vst [vmem:[#allocation3_spill] sm:$0xff] %v17757_v12  ;;  %v19873_v12 = vld [vmem:[#allocation48_spill] sm:$0xff] }
0x18e1   : > { %19869 = vst [vmem:[#allocation56_spill] sm:$0xff] %v17761_v9  ;;  %19870 = vst [vmem:[#allocation31_spill] sm:$0xff] %v17765_v7  ;;  %v19871_v9 = vld [vmem:[#allocation70_spill] sm:$0xff]  ;;  %v19872_v7 = vld [vmem:[#allocation28_spill] sm:$0xff]  ;;  %v7774_v50 = vmul.f32 %v17694_v46, %v19873_v12 }
0x18e2   : > { %v7763_v26 = vadd.f32 %v7762_v51, %v7761_v13  ;;  %v17787_v13 = vmul.f32 %v17694_v46, %v17615_v18  ;;  %v7770_v16 = vmul.f32 %v17694_v46, %v19871_v9  ;;  %v7772_v18 = vmul.f32 %v17694_v46, %v19872_v7 }
0x18e3   : > { %v7776_v51 = vmul.f32 %v17694_v46, %v19874_v3 }
0x18e4   : > { %v7764_v39 = vrot.slane %v7763_v26, 2  ;;  %v7834_v3 = vpack.c.bf16 %v7772_v18, %v7770_v16 }
0x18e6   : > { %v7765_v55 = vadd.f32 %v7764_v39, %v7763_v26  ;;  %v19875_v39 = vld [vmem:[#allocation68_spill] sm:$0xff] }
0x18e8   : > { %v7766_v20 = vrot.slane %v7765_v55, 1 }
0x18ea   : > { %v7767_v35 = vadd.f32 %v7766_v20, %v7765_v55 }
0x18ec   : > { %9627 = vrcp.f32 %v7767_v35 }
0x18f6   : > { %v17793_v34 = vpop.eup %9627 }
0x18f7   : > { %v7771_v26 = vmul.f32 %v17793_v34, %v17465_v56  ;;  %v7773_v35 = vmul.f32 %v17793_v34, %v17471_v27  ;;  %v7775_v55 = vmul.f32 %v17793_v34, %v17484_v32  ;;  %v7777_v9 = vmul.f32 %v17793_v34, %v17496_v49 }
0x18f8   : > { %v7779_v7 = vmul.f32 %v17793_v34, %v17508_v5  ;;  %v7781_v12 = vmul.f32 %v17793_v34, %v17520_v1  ;;  %v7778_v56 = vmul.f32 %v17694_v46, %v19875_v39  ;;  %v7780_v27 = vmul.f32 %v17694_v46, %v17365_v62 }
0x18f9   : > { %v7835_v20 = vpack.c.bf16 %v7773_v35, %v7771_v26  ;;  %v7782_v32 = vmul.f32 %v17694_v46, %v17374_v31  ;;  %v7837_v24 = vpack.c.bf16 %v7777_v9, %v7775_v55  ;;  %v7836_v49 = vpack.c.bf16 %v7776_v51, %v7774_v50 }
0x18fa   : > { %v7783_v26 = vmul.f32 %v17793_v34, %v17532_v15  ;;  %v17825_v5 = vmul.f32 %v17793_v34, %v17610_v0  ;;  %v7785_v1 = vmul.f32 %v17793_v34, %v17544_v14  ;;  %v7801_v62 = vmul.f32 %v17793_v34, %v17619_v10 }
0x18fb   : > { %7866 = vmatprep.subr.bf16.mxu1 %v7835_v20  ;;  %v7803_v31 = vmul.f32 %v17793_v34, %v17626_v8  ;;  %v7805_v50 = vmul.f32 %v17793_v34, %v17632_v17  ;;  %v7839_v51 = vpack.c.bf16 %v7781_v12, %v7779_v7  ;;  %v7807_v15 = vmul.f32 %v17793_v34, %v17638_v29 }
0x18fc   : > { %7867 = vmatpush1.bf16.msra.mxu1 %v7834_v3  ;;  %v7809_v0 = vmul.f32 %v17793_v34, %v17644_v40  ;;  %v7811_v14 = vmul.f32 %v17793_v34, %v17650_v42  ;;  %v7849_v16 = vpack.c.bf16 %v7801_v62, %v17825_v5  ;;  %v7813_v8 = vmul.f32 %v17793_v34, %v17656_v21  ;;  %v19879_v62 = vld [vmem:[#allocation61_spill] sm:$0xff] }
0x18fd   : > { %7868 = vmatprep.subr.bf16.mxu1 %v7837_v24  ;;  %v7851_v10 = vpack.c.bf16 %v7805_v50, %v7803_v31  ;;  %v7815_v17 = vmul.f32 %v17793_v34, %v17665_v22  ;;  %v7817_v18 = vmul.f32 %v17793_v34, %v17668_v60  ;;  %v7819_v29 = vmul.f32 %v17793_v34, %v17674_v30 }
0x18fe   : > { %v7853_v24 = vpack.c.bf16 %v7809_v0, %v7807_v15  ;;  %v7821_v40 = vmul.f32 %v17793_v34, %v17680_v2  ;;  %v7855_v42 = vpack.c.bf16 %v7813_v8, %v7811_v14  ;;  %v7823_v35 = vmul.f32 %v17793_v34, %v17683_v63  ;;  %v19885_v0 = vld [vmem:[#allocation11_spill] sm:$0xff]  ;;  %v19886_v14 = vld [vmem:[#allocation53_spill] sm:$0xff] }
0x18ff   : > { %v7825_v21 = vmul.f32 %v17793_v34, %v17686_v37  ;;  %v7827_v22 = vmul.f32 %v17793_v34, %v17689_v45  ;;  %v7857_v55 = vpack.c.bf16 %v7817_v18, %v7815_v17  ;;  %v7829_v30 = vmul.f32 %v17793_v34, %v17691_v44  ;;  %v19896_v8 = vld [vmem:[#allocation33_spill] sm:$0xff]  ;;  %v19898_v18 = vld [vmem:[#allocation44_spill] sm:$0xff] }
0x1900   : > { %7869 = vmatpush1.bf16.msra.mxu1 %v7836_v49  ;;  %v7859_v60 = vpack.c.bf16 %v7821_v40, %v7819_v29  ;;  %v7831_v2 = vmul.f32 %v17793_v34, %v17697_v59  ;;  %v7838_v9 = vpack.c.bf16 %v7780_v27, %v7778_v56  ;;  %v7784_v20 = vmul.f32 %v17694_v46, %v17380_v58  ;;  %v19876_v49 = vld [vmem:[#allocation17_spill] sm:$0xff]  ;;  %v19900_v40 = vld [vmem:[#allocation19_spill] sm:$0xff] }
0x1901   : > { %7870 = vmatprep.subr.bf16.mxu1 %v7839_v51  ;;  %v7861_v63 = vpack.c.bf16 %v7825_v21, %v7823_v35  ;;  %v7833_v37 = vmul.f32 %v17793_v34, %v17708_v33  ;;  %v7841_v7 = vpack.c.bf16 %v7785_v1, %v7783_v26  ;;  %v7787_v45 = vmul.f32 %v17793_v34, %v17556_v57  ;;  %v19877_v26 = vld [vmem:[#allocation57_spill] sm:$0xff]  ;;  %v19882_v51 = vld [vmem:[#allocation50_spill] sm:$0xff] }
0x1902   : > { %v7789_v12 = vmul.f32 %v17793_v34, %v17565_v52  ;;  %v7863_v3 = vpack.c.bf16 %v7829_v30, %v7827_v22  ;;  %v7840_v59 = vpack.c.bf16 %v7784_v20, %v7782_v32  ;;  %v7786_v39 = vmul.f32 %v17694_v46, %v17386_v23 }
0x1903   : > { %v7865_v44 = vpack.c.bf16 %v7833_v37, %v7831_v2  ;;  %v7788_v58 = vmul.f32 %v17694_v46, %v17395_v38  ;;  %v7791_v33 = vmul.f32 %v17793_v34, %v17574_v54  ;;  %v7793_v57 = vmul.f32 %v17793_v34, %v17583_v61  ;;  %v19878_v61 = vld [vmem:[#allocation30_spill] sm:$0xff]  ;;  %v8535_v2 = vld [vmem:[%s17983_s11 + $0x10] sm:$0xff]  }
0x1904   : > { %7871 = vmatpush1.bf16.msra.mxu1 %v7838_v9  ;;  %v7843_v56 = vpack.c.bf16 %v7789_v12, %v7787_v45  ;;  %v7790_v27 = vmul.f32 %v17694_v46, %v17404_v36  ;;  %v7792_v32 = vmul.f32 %v17694_v46, %v17413_v48  ;;  %v7795_v38 = vmul.f32 %v17793_v34, %v19876_v49  ;;  %v8536_v9 = vld [vmem:[%s17983_s11 + $0x18] sm:$0xff]  }
0x1905   : > { %7872 = vmatprep.subr.bf16.mxu1 %v7841_v7  ;;  %v7842_v52 = vpack.c.bf16 %v7788_v58, %v7786_v39  ;;  %v7845_v23 = vpack.c.bf16 %v7793_v57, %v7791_v33  ;;  %v7797_v5 = vmul.f32 %v17793_v34, %v19877_v26  ;;  %v7794_v1 = vmul.f32 %v17694_v46, %v19878_v61  ;;  %v7939_v7 = vpop.permute.xlu0 %7938  ;;  %v19906_v58 = vld [vmem:[#allocation22_spill] sm:$0xff]  ;;  %v19907_v33 = vld [vmem:[#allocation64_spill] sm:$0xff] }
0x1906   : > { %v7844_v54 = vpack.c.bf16 %v7792_v32, %v7790_v27  ;;  %v7796_v31 = vmul.f32 %v17694_v46, %v19879_v62  ;;  %v19880_v50 = vpack.c.bf16 %v17706_v53, %v17702_v41  ;;  %v19881_v34 = vpack.c.bf16 %v17716_v4, %v17712_v11  ;;  %v19888_v53 = vld [vmem:[#allocation3_spill] sm:$0xff] }
0x1907   : > { %v7847_v36 = vpack.c.bf16 %v7797_v5, %v7795_v38  ;;  %v19883_v15 = vpack.c.bf16 %v17727_v28, %v19882_v51  ;;  %v19884_v46 = vpack.c.bf16 %v17737_v6, %v17733_v47  ;;  %v19887_v41 = vpack.c.bf16 %v19885_v0, %v19886_v14  ;;  %v19891_v4 = vld [vmem:[#allocation31_spill] sm:$0xff]  ;;  %v19912_v0 = vld [vmem:[#allocation65_spill] sm:$0xff] }
0x1908   : > { %7873 = vmatpush1.bf16.msra.mxu1 %v7840_v59  ;;  %v7846_v48 = vpack.c.bf16 %v7796_v31, %v7794_v1  ;;  %v19894_v47 = vpack.c.bf16 %v17775_v43, %v17771_v19  ;;  %v19895_v6 = vpack.c.bf16 %v17787_v13, %v17783_v25  ;;  %v7147_v17 = vpack.c.bf16 %v19896_v8, %v19896_v8  ;;  %v19904_v43 = vld [vmem:[#allocation39_spill] sm:$0xff] }
0x1909   : > { %7874 = vmatprep.subr.bf16.mxu1 %v7843_v56  ;;  %v19903_v21 = vmov 0   ;;  %v19905_v25 = vld [vmem:[#allocation27_spill] sm:$0xff]  ;;  %v7949_v61 = vpop.permute.xlu0 %7948 }
0x190a   : > { %v19909_v32 = vld [vmem:[#allocation15_spill] sm:$0xff] }
0x190c   : > { %7875 = vmatpush1.bf16.msra.mxu1 %v7842_v52  ;;  %v19908_v52 = vld [vmem:[#allocation12_spill] sm:$0xff] }
0x190d   : > { %7876 = vmatprep.subr.bf16.mxu1 %v7845_v23 }
0x1910   : > { %7877 = vmatpush1.bf16.msra.mxu1 %v7844_v54 }
0x1911   : > { %7878 = vmatprep.subr.bf16.mxu1 %v7847_v36 }
0x1914   : > { %7879 = vmatpush1.bf16.msra.mxu1 %v7846_v48 }
0x1915   : > { %7880 = vmatprep.subr.bf16.mxu1 %v7849_v16  ;;  %v19889_v16 = vld [vmem:[#allocation45_spill] sm:$0xff] }
0x1916   : > { %v19890_v11 = vpack.c.bf16 %v19888_v53, %v19889_v16 }
0x1918   : > { %7881 = vmatpush1.bf16.msra.mxu1 %v19880_v50 }
0x1919   : > { %7882 = vmatprep.subr.bf16.mxu1 %v7851_v10  ;;  %v19892_v10 = vld [vmem:[#allocation56_spill] sm:$0xff] }
0x191a   : > { %v19893_v28 = vpack.c.bf16 %v19891_v4, %v19892_v10  ;;  %v8537_v4 = vld [vmem:[%s17985_s13 + $0x10] sm:$0xff]   ;;  %v8538_v10 = vld [vmem:[%s17985_s13 + $0x18] sm:$0xff]  }
0x191c   : > { %7883 = vmatpush1.bf16.msra.mxu1 %v19881_v34  ;;  %v19910_v34 = vld [vmem:[#allocation16_spill] sm:$0xff] }
0x191d   : > { %7884 = vmatprep.subr.bf16.mxu1 %v7853_v24  ;;  %v19897_v24 = vld [vmem:[#allocation74_spill] sm:$0xff] }
0x191e   : > { %v19899_v29 = vpack.c.bf16 %v19897_v24, %v19898_v18 }
0x1920   : > { %7885 = vmatpush1.bf16.msra.mxu1 %v19883_v15  ;;  %v19911_v15 = vld [vmem:[#allocation66_spill] sm:$0xff] }
0x1921   : > { %7886 = vmatprep.subr.bf16.mxu1 %v7855_v42  ;;  %v19901_v42 = vld [vmem:[#allocation59_spill] sm:$0xff] }
0x1922   : > { %v19902_v35 = vpack.c.bf16 %v19900_v40, %v19901_v42 }
0x1924   : > { %7887 = vmatpush1.bf16.msra.mxu1 %v19884_v46 }
0x1925   : > { %7888 = vmatprep.subr.bf16.mxu1 %v7857_v55 }
0x1928   : > { %7889 = vmatpush1.bf16.msra.mxu1 %v19887_v41  ;;  %v19913_v41 = vld [vmem:[#allocation58_spill] sm:$0xff] }
0x1929   : > { %7890 = vmatprep.subr.bf16.mxu1 %v7859_v60 }
0x192c   : > { %7891 = vmatpush1.bf16.msra.mxu1 %v19890_v11 }
0x192d   : > { %7892 = vmatprep.subr.bf16.mxu1 %v7861_v63  ;;  %v7934_v63 = vpop.permute.xlu1 %7933 }
0x1930   : > { %7893 = vmatpush1.bf16.msra.mxu1 %v19893_v28 }
0x1931   : > { %7894 = vmatprep.subr.bf16.mxu1 %v7863_v3  ;;  %v7944_v26 = vpop.permute.xlu1 %7943 }
0x1934   : > { %7895 = vmatpush1.bf16.msra.mxu1 %v19894_v47 }
0x1935   : > { %7896 = vmatprep.subr.bf16.mxu1 %v7865_v44 }
0x1938   : > { %7897 = vmatpush1.bf16.msra.mxu1 %v19895_v6 }
0x1939   : > { %7967 = vmatprep.subr.bf16.mxu1 %v19899_v29 }
0x193b   : > { %7899 = vmatmul.mubr.bf16.vlgmr.msra.gmra.mrb[40].mxu1 %v7147_v17 }
0x193c   : > { %7968 = vmatpush1.bf16.msra.mxu1 %v19902_v35  ;;  %7999 = vmatprep.mubr.bf16.mxu1 %v19903_v21 }
0x1a0e   : > { %v7900_v19 = vpop.f32.mrb[40].mxu1 }
0x1a0f   : > { %v7924_v22 = vpack.c.bf16 %v7900_v19, %v19904_v43  ;;  %v7902_v55 = vpop.f32.mrb[41].mxu1  ;;  %v8539_v43 = vld [vmem:[%s17986_s14 + $0x10] sm:$0xff]  }
0x1a10   : > { %v7925_v13 = vpack.c.bf16 %v7902_v55, %v19905_v25  ;;  %v7904_v60 = vpop.f32.mrb[42].mxu1 }
0x1a11   : > { %v7905_v30 = vpop.f32.mrb[43].mxu1 }
0x1a12   : > { %7969 = vmatprep.subr.bf16.mxu1 %v7925_v13 }
0x1a13   : > { %7970 = vmatpush1.bf16.msra.mxu1 %v7924_v22  ;;  %v8540_v22 = vld [vmem:[%s17986_s14 + $0x18] sm:$0xff]  }
0x1a16   : > { %8466 = vmatmul.mubr.msk.bf16.vlgmr.msra.gmra.mrb[44].mxu1 %vm828_vm0, %v8535_v2 }
0x1a17   : > { %8009 = vmatprep.mubr.bf16.mxu1 %v19903_v21 }
0x1a1e   : > { %8467 = vmatmul.mubr.msk.bf16.gmra.mrb[48].mxu1 %vm828_vm0, %v8536_v9 }
0x1a1f   : > { %8085 = vmatprep.mubr.bf16.mxu1 %v19903_v21 }
0x1ae9   : > { %v8001_v20 = vpop.f32.mrb[44].mxu1 }
0x1aea   : > { %v8003_v37 = vpop.f32.mrb[45].mxu1  ;;  %v8002_v3 = vadd.f32 %v8001_v20, %v7934_v63 }
0x1aeb   : > { %v8004_v45 = vadd.f32 %v8003_v37, %v7934_v63  ;;  %v8005_v12 = vpop.f32.mrb[46].mxu1 }
0x1aec   : > { %v8006_v44 = vadd.f32 %v8005_v12, %v7939_v7  ;;  %v8007_v59 = vpop.f32.mrb[47].mxu1  ;;  %v8020_v23 = vadd.f32 %v8002_v3, %v19909_v32 }
0x1aed   : > { %v8008_v39 = vadd.f32 %v8007_v59, %v7939_v7  ;;  %v8021_v57 = vadd.f32 %v8004_v45, %v19907_v33 }
0x1aee   : > { %v8022_v56 = vadd.f32 %v8006_v44, %v19906_v58 }
0x1aef   : > { %v8023_v27 = vadd.f32 %v8008_v39, %v19908_v52 }
0x1af0   : > { %v8033_v5 = vpack.c.bf16 %v8022_v56, %v8020_v23 }
0x1af1   : > { %v8011_v49 = vpop.f32.mrb[48].mxu1  ;;  %v8034_v38 = vpack.c.bf16 %v8023_v27, %v8021_v57 }
0x1af2   : > { %v8013_v54 = vpop.f32.mrb[49].mxu1  ;;  %v8012_v31 = vadd.f32 %v8011_v49, %v7944_v26 }
0x1af3   : > { %v8014_v1 = vadd.f32 %v8013_v54, %v7944_v26  ;;  %v8015_v62 = vpop.f32.mrb[50].mxu1  ;;  %8053 = vmatprep.subr.bf16.mxu1 %v8034_v38 }
0x1af4   : > { %v8016_v36 = vadd.f32 %v8015_v62, %v7949_v61  ;;  %v8017_v48 = vpop.f32.mrb[51].mxu1  ;;  %8054 = vmatpush1.bf16.msra.mxu1 %v8033_v5  ;;  %v8024_v53 = vadd.f32 %v8012_v31, %v19913_v41 }
0x1af5   : > { %v8018_v50 = vadd.f32 %v8017_v48, %v7949_v61  ;;  %v8025_v46 = vadd.f32 %v8014_v1, %v19911_v15 }
0x1af6   : > { %v8026_v51 = vadd.f32 %v8016_v36, %v19910_v34 }
0x1af7   : > { %v8027_v14 = vadd.f32 %v8018_v50, %v19912_v0 }
0x1af8   : > { %v8035_v11 = vpack.c.bf16 %v8026_v51, %v8024_v53 }
0x1af9   : > { %v8036_v16 = vpack.c.bf16 %v8027_v14, %v8025_v46 }
0x1afb   : > { %8055 = vmatprep.subr.bf16.mxu1 %v8036_v16 }
0x1afc   : > { %8056 = vmatpush1.bf16.msra.mxu1 %v8035_v11 }
0x1aff   : > { %8474 = vmatmul.mubr.msk.bf16.vlgmr.msra.gmra.mrb[52].mxu1 %vm828_vm0, %v8537_v4 }
0x1b00   : > { %8095 = vmatprep.mubr.bf16.mxu1 %v19903_v21 }
0x1b07   : > { %8475 = vmatmul.mubr.msk.bf16.gmra.mrb[56].mxu1 %vm828_vm0, %v8538_v10 }
0x1b08   : > { %8163 = vmatprep.mubr.bf16.mxu1 %v19903_v21 }
0x1bd2   : > { %v8087_v28 = vpop.f32.mrb[52].mxu1 }
0x1bd3   : > { %v8089_v47 = vpop.f32.mrb[53].mxu1 }
0x1bd4   : > { %v8091_v6 = vpop.f32.mrb[54].mxu1 }
0x1bd5   : > { %v8111_v8 = vpack.c.bf16 %v8091_v6, %v8087_v28  ;;  %v8093_v17 = vpop.f32.mrb[55].mxu1 }
0x1bd6   : > { %v8112_v24 = vpack.c.bf16 %v8093_v17, %v8089_v47 }
0x1bd8   : > { %8131 = vmatprep.subr.bf16.mxu1 %v8112_v24 }
0x1bd9   : > { %8132 = vmatpush1.bf16.msra.mxu1 %v8111_v8 }
0x1bda   : > { %v8097_v18 = vpop.f32.mrb[56].mxu1 }
0x1bdb   : > { %v8099_v29 = vpop.f32.mrb[57].mxu1 }
0x1bdc   : > { %v8101_v40 = vpop.f32.mrb[58].mxu1 }
0x1bdd   : > { %v8113_v42 = vpack.c.bf16 %v8101_v40, %v8097_v18  ;;  %v8103_v35 = vpop.f32.mrb[59].mxu1 }
0x1bde   : > { %v8114_v19 = vpack.c.bf16 %v8103_v35, %v8099_v29 }
0x1be0   : > { %8133 = vmatprep.subr.bf16.mxu1 %v8114_v19 }
0x1be1   : > { %8134 = vmatpush1.bf16.msra.mxu1 %v8113_v42 }
0x1be4   : > { %8482 = vmatmul.mubr.msk.bf16.vlgmr.msra.gmra.mrb[60].mxu1 %vm828_vm0, %v8539_v43 }
0x1be5   : > { %8173 = vmatprep.mubr.bf16.mxu1 %v19903_v21 }
0x1bec   : > { %8483 = vmatmul.mubr.msk.bf16.gmra.mrb[64].mxu1 %vm828_vm0, %v8540_v22 }
0x1cb7   : > { %v8165_v55 = vpop.f32.mrb[60].mxu1 }
0x1cb8   : > { %v8166_v25 = vadd.f32 %v8165_v55, %v8020_v23  ;;  %v8167_v13 = vpop.f32.mrb[61].mxu1 }
0x1cb9   : > { %v8168_v60 = vadd.f32 %v8167_v13, %v8021_v57  ;;  %v8169_v30 = vpop.f32.mrb[62].mxu1 }
0x1cba   : > { %8184 = vst [vmem:[%s494_s24] sm:$0xff] %v8166_v25  ;;  %v8170_v2 = vadd.f32 %v8169_v30, %v8022_v56  ;;  %v8171_v9 = vpop.f32.mrb[63].mxu1 }
0x1cbb   : > { %8185 = vst [vmem:[%s494_s24 + $0x8] sm:$0xff] %v8168_v60  ;;  %v8172_v21 = vadd.f32 %v8171_v9, %v8023_v27 }
0x1cbc   : > { %8186 = vst [vmem:[%s494_s24 + $0x10] sm:$0xff] %v8170_v2 }
0x1cbd   : > { %8187 = vst [vmem:[%s494_s24 + $0x18] sm:$0xff] %v8172_v21 }
0x1cbf   : > { %v8175_v20 = vpop.f32.mrb[64].mxu1 }
0x1cc0   : > { %v8176_v63 = vadd.f32 %v8175_v20, %v8024_v53  ;;  %v8177_v37 = vpop.f32.mrb[65].mxu1 }
0x1cc1   : > { %v8178_v7 = vadd.f32 %v8177_v37, %v8025_v46  ;;  %v8179_v45 = vpop.f32.mrb[66].mxu1 }
0x1cc2   : > { %8188 = vst [vmem:[%s494_s24 + $0x20] sm:$0xff] %v8176_v63  ;;  %v8180_v12 = vadd.f32 %v8179_v45, %v8026_v51  ;;  %v8181_v3 = vpop.f32.mrb[67].mxu1 }
0x1cc3   : > { %8189 = vst [vmem:[%s494_s24 + $0x28] sm:$0xff] %v8178_v7  ;;  %v8182_v44 = vadd.f32 %v8181_v3, %v8027_v14 }
0x1cc4   : > { %8190 = vst [vmem:[%s494_s24 + $0x30] sm:$0xff] %v8180_v12 }
0x1cc5   : > { %8191 = vst [vmem:[%s494_s24 + $0x38] sm:$0xff] %v8182_v44 }
0x1cc6 PF: > { %s25_s18 = sadd.s32 1, %s9635_s18  }
0x1cc7   : > { %p22_p4 = scmp.ge.s32.totalorder %s25_s18, 4  }
0x1cc9   :  { %24 = sbr.rel (!%p22_p4) target bundleno = 1 (0x1), region = 120 }

</bundles_post_ra>
